<compile_context>
chip_gen: v7x
topology: tpu7x:2x2x1
jax: 0.10.0
libtpu: 0.0.40
codegen_flags: <defaults>
</compile_context>

<pallas_src>
import functools
import math

import jax
import jax.numpy as jnp
from jax.experimental import pallas as pl
from jax.experimental.pallas import tpu as pltpu

_EPS = 1e-5


# ------------------------------ helpers -----------------------------------

def _round_up(x, m):
    return ((x + m - 1) // m) * m


def _choose_tile_m(m):
    """(tile_m, padded_m): multiple of 16, <= 512, >= 2 blocks when possible."""
    mp = _round_up(max(m, 16), 16)
    if mp <= 512:
        return mp, mp
    for tm in range(512, 127, -16):
        if mp % tm == 0:
            return tm, mp
    mp = _round_up(mp, 256)
    return 256, mp


def _choose_tk(k_true, h1p):
    """K tiling for the flattened Linear: single pass if the bf16 weight fits
    ~8 MB, else stream 2048-wide K tiles."""
    k1p = _round_up(k_true, 128)
    if k1p * h1p * 2 <= 8 * 1024 * 1024:
        return k1p, k1p
    k1p = _round_up(k_true, 2048)
    return 2048, k1p


def _fold_bn(w_in_out, b, bn):
    """Fold inference-mode BN into (in, out) weight columns + bias."""
    scale = bn["gamma"] / jnp.sqrt(bn["var"] + _EPS)
    return w_in_out * scale[None, :], (b - bn["mean"]) * scale + bn["beta"]


# ------------------------------ kernels ------------------------------------

def _per_point_kernel(*refs, n_layers):
    """Fused [Conv1d(k=1)+BN+ReLU]*n over one M tile; all weights in VMEM."""
    a_ref = refs[0]
    o_ref = refs[1 + 2 * n_layers]
    h = a_ref[...]
    for l in range(n_layers):
        w = refs[1 + 2 * l][...]
        b = refs[2 + 2 * l][...]
        h = jnp.dot(h, w, preferred_element_type=jnp.float32) + b
        h = jnp.maximum(h, 0.0)
    o_ref[...] = h.astype(o_ref.dtype)


def _flatten_mlp_kernel(*refs, n_tail, first_relu, tail_relu, multi_k):
    """Fused flattened Linear (K optionally streamed) + BN/ReLU + tail
    Linears (+BN+ReLU) + optional fc, all in one kernel."""
    n_in = 3 + 2 * n_tail
    a_ref, w1_ref, b1_ref = refs[0], refs[1], refs[2]
    tail_refs = refs[3:n_in]
    o_ref = refs[n_in]
    acc_ref = refs[n_in + 1] if multi_k else None

    def finish(acc):
        h = acc + b1_ref[...]
        if first_relu:
            h = jnp.maximum(h, 0.0)
        for t in range(n_tail):
            w = tail_refs[2 * t][...]
            b = tail_refs[2 * t + 1][...]
            h = jnp.dot(h, w, preferred_element_type=jnp.float32) + b
            if tail_relu[t]:
                h = jnp.maximum(h, 0.0)
        o_ref[...] = h.astype(o_ref.dtype)

    if multi_k:
        k = pl.program_id(1)

        @pl.when(k == 0)
        def _():
            acc_ref[...] = jnp.zeros_like(acc_ref)

        acc_ref[...] += jnp.dot(a_ref[...], w1_ref[...],
                                preferred_element_type=jnp.float32)

        @pl.when(k == pl.num_programs(1) - 1)
        def _():
            finish(acc_ref[...])
    else:
        finish(jnp.dot(a_ref[...], w1_ref[...],
                       preferred_element_type=jnp.float32))


# ------------------------- parameter preprocessing -------------------------

def prepare_params(params, input_channel, n_points):
    """Fold BN, permute/pad/cast all weights ONCE, outside the jitted fwd."""
    pp_w, pp_b = [], []
    cin = input_channel
    for layer in params["per_point"]:
        cout = layer["w"].shape[0]
        w = layer["w"].reshape(cout, cin).T                     # (cin, cout)
        w, b = _fold_bn(w, layer["b"], layer["bn"])
        cin_p, cout_p = _round_up(cin, 128), _round_up(cout, 128)
        pp_w.append(jnp.pad(w, ((0, cin_p - cin), (0, cout_p - cout)))
                    .astype(jnp.float32))
        pp_b.append(jnp.pad(b, (0, cout_p - cout)).reshape(1, cout_p)
                    .astype(jnp.float32))
        cin = cout
    c_last = cin

    # Stage B = flattened Linear (+BN+ReLU) -> remaining hidden -> optional fc.
    stage = [(l["w"], l["b"], l["bn"], True) for l in params["hidden"]]
    if params.get("fc") is not None:
        stage.append((params["fc"]["w"], params["fc"]["b"], None, False))

    prep = dict(pp_w=pp_w, pp_b=pp_b, w1=None, b1=None, tail_w=[], tail_b=[])
    meta = dict(c_last=c_last, n_pp=len(pp_w), n_stage=len(stage), tk=0,
                first_relu=True, tail_relu=(), out_dim=c_last * n_points)
    if not stage:
        return prep, meta

    # First stage-B layer consumes the flattened per-point output.  Permute
    # its rows from torch's (c*N + n) order to our (n*C + c) order so the
    # activation-side Flatten is a pure reshape.
    w0, b0, bn0, relu0 = stage[0]
    h1, k1 = w0.shape
    assert k1 == c_last * n_points, "Flatten wiring expects N == 20*20*1"
    wt = w0.T.reshape(c_last, n_points, h1).transpose(1, 0, 2).reshape(k1, h1)
    if bn0 is not None:
        wt, b0 = _fold_bn(wt, b0, bn0)
    h1p = _round_up(h1, 128)
    tk, k1p = _choose_tk(k1, h1p)
    prep["w1"] = jnp.pad(wt, ((0, k1p - k1), (0, h1p - h1))).astype(jnp.bfloat16)
    prep["b1"] = jnp.pad(b0, (0, h1p - h1)).reshape(1, h1p).astype(jnp.float32)

    tail_relu = []
    prev_p, prev_true = h1p, h1
    out_dim = h1
    for (w, b, bn, relu) in stage[1:]:
        cout, cin_l = w.shape
        assert cin_l == prev_true
        wm = w.T
        if bn is not None:
            wm, b = _fold_bn(wm, b, bn)
        cout_p = _round_up(cout, 128)
        prep["tail_w"].append(
            jnp.pad(wm, ((0, prev_p - cin_l), (0, cout_p - cout)))
            .astype(jnp.float32))
        prep["tail_b"].append(
            jnp.pad(b, (0, cout_p - cout)).reshape(1, cout_p)
            .astype(jnp.float32))
        tail_relu.append(relu)
        prev_p, prev_true = cout_p, cout
        out_dim = cout

    meta.update(tk=tk, first_relu=relu0, tail_relu=tuple(tail_relu),
                out_dim=out_dim)
    return prep, meta


# ------------------------------ forward ------------------------------------

def make_forward(meta):
    n_pp = meta["n_pp"]
    n_stage = meta["n_stage"]
    c_last = meta["c_last"]
    tk = meta["tk"]
    first_relu = meta["first_relu"]
    tail_relu = meta["tail_relu"]
    out_dim = meta["out_dim"]

    @jax.jit
    def forward(prev_frame, prep):
        B, f, N = prev_frame.shape
        M0 = B * N

        # (B, f, N) -> per-point rows (B*N, f).
        x = jnp.transpose(prev_frame, (0, 2, 1)).reshape(M0, f)
        x = x.astype(jnp.float32)

        # ---- stage A: fused per-point MLP (one pallas_call, f32 compute) ----
        if n_pp > 0:
            kp0 = prep["pp_w"][0].shape[0]          # padded input channels
            cpl = prep["pp_w"][-1].shape[1]         # padded output channels
            tm0, mp0 = _choose_tile_m(M0)
            x = jnp.pad(x, ((0, mp0 - M0), (0, kp0 - f)))

            in_specs = [pl.BlockSpec((tm0, kp0), lambda i: (i, 0))]
            operands = [x]
            for w, b in zip(prep["pp_w"], prep["pp_b"]):
                in_specs.append(pl.BlockSpec(w.shape, lambda i: (0, 0)))
                in_specs.append(pl.BlockSpec(b.shape, lambda i: (0, 0)))
                operands += [w, b]

            y = pl.pallas_call(
                functools.partial(_per_point_kernel, n_layers=n_pp),
                out_shape=jax.ShapeDtypeStruct((mp0, cpl), jnp.bfloat16),
                grid=(mp0 // tm0,),
                in_specs=in_specs,
                out_specs=pl.BlockSpec((tm0, cpl), lambda i: (i, 0)),
                compiler_params=pltpu.CompilerParams(
                    dimension_semantics=("parallel",)),
            )(*operands)
            y = y[:M0, :c_last]
        else:
            y = x.astype(jnp.bfloat16)

        # nn.Flatten: (B*N, C) -> (B, N*C).  The channel-major permutation is
        # pre-applied to the first stage-B weight, so this is a pure reshape.
        y = y.reshape(B, N * c_last)

        if n_stage == 0:
            z = y.reshape(B, N, c_last).transpose(0, 2, 1).reshape(B, N * c_last)
            return z.astype(jnp.float32)

        # ---- stage B: fused flattened Linear + hidden MLP + fc -------------
        w1, b1 = prep["w1"], prep["b1"]
        k1p, h1p = w1.shape
        n_tail = len(prep["tail_w"])
        op = prep["tail_w"][-1].shape[1] if n_tail else h1p
        tm1, mp1 = _choose_tile_m(B)
        y = jnp.pad(y, ((0, mp1 - B), (0, k1p - N * c_last)))

        nk = k1p // tk
        multi_k = nk > 1

        in_specs = [
            pl.BlockSpec((tm1, tk), lambda i, k: (i, k)),
            pl.BlockSpec((tk, h1p), lambda i, k: (k, 0)),
            pl.BlockSpec(b1.shape, lambda i, k: (0, 0)),
        ]
        operands = [y, w1, b1]
        for w, b in zip(prep["tail_w"], prep["tail_b"]):
            in_specs.append(pl.BlockSpec(w.shape, lambda i, k: (0, 0)))
            in_specs.append(pl.BlockSpec(b.shape, lambda i, k: (0, 0)))
            operands += [w, b]

        tail_bytes = sum(int(w.size) * 4 + int(b.size) * 4
                         for w, b in zip(prep["tail_w"], prep["tail_b"]))
        vmem_need = (2 * tm1 * tk * 2 + 2 * tk * h1p * 2
                     + 2 * tm1 * op * 4 + 2 * tail_bytes + 2 * int(b1.size) * 4
                     + (tm1 * h1p * 4 if multi_k else 0))
        vmem_limit = int(min(max(int(vmem_need * 1.3) + (2 << 20), 16 << 20),
                             40 << 20))
        flops = 2 * mp1 * k1p * h1p + sum(
            2 * mp1 * w.shape[0] * w.shape[1] for w in prep["tail_w"])
        bytes_accessed = (mp1 * k1p * 2 + k1p * h1p * 2 + tail_bytes
                          + mp1 * op * 4)

        out = pl.pallas_call(
            functools.partial(_flatten_mlp_kernel, n_tail=n_tail,
                              first_relu=first_relu, tail_relu=tail_relu,
                              multi_k=multi_k),
            out_shape=jax.ShapeDtypeStruct((mp1, op), jnp.float32),
            grid=(mp1 // tm1, nk),
            in_specs=in_specs,
            out_specs=pl.BlockSpec((tm1, op), lambda i, k: (i, 0)),
            scratch_shapes=([pltpu.VMEM((tm1, h1p), jnp.float32)]
                            if multi_k else []),
            compiler_params=pltpu.CompilerParams(
                dimension_semantics=("parallel", "arbitrary"),
                vmem_limit_bytes=vmem_limit),
            cost_estimate=pl.CostEstimate(flops=flops, transcendentals=0,
                                          bytes_accessed=bytes_accessed),
        )(*operands)

        return out[:B, :out_dim]

    return forward


# --------------------------- parameter init --------------------------------

def _init_bn(key, c):
    k1, k2, k3, k4 = jax.random.split(key, 4)
    return dict(
        gamma=1.0 + 0.1 * jax.random.normal(k1, (c,), jnp.float32),
        beta=0.1 * jax.random.normal(k2, (c,), jnp.float32),
        mean=0.1 * jax.random.normal(k3, (c,), jnp.float32),
        var=0.5 + jnp.abs(jax.random.normal(k4, (c,), jnp.float32)),
    )


def init_params(key, input_channel, per_point_mlp, hidden_mlp, output_size):
    n_layers = len(per_point_mlp) + len(hidden_mlp) + 1
    keys = list(jax.random.split(key, n_layers))

    per_point = []
    cin = input_channel
    for cout in per_point_mlp:
        kw, kb, kbn = jax.random.split(keys.pop(0), 3)
        per_point.append(dict(
            w=jax.random.normal(kw, (cout, cin, 1), jnp.float32) / math.sqrt(cin),
            b=0.01 * jax.random.normal(kb, (cout,), jnp.float32),
            bn=_init_bn(kbn, cout)))
        cin = cout

    cin = cin * 20 * 20 * 1   # nn.Flatten wiring in the module
    hidden = []
    for cout in hidden_mlp:
        kw, kb, kbn = jax.random.split(keys.pop(0), 3)
        hidden.append(dict(
            w=jax.random.normal(kw, (cout, cin), jnp.float32) / math.sqrt(cin),
            b=0.01 * jax.random.normal(kb, (cout,), jnp.float32),
            bn=_init_bn(kbn, cout)))
        cin = cout

    fc = None
    if output_size > 0:
        kw, kb = jax.random.split(keys.pop(0), 2)
        fc = dict(
            w=jax.random.normal(kw, (output_size, cin), jnp.float32) / math.sqrt(cin),
            b=0.01 * jax.random.normal(kb, (output_size,), jnp.float32))

    return dict(per_point=per_point, hidden=hidden, fc=fc)


# ----------------------------- f32 reference -------------------------------

def reference_forward(prev_frame, params):
    x = prev_frame.astype(jnp.float32)                 # (B, C, N)
    for layer in params["per_point"]:
        w = layer["w"][..., 0]
        x = jnp.einsum("oc,bcn->bon", w, x) + layer["b"][None, :, None]
        bn = layer["bn"]
        x = ((x - bn["mean"][None, :, None])
             / jnp.sqrt(bn["var"] + _EPS)[None, :, None]
             * bn["gamma"][None, :, None] + bn["beta"][None, :, None])
        x = jnp.maximum(x, 0.0)
    x = x.reshape(x.shape[0], -1)                      # torch Flatten order
    for layer in params["hidden"]:
        x = x @ layer["w"].T + layer["b"]
        bn = layer["bn"]
        x = ((x - bn["mean"]) / jnp.sqrt(bn["var"] + _EPS)
             * bn["gamma"] + bn["beta"])
        x = jnp.maximum(x, 0.0)
    if params.get("fc") is not None:
        x = x @ params["fc"]["w"].T + params["fc"]["b"]
    return x


# --------------------------------- main -------------------------------------

if __name__ == "__main__":
    key = jax.random.PRNGKey(0)
    kx, kp = jax.random.split(key)

    # N must equal 20*20*1 = 400 per the module's Flatten -> Linear wiring.
    B, F_IN, N = 2, 4, 400
    PER_POINT_MLP = [32, 64]
    HIDDEN_MLP = [128, 64]
    OUTPUT_SIZE = 8

    prev_frame = jax.random.normal(kx, (B, F_IN, N), jnp.float32)
    params = init_params(kp, F_IN, PER_POINT_MLP, HIDDEN_MLP, OUTPUT_SIZE)

    prep, meta = prepare_params(params, F_IN, N)       # one-time weight prep
    forward = make_forward(meta)

    out = forward(prev_frame, prep)
    jax.block_until_ready(out)

    assert out.shape == (B, OUTPUT_SIZE), out.shape
    assert bool(jnp.all(jnp.isfinite(out)))

    ref = reference_forward(prev_frame, params)
    rel_err = float(jnp.linalg.norm(out - ref) / (jnp.linalg.norm(ref) + 1e-6))
    assert rel_err < 5e-2, f"relative L2 error {rel_err}"

    print("KERNEL_OK")
</pallas_src>

<mosaic_0001>
module attributes {stable_mosaic.version = 11 : i64} {
  func.func @_per_point_kernel(%arg0: i32, %arg1: memref<400x128xf32, #tpu.memory_space<vmem>>, %arg2: memref<128x128xf32, #tpu.memory_space<vmem>>, %arg3: memref<1x128xf32, #tpu.memory_space<vmem>>, %arg4: memref<128x128xf32, #tpu.memory_space<vmem>>, %arg5: memref<1x128xf32, #tpu.memory_space<vmem>>, %arg6: memref<400x128xbf16, #tpu.memory_space<vmem>>) attributes {dimension_semantics = [#tpu.dimension_semantics<parallel>], iteration_bounds = array<i64: 2>, scalar_prefetch = 0 : i64, scratch_operands = 0 : i64, tpu.core_type = #tpu.core_type<tc>, window_params = [{transform_indices = @transform_0, window_bounds = array<i64: 400, 128>}, {pipeline_mode = #tpu.pipeline_mode<synchronous>, transform_indices = @transform_1, window_bounds = array<i64: 128, 128>}, {pipeline_mode = #tpu.pipeline_mode<synchronous>, transform_indices = @transform_2, window_bounds = array<i64: 1, 128>}, {pipeline_mode = #tpu.pipeline_mode<synchronous>, transform_indices = @transform_3, window_bounds = array<i64: 128, 128>}, {pipeline_mode = #tpu.pipeline_mode<synchronous>, transform_indices = @transform_4, window_bounds = array<i64: 1, 128>}, {transform_indices = @transform_5, window_bounds = array<i64: 400, 128>}]} {
    %c0 = arith.constant 0 : index
    %c0_0 = arith.constant 0 : index
    %0 = vector.load %arg1[%c0, %c0_0] : memref<400x128xf32, #tpu.memory_space<vmem>>, vector<400x128xf32>
    %c0_1 = arith.constant 0 : index
    %c0_2 = arith.constant 0 : index
    %1 = vector.load %arg2[%c0_1, %c0_2] : memref<128x128xf32, #tpu.memory_space<vmem>>, vector<128x128xf32>
    %c0_3 = arith.constant 0 : index
    %c0_4 = arith.constant 0 : index
    %2 = vector.load %arg3[%c0_3, %c0_4] : memref<1x128xf32, #tpu.memory_space<vmem>>, vector<1x128xf32>
    %cst = arith.constant dense<0.000000e+00> : vector<400x128xf32>
    %3 = tpu.matmul %0, %1, %cst {dimension_numbers = #tpu.dot_dimension_numbers<[1], [0], [0], [1], [0, 0, 1, 1], [], []>} : vector<400x128xf32>, vector<128x128xf32>, vector<400x128xf32> -> vector<400x128xf32>
    %4 = vector.broadcast %2 : vector<1x128xf32> to vector<400x128xf32>
    %5 = arith.addf %3, %4 : vector<400x128xf32>
    %cst_5 = arith.constant 0.000000e+00 : f32
    %6 = vector.broadcast %cst_5 : f32 to vector<400x128xf32>
    %7 = arith.maximumf %5, %6 : vector<400x128xf32>
    %c0_6 = arith.constant 0 : index
    %c0_7 = arith.constant 0 : index
    %8 = vector.load %arg4[%c0_6, %c0_7] : memref<128x128xf32, #tpu.memory_space<vmem>>, vector<128x128xf32>
    %c0_8 = arith.constant 0 : index
    %c0_9 = arith.constant 0 : index
    %9 = vector.load %arg5[%c0_8, %c0_9] : memref<1x128xf32, #tpu.memory_space<vmem>>, vector<1x128xf32>
    %cst_10 = arith.constant dense<0.000000e+00> : vector<400x128xf32>
    %10 = tpu.matmul %7, %8, %cst_10 {dimension_numbers = #tpu.dot_dimension_numbers<[1], [0], [0], [1], [0, 0, 1, 1], [], []>} : vector<400x128xf32>, vector<128x128xf32>, vector<400x128xf32> -> vector<400x128xf32>
    %11 = vector.broadcast %9 : vector<1x128xf32> to vector<400x128xf32>
    %12 = arith.addf %10, %11 : vector<400x128xf32>
    %cst_11 = arith.constant 0.000000e+00 : f32
    %13 = vector.broadcast %cst_11 : f32 to vector<400x128xf32>
    %14 = arith.maximumf %12, %13 : vector<400x128xf32>
    %15 = arith.truncf %14 : vector<400x128xf32> to vector<400x128xbf16>
    %c0_12 = arith.constant 0 : index
    %c0_13 = arith.constant 0 : index
    %16 = vector.load %arg6[%c0_12, %c0_13] : memref<400x128xbf16, #tpu.memory_space<vmem>>, vector<400x128xbf16>
    tpu.vector_store %arg6[%c0_12, %c0_13], %15 {strides = array<i32>} : memref<400x128xbf16, #tpu.memory_space<vmem>>, vector<400x128xbf16>,
    return
  }
  func.func @transform_0(%arg0: i32) -> (i32, i32) {
    %c0_i32 = arith.constant 0 : i32
    %c0_i32_0 = arith.constant 0 : i32
    return %arg0, %c0_i32 : i32, i32
  }
  func.func @transform_1(%arg0: i32) -> (i32, i32) {
    %c0_i32 = arith.constant 0 : i32
    %c0_i32_0 = arith.constant 0 : i32
    %c0_i32_1 = arith.constant 0 : i32
    return %c0_i32, %c0_i32_0 : i32, i32
  }
  func.func @transform_2(%arg0: i32) -> (i32, i32) {
    %c0_i32 = arith.constant 0 : i32
    %c0_i32_0 = arith.constant 0 : i32
    %c0_i32_1 = arith.constant 0 : i32
    return %c0_i32, %c0_i32_0 : i32, i32
  }
  func.func @transform_3(%arg0: i32) -> (i32, i32) {
    %c0_i32 = arith.constant 0 : i32
    %c0_i32_0 = arith.constant 0 : i32
    %c0_i32_1 = arith.constant 0 : i32
    return %c0_i32, %c0_i32_0 : i32, i32
  }
  func.func @transform_4(%arg0: i32) -> (i32, i32) {
    %c0_i32 = arith.constant 0 : i32
    %c0_i32_0 = arith.constant 0 : i32
    %c0_i32_1 = arith.constant 0 : i32
    return %c0_i32, %c0_i32_0 : i32, i32
  }
  func.func @transform_5(%arg0: i32) -> (i32, i32) {
    %c0_i32 = arith.constant 0 : i32
    %c0_i32_0 = arith.constant 0 : i32
    return %arg0, %c0_i32 : i32, i32
  }
}

module attributes {stable_mosaic.version = 11 : i64} {
  func.func @_flatten_mlp_kernel(%arg0: i32, %arg1: i32, %arg2: memref<16x25600xbf16, #tpu.memory_space<vmem>>, %arg3: memref<25600x128xbf16, #tpu.memory_space<vmem>>, %arg4: memref<1x128xf32, #tpu.memory_space<vmem>>, %arg5: memref<128x128xf32, #tpu.memory_space<vmem>>, %arg6: memref<1x128xf32, #tpu.memory_space<vmem>>, %arg7: memref<128x128xf32, #tpu.memory_space<vmem>>, %arg8: memref<1x128xf32, #tpu.memory_space<vmem>>, %arg9: memref<16x128xf32, #tpu.memory_space<vmem>>) attributes {dimension_semantics = [#tpu.dimension_semantics<parallel>, #tpu.dimension_semantics<arbitrary>], iteration_bounds = array<i64: 1, 1>, scalar_prefetch = 0 : i64, scratch_operands = 0 : i64, tpu.core_type = #tpu.core_type<tc>, window_params = [{transform_indices = @transform_0, window_bounds = array<i64: 16, 25600>}, {transform_indices = @transform_1, window_bounds = array<i64: 25600, 128>}, {pipeline_mode = #tpu.pipeline_mode<synchronous>, transform_indices = @transform_2, window_bounds = array<i64: 1, 128>}, {pipeline_mode = #tpu.pipeline_mode<synchronous>, transform_indices = @transform_3, window_bounds = array<i64: 128, 128>}, {pipeline_mode = #tpu.pipeline_mode<synchronous>, transform_indices = @transform_4, window_bounds = array<i64: 1, 128>}, {pipeline_mode = #tpu.pipeline_mode<synchronous>, transform_indices = @transform_5, window_bounds = array<i64: 128, 128>}, {pipeline_mode = #tpu.pipeline_mode<synchronous>, transform_indices = @transform_6, window_bounds = array<i64: 1, 128>}, {transform_indices = @transform_7, window_bounds = array<i64: 16, 128>}]} {
    %c0 = arith.constant 0 : index
    %c0_0 = arith.constant 0 : index
    %0 = vector.load %arg2[%c0, %c0_0] : memref<16x25600xbf16, #tpu.memory_space<vmem>>, vector<16x25600xbf16>
    %c0_1 = arith.constant 0 : index
    %c0_2 = arith.constant 0 : index
    %1 = vector.load %arg3[%c0_1, %c0_2] : memref<25600x128xbf16, #tpu.memory_space<vmem>>, vector<25600x128xbf16>
    %cst = arith.constant dense<0.000000e+00> : vector<16x128xf32>
    %2 = tpu.matmul %0, %1, %cst {dimension_numbers = #tpu.dot_dimension_numbers<[1], [0], [0], [1], [0, 0, 1, 1], [], []>} : vector<16x25600xbf16>, vector<25600x128xbf16>, vector<16x128xf32> -> vector<16x128xf32>
    %c0_3 = arith.constant 0 : index
    %c0_4 = arith.constant 0 : index
    %3 = vector.load %arg4[%c0_3, %c0_4] : memref<1x128xf32, #tpu.memory_space<vmem>>, vector<1x128xf32>
    %4 = vector.broadcast %3 : vector<1x128xf32> to vector<16x128xf32>
    %5 = arith.addf %2, %4 : vector<16x128xf32>
    %cst_5 = arith.constant 0.000000e+00 : f32
    %6 = vector.broadcast %cst_5 : f32 to vector<16x128xf32>
    %7 = arith.maximumf %5, %6 : vector<16x128xf32>
    %c0_6 = arith.constant 0 : index
    %c0_7 = arith.constant 0 : index
    %8 = vector.load %arg5[%c0_6, %c0_7] : memref<128x128xf32, #tpu.memory_space<vmem>>, vector<128x128xf32>
    %c0_8 = arith.constant 0 : index
    %c0_9 = arith.constant 0 : index
    %9 = vector.load %arg6[%c0_8, %c0_9] : memref<1x128xf32, #tpu.memory_space<vmem>>, vector<1x128xf32>
    %cst_10 = arith.constant dense<0.000000e+00> : vector<16x128xf32>
    %10 = tpu.matmul %7, %8, %cst_10 {dimension_numbers = #tpu.dot_dimension_numbers<[1], [0], [0], [1], [0, 0, 1, 1], [], []>} : vector<16x128xf32>, vector<128x128xf32>, vector<16x128xf32> -> vector<16x128xf32>
    %11 = vector.broadcast %9 : vector<1x128xf32> to vector<16x128xf32>
    %12 = arith.addf %10, %11 : vector<16x128xf32>
    %cst_11 = arith.constant 0.000000e+00 : f32
    %13 = vector.broadcast %cst_11 : f32 to vector<16x128xf32>
    %14 = arith.maximumf %12, %13 : vector<16x128xf32>
    %c0_12 = arith.constant 0 : index
    %c0_13 = arith.constant 0 : index
    %15 = vector.load %arg7[%c0_12, %c0_13] : memref<128x128xf32, #tpu.memory_space<vmem>>, vector<128x128xf32>
    %c0_14 = arith.constant 0 : index
    %c0_15 = arith.constant 0 : index
    %16 = vector.load %arg8[%c0_14, %c0_15] : memref<1x128xf32, #tpu.memory_space<vmem>>, vector<1x128xf32>
    %cst_16 = arith.constant dense<0.000000e+00> : vector<16x128xf32>
    %17 = tpu.matmul %14, %15, %cst_16 {dimension_numbers = #tpu.dot_dimension_numbers<[1], [0], [0], [1], [0, 0, 1, 1], [], []>} : vector<16x128xf32>, vector<128x128xf32>, vector<16x128xf32> -> vector<16x128xf32>
    %18 = vector.broadcast %16 : vector<1x128xf32> to vector<16x128xf32>
    %19 = arith.addf %17, %18 : vector<16x128xf32>
    %c0_17 = arith.constant 0 : index
    %c0_18 = arith.constant 0 : index
    %20 = vector.load %arg9[%c0_17, %c0_18] : memref<16x128xf32, #tpu.memory_space<vmem>>, vector<16x128xf32>
    tpu.vector_store %arg9[%c0_17, %c0_18], %19 {strides = array<i32>} : memref<16x128xf32, #tpu.memory_space<vmem>>, vector<16x128xf32>,
    return
  }
  func.func @transform_0(%arg0: i32, %arg1: i32) -> (i32, i32) {
    %c0_i32 = arith.constant 0 : i32
    return %arg0, %arg1 : i32, i32
  }
  func.func @transform_1(%arg0: i32, %arg1: i32) -> (i32, i32) {
    %c0_i32 = arith.constant 0 : i32
    %c0_i32_0 = arith.constant 0 : i32
    return %arg1, %c0_i32 : i32, i32
  }
  func.func @transform_2(%arg0: i32, %arg1: i32) -> (i32, i32) {
    %c0_i32 = arith.constant 0 : i32
    %c0_i32_0 = arith.constant 0 : i32
    %c0_i32_1 = arith.constant 0 : i32
    return %c0_i32, %c0_i32_0 : i32, i32
  }
  func.func @transform_3(%arg0: i32, %arg1: i32) -> (i32, i32) {
    %c0_i32 = arith.constant 0 : i32
    %c0_i32_0 = arith.constant 0 : i32
    %c0_i32_1 = arith.constant 0 : i32
    return %c0_i32, %c0_i32_0 : i32, i32
  }
  func.func @transform_4(%arg0: i32, %arg1: i32) -> (i32, i32) {
    %c0_i32 = arith.constant 0 : i32
    %c0_i32_0 = arith.constant 0 : i32
    %c0_i32_1 = arith.constant 0 : i32
    return %c0_i32, %c0_i32_0 : i32, i32
  }
  func.func @transform_5(%arg0: i32, %arg1: i32) -> (i32, i32) {
    %c0_i32 = arith.constant 0 : i32
    %c0_i32_0 = arith.constant 0 : i32
    %c0_i32_1 = arith.constant 0 : i32
    return %c0_i32, %c0_i32_0 : i32, i32
  }
  func.func @transform_6(%arg0: i32, %arg1: i32) -> (i32, i32) {
    %c0_i32 = arith.constant 0 : i32
    %c0_i32_0 = arith.constant 0 : i32
    %c0_i32_1 = arith.constant 0 : i32
    return %c0_i32, %c0_i32_0 : i32, i32
  }
  func.func @transform_7(%arg0: i32, %arg1: i32) -> (i32, i32) {
    %c0_i32 = arith.constant 0 : i32
    %c0_i32_0 = arith.constant 0 : i32
    return %arg0, %c0_i32 : i32, i32
  }
}

</mosaic_0001>

<bundles_post_ra>
// kernel: forward.2
= control target key start
LH: loop header
LB: loop body
LE: loop exit
PB: predicated region body
PF: predicated region fallthrough
CT: control target
= control target key end

     0   :  { %10 = vsyncpa [#allocation3], 0  ;;  %s2694_s0 = inlined_call_operand.vmem [shape: f32[800,128], index: 0, kind: input, shape index: {}]   ;;  %s2695_s1 = inlined_call_operand.hbm [shape: f32[128,128], index: 1, kind: input, shape index: {}]   ;;  %s2696_s2 = inlined_call_operand.hbm [shape: f32[1,128], index: 2, kind: input, shape index: {}]   ;;  %s2697_s3 = inlined_call_operand.hbm [shape: f32[128,128], index: 3, kind: input, shape index: {}]   ;;  %s2698_s4 = inlined_call_operand.hbm [shape: f32[1,128], index: 4, kind: input, shape index: {}]   ;;  %s2699_s5 = inlined_call_operand.vmem [shape: bf16[800,128], index: 5, kind: output, shape index: {}]  }
   0x1   :  { %11 = vsyncpa [#allocation5], 0 }
   0x2   :  { %12 = vsyncpa [#allocation8], 0  ;;  %s2353_s18 = smov 0  }
   0x3 LB: > { %s2317_s19 = smov [#allocation4]   ;;  %s1456_s21 = sadd.s32 4294967295, %s2315_s18   ;;  %s2315_s18 = sphi %s2353_s18, %s18_s18  }
   0x4   : > { %s185_s20 = sshll.u32 %s2317_s19, 4  ;;  %p1458_p0 = scmp.ge.s32.totalorder %s2315_s18, 1  ;;  %s2367_s20 = int_to_ptr.vmem [resolvable:$true] %s185_s20 }
   0x5   : > { %p159_p1 = scmp.lt.s32.totalorder %s2315_s18, 3  ;;  %p2363_p2 = scmp.eq.s32.totalorder %s1456_s21, 0 }
   0x6   : > { %s2318_s24 = smov [#allocation2]   ;;  %s2319_s27 = smov [#allocation6]  }
   0x7   : > { %s2703_s22 = scalar_select %p2363_p2, 1, 0 }
   0x8   : > { %p2369_p3 = pnand %p1458_p0, %p159_p1  ;;  %s171_s25 = sshll.u32 %s2318_s24, 4  ;;  %s2375_s25 = int_to_ptr.vmem [resolvable:$true] %s171_s25 }
   0x9   : > { %s195_s28 = sshll.u32 %s2319_s27, 4  ;;  %s2320_s29 = smov [#allocation7]   ;;  %s2383_s28 = int_to_ptr.vmem [resolvable:$true] %s195_s28 }
   0xa   : > { %s2704_s23 = scalar_select %p2369_p3, 1, 0 }
   0xb   : > { %p2150_p4 = pneg %p2369_p3  ;;  %s2385_s30 = sshll.u32 %s2320_s29, 4  ;;  %s210_s30 = int_to_ptr.vmem [resolvable:$true] %s2385_s30 }
   0xc   : > { %s2185_s8 = scalar_lea.hbm %s2696_s2, 16 }
   0xd   : > { %p2379_p5 = pnand %p2363_p2, %p2150_p4  ;;  %p2186_p6 = scmp.ne.s32.totalorder %s2696_s2, %s2185_s8 }
   0xe   : > { %p2192_p10 = scmp.lt.u32.totalorder %s2185_s8, %s2696_s2 }
   0xf   : > { %p2395_p7 = pneg %p2379_p5 }
  0x11   : > { %p2188_p8 = pnand %p2395_p7, %p2186_p6 }
  0x13   : > { %p2189_p9 = pneg %p2188_p8 }
  0x15   : > { %p2194_p11 = pnand %p2192_p10, %p2189_p9 }
  0x17   : > { %2197 = shalt.err (!%p2194_p11)
}
  0x18   : > { %s2198_s14 = scalar_lea.vmem %s2367_s20, 16  ;;  %s2205_s15 = scalar_lea.vmem %s2367_s20, 32 }
  0x19   : > { %p2199_p12 = scmp.ne.s32.totalorder %s2367_s20, %s2198_s14  ;;  %p2206_p1 = scmp.lt.s32.totalorder %s2367_s20, %s2367_s20 }
  0x1a   : > { %p2207_p4 = scmp.lt.s32.totalorder %s2205_s15, %s2198_s14 }
  0x1b   : > { %p2201_p13 = pnand %p2199_p12, %p2395_p7 }
  0x1c   : > { %p2208_p6 = por %p2207_p4, %p2206_p1 }
  0x1d   : > { %p2202_p0 = pneg %p2201_p13 }
  0x1f   : > { %p2209_p8 = pnand %p2208_p6, %p2202_p0 }
  0x21   : > { %2212 = shalt.err (!%p2209_p8)
}
  0x22   : > { %2156 = dma.hbm_to_vmem [thread:$0]  (!%p2379_p5), %s2696_s2, 16, %s2367_s20, [#allocation5]  }
  0x23   : > { %s2213_s27 = scalar_lea.hbm %s2695_s1, 2048 }
  0x24   : > { %p2214_p9 = scmp.ne.s32.totalorder %s2695_s1, %s2213_s27  ;;  %p2220_p12 = scmp.lt.u32.totalorder %s2213_s27, %s2695_s1 }
  0x26   : > { %p2216_p10 = pnand %p2214_p9, %p2395_p7 }
  0x28   : > { %p2217_p11 = pneg %p2216_p10 }
  0x2a   : > { %p2222_p13 = pnand %p2220_p12, %p2217_p11 }
  0x2c   : > { %2225 = shalt.err (!%p2222_p13)
}
  0x2d   : > { %s2226_s20 = scalar_lea.vmem %s2375_s25, 2048  ;;  %p2234_p6 = scmp.lt.s32.totalorder %s2375_s25, %s2375_s25 }
  0x2e   : > { %p2227_p0 = scmp.ne.s32.totalorder %s2375_s25, %s2226_s20  ;;  %p2235_p8 = scmp.lt.s32.totalorder %s2226_s20, %s2226_s20 }
  0x30   : > { %p2229_p1 = pnand %p2227_p0, %p2395_p7  ;;  %p2236_p9 = por %p2235_p8, %p2234_p6 }
  0x32   : > { %p2230_p4 = pneg %p2229_p1 }
  0x34   : > { %p2237_p10 = pnand %p2236_p9, %p2230_p4 }
  0x36   : > { %2240 = shalt.err (!%p2237_p10)
}
  0x37   : > { %s2321_s9 = smov 128   ;;  %s2322_s10 = smov 8  }
  0x38   : > { %2153 = dma.hbm_to_vmem [thread:$0]  (!%p2379_p5), %s2695_s1, 2048, %s2375_s25, [#allocation3], %s2321_s9, %s2321_s9, %s2322_s10  }
  0x39   : > { %s2241_s16 = scalar_lea.hbm %s2697_s3, 2048 }
  0x3a   : > { %p2242_p11 = scmp.ne.s32.totalorder %s2697_s3, %s2241_s16  ;;  %p2248_p0 = scmp.lt.u32.totalorder %s2241_s16, %s2697_s3 }
  0x3c   : > { %p2244_p12 = pnand %p2242_p11, %p2395_p7 }
  0x3e   : > { %p2245_p13 = pneg %p2244_p12 }
  0x40   : > { %p2250_p1 = pnand %p2248_p0, %p2245_p13 }
  0x42   : > { %2253 = shalt.err (!%p2250_p1)
}
  0x43   : > { %s2254_s25 = scalar_lea.vmem %s2383_s28, 2048  ;;  %p2262_p9 = scmp.lt.s32.totalorder %s2383_s28, %s2383_s28 }
  0x44   : > { %p2255_p4 = scmp.ne.s32.totalorder %s2383_s28, %s2254_s25  ;;  %p2263_p10 = scmp.lt.s32.totalorder %s2254_s25, %s2254_s25 }
  0x46   : > { %p2257_p6 = pnand %p2255_p4, %p2395_p7  ;;  %p2264_p11 = por %p2263_p10, %p2262_p9 }
  0x48   : > { %p2258_p8 = pneg %p2257_p6 }
  0x4a   : > { %p2265_p12 = pnand %p2264_p11, %p2258_p8 }
  0x4c   : > { %2268 = shalt.err (!%p2265_p12)
}
  0x4d   : > { %2159 = dma.hbm_to_vmem [thread:$0]  (!%p2379_p5), %s2697_s3, 2048, %s2383_s28, [#allocation5], %s2321_s9, %s2321_s9, %s2322_s10  }
  0x4e   : > { %s2269_s20 = scalar_lea.hbm %s2698_s4, 16 }
  0x4f   : > { %p2270_p13 = scmp.ne.s32.totalorder %s2698_s4, %s2269_s20  ;;  %p2276_p4 = scmp.lt.u32.totalorder %s2269_s20, %s2698_s4 }
  0x51   : > { %p2272_p0 = pnand %p2270_p13, %p2395_p7 }
  0x53   : > { %p2273_p1 = pneg %p2272_p0 }
  0x55   : > { %p2278_p6 = pnand %p2276_p4, %p2273_p1 }
  0x57   : > { %2281 = shalt.err (!%p2278_p6)
}
  0x58   : > { %s2282_s16 = scalar_lea.vmem %s210_s30, 16  ;;  %s2289_s28 = scalar_lea.vmem %s210_s30, 32 }
  0x59   : > { %p2283_p8 = scmp.ne.s32.totalorder %s210_s30, %s2282_s16  ;;  %p2290_p11 = scmp.lt.s32.totalorder %s210_s30, %s210_s30 }
  0x5a   : > { %p2291_p12 = scmp.lt.s32.totalorder %s2289_s28, %s2282_s16 }
  0x5b   : > { %p2285_p9 = pnand %p2283_p8, %p2395_p7 }
  0x5c   : > { %p2292_p2 = por %p2291_p12, %p2290_p11 }
  0x5d   : > { %p2286_p10 = pneg %p2285_p9 }
  0x5f   : > { %p2293_p3 = pnand %p2292_p2, %p2286_p10 }
  0x61   : > { %2296 = shalt.err (!%p2293_p3)
}
  0x62   : > { %2162 = dma.hbm_to_vmem [thread:$0]  (!%p2379_p5), %s2698_s4, 16, %s210_s30, [#allocation8]  }
  0x63   : > { %p2707_p13 = scmp.ne.s32.totalorder %s2704_s23, 0 }
  0x64   : > { %p2708_p0 = scmp.ne.s32.totalorder (!%p2707_p13), %s2703_s22, 0 }
  0x65   : > { %231 = sbr.rel (%p2707_p13) target bundleno = 682 (0x2aa), region = 40 }
  0x6c   : > { %2302 = dma.done.wait (%p2708_p0), [#allocation3], 2048  }
  0x6d   : > { %2304 = vsyncadd (%p2708_p0), [#allocation3], 4294965248 }
  0x6e   : > { %2306 = dma.done.wait (%p2708_p0), [#allocation5], 2064  }
  0x6f   : > { %2308 = vsyncadd (%p2708_p0), [#allocation5], 4294965232 }
  0x70   : > { %2310 = dma.done.wait (%p2708_p0), [#allocation8], 16  }
  0x71   : > { %2312 = vsyncadd (%p2708_p0), [#allocation8], 4294967280  ;;  %s271_s23 = smul.u32 50, %s1456_s21  ;;  %v333_v0 = vld [vmem:[#allocation2] sm:$0xff]  ;;  %v334_v1 = vld [vmem:[#allocation2 + $0x8] sm:$0xff] }
  0x72   : > { %v335_v2 = vld [vmem:[#allocation2 + $0x10] sm:$0xff]  ;;  %v2070_v3 = vpack.c.bf16 %v334_v1, %v333_v0  ;;  %v336_v4 = vld [vmem:[#allocation2 + $0x18] sm:$0xff]  ;;  %v337_v6 = vld [vmem:[#allocation2 + $0x20] sm:$0xff] }
  0x73   : > { %p272_p2 = scmp.lt.s32.totalorder %s271_s23, 99  ;;  %v2074_v5 = vpack.c.bf16 %v336_v4, %v335_v2  ;;  %v338_v7 = vld [vmem:[#allocation2 + $0x28] sm:$0xff]  ;;  %v339_v10 = vld [vmem:[#allocation2 + $0x30] sm:$0xff]  ;;  %v340_v11 = vld [vmem:[#allocation2 + $0x38] sm:$0xff] }
  0x74   : > { %2071 = vmatprep.subr.bf16.mxu0 %v2070_v3  ;;  %v2078_v8 = vpack.c.bf16 %v338_v7, %v337_v6  ;;  %v2082_v12 = vpack.c.bf16 %v340_v11, %v339_v10  ;;  %v341_v13 = vld [vmem:[#allocation2 + $0x40] sm:$0xff]  ;;  %v342_v14 = vld [vmem:[#allocation2 + $0x48] sm:$0xff]  ;;  %v343_v16 = vld [vmem:[#allocation2 + $0x50] sm:$0xff] }
  0x75   : > { %s2710_s23 = smov (!%p272_p2, %s271_s23), 99  ;;  %2073 = vmatpush3.bf16.msra.mxu0 %v2070_v3  ;;  %v2086_v15 = vpack.c.bf16 %v342_v14, %v341_v13  ;;  %v344_v17 = vld [vmem:[#allocation2 + $0x58] sm:$0xff]  ;;  %v345_v19 = vld [vmem:[#allocation2 + $0x60] sm:$0xff]  ;;  %v346_v20 = vld [vmem:[#allocation2 + $0x68] sm:$0xff] }
  0x76   : > { %s1469_s26 = sshll.u32 %s2710_s23, 3  ;;  %2075 = vmatprep.subr.bf16.mxu0 %v2074_v5  ;;  %v2090_v18 = vpack.c.bf16 %v344_v17, %v343_v16  ;;  %v2094_v21 = vpack.c.bf16 %v346_v20, %v345_v19  ;;  %v347_v22 = vld [vmem:[#allocation2 + $0x70] sm:$0xff]  ;;  %v348_v23 = vld [vmem:[#allocation2 + $0x78] sm:$0xff]  ;;  %v721_v24 = vld [vmem:[#allocation6] sm:$0xff]  ;;  %s1470_s21 = sshll.u32 %s2710_s23, 2 }
  0x77   : > { %s2504_s22 = scalar_lea.vmem %s2694_s0, %s1469_s26  ;;  %v722_v25 = vld [vmem:[#allocation6 + $0x8] sm:$0xff]  ;;  %v723_v26 = vld [vmem:[#allocation6 + $0x10] sm:$0xff]  ;;  %v724_v28 = vld [vmem:[#allocation6 + $0x18] sm:$0xff]  ;;  %v2098_v32 = vpack.c.bf16 %v348_v23, %v347_v22  ;;  %s2616_s24 = scalar_lea.vmem %s2699_s5, %s1470_s21 }
  0x78   : > { %v283_v9 = vld [vmem:[%s2504_s22] sm:$0xff]  ;;  %v2102_v27 = vpack.c.bf16 %v722_v25, %v721_v24  ;;  %v2106_v29 = vpack.c.bf16 %v724_v28, %v723_v26  ;;  %v726_v31 = vld [vmem:[#allocation6 + $0x28] sm:$0xff]  ;;  %v727_v34 = vld [vmem:[#allocation6 + $0x30] sm:$0xff] }
  0x79   : > { %1888 = vmatprep.mubr.f32.mxu0 %v283_v9  ;;  %2077 = vmatpush3.bf16.msra.mxu0 %v2074_v5  ;;  %v725_v30 = vld [vmem:[#allocation6 + $0x20] sm:$0xff]  ;;  %v728_v35 = vld [vmem:[#allocation6 + $0x38] sm:$0xff]  ;;  %v730_v39 = vld [vmem:[#allocation6 + $0x48] sm:$0xff] }
  0x7a   : > { %2079 = vmatprep.subr.bf16.mxu0 %v2078_v8  ;;  %2103 = vmatprep.subr.bf16.mxu1 %v2102_v27  ;;  %v2110_v33 = vpack.c.bf16 %v726_v31, %v725_v30  ;;  %v2114_v36 = vpack.c.bf16 %v728_v35, %v727_v34  ;;  %v284_v37 = vld [vmem:[%s2504_s22 + $0x8] sm:$0xff]  ;;  %v285_v40 = vld [vmem:[%s2504_s22 + $0x10] sm:$0xff]  ;;  %v286_v42 = vld [vmem:[%s2504_s22 + $0x18] sm:$0xff] }
  0x7b   : > { %2105 = vmatpush3.bf16.msra.mxu1 %v2102_v27  ;;  %v729_v38 = vld [vmem:[#allocation6 + $0x40] sm:$0xff]  ;;  %v731_v43 = vld [vmem:[#allocation6 + $0x50] sm:$0xff]  ;;  %v732_v44 = vld [vmem:[#allocation6 + $0x58] sm:$0xff] }
  0x7c   : > { %2107 = vmatprep.subr.bf16.mxu1 %v2106_v29  ;;  %v2118_v41 = vpack.c.bf16 %v730_v39, %v729_v38  ;;  %v287_v45 = vld [vmem:[%s2504_s22 + $0x20] sm:$0xff]  ;;  %v2122_v46 = vpack.c.bf16 %v732_v44, %v731_v43  ;;  %v288_v47 = vld [vmem:[%s2504_s22 + $0x28] sm:$0xff]  ;;  %v289_v50 = vld [vmem:[%s2504_s22 + $0x30] sm:$0xff] }
  0x7d   : > { %2081 = vmatpush3.bf16.msra.mxu0 %v2078_v8  ;;  %v733_v48 = vld [vmem:[#allocation6 + $0x60] sm:$0xff]  ;;  %v734_v49 = vld [vmem:[#allocation6 + $0x68] sm:$0xff]  ;;  %v290_v52 = vld [vmem:[%s2504_s22 + $0x38] sm:$0xff] }
  0x7e   : > { %2083 = vmatprep.subr.bf16.mxu0 %v2082_v12  ;;  %v2126_v51 = vpack.c.bf16 %v734_v49, %v733_v48  ;;  %v291_v53 = vld [vmem:[%s2504_s22 + $0x40] sm:$0xff]  ;;  %v292_v54 = vld [vmem:[%s2504_s22 + $0x48] sm:$0xff]  ;;  %v293_v55 = vld [vmem:[%s2504_s22 + $0x50] sm:$0xff] }
  0x7f   : > { %2109 = vmatpush3.bf16.msra.mxu1 %v2106_v29  ;;  %v294_v56 = vld [vmem:[%s2504_s22 + $0x58] sm:$0xff]  ;;  %v295_v57 = vld [vmem:[%s2504_s22 + $0x60] sm:$0xff]  ;;  %v296_v58 = vld [vmem:[%s2504_s22 + $0x68] sm:$0xff] }
  0x80   : > { %2111 = vmatprep.subr.bf16.mxu1 %v2110_v33  ;;  %v297_v59 = vld [vmem:[%s2504_s22 + $0x70] sm:$0xff]  ;;  %v298_v60 = vld [vmem:[%s2504_s22 + $0x78] sm:$0xff]  ;;  %v299_v61 = vld [vmem:[%s2504_s22 + $0x80] sm:$0xff] }
  0x81   : > { %2085 = vmatpush3.bf16.msra.mxu0 %v2082_v12  ;;  %v300_v62 = vld [vmem:[%s2504_s22 + $0x88] sm:$0xff]  ;;  %v301_v63 = vld [vmem:[%s2504_s22 + $0x90] sm:$0xff]  ;;  %v302_v0 = vld [vmem:[%s2504_s22 + $0x98] sm:$0xff] }
  0x82   : > { %2087 = vmatprep.subr.bf16.mxu0 %v2086_v15  ;;  %v303_v1 = vld [vmem:[%s2504_s22 + $0xa0] sm:$0xff]  ;;  %v304_v2 = vld [vmem:[%s2504_s22 + $0xa8] sm:$0xff]  ;;  %v305_v3 = vld [vmem:[%s2504_s22 + $0xb0] sm:$0xff] }
  0x83   : > { %2113 = vmatpush3.bf16.msra.mxu1 %v2110_v33  ;;  %v306_v4 = vld [vmem:[%s2504_s22 + $0xb8] sm:$0xff]  ;;  %v307_v5 = vld [vmem:[%s2504_s22 + $0xc0] sm:$0xff]  ;;  %v308_v6 = vld [vmem:[%s2504_s22 + $0xc8] sm:$0xff] }
  0x84   : > { %2115 = vmatprep.subr.bf16.mxu1 %v2114_v36  ;;  %v309_v7 = vld [vmem:[%s2504_s22 + $0xd0] sm:$0xff]  ;;  %v310_v8 = vld [vmem:[%s2504_s22 + $0xd8] sm:$0xff]  ;;  %v311_v9 = vld [vmem:[%s2504_s22 + $0xe0] sm:$0xff] }
  0x85   : > { %2089 = vmatpush3.bf16.msra.mxu0 %v2086_v15  ;;  %v312_v10 = vld [vmem:[%s2504_s22 + $0xe8] sm:$0xff]  ;;  %v313_v11 = vld [vmem:[%s2504_s22 + $0xf0] sm:$0xff]  ;;  %v314_v12 = vld [vmem:[%s2504_s22 + $0xf8] sm:$0xff] }
  0x86   : > { %2091 = vmatprep.subr.bf16.mxu0 %v2090_v18  ;;  %v315_v13 = vld [vmem:[%s2504_s22 + $0x100] sm:$0xff]  ;;  %v316_v14 = vld [vmem:[%s2504_s22 + $0x108] sm:$0xff]  ;;  %v317_v15 = vld [vmem:[%s2504_s22 + $0x110] sm:$0xff] }
  0x87   : > { %2117 = vmatpush3.bf16.msra.mxu1 %v2114_v36  ;;  %v318_v16 = vld [vmem:[%s2504_s22 + $0x118] sm:$0xff]  ;;  %v319_v17 = vld [vmem:[%s2504_s22 + $0x120] sm:$0xff]  ;;  %v321_v19 = vld [vmem:[%s2504_s22 + $0x130] sm:$0xff] }
  0x88   : > { %2119 = vmatprep.subr.bf16.mxu1 %v2118_v41  ;;  %v322_v20 = vld [vmem:[%s2504_s22 + $0x138] sm:$0xff]  ;;  %v324_v22 = vld [vmem:[%s2504_s22 + $0x148] sm:$0xff]  ;;  %v325_v23 = vld [vmem:[%s2504_s22 + $0x150] sm:$0xff] }
  0x89   : > { %2093 = vmatpush3.bf16.msra.mxu0 %v2090_v18  ;;  %v320_v18 = vld [vmem:[%s2504_s22 + $0x128] sm:$0xff]  ;;  %v326_v24 = vld [vmem:[%s2504_s22 + $0x158] sm:$0xff]  ;;  %v327_v25 = vld [vmem:[%s2504_s22 + $0x160] sm:$0xff] }
  0x8a   : > { %2095 = vmatprep.subr.bf16.mxu0 %v2094_v21  ;;  %v735_v26 = vld [vmem:[#allocation6 + $0x70] sm:$0xff]  ;;  %v736_v27 = vld [vmem:[#allocation6 + $0x78] sm:$0xff]  ;;  %v328_v29 = vld [vmem:[%s2504_s22 + $0x168] sm:$0xff] }
  0x8b   : > { %2121 = vmatpush3.bf16.msra.mxu1 %v2118_v41  ;;  %v2130_v28 = vpack.c.bf16 %v736_v27, %v735_v26  ;;  %v329_v30 = vld [vmem:[%s2504_s22 + $0x170] sm:$0xff]  ;;  %v330_v31 = vld [vmem:[%s2504_s22 + $0x178] sm:$0xff]  ;;  %v332_v33 = vld [vmem:[%s2504_s22 + $0x188] sm:$0xff] }
  0x8c   : > { %2123 = vmatprep.subr.bf16.mxu1 %v2122_v46  ;;  %v2556_v34 = vld [vmem:[#allocation4] ss:$0 sm:$0xff] }
  0x8d   : > { %2097 = vmatpush3.bf16.msra.mxu0 %v2094_v21  ;;  %v323_v21 = vld [vmem:[%s2504_s22 + $0x140] sm:$0xff] }
  0x8e   : > { %2099 = vmatprep.subr.bf16.mxu0 %v2098_v32 }
  0x8f   : > { %2125 = vmatpush3.bf16.msra.mxu1 %v2122_v46 }
  0x90   : > { %2127 = vmatprep.subr.bf16.mxu1 %v2126_v51 }
  0x91   : > { %2101 = vmatpush3.bf16.msra.mxu0 %v2098_v32  ;;  %v331_v32 = vld [vmem:[%s2504_s22 + $0x180] sm:$0xff] }
  0x93   : > { %2129 = vmatpush3.bf16.msra.mxu1 %v2126_v51 }
  0x94   : > { %1889 = vmatmul.mubr.f32.vlgmr.msra.gmra.mrb[0].mxu0 %v284_v37  ;;  %2131 = vmatprep.subr.bf16.mxu1 %v2130_v28 }
  0x95   : > { %1891 = vmatprep.mubr.f32.mxu0 %v285_v40 }
  0x97   : > { %2133 = vmatpush3.bf16.msra.mxu1 %v2130_v28 }
  0x98   : > { %1892 = vmatmul.mubr.f32.gmra.mrb[2].mxu0 %v286_v42 }
  0x99   : > { %1894 = vmatprep.mubr.f32.mxu0 %v287_v45 }
  0x9c   : > { %1895 = vmatmul.mubr.f32.gmra.mrb[4].mxu0 %v288_v47 }
  0x9d   : > { %1897 = vmatprep.mubr.f32.mxu0 %v289_v50 }
  0xa0   : > { %1898 = vmatmul.mubr.f32.gmra.mrb[6].mxu0 %v290_v52 }
  0xa1   : > { %1900 = vmatprep.mubr.f32.mxu0 %v291_v53 }
  0xa4   : > { %1901 = vmatmul.mubr.f32.gmra.mrb[8].mxu0 %v292_v54 }
  0xa5   : > { %1903 = vmatprep.mubr.f32.mxu0 %v293_v55 }
  0xa8   : > { %1904 = vmatmul.mubr.f32.gmra.mrb[10].mxu0 %v294_v56 }
  0xa9   : > { %1906 = vmatprep.mubr.f32.mxu0 %v295_v57 }
  0xac   : > { %1907 = vmatmul.mubr.f32.gmra.mrb[12].mxu0 %v296_v58 }
  0xad   : > { %1909 = vmatprep.mubr.f32.mxu0 %v297_v59 }
  0xb0   : > { %1910 = vmatmul.mubr.f32.gmra.mrb[14].mxu0 %v298_v60 }
  0xb1   : > { %1912 = vmatprep.mubr.f32.mxu0 %v299_v61 }
  0xb4   : > { %1913 = vmatmul.mubr.f32.gmra.mrb[16].mxu0 %v300_v62 }
  0xb5   : > { %1915 = vmatprep.mubr.f32.mxu0 %v301_v63 }
  0xb8   : > { %1916 = vmatmul.mubr.f32.gmra.mrb[18].mxu0 %v302_v0 }
  0xb9   : > { %1918 = vmatprep.mubr.f32.mxu0 %v303_v1 }
  0xbc   : > { %1919 = vmatmul.mubr.f32.gmra.mrb[20].mxu0 %v304_v2 }
  0xbd   : > { %1921 = vmatprep.mubr.f32.mxu0 %v305_v3 }
  0xc0   : > { %1922 = vmatmul.mubr.f32.gmra.mrb[22].mxu0 %v306_v4 }
  0xc1   : > { %1924 = vmatprep.mubr.f32.mxu0 %v307_v5 }
  0xc4   : > { %1925 = vmatmul.mubr.f32.gmra.mrb[24].mxu0 %v308_v6 }
  0xc5   : > { %1927 = vmatprep.mubr.f32.mxu0 %v309_v7 }
  0xc8   : > { %1928 = vmatmul.mubr.f32.gmra.mrb[26].mxu0 %v310_v8 }
  0xc9   : > { %1930 = vmatprep.mubr.f32.mxu0 %v311_v9 }
  0xcc   : > { %1931 = vmatmul.mubr.f32.gmra.mrb[28].mxu0 %v312_v10 }
  0xcd   : > { %1933 = vmatprep.mubr.f32.mxu0 %v313_v11 }
  0xd0   : > { %1934 = vmatmul.mubr.f32.gmra.mrb[30].mxu0 %v314_v12 }
  0xd1   : > { %1936 = vmatprep.mubr.f32.mxu0 %v315_v13 }
  0xd4   : > { %1937 = vmatmul.mubr.f32.gmra.mrb[32].mxu0 %v316_v14 }
  0xd5   : > { %1939 = vmatprep.mubr.f32.mxu0 %v317_v15 }
  0xd8   : > { %1940 = vmatmul.mubr.f32.gmra.mrb[34].mxu0 %v318_v16 }
  0xd9   : > { %1942 = vmatprep.mubr.f32.mxu0 %v319_v17 }
  0xdc   : > { %1943 = vmatmul.mubr.f32.gmra.mrb[36].mxu0 %v320_v18 }
  0xdd   : > { %1945 = vmatprep.mubr.f32.mxu0 %v321_v19 }
  0xe0   : > { %1946 = vmatmul.mubr.f32.gmra.mrb[38].mxu0 %v322_v20 }
  0xe1   : > { %1948 = vmatprep.mubr.f32.mxu0 %v323_v21 }
  0xe4   : > { %1949 = vmatmul.mubr.f32.gmra.mrb[40].mxu0 %v324_v22 }
  0xe5   : > { %1951 = vmatprep.mubr.f32.mxu0 %v325_v23 }
  0xe8   : > { %1952 = vmatmul.mubr.f32.gmra.mrb[42].mxu0 %v326_v24 }
  0xe9   : > { %1954 = vmatprep.mubr.f32.mxu0 %v327_v25 }
  0xec   : > { %1955 = vmatmul.mubr.f32.gmra.mrb[44].mxu0 %v328_v29 }
  0xed   : > { %1957 = vmatprep.mubr.f32.mxu0 %v329_v30 }
  0xf0   : > { %1958 = vmatmul.mubr.f32.gmra.mrb[46].mxu0 %v330_v31 }
  0xf1   : > { %1960 = vmatprep.mubr.f32.mxu0 %v331_v32 }
  0xf4   : > { %1961 = vmatmul.mubr.f32.gmra.mrb[48].mxu0 %v332_v33 }
 0x167   : > { %v1890_v35 = vpop.f32.mrb[0].mxu0 }
 0x168   : > { %v428_v36 = vadd.f32 %v1890_v35, %v2556_v34  ;;  %v422_v37 = vpop.f32.mrb[1].mxu0 }
 0x169   : > { %v423_v38 = vadd.f32 %v2556_v34, %v422_v37 }
 0x16a   : > { %v672_v41 = vmax.f32 %v428_v36, 0.0 }
 0x16b   : > { %v1893_v39 = vpop.f32.mrb[2].mxu0  ;;  %v671_v40 = vmax.f32 %v423_v38, 0.0 }
 0x16c   : > { %v438_v42 = vadd.f32 %v1893_v39, %v2556_v34  ;;  %v432_v43 = vpop.f32.mrb[3].mxu0 }
 0x16d   : > { %v433_v44 = vadd.f32 %v2556_v34, %v432_v43  ;;  %1995 = vmatprep.mubr.f32.mxu1 %v671_v40 }
 0x16e   : > { %1996 = vmatmul.mubr.f32.vlgmr.msra.gmra.mrb[0].mxu1 %v672_v41  ;;  %v674_v47 = vmax.f32 %v438_v42, 0.0 }
 0x16f   : > { %v673_v45 = vmax.f32 %v433_v44, 0.0  ;;  %v1896_v46 = vpop.f32.mrb[4].mxu0 }
 0x170   : > { %v448_v48 = vadd.f32 %v1896_v46, %v2556_v34  ;;  %v442_v49 = vpop.f32.mrb[5].mxu0 }
 0x171   : > { %v443_v50 = vadd.f32 %v2556_v34, %v442_v49  ;;  %1998 = vmatprep.mubr.f32.mxu1 %v673_v45 }
 0x172   : > { %1999 = vmatmul.mubr.f32.gmra.mrb[2].mxu1 %v674_v47  ;;  %v676_v53 = vmax.f32 %v448_v48, 0.0 }
 0x173   : > { %v675_v51 = vmax.f32 %v443_v50, 0.0  ;;  %v1899_v52 = vpop.f32.mrb[6].mxu0 }
 0x174   : > { %v458_v54 = vadd.f32 %v1899_v52, %v2556_v34  ;;  %v452_v55 = vpop.f32.mrb[7].mxu0 }
 0x175   : > { %v453_v56 = vadd.f32 %v2556_v34, %v452_v55  ;;  %2001 = vmatprep.mubr.f32.mxu1 %v675_v51 }
 0x176   : > { %2002 = vmatmul.mubr.f32.gmra.mrb[4].mxu1 %v676_v53  ;;  %v678_v59 = vmax.f32 %v458_v54, 0.0 }
 0x177   : > { %v677_v57 = vmax.f32 %v453_v56, 0.0  ;;  %v1902_v58 = vpop.f32.mrb[8].mxu0 }
 0x178   : > { %v468_v60 = vadd.f32 %v1902_v58, %v2556_v34  ;;  %v462_v61 = vpop.f32.mrb[9].mxu0 }
 0x179   : > { %v463_v62 = vadd.f32 %v2556_v34, %v462_v61  ;;  %2004 = vmatprep.mubr.f32.mxu1 %v677_v57 }
 0x17a   : > { %2005 = vmatmul.mubr.f32.gmra.mrb[6].mxu1 %v678_v59  ;;  %v680_v1 = vmax.f32 %v468_v60, 0.0 }
 0x17b   : > { %v679_v63 = vmax.f32 %v463_v62, 0.0  ;;  %v1905_v0 = vpop.f32.mrb[10].mxu0 }
 0x17c   : > { %v478_v2 = vadd.f32 %v1905_v0, %v2556_v34  ;;  %v472_v3 = vpop.f32.mrb[11].mxu0 }
 0x17d   : > { %v473_v4 = vadd.f32 %v2556_v34, %v472_v3  ;;  %2007 = vmatprep.mubr.f32.mxu1 %v679_v63 }
 0x17e   : > { %2008 = vmatmul.mubr.f32.gmra.mrb[8].mxu1 %v680_v1  ;;  %v682_v7 = vmax.f32 %v478_v2, 0.0 }
 0x17f   : > { %v681_v5 = vmax.f32 %v473_v4, 0.0  ;;  %v1908_v6 = vpop.f32.mrb[12].mxu0 }
 0x180   : > { %v488_v8 = vadd.f32 %v1908_v6, %v2556_v34  ;;  %v482_v9 = vpop.f32.mrb[13].mxu0 }
 0x181   : > { %v483_v10 = vadd.f32 %v2556_v34, %v482_v9  ;;  %2010 = vmatprep.mubr.f32.mxu1 %v681_v5 }
 0x182   : > { %2011 = vmatmul.mubr.f32.gmra.mrb[10].mxu1 %v682_v7  ;;  %v684_v13 = vmax.f32 %v488_v8, 0.0 }
 0x183   : > { %v683_v11 = vmax.f32 %v483_v10, 0.0  ;;  %v1911_v12 = vpop.f32.mrb[14].mxu0 }
 0x184   : > { %v498_v14 = vadd.f32 %v1911_v12, %v2556_v34  ;;  %v492_v15 = vpop.f32.mrb[15].mxu0 }
 0x185   : > { %v493_v16 = vadd.f32 %v2556_v34, %v492_v15  ;;  %2013 = vmatprep.mubr.f32.mxu1 %v683_v11 }
 0x186   : > { %2014 = vmatmul.mubr.f32.gmra.mrb[12].mxu1 %v684_v13  ;;  %v686_v19 = vmax.f32 %v498_v14, 0.0 }
 0x187   : > { %v685_v17 = vmax.f32 %v493_v16, 0.0  ;;  %v1914_v18 = vpop.f32.mrb[16].mxu0 }
 0x188   : > { %v508_v20 = vadd.f32 %v1914_v18, %v2556_v34  ;;  %v502_v21 = vpop.f32.mrb[17].mxu0 }
 0x189   : > { %v503_v22 = vadd.f32 %v2556_v34, %v502_v21  ;;  %2016 = vmatprep.mubr.f32.mxu1 %v685_v17 }
 0x18a   : > { %2017 = vmatmul.mubr.f32.gmra.mrb[14].mxu1 %v686_v19  ;;  %v688_v25 = vmax.f32 %v508_v20, 0.0 }
 0x18b   : > { %v687_v23 = vmax.f32 %v503_v22, 0.0  ;;  %v1917_v24 = vpop.f32.mrb[18].mxu0 }
 0x18c   : > { %v518_v26 = vadd.f32 %v1917_v24, %v2556_v34  ;;  %v512_v27 = vpop.f32.mrb[19].mxu0 }
 0x18d   : > { %v513_v28 = vadd.f32 %v2556_v34, %v512_v27  ;;  %2019 = vmatprep.mubr.f32.mxu1 %v687_v23 }
 0x18e   : > { %2020 = vmatmul.mubr.f32.gmra.mrb[16].mxu1 %v688_v25  ;;  %v690_v31 = vmax.f32 %v518_v26, 0.0 }
 0x18f   : > { %v689_v29 = vmax.f32 %v513_v28, 0.0  ;;  %v1920_v30 = vpop.f32.mrb[20].mxu0 }
 0x190   : > { %v528_v32 = vadd.f32 %v1920_v30, %v2556_v34  ;;  %v522_v33 = vpop.f32.mrb[21].mxu0 }
 0x191   : > { %v523_v35 = vadd.f32 %v2556_v34, %v522_v33  ;;  %2022 = vmatprep.mubr.f32.mxu1 %v689_v29 }
 0x192   : > { %2023 = vmatmul.mubr.f32.gmra.mrb[18].mxu1 %v690_v31  ;;  %v692_v38 = vmax.f32 %v528_v32, 0.0 }
 0x193   : > { %v691_v36 = vmax.f32 %v523_v35, 0.0  ;;  %v1923_v37 = vpop.f32.mrb[22].mxu0 }
 0x194   : > { %v538_v39 = vadd.f32 %v1923_v37, %v2556_v34  ;;  %v532_v40 = vpop.f32.mrb[23].mxu0 }
 0x195   : > { %v533_v41 = vadd.f32 %v2556_v34, %v532_v40  ;;  %2025 = vmatprep.mubr.f32.mxu1 %v691_v36 }
 0x196   : > { %2026 = vmatmul.mubr.f32.gmra.mrb[20].mxu1 %v692_v38  ;;  %v694_v44 = vmax.f32 %v538_v39, 0.0 }
 0x197   : > { %v693_v42 = vmax.f32 %v533_v41, 0.0  ;;  %v1926_v43 = vpop.f32.mrb[24].mxu0 }
 0x198   : > { %v548_v45 = vadd.f32 %v1926_v43, %v2556_v34  ;;  %v542_v46 = vpop.f32.mrb[25].mxu0 }
 0x199   : > { %v543_v47 = vadd.f32 %v2556_v34, %v542_v46  ;;  %2028 = vmatprep.mubr.f32.mxu1 %v693_v42 }
 0x19a   : > { %2029 = vmatmul.mubr.f32.gmra.mrb[22].mxu1 %v694_v44  ;;  %v696_v50 = vmax.f32 %v548_v45, 0.0 }
 0x19b   : > { %v695_v48 = vmax.f32 %v543_v47, 0.0  ;;  %v1929_v49 = vpop.f32.mrb[26].mxu0 }
 0x19c   : > { %v558_v51 = vadd.f32 %v1929_v49, %v2556_v34  ;;  %v552_v52 = vpop.f32.mrb[27].mxu0 }
 0x19d   : > { %v553_v53 = vadd.f32 %v2556_v34, %v552_v52  ;;  %2031 = vmatprep.mubr.f32.mxu1 %v695_v48 }
 0x19e   : > { %2032 = vmatmul.mubr.f32.gmra.mrb[24].mxu1 %v696_v50  ;;  %v698_v56 = vmax.f32 %v558_v51, 0.0 }
 0x19f   : > { %v697_v54 = vmax.f32 %v553_v53, 0.0  ;;  %v1932_v55 = vpop.f32.mrb[28].mxu0 }
 0x1a0   : > { %v568_v57 = vadd.f32 %v1932_v55, %v2556_v34  ;;  %v562_v58 = vpop.f32.mrb[29].mxu0 }
 0x1a1   : > { %v563_v59 = vadd.f32 %v2556_v34, %v562_v58  ;;  %2034 = vmatprep.mubr.f32.mxu1 %v697_v54 }
 0x1a2   : > { %2035 = vmatmul.mubr.f32.gmra.mrb[26].mxu1 %v698_v56  ;;  %v700_v62 = vmax.f32 %v568_v57, 0.0 }
 0x1a3   : > { %v699_v60 = vmax.f32 %v563_v59, 0.0  ;;  %v1935_v61 = vpop.f32.mrb[30].mxu0  ;;  %v2608_v59 = vld [vmem:[#allocation7] ss:$0 sm:$0xff] }
 0x1a4   : > { %v578_v63 = vadd.f32 %v1935_v61, %v2556_v34  ;;  %v572_v0 = vpop.f32.mrb[31].mxu0 }
 0x1a5   : > { %v573_v1 = vadd.f32 %v2556_v34, %v572_v0  ;;  %2037 = vmatprep.mubr.f32.mxu1 %v699_v60 }
 0x1a6   : > { %2038 = vmatmul.mubr.f32.gmra.mrb[28].mxu1 %v700_v62  ;;  %v702_v4 = vmax.f32 %v578_v63, 0.0 }
 0x1a7   : > { %v701_v2 = vmax.f32 %v573_v1, 0.0  ;;  %v1938_v3 = vpop.f32.mrb[32].mxu0 }
 0x1a8   : > { %v588_v5 = vadd.f32 %v1938_v3, %v2556_v34  ;;  %v582_v6 = vpop.f32.mrb[33].mxu0 }
 0x1a9   : > { %v583_v7 = vadd.f32 %v2556_v34, %v582_v6  ;;  %2040 = vmatprep.mubr.f32.mxu1 %v701_v2 }
 0x1aa   : > { %2041 = vmatmul.mubr.f32.gmra.mrb[30].mxu1 %v702_v4  ;;  %v704_v10 = vmax.f32 %v588_v5, 0.0 }
 0x1ab   : > { %v703_v8 = vmax.f32 %v583_v7, 0.0  ;;  %v1941_v9 = vpop.f32.mrb[34].mxu0 }
 0x1ac   : > { %v598_v11 = vadd.f32 %v1941_v9, %v2556_v34  ;;  %v592_v12 = vpop.f32.mrb[35].mxu0 }
 0x1ad   : > { %v593_v13 = vadd.f32 %v2556_v34, %v592_v12  ;;  %2043 = vmatprep.mubr.f32.mxu1 %v703_v8 }
 0x1ae   : > { %2044 = vmatmul.mubr.f32.gmra.mrb[32].mxu1 %v704_v10  ;;  %v706_v16 = vmax.f32 %v598_v11, 0.0 }
 0x1af   : > { %v705_v14 = vmax.f32 %v593_v13, 0.0  ;;  %v1944_v15 = vpop.f32.mrb[36].mxu0 }
 0x1b0   : > { %v608_v17 = vadd.f32 %v1944_v15, %v2556_v34  ;;  %v602_v18 = vpop.f32.mrb[37].mxu0 }
 0x1b1   : > { %v603_v19 = vadd.f32 %v2556_v34, %v602_v18  ;;  %2046 = vmatprep.mubr.f32.mxu1 %v705_v14 }
 0x1b2   : > { %2047 = vmatmul.mubr.f32.gmra.mrb[34].mxu1 %v706_v16  ;;  %v708_v22 = vmax.f32 %v608_v17, 0.0 }
 0x1b3   : > { %v707_v20 = vmax.f32 %v603_v19, 0.0  ;;  %v1947_v21 = vpop.f32.mrb[38].mxu0 }
 0x1b4   : > { %v618_v23 = vadd.f32 %v1947_v21, %v2556_v34  ;;  %v612_v24 = vpop.f32.mrb[39].mxu0 }
 0x1b5   : > { %v613_v25 = vadd.f32 %v2556_v34, %v612_v24  ;;  %2049 = vmatprep.mubr.f32.mxu1 %v707_v20 }
 0x1b6   : > { %2050 = vmatmul.mubr.f32.gmra.mrb[36].mxu1 %v708_v22  ;;  %v710_v28 = vmax.f32 %v618_v23, 0.0 }
 0x1b7   : > { %v709_v26 = vmax.f32 %v613_v25, 0.0  ;;  %v1950_v27 = vpop.f32.mrb[40].mxu0 }
 0x1b8   : > { %v628_v29 = vadd.f32 %v1950_v27, %v2556_v34  ;;  %v622_v30 = vpop.f32.mrb[41].mxu0 }
 0x1b9   : > { %v623_v31 = vadd.f32 %v2556_v34, %v622_v30  ;;  %2052 = vmatprep.mubr.f32.mxu1 %v709_v26 }
 0x1ba   : > { %2053 = vmatmul.mubr.f32.gmra.mrb[38].mxu1 %v710_v28  ;;  %v712_v35 = vmax.f32 %v628_v29, 0.0 }
 0x1bb   : > { %v711_v32 = vmax.f32 %v623_v31, 0.0  ;;  %v1953_v33 = vpop.f32.mrb[42].mxu0 }
 0x1bc   : > { %v638_v36 = vadd.f32 %v1953_v33, %v2556_v34  ;;  %v632_v37 = vpop.f32.mrb[43].mxu0 }
 0x1bd   : > { %v633_v38 = vadd.f32 %v2556_v34, %v632_v37  ;;  %2055 = vmatprep.mubr.f32.mxu1 %v711_v32 }
 0x1be   : > { %2056 = vmatmul.mubr.f32.gmra.mrb[40].mxu1 %v712_v35  ;;  %v714_v41 = vmax.f32 %v638_v36, 0.0 }
 0x1bf   : > { %v713_v39 = vmax.f32 %v633_v38, 0.0  ;;  %v1956_v40 = vpop.f32.mrb[44].mxu0 }
 0x1c0   : > { %v648_v42 = vadd.f32 %v1956_v40, %v2556_v34  ;;  %v642_v43 = vpop.f32.mrb[45].mxu0 }
 0x1c1   : > { %v643_v44 = vadd.f32 %v2556_v34, %v642_v43  ;;  %2058 = vmatprep.mubr.f32.mxu1 %v713_v39 }
 0x1c2   : > { %2059 = vmatmul.mubr.f32.gmra.mrb[42].mxu1 %v714_v41  ;;  %v716_v47 = vmax.f32 %v648_v42, 0.0 }
 0x1c3   : > { %v715_v45 = vmax.f32 %v643_v44, 0.0  ;;  %v1959_v46 = vpop.f32.mrb[46].mxu0 }
 0x1c4   : > { %v658_v48 = vadd.f32 %v1959_v46, %v2556_v34  ;;  %v652_v49 = vpop.f32.mrb[47].mxu0 }
 0x1c5   : > { %v653_v50 = vadd.f32 %v2556_v34, %v652_v49  ;;  %2061 = vmatprep.mubr.f32.mxu1 %v715_v45 }
 0x1c6   : > { %2062 = vmatmul.mubr.f32.gmra.mrb[44].mxu1 %v716_v47  ;;  %v718_v53 = vmax.f32 %v658_v48, 0.0 }
 0x1c7   : > { %v717_v51 = vmax.f32 %v653_v50, 0.0  ;;  %v1962_v52 = vpop.f32.mrb[48].mxu0 }
 0x1c8   : > { %v668_v54 = vadd.f32 %v1962_v52, %v2556_v34  ;;  %v662_v55 = vpop.f32.mrb[49].mxu0 }
 0x1c9   : > { %v663_v56 = vadd.f32 %v2556_v34, %v662_v55  ;;  %2064 = vmatprep.mubr.f32.mxu1 %v717_v51 }
 0x1ca   : > { %2065 = vmatmul.mubr.f32.gmra.mrb[46].mxu1 %v718_v53  ;;  %v720_v58 = vmax.f32 %v668_v54, 0.0 }
 0x1cb   : > { %v719_v57 = vmax.f32 %v663_v56, 0.0 }
 0x1cd   : > { %2067 = vmatprep.mubr.f32.mxu1 %v719_v57 }
 0x1ce   : > { %2068 = vmatmul.mubr.f32.gmra.mrb[48].mxu1 %v720_v58 }
 0x241   : > { %v1997_v60 = vpop.f32.mrb[0].mxu1 }
 0x242   : > { %v816_v61 = vadd.f32 %v1997_v60, %v2608_v59  ;;  %v810_v62 = vpop.f32.mrb[1].mxu1 }
 0x243   : > { %v811_v63 = vadd.f32 %v2608_v59, %v810_v62 }
 0x244   : > { %v1060_v0 = vmax.f32 %v816_v61, 0.0 }
 0x245   : > { %v1059_v1 = vmax.f32 %v811_v63, 0.0  ;;  %v2000_v2 = vpop.f32.mrb[2].mxu1 }
 0x246   : > { %v826_v34 = vadd.f32 %v2000_v2, %v2608_v59  ;;  %v820_v3 = vpop.f32.mrb[3].mxu1 }
 0x247   : > { %v1578_v4 = vpack.c.bf16 %v1060_v0, %v1059_v1  ;;  %v821_v5 = vadd.f32 %v2608_v59, %v820_v3 }
 0x248   : > { %v1062_v6 = vmax.f32 %v826_v34, 0.0 }
 0x249   : > { %1579 = vst [vmem:[%s2616_s24] sm:$0xff] %v1578_v4   ;;  %v1061_v7 = vmax.f32 %v821_v5, 0.0  ;;  %v2003_v8 = vpop.f32.mrb[4].mxu1 }
 0x24a   : > { %v836_v9 = vadd.f32 %v2003_v8, %v2608_v59  ;;  %v830_v10 = vpop.f32.mrb[5].mxu1 }
 0x24b   : > { %v1583_v11 = vpack.c.bf16 %v1062_v6, %v1061_v7  ;;  %v831_v12 = vadd.f32 %v2608_v59, %v830_v10 }
 0x24c   : > { %v1064_v13 = vmax.f32 %v836_v9, 0.0 }
 0x24d   : > { %1700 = vst [vmem:[%s2616_s24 + $0x8] sm:$0xff] %v1583_v11   ;;  %v1063_v14 = vmax.f32 %v831_v12, 0.0  ;;  %v2006_v15 = vpop.f32.mrb[6].mxu1 }
 0x24e   : > { %v846_v16 = vadd.f32 %v2006_v15, %v2608_v59  ;;  %v840_v17 = vpop.f32.mrb[7].mxu1 }
 0x24f   : > { %v1588_v18 = vpack.c.bf16 %v1064_v13, %v1063_v14  ;;  %v841_v19 = vadd.f32 %v2608_v59, %v840_v17 }
 0x250   : > { %v1066_v20 = vmax.f32 %v846_v16, 0.0 }
 0x251   : > { %1701 = vst [vmem:[%s2616_s24 + $0x10] sm:$0xff] %v1588_v18   ;;  %v1065_v21 = vmax.f32 %v841_v19, 0.0  ;;  %v2009_v22 = vpop.f32.mrb[8].mxu1 }
 0x252   : > { %v856_v23 = vadd.f32 %v2009_v22, %v2608_v59  ;;  %v850_v24 = vpop.f32.mrb[9].mxu1 }
 0x253   : > { %v1593_v25 = vpack.c.bf16 %v1066_v20, %v1065_v21  ;;  %v851_v26 = vadd.f32 %v2608_v59, %v850_v24 }
 0x254   : > { %v1068_v27 = vmax.f32 %v856_v23, 0.0 }
 0x255   : > { %1702 = vst [vmem:[%s2616_s24 + $0x18] sm:$0xff] %v1593_v25   ;;  %v1067_v28 = vmax.f32 %v851_v26, 0.0  ;;  %v2012_v29 = vpop.f32.mrb[10].mxu1 }
 0x256   : > { %v866_v30 = vadd.f32 %v2012_v29, %v2608_v59  ;;  %v860_v31 = vpop.f32.mrb[11].mxu1 }
 0x257   : > { %v1598_v32 = vpack.c.bf16 %v1068_v27, %v1067_v28  ;;  %v861_v33 = vadd.f32 %v2608_v59, %v860_v31 }
 0x258   : > { %v1070_v35 = vmax.f32 %v866_v30, 0.0 }
 0x259   : > { %1703 = vst [vmem:[%s2616_s24 + $0x20] sm:$0xff] %v1598_v32   ;;  %v1069_v36 = vmax.f32 %v861_v33, 0.0  ;;  %v2015_v37 = vpop.f32.mrb[12].mxu1 }
 0x25a   : > { %v876_v38 = vadd.f32 %v2015_v37, %v2608_v59  ;;  %v870_v39 = vpop.f32.mrb[13].mxu1 }
 0x25b   : > { %v1603_v40 = vpack.c.bf16 %v1070_v35, %v1069_v36  ;;  %v871_v41 = vadd.f32 %v2608_v59, %v870_v39 }
 0x25c   : > { %v1072_v42 = vmax.f32 %v876_v38, 0.0 }
 0x25d   : > { %1704 = vst [vmem:[%s2616_s24 + $0x28] sm:$0xff] %v1603_v40   ;;  %v1071_v43 = vmax.f32 %v871_v41, 0.0  ;;  %v2018_v44 = vpop.f32.mrb[14].mxu1 }
 0x25e   : > { %v886_v45 = vadd.f32 %v2018_v44, %v2608_v59  ;;  %v880_v46 = vpop.f32.mrb[15].mxu1 }
 0x25f   : > { %v1608_v47 = vpack.c.bf16 %v1072_v42, %v1071_v43  ;;  %v881_v48 = vadd.f32 %v2608_v59, %v880_v46 }
 0x260   : > { %v1074_v49 = vmax.f32 %v886_v45, 0.0 }
 0x261   : > { %1705 = vst [vmem:[%s2616_s24 + $0x30] sm:$0xff] %v1608_v47   ;;  %v1073_v50 = vmax.f32 %v881_v48, 0.0  ;;  %v2021_v51 = vpop.f32.mrb[16].mxu1 }
 0x262   : > { %v896_v52 = vadd.f32 %v2021_v51, %v2608_v59  ;;  %v890_v53 = vpop.f32.mrb[17].mxu1 }
 0x263   : > { %v1613_v54 = vpack.c.bf16 %v1074_v49, %v1073_v50  ;;  %v891_v55 = vadd.f32 %v2608_v59, %v890_v53 }
 0x264   : > { %v1076_v56 = vmax.f32 %v896_v52, 0.0 }
 0x265   : > { %1706 = vst [vmem:[%s2616_s24 + $0x38] sm:$0xff] %v1613_v54   ;;  %v1075_v57 = vmax.f32 %v891_v55, 0.0  ;;  %v2024_v58 = vpop.f32.mrb[18].mxu1 }
 0x266   : > { %v906_v60 = vadd.f32 %v2024_v58, %v2608_v59  ;;  %v900_v61 = vpop.f32.mrb[19].mxu1 }
 0x267   : > { %v1618_v62 = vpack.c.bf16 %v1076_v56, %v1075_v57  ;;  %v901_v63 = vadd.f32 %v2608_v59, %v900_v61 }
 0x268   : > { %v1078_v0 = vmax.f32 %v906_v60, 0.0 }
 0x269   : > { %1707 = vst [vmem:[%s2616_s24 + $0x40] sm:$0xff] %v1618_v62   ;;  %v1077_v1 = vmax.f32 %v901_v63, 0.0  ;;  %v2027_v2 = vpop.f32.mrb[20].mxu1 }
 0x26a   : > { %v916_v34 = vadd.f32 %v2027_v2, %v2608_v59  ;;  %v910_v3 = vpop.f32.mrb[21].mxu1 }
 0x26b   : > { %v1623_v4 = vpack.c.bf16 %v1078_v0, %v1077_v1  ;;  %v911_v5 = vadd.f32 %v2608_v59, %v910_v3 }
 0x26c   : > { %v1080_v6 = vmax.f32 %v916_v34, 0.0 }
 0x26d   : > { %1708 = vst [vmem:[%s2616_s24 + $0x48] sm:$0xff] %v1623_v4   ;;  %v1079_v7 = vmax.f32 %v911_v5, 0.0  ;;  %v2030_v8 = vpop.f32.mrb[22].mxu1 }
 0x26e   : > { %v926_v9 = vadd.f32 %v2030_v8, %v2608_v59  ;;  %v920_v10 = vpop.f32.mrb[23].mxu1 }
 0x26f   : > { %v1628_v11 = vpack.c.bf16 %v1080_v6, %v1079_v7  ;;  %v921_v12 = vadd.f32 %v2608_v59, %v920_v10 }
 0x270   : > { %v1082_v13 = vmax.f32 %v926_v9, 0.0 }
 0x271   : > { %1709 = vst [vmem:[%s2616_s24 + $0x50] sm:$0xff] %v1628_v11   ;;  %v1081_v14 = vmax.f32 %v921_v12, 0.0  ;;  %v2033_v15 = vpop.f32.mrb[24].mxu1 }
 0x272   : > { %v936_v16 = vadd.f32 %v2033_v15, %v2608_v59  ;;  %v930_v17 = vpop.f32.mrb[25].mxu1 }
 0x273   : > { %v1633_v18 = vpack.c.bf16 %v1082_v13, %v1081_v14  ;;  %v931_v19 = vadd.f32 %v2608_v59, %v930_v17 }
 0x274   : > { %v1084_v20 = vmax.f32 %v936_v16, 0.0 }
 0x275   : > { %1710 = vst [vmem:[%s2616_s24 + $0x58] sm:$0xff] %v1633_v18   ;;  %v1083_v21 = vmax.f32 %v931_v19, 0.0  ;;  %v2036_v22 = vpop.f32.mrb[26].mxu1 }
 0x276   : > { %v946_v23 = vadd.f32 %v2036_v22, %v2608_v59  ;;  %v940_v24 = vpop.f32.mrb[27].mxu1 }
 0x277   : > { %v1638_v25 = vpack.c.bf16 %v1084_v20, %v1083_v21  ;;  %v941_v26 = vadd.f32 %v2608_v59, %v940_v24 }
 0x278   : > { %v1086_v27 = vmax.f32 %v946_v23, 0.0 }
 0x279   : > { %1711 = vst [vmem:[%s2616_s24 + $0x60] sm:$0xff] %v1638_v25   ;;  %v1085_v28 = vmax.f32 %v941_v26, 0.0  ;;  %v2039_v29 = vpop.f32.mrb[28].mxu1 }
 0x27a   : > { %v956_v30 = vadd.f32 %v2039_v29, %v2608_v59  ;;  %v950_v31 = vpop.f32.mrb[29].mxu1 }
 0x27b   : > { %v1643_v32 = vpack.c.bf16 %v1086_v27, %v1085_v28  ;;  %v951_v33 = vadd.f32 %v2608_v59, %v950_v31 }
 0x27c   : > { %v1088_v35 = vmax.f32 %v956_v30, 0.0 }
 0x27d   : > { %1712 = vst [vmem:[%s2616_s24 + $0x68] sm:$0xff] %v1643_v32   ;;  %v1087_v36 = vmax.f32 %v951_v33, 0.0  ;;  %v2042_v37 = vpop.f32.mrb[30].mxu1 }
 0x27e   : > { %v966_v38 = vadd.f32 %v2042_v37, %v2608_v59  ;;  %v960_v39 = vpop.f32.mrb[31].mxu1 }
 0x27f   : > { %v1648_v40 = vpack.c.bf16 %v1088_v35, %v1087_v36  ;;  %v961_v41 = vadd.f32 %v2608_v59, %v960_v39 }
 0x280   : > { %v1090_v42 = vmax.f32 %v966_v38, 0.0 }
 0x281   : > { %1713 = vst [vmem:[%s2616_s24 + $0x70] sm:$0xff] %v1648_v40   ;;  %v1089_v43 = vmax.f32 %v961_v41, 0.0  ;;  %v2045_v44 = vpop.f32.mrb[32].mxu1 }
 0x282   : > { %v976_v45 = vadd.f32 %v2045_v44, %v2608_v59  ;;  %v970_v46 = vpop.f32.mrb[33].mxu1 }
 0x283   : > { %v1653_v47 = vpack.c.bf16 %v1090_v42, %v1089_v43  ;;  %v971_v48 = vadd.f32 %v2608_v59, %v970_v46 }
 0x284   : > { %v1092_v49 = vmax.f32 %v976_v45, 0.0 }
 0x285   : > { %1714 = vst [vmem:[%s2616_s24 + $0x78] sm:$0xff] %v1653_v47   ;;  %v1091_v50 = vmax.f32 %v971_v48, 0.0  ;;  %v2048_v51 = vpop.f32.mrb[34].mxu1 }
 0x286   : > { %v986_v52 = vadd.f32 %v2048_v51, %v2608_v59  ;;  %v980_v53 = vpop.f32.mrb[35].mxu1 }
 0x287   : > { %v1658_v54 = vpack.c.bf16 %v1092_v49, %v1091_v50  ;;  %v981_v55 = vadd.f32 %v2608_v59, %v980_v53 }
 0x288   : > { %v1094_v56 = vmax.f32 %v986_v52, 0.0 }
 0x289   : > { %1715 = vst [vmem:[%s2616_s24 + $0x80] sm:$0xff] %v1658_v54   ;;  %v1093_v57 = vmax.f32 %v981_v55, 0.0  ;;  %v2051_v58 = vpop.f32.mrb[36].mxu1 }
 0x28a   : > { %v996_v60 = vadd.f32 %v2051_v58, %v2608_v59  ;;  %v990_v61 = vpop.f32.mrb[37].mxu1 }
 0x28b   : > { %v1663_v62 = vpack.c.bf16 %v1094_v56, %v1093_v57  ;;  %v991_v63 = vadd.f32 %v2608_v59, %v990_v61 }
 0x28c   : > { %v1096_v0 = vmax.f32 %v996_v60, 0.0 }
 0x28d   : > { %1716 = vst [vmem:[%s2616_s24 + $0x88] sm:$0xff] %v1663_v62   ;;  %v1095_v1 = vmax.f32 %v991_v63, 0.0  ;;  %v2054_v2 = vpop.f32.mrb[38].mxu1 }
 0x28e   : > { %v1006_v34 = vadd.f32 %v2054_v2, %v2608_v59  ;;  %v1000_v3 = vpop.f32.mrb[39].mxu1 }
 0x28f   : > { %v1668_v4 = vpack.c.bf16 %v1096_v0, %v1095_v1  ;;  %v1001_v5 = vadd.f32 %v2608_v59, %v1000_v3 }
 0x290   : > { %v1098_v6 = vmax.f32 %v1006_v34, 0.0 }
 0x291   : > { %1717 = vst [vmem:[%s2616_s24 + $0x90] sm:$0xff] %v1668_v4   ;;  %v1097_v7 = vmax.f32 %v1001_v5, 0.0  ;;  %v2057_v8 = vpop.f32.mrb[40].mxu1 }
 0x292   : > { %v1016_v9 = vadd.f32 %v2057_v8, %v2608_v59  ;;  %v1010_v10 = vpop.f32.mrb[41].mxu1 }
 0x293   : > { %v1673_v11 = vpack.c.bf16 %v1098_v6, %v1097_v7  ;;  %v1011_v12 = vadd.f32 %v2608_v59, %v1010_v10 }
 0x294   : > { %v1100_v13 = vmax.f32 %v1016_v9, 0.0 }
 0x295   : > { %1718 = vst [vmem:[%s2616_s24 + $0x98] sm:$0xff] %v1673_v11   ;;  %v1099_v14 = vmax.f32 %v1011_v12, 0.0  ;;  %v2060_v15 = vpop.f32.mrb[42].mxu1 }
 0x296   : > { %v1026_v16 = vadd.f32 %v2060_v15, %v2608_v59  ;;  %v1020_v17 = vpop.f32.mrb[43].mxu1 }
 0x297   : > { %v1678_v18 = vpack.c.bf16 %v1100_v13, %v1099_v14  ;;  %v1021_v19 = vadd.f32 %v2608_v59, %v1020_v17 }
 0x298   : > { %v1102_v20 = vmax.f32 %v1026_v16, 0.0 }
 0x299   : > { %1719 = vst [vmem:[%s2616_s24 + $0xa0] sm:$0xff] %v1678_v18   ;;  %v1101_v21 = vmax.f32 %v1021_v19, 0.0  ;;  %v2063_v22 = vpop.f32.mrb[44].mxu1 }
 0x29a   : > { %v1036_v23 = vadd.f32 %v2063_v22, %v2608_v59  ;;  %v1030_v24 = vpop.f32.mrb[45].mxu1 }
 0x29b   : > { %v1683_v25 = vpack.c.bf16 %v1102_v20, %v1101_v21  ;;  %v1031_v26 = vadd.f32 %v2608_v59, %v1030_v24 }
 0x29c   : > { %v1104_v27 = vmax.f32 %v1036_v23, 0.0 }
 0x29d   : > { %1720 = vst [vmem:[%s2616_s24 + $0xa8] sm:$0xff] %v1683_v25   ;;  %v1103_v28 = vmax.f32 %v1031_v26, 0.0  ;;  %v2066_v29 = vpop.f32.mrb[46].mxu1 }
 0x29e   : > { %v1046_v30 = vadd.f32 %v2066_v29, %v2608_v59  ;;  %v1040_v31 = vpop.f32.mrb[47].mxu1 }
 0x29f   : > { %v1688_v32 = vpack.c.bf16 %v1104_v27, %v1103_v28  ;;  %v1041_v33 = vadd.f32 %v2608_v59, %v1040_v31 }
 0x2a0   : > { %v1106_v35 = vmax.f32 %v1046_v30, 0.0 }
 0x2a1   : > { %1721 = vst [vmem:[%s2616_s24 + $0xb0] sm:$0xff] %v1688_v32   ;;  %v1105_v36 = vmax.f32 %v1041_v33, 0.0  ;;  %v2069_v37 = vpop.f32.mrb[48].mxu1 }
 0x2a2   : > { %v1056_v38 = vadd.f32 %v2069_v37, %v2608_v59  ;;  %v1050_v39 = vpop.f32.mrb[49].mxu1 }
 0x2a3   : > { %v1693_v40 = vpack.c.bf16 %v1106_v35, %v1105_v36  ;;  %v1051_v41 = vadd.f32 %v2608_v59, %v1050_v39 }
 0x2a4   : > { %v1108_v42 = vmax.f32 %v1056_v38, 0.0 }
 0x2a5   : > { %1722 = vst [vmem:[%s2616_s24 + $0xb8] sm:$0xff] %v1693_v40   ;;  %v1107_v43 = vmax.f32 %v1051_v41, 0.0 }
 0x2a7   : > { %v1698_v44 = vpack.c.bf16 %v1108_v42, %v1107_v43 }
 0x2a9   : > { %1723 = vst [vmem:[%s2616_s24 + $0xc0] sm:$0xff] %v1698_v44  }
 0x2aa PF: > { %s18_s18 = sadd.s32 1, %s2315_s18  }
 0x2ab   : > { %p15_p3 = scmp.ge.s32.totalorder %s18_s18, 4  }
 0x2ad   :  { %17 = sbr.rel (!%p15_p3) target bundleno = 3 (0x3), region = 87 }
 0x2b4   :  { %1381 = vsyncpa [#allocation3], 1 }
 0x2b5   :  { %1383 = vsyncpa [#allocation3 + $0x1], 1 }
 0x2b6   :  { %1384 = vsyncpa [#allocation5], 1 }
 0x2b7   :  { %1385 = vsyncpa [#allocation8], 1 }

// kernel: forward.3
= control target key start
LH: loop header
LB: loop body
LE: loop exit
PB: predicated region body
PF: predicated region fallthrough
CT: control target
= control target key end

     0   :  { %12 = vsyncpa [#allocation3], 0  ;;  %s25323_s0 = inlined_call_operand.vmem [shape: bf16[16,25600], index: 0, kind: input, shape index: {}]   ;;  %s25324_s1 = inlined_call_operand.hbm [shape: bf16[25600,128], index: 1, kind: input, shape index: {}]   ;;  %s25325_s2 = inlined_call_operand.hbm [shape: f32[1,128], index: 2, kind: input, shape index: {}]   ;;  %s25326_s3 = inlined_call_operand.hbm [shape: f32[128,128], index: 3, kind: input, shape index: {}]   ;;  %s25327_s4 = inlined_call_operand.hbm [shape: f32[1,128], index: 4, kind: input, shape index: {}]   ;;  %s25328_s5 = inlined_call_operand.hbm [shape: f32[128,128], index: 5, kind: input, shape index: {}]   ;;  %s25329_s6 = inlined_call_operand.hbm [shape: f32[1,128], index: 6, kind: input, shape index: {}]   ;;  %s25330_s7 = inlined_call_operand.vmem [shape: f32[16,128], index: 7, kind: output, shape index: {}]  }
   0x1   :  { %13 = vsyncpa [#allocation5], 0 }
   0x2   :  { %14 = vsyncpa [#allocation8], 0 }
   0x3   :  { %15 = vsyncpa [#allocation11], 0  ;;  %s24343_s24 = smov [#allocation4]   ;;  %s24344_s26 = smov [#allocation7]  }
   0x4   :  { %s36_s25 = sshll.u32 %s24343_s24, 4  ;;  %s58_s27 = sshll.u32 %s24344_s26, 4  ;;  %s37_s25 = int_to_ptr.vmem [resolvable:$true] %s36_s25  ;;  %s59_s27 = int_to_ptr.vmem [resolvable:$true] %s58_s27 }
   0x5   :  { %s24203_s30 = scalar_lea.hbm %s25325_s2, 16 }
   0x6   :  { %p24204_p0 = scmp.ne.s32.totalorder %s25325_s2, %s24203_s30  ;;  %p24207_p1 = scmp.lt.u32.totalorder %s24203_s30, %s25325_s2 }
   0x8   :  { %p24209_p2 = pnand %p24207_p1, %p24204_p0 }
   0xa   :  { %24212 = shalt.err (!%p24209_p2)
}
   0xb   :  { %s24213_s12 = scalar_lea.vmem %s37_s25, 16  ;;  %s24217_s13 = scalar_lea.vmem %s37_s25, 32 }
   0xc   :  { %p24214_p3 = scmp.ne.s32.totalorder %s37_s25, %s24213_s12  ;;  %p24218_p4 = scmp.lt.s32.totalorder %s37_s25, %s37_s25 }
   0xd   :  { %p24219_p5 = scmp.lt.s32.totalorder %s24217_s13, %s24213_s12 }
   0xf   :  { %p24220_p6 = por %p24219_p5, %p24218_p4 }
  0x11   :  { %p24221_p7 = pnand %p24220_p6, %p24214_p3 }
  0x13   :  { %24224 = shalt.err (!%p24221_p7)
}
  0x14   :  { %39 = dma.hbm_to_vmem [thread:$0]  %s25325_s2, 16, %s37_s25, [#allocation5]  }
  0x15   :  { %s24225_s18 = scalar_lea.hbm %s25327_s4, 16 }
  0x16   :  { %p24226_p8 = scmp.ne.s32.totalorder %s25327_s4, %s24225_s18  ;;  %p24229_p9 = scmp.lt.u32.totalorder %s24225_s18, %s25327_s4 }
  0x18   :  { %p24231_p10 = pnand %p24229_p9, %p24226_p8 }
  0x1a   :  { %24234 = shalt.err (!%p24231_p10)
}
  0x1b   :  { %s24235_s23 = scalar_lea.vmem %s59_s27, 16  ;;  %s24239_s24 = scalar_lea.vmem %s59_s27, 32 }
  0x1c   :  { %p24236_p11 = scmp.ne.s32.totalorder %s59_s27, %s24235_s23  ;;  %p24240_p12 = scmp.lt.s32.totalorder %s59_s27, %s59_s27 }
  0x1d   :  { %p24241_p13 = scmp.lt.s32.totalorder %s24239_s24, %s24235_s23 }
  0x1f   :  { %p24242_p0 = por %p24241_p13, %p24240_p12 }
  0x21   :  { %p24243_p1 = pnand %p24242_p0, %p24236_p11 }
  0x23   :  { %24246 = shalt.err (!%p24243_p1)
}
  0x24   :  { %61 = dma.hbm_to_vmem [thread:$0]  %s25327_s4, 16, %s59_s27, [#allocation8]  }
  0x25   :  { %s24345_s26 = smov [#allocation2]   ;;  %s24247_s8 = scalar_lea.hbm %s25324_s1, 204800 }
  0x26   :  { %s23_s28 = sshll.u32 %s24345_s26, 4  ;;  %p24248_p2 = scmp.ne.s32.totalorder %s25324_s1, %s24247_s8  ;;  %s24_s28 = int_to_ptr.vmem [resolvable:$true] %s23_s28 }
  0x27   :  { %p24251_p3 = scmp.lt.u32.totalorder %s24247_s8, %s25324_s1 }
  0x29   :  { %p24253_p4 = pnand %p24251_p3, %p24248_p2 }
  0x2b   :  { %24256 = shalt.err (!%p24253_p4)
}
  0x2c   :  { %s24257_s13 = scalar_lea.vmem %s24_s28, 204800  ;;  %p24262_p6 = scmp.lt.s32.totalorder %s24_s28, %s24_s28 }
  0x2d   :  { %p24258_p5 = scmp.ne.s32.totalorder %s24_s28, %s24257_s13  ;;  %p24263_p7 = scmp.lt.s32.totalorder %s24257_s13, %s24257_s13 }
  0x2f   :  { %p24264_p8 = por %p24263_p7, %p24262_p6 }
  0x31   :  { %p24265_p9 = pnand %p24264_p8, %p24258_p5 }
  0x33   :  { %24268 = shalt.err (!%p24265_p9)
}
  0x34   :  { %s24346_s4 = smov 64   ;;  %s24347_s27 = smov 4  }
  0x35   :  { %29 = dma.hbm_to_vmem [thread:$0]  %s25324_s1, 204800, %s24_s28, [#allocation3], %s24346_s4, %s24346_s4, %s24347_s27  }
  0x36   :  { %s24348_s16 = smov [#allocation6]   ;;  %s24269_s20 = scalar_lea.hbm %s25326_s3, 2048 }
  0x37   :  { %s45_s17 = sshll.u32 %s24348_s16, 4  ;;  %p24270_p10 = scmp.ne.s32.totalorder %s25326_s3, %s24269_s20  ;;  %s46_s17 = int_to_ptr.vmem [resolvable:$true] %s45_s17 }
  0x38   :  { %p24273_p11 = scmp.lt.u32.totalorder %s24269_s20, %s25326_s3 }
  0x3a   :  { %p24275_p12 = pnand %p24273_p11, %p24270_p10 }
  0x3c   :  { %24278 = shalt.err (!%p24275_p12)
}
  0x3d   :  { %s24279_s2 = scalar_lea.vmem %s46_s17, 2048  ;;  %p24284_p0 = scmp.lt.s32.totalorder %s46_s17, %s46_s17 }
  0x3e   :  { %p24280_p13 = scmp.ne.s32.totalorder %s46_s17, %s24279_s2  ;;  %p24285_p1 = scmp.lt.s32.totalorder %s24279_s2, %s24279_s2 }
  0x40   :  { %p24286_p2 = por %p24285_p1, %p24284_p0 }
  0x42   :  { %p24287_p3 = pnand %p24286_p2, %p24280_p13 }
  0x44   :  { %24290 = shalt.err (!%p24287_p3)
}
  0x45   :  { %s24349_s1 = smov 128   ;;  %s24350_s25 = smov 8  }
  0x46   :  { %51 = dma.hbm_to_vmem [thread:$0]  %s25326_s3, 2048, %s46_s17, [#allocation5], %s24349_s1, %s24349_s1, %s24350_s25  }
  0x47   :  { %s24351_s29 = smov [#allocation9]   ;;  %s24352_s8 = smov [#allocation10]  }
  0x48   :  { %s67_s30 = sshll.u32 %s24351_s29, 4  ;;  %s80_s9 = sshll.u32 %s24352_s8, 4  ;;  %s68_s30 = int_to_ptr.vmem [resolvable:$true] %s67_s30  ;;  %s81_s9 = int_to_ptr.vmem [resolvable:$true] %s80_s9 }
  0x49   :  { %s24291_s12 = scalar_lea.hbm %s25328_s5, 2048 }
  0x4a   :  { %p24292_p4 = scmp.ne.s32.totalorder %s25328_s5, %s24291_s12  ;;  %p24295_p5 = scmp.lt.u32.totalorder %s24291_s12, %s25328_s5 }
  0x4c   :  { %p24297_p6 = pnand %p24295_p5, %p24292_p4 }
  0x4e   :  { %24300 = shalt.err (!%p24297_p6)
}
  0x4f   :  { %s24301_s3 = scalar_lea.vmem %s68_s30, 2048  ;;  %p24306_p8 = scmp.lt.s32.totalorder %s68_s30, %s68_s30 }
  0x50   :  { %p24302_p7 = scmp.ne.s32.totalorder %s68_s30, %s24301_s3  ;;  %p24307_p9 = scmp.lt.s32.totalorder %s24301_s3, %s24301_s3 }
  0x52   :  { %p24308_p10 = por %p24307_p9, %p24306_p8 }
  0x54   :  { %p24309_p11 = pnand %p24308_p10, %p24302_p7 }
  0x56   :  { %24312 = shalt.err (!%p24309_p11)
}
  0x57   :  { %73 = dma.hbm_to_vmem [thread:$0]  %s25328_s5, 2048, %s68_s30, [#allocation8], %s24349_s1, %s24349_s1, %s24350_s25  }
  0x58   :  { %s24313_s19 = scalar_lea.hbm %s25329_s6, 16 }
  0x59   :  { %p24314_p12 = scmp.ne.s32.totalorder %s25329_s6, %s24313_s19  ;;  %p24317_p13 = scmp.lt.u32.totalorder %s24313_s19, %s25329_s6 }
  0x5b   :  { %p24319_p0 = pnand %p24317_p13, %p24314_p12 }
  0x5d   :  { %24322 = shalt.err (!%p24319_p0)
}
  0x5e   :  { %s24323_s24 = scalar_lea.vmem %s81_s9, 16  ;;  %s24327_s2 = scalar_lea.vmem %s81_s9, 32 }
  0x5f   :  { %p24324_p1 = scmp.ne.s32.totalorder %s81_s9, %s24323_s24  ;;  %p24328_p2 = scmp.lt.s32.totalorder %s81_s9, %s81_s9 }
  0x60   :  { %p24329_p3 = scmp.lt.s32.totalorder %s24327_s2, %s24323_s24 }
  0x62   :  { %p24330_p4 = por %p24329_p3, %p24328_p2 }
  0x64   :  { %p24331_p5 = pnand %p24330_p4, %p24324_p1 }
  0x66   :  { %24334 = shalt.err (!%p24331_p5)
}
  0x67   :  { %83 = dma.hbm_to_vmem [thread:$0]  %s25329_s6, 16, %s81_s9, [#allocation11]  }
  0x68   :  { %24335 = dma.done.wait [#allocation3], 204800  }
  0x69   :  { %24336 = vsyncadd [#allocation3], 4294762496 }
  0x6a   :  { %24337 = dma.done.wait [#allocation5], 2064  }
  0x6b   :  { %24338 = vsyncadd [#allocation5], 4294965232 }
  0x6c   :  { %24339 = dma.done.wait [#allocation8], 2064  }
  0x6d   :  { %24340 = vsyncadd [#allocation8], 4294965232 }
  0x6e   :  { %24341 = dma.done.wait [#allocation11], 16  }
  0x6f   :  { %24342 = vsyncadd [#allocation11], 4294967280  ;;  %v22603_v0 = vld [vmem:[#allocation2 + $0x40] sm:$0xff]   ;;  %v22607_v4 = vld [vmem:[#allocation2 + $0x48] sm:$0xff]  }
  0x70   :  { %v22604_v1 = vld [vmem:[#allocation2 + $0xc0] sm:$0xff]   ;;  %20223 = vmatprep.subr.bf16.mxu0 %v22603_v0  ;;  %v22608_v5 = vld [vmem:[#allocation2 + $0xc8] sm:$0xff]   ;;  %v22611_v8 = vld [vmem:[#allocation2 + $0x50] sm:$0xff]  }
  0x71   :  { %v22605_v2 = vld [vmem:[#allocation2] sm:$0xff]   ;;  %20245 = vmatprep.subr.bf16.mxu1 %v22604_v1  ;;  %v22609_v6 = vld [vmem:[#allocation2 + $0x8] sm:$0xff]   ;;  %v22612_v9 = vld [vmem:[#allocation2 + $0xd0] sm:$0xff]  }
  0x72   :  { %v22606_v3 = vld [vmem:[#allocation2 + $0x80] sm:$0xff]   ;;  %20224 = vmatpush3.bf16.msra.mxu0 %v22605_v2  ;;  %v22610_v7 = vld [vmem:[#allocation2 + $0x88] sm:$0xff]   ;;  %v22613_v10 = vld [vmem:[#allocation2 + $0x10] sm:$0xff]  }
  0x73   :  { %20246 = vmatpush3.bf16.msra.mxu1 %v22606_v3  ;;  %20225 = vmatprep.subr.bf16.mxu0 %v22607_v4  ;;  %v22614_v11 = vld [vmem:[#allocation2 + $0x90] sm:$0xff]   ;;  %v22615_v12 = vld [vmem:[#allocation2 + $0x58] sm:$0xff]   ;;  %v22619_v16 = vld [vmem:[#allocation2 + $0x60] sm:$0xff]  }
  0x74   :  { %20247 = vmatprep.subr.bf16.mxu1 %v22608_v5  ;;  %v22616_v13 = vld [vmem:[#allocation2 + $0xd8] sm:$0xff]   ;;  %v22620_v17 = vld [vmem:[#allocation2 + $0xe0] sm:$0xff]   ;;  %v22623_v20 = vld [vmem:[#allocation2 + $0x68] sm:$0xff]  }
  0x75   :  { %v22617_v14 = vld [vmem:[#allocation2 + $0x18] sm:$0xff]   ;;  %v22621_v18 = vld [vmem:[#allocation2 + $0x20] sm:$0xff]   ;;  %v22624_v21 = vld [vmem:[#allocation2 + $0xe8] sm:$0xff]  }
  0x76   :  { %20226 = vmatpush3.bf16.msra.mxu0 %v22609_v6  ;;  %v22618_v15 = vld [vmem:[#allocation2 + $0x98] sm:$0xff]   ;;  %v22622_v19 = vld [vmem:[#allocation2 + $0xa0] sm:$0xff]   ;;  %v22625_v22 = vld [vmem:[#allocation2 + $0x28] sm:$0xff]  }
  0x77   :  { %20248 = vmatpush3.bf16.msra.mxu1 %v22610_v7  ;;  %20227 = vmatprep.subr.bf16.mxu0 %v22611_v8  ;;  %v22626_v23 = vld [vmem:[#allocation2 + $0xa8] sm:$0xff]   ;;  %v22627_v24 = vld [vmem:[#allocation2 + $0x70] sm:$0xff]   ;;  %v22631_v28 = vld [vmem:[#allocation2 + $0x78] sm:$0xff]  }
  0x78   :  { %20249 = vmatprep.subr.bf16.mxu1 %v22612_v9  ;;  %v22628_v25 = vld [vmem:[#allocation2 + $0xf0] sm:$0xff]   ;;  %v22632_v29 = vld [vmem:[#allocation2 + $0xf8] sm:$0xff]   ;;  %v103_v32 = vld [vmem:[%s25323_s0] sm:$0xff] }
  0x79   :  { %v22629_v26 = vld [vmem:[#allocation2 + $0x30] sm:$0xff]   ;;  %v22633_v30 = vld [vmem:[#allocation2 + $0x38] sm:$0xff]   ;;  %v203_v33 = vld [vmem:[%s25323_s0 + $0x320] sm:$0xff] }
  0x7a   :  { %20228 = vmatpush3.bf16.msra.mxu0 %v22613_v10  ;;  %v22630_v27 = vld [vmem:[#allocation2 + $0xb0] sm:$0xff]   ;;  %v22634_v31 = vld [vmem:[#allocation2 + $0xb8] sm:$0xff]   ;;  %v104_v34 = vld [vmem:[%s25323_s0 + $0x8] sm:$0xff]  ;;  %v18421_v35 = vcombine.low %v103_v32, %v203_v33  ;;  %v18422_v36 = vcombine.high %v103_v32, %v203_v33 }
  0x7b   :  { %20250 = vmatpush3.bf16.msra.mxu1 %v22614_v11  ;;  %20229 = vmatprep.subr.bf16.mxu0 %v22615_v12  ;;  %v204_v37 = vld [vmem:[%s25323_s0 + $0x328] sm:$0xff]  ;;  %v22635_v40 = vld [vmem:[#allocation2 + $0x140] sm:$0xff]   ;;  %v22643_v48 = vld [vmem:[#allocation2 + $0x150] sm:$0xff]  }
  0x7c   :  { %20251 = vmatprep.subr.bf16.mxu1 %v22616_v13  ;;  %v18423_v38 = vcombine.low %v104_v34, %v204_v37  ;;  %v18424_v39 = vcombine.high %v104_v34, %v204_v37  ;;  %14142 = vmatprep.mubr.bf16.mxu0 %v18422_v36  ;;  %v22636_v41 = vld [vmem:[#allocation2 + $0x1c0] sm:$0xff]   ;;  %v22639_v44 = vld [vmem:[#allocation2 + $0x148] sm:$0xff]   ;;  %v22644_v49 = vld [vmem:[#allocation2 + $0x1d0] sm:$0xff]  }
  0x7d   :  { %v22637_v42 = vld [vmem:[#allocation2 + $0x100] sm:$0xff]   ;;  %v22640_v45 = vld [vmem:[#allocation2 + $0x1c8] sm:$0xff]   ;;  %v22645_v50 = vld [vmem:[#allocation2 + $0x110] sm:$0xff]  }
  0x7e   :  { %20230 = vmatpush3.bf16.msra.mxu0 %v22617_v14  ;;  %14183 = vmatprep.mubr.bf16.mxu1 %v18424_v39  ;;  %v22638_v43 = vld [vmem:[#allocation2 + $0x180] sm:$0xff]   ;;  %v22641_v46 = vld [vmem:[#allocation2 + $0x108] sm:$0xff]   ;;  %v22646_v51 = vld [vmem:[#allocation2 + $0x190] sm:$0xff]  }
  0x7f   :  { %20252 = vmatpush3.bf16.msra.mxu1 %v22618_v15  ;;  %20231 = vmatprep.subr.bf16.mxu0 %v22619_v16  ;;  %v22642_v47 = vld [vmem:[#allocation2 + $0x188] sm:$0xff]   ;;  %v22647_v52 = vld [vmem:[#allocation2 + $0x158] sm:$0xff]   ;;  %v22651_v56 = vld [vmem:[#allocation2 + $0x160] sm:$0xff]  }
  0x80   :  { %20253 = vmatprep.subr.bf16.mxu1 %v22620_v17  ;;  %v22648_v53 = vld [vmem:[#allocation2 + $0x1d8] sm:$0xff]   ;;  %v22652_v57 = vld [vmem:[#allocation2 + $0x1e0] sm:$0xff]   ;;  %v22655_v60 = vld [vmem:[#allocation2 + $0x168] sm:$0xff]  }
  0x81   :  { %v22649_v54 = vld [vmem:[#allocation2 + $0x118] sm:$0xff]   ;;  %v22653_v58 = vld [vmem:[#allocation2 + $0x120] sm:$0xff]   ;;  %v22656_v61 = vld [vmem:[#allocation2 + $0x1e8] sm:$0xff]  }
  0x82   :  { %20232 = vmatpush3.bf16.msra.mxu0 %v22621_v18  ;;  %v22650_v55 = vld [vmem:[#allocation2 + $0x198] sm:$0xff]   ;;  %v22654_v59 = vld [vmem:[#allocation2 + $0x1a0] sm:$0xff]   ;;  %v22657_v62 = vld [vmem:[#allocation2 + $0x128] sm:$0xff]  }
  0x83   :  { %20254 = vmatpush3.bf16.msra.mxu1 %v22622_v19  ;;  %20233 = vmatprep.subr.bf16.mxu0 %v22623_v20  ;;  %v22658_v63 = vld [vmem:[#allocation2 + $0x1a8] sm:$0xff]   ;;  %v22659_v0 = vld [vmem:[#allocation2 + $0x170] sm:$0xff]   ;;  %v22663_v4 = vld [vmem:[#allocation2 + $0x178] sm:$0xff]  }
  0x84   :  { %20255 = vmatprep.subr.bf16.mxu1 %v22624_v21  ;;  %v22660_v1 = vld [vmem:[#allocation2 + $0x1f0] sm:$0xff]   ;;  %v22664_v5 = vld [vmem:[#allocation2 + $0x1f8] sm:$0xff]   ;;  %v22667_v16 = vld [vmem:[#allocation2 + $0x240] sm:$0xff]  }
  0x85   :  { %v22661_v2 = vld [vmem:[#allocation2 + $0x130] sm:$0xff]   ;;  %v22665_v6 = vld [vmem:[#allocation2 + $0x138] sm:$0xff]   ;;  %v22668_v17 = vld [vmem:[#allocation2 + $0x2c0] sm:$0xff]  }
  0x86   :  { %20234 = vmatpush3.bf16.msra.mxu0 %v22625_v22  ;;  %v22662_v3 = vld [vmem:[#allocation2 + $0x1b0] sm:$0xff]   ;;  %v22666_v7 = vld [vmem:[#allocation2 + $0x1b8] sm:$0xff]   ;;  %v22669_v18 = vld [vmem:[#allocation2 + $0x200] sm:$0xff]  }
  0x87   :  { %20256 = vmatpush3.bf16.msra.mxu1 %v22626_v23  ;;  %20235 = vmatprep.subr.bf16.mxu0 %v22627_v24  ;;  %v105_v8 = vld [vmem:[%s25323_s0 + $0x10] sm:$0xff]  ;;  %v106_v12 = vld [vmem:[%s25323_s0 + $0x18] sm:$0xff]  ;;  %v22670_v19 = vld [vmem:[#allocation2 + $0x280] sm:$0xff]  }
  0x88   :  { %20257 = vmatprep.subr.bf16.mxu1 %v22628_v25  ;;  %v205_v9 = vld [vmem:[%s25323_s0 + $0x330] sm:$0xff]  ;;  %v206_v13 = vld [vmem:[%s25323_s0 + $0x338] sm:$0xff]  ;;  %v22671_v20 = vld [vmem:[#allocation2 + $0x248] sm:$0xff]  }
  0x89   :  { %v18425_v10 = vcombine.low %v105_v8, %v205_v9  ;;  %v18426_v11 = vcombine.high %v105_v8, %v205_v9  ;;  %v18427_v14 = vcombine.low %v106_v12, %v206_v13  ;;  %v18428_v15 = vcombine.high %v106_v12, %v206_v13  ;;  %v22672_v21 = vld [vmem:[#allocation2 + $0x2c8] sm:$0xff]   ;;  %v22675_v24 = vld [vmem:[#allocation2 + $0x250] sm:$0xff]   ;;  %v22683_v32 = vld [vmem:[#allocation2 + $0x260] sm:$0xff]  }
  0x8a   :  { %20236 = vmatpush3.bf16.msra.mxu0 %v22629_v26  ;;  %v22673_v22 = vld [vmem:[#allocation2 + $0x208] sm:$0xff]   ;;  %v22676_v25 = vld [vmem:[#allocation2 + $0x2d0] sm:$0xff]   ;;  %v22684_v33 = vld [vmem:[#allocation2 + $0x2e0] sm:$0xff]  }
  0x8b   :  { %20258 = vmatpush3.bf16.msra.mxu1 %v22630_v27  ;;  %20237 = vmatprep.subr.bf16.mxu0 %v22631_v28  ;;  %v22674_v23 = vld [vmem:[#allocation2 + $0x288] sm:$0xff]   ;;  %v22677_v26 = vld [vmem:[#allocation2 + $0x210] sm:$0xff]   ;;  %v22679_v28 = vld [vmem:[#allocation2 + $0x258] sm:$0xff]  }
  0x8c   :  { %20259 = vmatprep.subr.bf16.mxu1 %v22632_v29  ;;  %v22678_v27 = vld [vmem:[#allocation2 + $0x290] sm:$0xff]   ;;  %v22680_v29 = vld [vmem:[#allocation2 + $0x2d8] sm:$0xff]   ;;  %v22685_v34 = vld [vmem:[#allocation2 + $0x220] sm:$0xff]  }
  0x8d   :  { %v22687_v36 = vld [vmem:[#allocation2 + $0x268] sm:$0xff]   ;;  %v22715_v8 = vld [vmem:[#allocation2 + $0x360] sm:$0xff]  }
  0x8e   :  { %20238 = vmatpush3.bf16.msra.mxu0 %v22633_v30  ;;  %v22681_v30 = vld [vmem:[#allocation2 + $0x218] sm:$0xff]   ;;  %v22688_v37 = vld [vmem:[#allocation2 + $0x2e8] sm:$0xff]   ;;  %v22716_v9 = vld [vmem:[#allocation2 + $0x3e0] sm:$0xff]  }
  0x8f   :  { %20260 = vmatpush3.bf16.msra.mxu1 %v22634_v31  ;;  %20267 = vmatprep.subr.bf16.mxu0 %v22635_v40  ;;  %v22682_v31 = vld [vmem:[#allocation2 + $0x298] sm:$0xff]   ;;  %v22690_v39 = vld [vmem:[#allocation2 + $0x2a8] sm:$0xff]   ;;  %v22691_v40 = vld [vmem:[#allocation2 + $0x270] sm:$0xff]  }
  0x90   :  { %20289 = vmatprep.subr.bf16.mxu1 %v22636_v41  ;;  %v22692_v41 = vld [vmem:[#allocation2 + $0x2f0] sm:$0xff]   ;;  %v22719_v12 = vld [vmem:[#allocation2 + $0x368] sm:$0xff]  }
  0x91   :  { %14143 = vmatmul.mubr.bf16.vlgmr.msra.gmra.mrb[0].mxu0 %v18421_v35  ;;  %v22686_v35 = vld [vmem:[#allocation2 + $0x2a0] sm:$0xff]   ;;  %v22720_v13 = vld [vmem:[#allocation2 + $0x3e8] sm:$0xff]  }
  0x92   :  { %14184 = vmatmul.mubr.bf16.vlgmr.msra.gmra.mrb[0].mxu1 %v18423_v38  ;;  %20268 = vmatpush3.bf16.msra.mxu0 %v22637_v42  ;;  %v22689_v38 = vld [vmem:[#allocation2 + $0x228] sm:$0xff]   ;;  %v22693_v42 = vld [vmem:[#allocation2 + $0x230] sm:$0xff]  }
  0x93   :  { %20290 = vmatpush3.bf16.msra.mxu1 %v22638_v43  ;;  %20269 = vmatprep.subr.bf16.mxu0 %v22639_v44  ;;  %v22694_v43 = vld [vmem:[#allocation2 + $0x2b0] sm:$0xff]   ;;  %v22695_v44 = vld [vmem:[#allocation2 + $0x278] sm:$0xff]  }
  0x94   :  { %20291 = vmatprep.subr.bf16.mxu1 %v22640_v45  ;;  %14224 = vmatprep.mubr.bf16.mxu0 %v18426_v11  ;;  %v22696_v45 = vld [vmem:[#allocation2 + $0x2f8] sm:$0xff]   ;;  %v22718_v11 = vld [vmem:[#allocation2 + $0x3a0] sm:$0xff]  }
  0x95   :  { %14265 = vmatprep.mubr.bf16.mxu1 %v18428_v15  ;;  %v22722_v15 = vld [vmem:[#allocation2 + $0x3a8] sm:$0xff]  }
  0x96   :  { %20270 = vmatpush3.bf16.msra.mxu0 %v22641_v46  ;;  %v22697_v46 = vld [vmem:[#allocation2 + $0x238] sm:$0xff]  }
  0x97   :  { %20292 = vmatpush3.bf16.msra.mxu1 %v22642_v47  ;;  %20271 = vmatprep.subr.bf16.mxu0 %v22643_v48  ;;  %v22698_v47 = vld [vmem:[#allocation2 + $0x2b8] sm:$0xff]   ;;  %v107_v48 = vld [vmem:[%s25323_s0 + $0x20] sm:$0xff] }
  0x98   :  { %20293 = vmatprep.subr.bf16.mxu1 %v22644_v49  ;;  %v207_v49 = vld [vmem:[%s25323_s0 + $0x340] sm:$0xff] }
  0x9a   :  { %20272 = vmatpush3.bf16.msra.mxu0 %v22645_v50  ;;  %v108_v50 = vld [vmem:[%s25323_s0 + $0x28] sm:$0xff] }
  0x9b   :  { %20294 = vmatpush3.bf16.msra.mxu1 %v22646_v51  ;;  %20273 = vmatprep.subr.bf16.mxu0 %v22647_v52  ;;  %v208_v51 = vld [vmem:[%s25323_s0 + $0x348] sm:$0xff]  ;;  %v18429_v52 = vcombine.low %v107_v48, %v207_v49 }
  0x9c   :  { %20295 = vmatprep.subr.bf16.mxu1 %v22648_v53  ;;  %v18430_v53 = vcombine.high %v107_v48, %v207_v49  ;;  %v22747_v48 = vld [vmem:[#allocation2 + $0x460] sm:$0xff]  }
  0x9d   :  { %v22748_v49 = vld [vmem:[#allocation2 + $0x4e0] sm:$0xff]  }
  0x9e   :  { %20274 = vmatpush3.bf16.msra.mxu0 %v22649_v54  ;;  %v18431_v54 = vcombine.low %v108_v50, %v208_v51 }
  0x9f   :  { %20296 = vmatpush3.bf16.msra.mxu1 %v22650_v55  ;;  %20275 = vmatprep.subr.bf16.mxu0 %v22651_v56  ;;  %v18432_v55 = vcombine.high %v108_v50, %v208_v51  ;;  %v22699_v56 = vld [vmem:[#allocation2 + $0x340] sm:$0xff]  }
  0xa0   :  { %20297 = vmatprep.subr.bf16.mxu1 %v22652_v57  ;;  %v22700_v57 = vld [vmem:[#allocation2 + $0x3c0] sm:$0xff]  }
  0xa1   :  { %v22749_v50 = vld [vmem:[#allocation2 + $0x420] sm:$0xff]  }
  0xa2   :  { %20276 = vmatpush3.bf16.msra.mxu0 %v22653_v58  ;;  %v22701_v58 = vld [vmem:[#allocation2 + $0x300] sm:$0xff]  }
  0xa3   :  { %20298 = vmatpush3.bf16.msra.mxu1 %v22654_v59  ;;  %20277 = vmatprep.subr.bf16.mxu0 %v22655_v60  ;;  %v22702_v59 = vld [vmem:[#allocation2 + $0x380] sm:$0xff]   ;;  %v22703_v60 = vld [vmem:[#allocation2 + $0x348] sm:$0xff]  }
  0xa4   :  { %20299 = vmatprep.subr.bf16.mxu1 %v22656_v61  ;;  %v22704_v61 = vld [vmem:[#allocation2 + $0x3c8] sm:$0xff]   ;;  %v22750_v51 = vld [vmem:[#allocation2 + $0x4a0] sm:$0xff]  }
  0xa6   :  { %20278 = vmatpush3.bf16.msra.mxu0 %v22657_v62  ;;  %v22705_v62 = vld [vmem:[#allocation2 + $0x308] sm:$0xff]  }
  0xa7   :  { %20300 = vmatpush3.bf16.msra.mxu1 %v22658_v63  ;;  %20279 = vmatprep.subr.bf16.mxu0 %v22659_v0  ;;  %v22706_v63 = vld [vmem:[#allocation2 + $0x388] sm:$0xff]   ;;  %v22707_v0 = vld [vmem:[#allocation2 + $0x350] sm:$0xff]  }
  0xa8   :  { %20301 = vmatprep.subr.bf16.mxu1 %v22660_v1  ;;  %v22708_v1 = vld [vmem:[#allocation2 + $0x3d0] sm:$0xff]  }
  0xaa   :  { %20280 = vmatpush3.bf16.msra.mxu0 %v22661_v2  ;;  %v22709_v2 = vld [vmem:[#allocation2 + $0x310] sm:$0xff]  }
  0xab   :  { %20302 = vmatpush3.bf16.msra.mxu1 %v22662_v3  ;;  %20281 = vmatprep.subr.bf16.mxu0 %v22663_v4  ;;  %v22710_v3 = vld [vmem:[#allocation2 + $0x390] sm:$0xff]   ;;  %v22711_v4 = vld [vmem:[#allocation2 + $0x358] sm:$0xff]  }
  0xac   :  { %20303 = vmatprep.subr.bf16.mxu1 %v22664_v5  ;;  %v22712_v5 = vld [vmem:[#allocation2 + $0x3d8] sm:$0xff]  }
  0xae   :  { %20282 = vmatpush3.bf16.msra.mxu0 %v22665_v6  ;;  %v22713_v6 = vld [vmem:[#allocation2 + $0x318] sm:$0xff]  }
  0xaf   :  { %20304 = vmatpush3.bf16.msra.mxu1 %v22666_v7  ;;  %20311 = vmatprep.subr.bf16.mxu0 %v22667_v16  ;;  %v22714_v7 = vld [vmem:[#allocation2 + $0x398] sm:$0xff]   ;;  %v22723_v16 = vld [vmem:[#allocation2 + $0x370] sm:$0xff]  }
  0xb0   :  { %20333 = vmatprep.subr.bf16.mxu1 %v22668_v17  ;;  %v22724_v17 = vld [vmem:[#allocation2 + $0x3f0] sm:$0xff]  }
  0xb1   :  { %14225 = vmatmul.mubr.bf16.vlgmr.msra.gmra.mrb[4].mxu0 %v18425_v10  ;;  %v22717_v10 = vld [vmem:[#allocation2 + $0x320] sm:$0xff]  }
  0xb2   :  { %14266 = vmatmul.mubr.bf16.vlgmr.msra.gmra.mrb[4].mxu1 %v18427_v14  ;;  %20312 = vmatpush3.bf16.msra.mxu0 %v22669_v18  ;;  %v22721_v14 = vld [vmem:[#allocation2 + $0x328] sm:$0xff]   ;;  %v22725_v18 = vld [vmem:[#allocation2 + $0x330] sm:$0xff]  }
  0xb3   :  { %20334 = vmatpush3.bf16.msra.mxu1 %v22670_v19  ;;  %20313 = vmatprep.subr.bf16.mxu0 %v22671_v20  ;;  %v22726_v19 = vld [vmem:[#allocation2 + $0x3b0] sm:$0xff]   ;;  %v22727_v20 = vld [vmem:[#allocation2 + $0x378] sm:$0xff]  }
  0xb4   :  { %20335 = vmatprep.subr.bf16.mxu1 %v22672_v21  ;;  %14306 = vmatprep.mubr.bf16.mxu0 %v18430_v53  ;;  %v22728_v21 = vld [vmem:[#allocation2 + $0x3f8] sm:$0xff]   ;;  %v22752_v53 = vld [vmem:[#allocation2 + $0x4e8] sm:$0xff]  }
  0xb5   :  { %14347 = vmatprep.mubr.bf16.mxu1 %v18432_v55  ;;  %v22754_v55 = vld [vmem:[#allocation2 + $0x4a8] sm:$0xff]  }
  0xb6   :  { %20314 = vmatpush3.bf16.msra.mxu0 %v22673_v22  ;;  %v22729_v22 = vld [vmem:[#allocation2 + $0x338] sm:$0xff]  }
  0xb7   :  { %20336 = vmatpush3.bf16.msra.mxu1 %v22674_v23  ;;  %20315 = vmatprep.subr.bf16.mxu0 %v22675_v24  ;;  %v22730_v23 = vld [vmem:[#allocation2 + $0x3b8] sm:$0xff]   ;;  %v109_v24 = vld [vmem:[%s25323_s0 + $0x30] sm:$0xff] }
  0xb8   :  { %20337 = vmatprep.subr.bf16.mxu1 %v22676_v25  ;;  %v209_v25 = vld [vmem:[%s25323_s0 + $0x350] sm:$0xff] }
  0xba   :  { %20316 = vmatpush3.bf16.msra.mxu0 %v22677_v26  ;;  %v110_v26 = vld [vmem:[%s25323_s0 + $0x38] sm:$0xff] }
  0xbb   :  { %20338 = vmatpush3.bf16.msra.mxu1 %v22678_v27  ;;  %20317 = vmatprep.subr.bf16.mxu0 %v22679_v28  ;;  %v18433_v27 = vcombine.low %v109_v24, %v209_v25  ;;  %v18434_v28 = vcombine.high %v109_v24, %v209_v25  ;;  %v22779_v24 = vld [vmem:[#allocation2 + $0x560] sm:$0xff]  }
  0xbc   :  { %20339 = vmatprep.subr.bf16.mxu1 %v22680_v29  ;;  %v210_v29 = vld [vmem:[%s25323_s0 + $0x358] sm:$0xff]  ;;  %v22780_v25 = vld [vmem:[#allocation2 + $0x5e0] sm:$0xff]  }
  0xbe   :  { %20318 = vmatpush3.bf16.msra.mxu0 %v22681_v30  ;;  %v18435_v30 = vcombine.low %v110_v26, %v210_v29 }
  0xbf   :  { %20340 = vmatpush3.bf16.msra.mxu1 %v22682_v31  ;;  %20319 = vmatprep.subr.bf16.mxu0 %v22683_v32  ;;  %v18436_v31 = vcombine.high %v110_v26, %v210_v29  ;;  %v22731_v32 = vld [vmem:[#allocation2 + $0x440] sm:$0xff]   ;;  %v22784_v29 = vld [vmem:[#allocation2 + $0x5e8] sm:$0xff]  }
  0xc0   :  { %20341 = vmatprep.subr.bf16.mxu1 %v22684_v33  ;;  %v22732_v33 = vld [vmem:[#allocation2 + $0x4c0] sm:$0xff]  }
  0xc1   :  { %v22781_v26 = vld [vmem:[#allocation2 + $0x520] sm:$0xff]  }
  0xc2   :  { %20320 = vmatpush3.bf16.msra.mxu0 %v22685_v34  ;;  %v22733_v34 = vld [vmem:[#allocation2 + $0x400] sm:$0xff]  }
  0xc3   :  { %20342 = vmatpush3.bf16.msra.mxu1 %v22686_v35  ;;  %20321 = vmatprep.subr.bf16.mxu0 %v22687_v36  ;;  %v22734_v35 = vld [vmem:[#allocation2 + $0x480] sm:$0xff]   ;;  %v22735_v36 = vld [vmem:[#allocation2 + $0x448] sm:$0xff]  }
  0xc4   :  { %20343 = vmatprep.subr.bf16.mxu1 %v22688_v37  ;;  %v22736_v37 = vld [vmem:[#allocation2 + $0x4c8] sm:$0xff]  }
  0xc6   :  { %20322 = vmatpush3.bf16.msra.mxu0 %v22689_v38  ;;  %v22737_v38 = vld [vmem:[#allocation2 + $0x408] sm:$0xff]  }
  0xc7   :  { %20344 = vmatpush3.bf16.msra.mxu1 %v22690_v39  ;;  %20323 = vmatprep.subr.bf16.mxu0 %v22691_v40  ;;  %v22738_v39 = vld [vmem:[#allocation2 + $0x488] sm:$0xff]   ;;  %v22739_v40 = vld [vmem:[#allocation2 + $0x450] sm:$0xff]  }
  0xc8   :  { %20345 = vmatprep.subr.bf16.mxu1 %v22692_v41  ;;  %v22740_v41 = vld [vmem:[#allocation2 + $0x4d0] sm:$0xff]  }
  0xca   :  { %20324 = vmatpush3.bf16.msra.mxu0 %v22693_v42  ;;  %v22741_v42 = vld [vmem:[#allocation2 + $0x410] sm:$0xff]  }
  0xcb   :  { %20346 = vmatpush3.bf16.msra.mxu1 %v22694_v43  ;;  %20325 = vmatprep.subr.bf16.mxu0 %v22695_v44  ;;  %v22742_v43 = vld [vmem:[#allocation2 + $0x490] sm:$0xff]   ;;  %v22743_v44 = vld [vmem:[#allocation2 + $0x458] sm:$0xff]  }
  0xcc   :  { %20347 = vmatprep.subr.bf16.mxu1 %v22696_v45  ;;  %v22744_v45 = vld [vmem:[#allocation2 + $0x4d8] sm:$0xff]  }
  0xce   :  { %20326 = vmatpush3.bf16.msra.mxu0 %v22697_v46  ;;  %v22745_v46 = vld [vmem:[#allocation2 + $0x418] sm:$0xff]  }
  0xcf   :  { %20348 = vmatpush3.bf16.msra.mxu1 %v22698_v47  ;;  %20355 = vmatprep.subr.bf16.mxu0 %v22699_v56  ;;  %v22746_v47 = vld [vmem:[#allocation2 + $0x498] sm:$0xff]   ;;  %v22755_v56 = vld [vmem:[#allocation2 + $0x470] sm:$0xff]  }
  0xd0   :  { %20377 = vmatprep.subr.bf16.mxu1 %v22700_v57  ;;  %v22756_v57 = vld [vmem:[#allocation2 + $0x4f0] sm:$0xff]  }
  0xd1   :  { %14307 = vmatmul.mubr.bf16.vlgmr.msra.gmra.mrb[8].mxu0 %v18429_v52  ;;  %v22751_v52 = vld [vmem:[#allocation2 + $0x468] sm:$0xff]  }
  0xd2   :  { %14348 = vmatmul.mubr.bf16.vlgmr.msra.gmra.mrb[8].mxu1 %v18431_v54  ;;  %20356 = vmatpush3.bf16.msra.mxu0 %v22701_v58  ;;  %v22753_v54 = vld [vmem:[#allocation2 + $0x428] sm:$0xff]   ;;  %v22757_v58 = vld [vmem:[#allocation2 + $0x430] sm:$0xff]  }
  0xd3   :  { %20378 = vmatpush3.bf16.msra.mxu1 %v22702_v59  ;;  %20357 = vmatprep.subr.bf16.mxu0 %v22703_v60  ;;  %v22758_v59 = vld [vmem:[#allocation2 + $0x4b0] sm:$0xff]   ;;  %v22759_v60 = vld [vmem:[#allocation2 + $0x478] sm:$0xff]  }
  0xd4   :  { %20379 = vmatprep.subr.bf16.mxu1 %v22704_v61  ;;  %14388 = vmatprep.mubr.bf16.mxu0 %v18434_v28  ;;  %v22760_v61 = vld [vmem:[#allocation2 + $0x4f8] sm:$0xff]   ;;  %v22783_v28 = vld [vmem:[#allocation2 + $0x568] sm:$0xff]  }
  0xd5   :  { %14429 = vmatprep.mubr.bf16.mxu1 %v18436_v31  ;;  %v22786_v31 = vld [vmem:[#allocation2 + $0x5a8] sm:$0xff]  }
  0xd6   :  { %20358 = vmatpush3.bf16.msra.mxu0 %v22705_v62  ;;  %v22761_v62 = vld [vmem:[#allocation2 + $0x438] sm:$0xff]  }
  0xd7   :  { %20380 = vmatpush3.bf16.msra.mxu1 %v22706_v63  ;;  %20359 = vmatprep.subr.bf16.mxu0 %v22707_v0  ;;  %v22762_v63 = vld [vmem:[#allocation2 + $0x4b8] sm:$0xff]   ;;  %v111_v0 = vld [vmem:[%s25323_s0 + $0x40] sm:$0xff] }
  0xd8   :  { %20381 = vmatprep.subr.bf16.mxu1 %v22708_v1  ;;  %v211_v1 = vld [vmem:[%s25323_s0 + $0x360] sm:$0xff] }
  0xda   :  { %20360 = vmatpush3.bf16.msra.mxu0 %v22709_v2  ;;  %v18437_v2 = vcombine.low %v111_v0, %v211_v1 }
  0xdb   :  { %20382 = vmatpush3.bf16.msra.mxu1 %v22710_v3  ;;  %20361 = vmatprep.subr.bf16.mxu0 %v22711_v4  ;;  %v18438_v3 = vcombine.high %v111_v0, %v211_v1  ;;  %v112_v4 = vld [vmem:[%s25323_s0 + $0x48] sm:$0xff]  ;;  %v22811_v0 = vld [vmem:[#allocation2 + $0x660] sm:$0xff]  }
  0xdc   :  { %20383 = vmatprep.subr.bf16.mxu1 %v22712_v5  ;;  %v212_v5 = vld [vmem:[%s25323_s0 + $0x368] sm:$0xff]  ;;  %v22812_v1 = vld [vmem:[#allocation2 + $0x6e0] sm:$0xff]  }
  0xde   :  { %20362 = vmatpush3.bf16.msra.mxu0 %v22713_v6  ;;  %v18439_v6 = vcombine.low %v112_v4, %v212_v5 }
  0xdf   :  { %20384 = vmatpush3.bf16.msra.mxu1 %v22714_v7  ;;  %20363 = vmatprep.subr.bf16.mxu0 %v22715_v8  ;;  %v18440_v7 = vcombine.high %v112_v4, %v212_v5  ;;  %v22763_v8 = vld [vmem:[#allocation2 + $0x540] sm:$0xff]   ;;  %v22815_v4 = vld [vmem:[#allocation2 + $0x668] sm:$0xff]  }
  0xe0   :  { %20385 = vmatprep.subr.bf16.mxu1 %v22716_v9  ;;  %v22764_v9 = vld [vmem:[#allocation2 + $0x5c0] sm:$0xff]   ;;  %v22816_v5 = vld [vmem:[#allocation2 + $0x6e8] sm:$0xff]  }
  0xe2   :  { %20364 = vmatpush3.bf16.msra.mxu0 %v22717_v10  ;;  %v22765_v10 = vld [vmem:[#allocation2 + $0x500] sm:$0xff]  }
  0xe3   :  { %20386 = vmatpush3.bf16.msra.mxu1 %v22718_v11  ;;  %20365 = vmatprep.subr.bf16.mxu0 %v22719_v12  ;;  %v22766_v11 = vld [vmem:[#allocation2 + $0x580] sm:$0xff]   ;;  %v22767_v12 = vld [vmem:[#allocation2 + $0x548] sm:$0xff]  }
  0xe4   :  { %20387 = vmatprep.subr.bf16.mxu1 %v22720_v13  ;;  %v22768_v13 = vld [vmem:[#allocation2 + $0x5c8] sm:$0xff]  }
  0xe6   :  { %20366 = vmatpush3.bf16.msra.mxu0 %v22721_v14  ;;  %v22769_v14 = vld [vmem:[#allocation2 + $0x508] sm:$0xff]  }
  0xe7   :  { %20388 = vmatpush3.bf16.msra.mxu1 %v22722_v15  ;;  %20367 = vmatprep.subr.bf16.mxu0 %v22723_v16  ;;  %v22770_v15 = vld [vmem:[#allocation2 + $0x588] sm:$0xff]   ;;  %v22771_v16 = vld [vmem:[#allocation2 + $0x550] sm:$0xff]  }
  0xe8   :  { %20389 = vmatprep.subr.bf16.mxu1 %v22724_v17  ;;  %v22772_v17 = vld [vmem:[#allocation2 + $0x5d0] sm:$0xff]  }
  0xea   :  { %20368 = vmatpush3.bf16.msra.mxu0 %v22725_v18  ;;  %v22773_v18 = vld [vmem:[#allocation2 + $0x510] sm:$0xff]  }
  0xeb   :  { %20390 = vmatpush3.bf16.msra.mxu1 %v22726_v19  ;;  %20369 = vmatprep.subr.bf16.mxu0 %v22727_v20  ;;  %v22774_v19 = vld [vmem:[#allocation2 + $0x590] sm:$0xff]   ;;  %v22775_v20 = vld [vmem:[#allocation2 + $0x558] sm:$0xff]  }
  0xec   :  { %20391 = vmatprep.subr.bf16.mxu1 %v22728_v21  ;;  %v22776_v21 = vld [vmem:[#allocation2 + $0x5d8] sm:$0xff]  }
  0xee   :  { %20370 = vmatpush3.bf16.msra.mxu0 %v22729_v22  ;;  %v22777_v22 = vld [vmem:[#allocation2 + $0x518] sm:$0xff]  }
  0xef   :  { %20392 = vmatpush3.bf16.msra.mxu1 %v22730_v23  ;;  %20399 = vmatprep.subr.bf16.mxu0 %v22731_v32  ;;  %v22778_v23 = vld [vmem:[#allocation2 + $0x598] sm:$0xff]   ;;  %v22787_v32 = vld [vmem:[#allocation2 + $0x570] sm:$0xff]  }
  0xf0   :  { %20421 = vmatprep.subr.bf16.mxu1 %v22732_v33  ;;  %v22788_v33 = vld [vmem:[#allocation2 + $0x5f0] sm:$0xff]  }
  0xf1   :  { %14389 = vmatmul.mubr.bf16.vlgmr.msra.gmra.mrb[12].mxu0 %v18433_v27  ;;  %v22782_v27 = vld [vmem:[#allocation2 + $0x5a0] sm:$0xff]  }
  0xf2   :  { %14430 = vmatmul.mubr.bf16.vlgmr.msra.gmra.mrb[12].mxu1 %v18435_v30  ;;  %20400 = vmatpush3.bf16.msra.mxu0 %v22733_v34  ;;  %v22785_v30 = vld [vmem:[#allocation2 + $0x528] sm:$0xff]   ;;  %v22789_v34 = vld [vmem:[#allocation2 + $0x530] sm:$0xff]  }
  0xf3   :  { %20422 = vmatpush3.bf16.msra.mxu1 %v22734_v35  ;;  %20401 = vmatprep.subr.bf16.mxu0 %v22735_v36  ;;  %v22790_v35 = vld [vmem:[#allocation2 + $0x5b0] sm:$0xff]   ;;  %v22791_v36 = vld [vmem:[#allocation2 + $0x578] sm:$0xff]  }
  0xf4   :  { %20423 = vmatprep.subr.bf16.mxu1 %v22736_v37  ;;  %14470 = vmatprep.mubr.bf16.mxu0 %v18438_v3  ;;  %v22792_v37 = vld [vmem:[#allocation2 + $0x5f8] sm:$0xff]   ;;  %v22814_v3 = vld [vmem:[#allocation2 + $0x6a0] sm:$0xff]  }
  0xf5   :  { %14511 = vmatprep.mubr.bf16.mxu1 %v18440_v7  ;;  %v22818_v7 = vld [vmem:[#allocation2 + $0x6a8] sm:$0xff]  }
  0xf6   :  { %20402 = vmatpush3.bf16.msra.mxu0 %v22737_v38  ;;  %v22793_v38 = vld [vmem:[#allocation2 + $0x538] sm:$0xff]  }
  0xf7   :  { %20424 = vmatpush3.bf16.msra.mxu1 %v22738_v39  ;;  %20403 = vmatprep.subr.bf16.mxu0 %v22739_v40  ;;  %v22794_v39 = vld [vmem:[#allocation2 + $0x5b8] sm:$0xff]   ;;  %v113_v40 = vld [vmem:[%s25323_s0 + $0x50] sm:$0xff] }
  0xf8   :  { %20425 = vmatprep.subr.bf16.mxu1 %v22740_v41  ;;  %v213_v41 = vld [vmem:[%s25323_s0 + $0x370] sm:$0xff] }
  0xfa   :  { %20404 = vmatpush3.bf16.msra.mxu0 %v22741_v42  ;;  %v114_v42 = vld [vmem:[%s25323_s0 + $0x58] sm:$0xff] }
  0xfb   :  { %20426 = vmatpush3.bf16.msra.mxu1 %v22742_v43  ;;  %20405 = vmatprep.subr.bf16.mxu0 %v22743_v44  ;;  %v214_v43 = vld [vmem:[%s25323_s0 + $0x378] sm:$0xff]  ;;  %v18441_v44 = vcombine.low %v113_v40, %v213_v41 }
  0xfc   :  { %20427 = vmatprep.subr.bf16.mxu1 %v22744_v45  ;;  %v18442_v45 = vcombine.high %v113_v40, %v213_v41  ;;  %v22842_v41 = vld [vmem:[#allocation2 + $0x798] sm:$0xff]  }
  0xfe   :  { %20406 = vmatpush3.bf16.msra.mxu0 %v22745_v46  ;;  %v18443_v46 = vcombine.low %v114_v42, %v214_v43 }
  0xff   :  { %20428 = vmatpush3.bf16.msra.mxu1 %v22746_v47  ;;  %20407 = vmatprep.subr.bf16.mxu0 %v22747_v48  ;;  %v18444_v47 = vcombine.high %v114_v42, %v214_v43  ;;  %v22795_v48 = vld [vmem:[#allocation2 + $0x640] sm:$0xff]  }
 0x100   :  { %20429 = vmatprep.subr.bf16.mxu1 %v22748_v49  ;;  %v22796_v49 = vld [vmem:[#allocation2 + $0x6c0] sm:$0xff]  }
 0x101   :  { %v22843_v43 = vld [vmem:[#allocation2 + $0x760] sm:$0xff]  }
 0x102   :  { %20408 = vmatpush3.bf16.msra.mxu0 %v22749_v50  ;;  %v22797_v50 = vld [vmem:[#allocation2 + $0x600] sm:$0xff]  }
 0x103   :  { %20430 = vmatpush3.bf16.msra.mxu1 %v22750_v51  ;;  %20409 = vmatprep.subr.bf16.mxu0 %v22751_v52  ;;  %v22798_v51 = vld [vmem:[#allocation2 + $0x680] sm:$0xff]   ;;  %v22799_v52 = vld [vmem:[#allocation2 + $0x648] sm:$0xff]  }
 0x104   :  { %20431 = vmatprep.subr.bf16.mxu1 %v22752_v53  ;;  %v22800_v53 = vld [vmem:[#allocation2 + $0x6c8] sm:$0xff]  }
 0x106   :  { %20410 = vmatpush3.bf16.msra.mxu0 %v22753_v54  ;;  %v22801_v54 = vld [vmem:[#allocation2 + $0x608] sm:$0xff]  }
 0x107   :  { %20432 = vmatpush3.bf16.msra.mxu1 %v22754_v55  ;;  %20411 = vmatprep.subr.bf16.mxu0 %v22755_v56  ;;  %v22802_v55 = vld [vmem:[#allocation2 + $0x688] sm:$0xff]   ;;  %v22803_v56 = vld [vmem:[#allocation2 + $0x650] sm:$0xff]  }
 0x108   :  { %20433 = vmatprep.subr.bf16.mxu1 %v22756_v57  ;;  %v22804_v57 = vld [vmem:[#allocation2 + $0x6d0] sm:$0xff]  }
 0x10a   :  { %20412 = vmatpush3.bf16.msra.mxu0 %v22757_v58  ;;  %v22805_v58 = vld [vmem:[#allocation2 + $0x610] sm:$0xff]  }
 0x10b   :  { %20434 = vmatpush3.bf16.msra.mxu1 %v22758_v59  ;;  %20413 = vmatprep.subr.bf16.mxu0 %v22759_v60  ;;  %v22806_v59 = vld [vmem:[#allocation2 + $0x690] sm:$0xff]   ;;  %v22807_v60 = vld [vmem:[#allocation2 + $0x658] sm:$0xff]  }
 0x10c   :  { %20435 = vmatprep.subr.bf16.mxu1 %v22760_v61  ;;  %v22808_v61 = vld [vmem:[#allocation2 + $0x6d8] sm:$0xff]  }
 0x10e   :  { %20414 = vmatpush3.bf16.msra.mxu0 %v22761_v62  ;;  %v22809_v62 = vld [vmem:[#allocation2 + $0x618] sm:$0xff]  }
 0x10f   :  { %20436 = vmatpush3.bf16.msra.mxu1 %v22762_v63  ;;  %20443 = vmatprep.subr.bf16.mxu0 %v22763_v8  ;;  %v22810_v63 = vld [vmem:[#allocation2 + $0x698] sm:$0xff]   ;;  %v22819_v8 = vld [vmem:[#allocation2 + $0x670] sm:$0xff]  }
 0x110   :  { %20465 = vmatprep.subr.bf16.mxu1 %v22764_v9  ;;  %v22820_v9 = vld [vmem:[#allocation2 + $0x6f0] sm:$0xff]  }
 0x111   :  { %14471 = vmatmul.mubr.bf16.vlgmr.msra.gmra.mrb[16].mxu0 %v18437_v2  ;;  %v22813_v2 = vld [vmem:[#allocation2 + $0x620] sm:$0xff]  }
 0x112   :  { %14512 = vmatmul.mubr.bf16.vlgmr.msra.gmra.mrb[16].mxu1 %v18439_v6  ;;  %20444 = vmatpush3.bf16.msra.mxu0 %v22765_v10  ;;  %v22817_v6 = vld [vmem:[#allocation2 + $0x628] sm:$0xff]   ;;  %v22821_v10 = vld [vmem:[#allocation2 + $0x630] sm:$0xff]  }
 0x113   :  { %20466 = vmatpush3.bf16.msra.mxu1 %v22766_v11  ;;  %20445 = vmatprep.subr.bf16.mxu0 %v22767_v12  ;;  %v22822_v11 = vld [vmem:[#allocation2 + $0x6b0] sm:$0xff]   ;;  %v22823_v12 = vld [vmem:[#allocation2 + $0x678] sm:$0xff]  }
 0x114   :  { %20467 = vmatprep.subr.bf16.mxu1 %v22768_v13  ;;  %14552 = vmatprep.mubr.bf16.mxu0 %v18442_v45  ;;  %v22824_v13 = vld [vmem:[#allocation2 + $0x6f8] sm:$0xff]  }
 0x115   :  { %14593 = vmatprep.mubr.bf16.mxu1 %v18444_v47 }
 0x116   :  { %20446 = vmatpush3.bf16.msra.mxu0 %v22769_v14  ;;  %v22825_v14 = vld [vmem:[#allocation2 + $0x638] sm:$0xff]  }
 0x117   :  { %20468 = vmatpush3.bf16.msra.mxu1 %v22770_v15  ;;  %20447 = vmatprep.subr.bf16.mxu0 %v22771_v16  ;;  %v22826_v15 = vld [vmem:[#allocation2 + $0x6b8] sm:$0xff]   ;;  %v115_v16 = vld [vmem:[%s25323_s0 + $0x60] sm:$0xff] }
 0x118   :  { %20469 = vmatprep.subr.bf16.mxu1 %v22772_v17  ;;  %v215_v17 = vld [vmem:[%s25323_s0 + $0x380] sm:$0xff] }
 0x11a   :  { %20448 = vmatpush3.bf16.msra.mxu0 %v22773_v18  ;;  %v116_v18 = vld [vmem:[%s25323_s0 + $0x68] sm:$0xff] }
 0x11b   :  { %20470 = vmatpush3.bf16.msra.mxu1 %v22774_v19  ;;  %20449 = vmatprep.subr.bf16.mxu0 %v22775_v20  ;;  %v18445_v19 = vcombine.low %v115_v16, %v215_v17  ;;  %v18446_v20 = vcombine.high %v115_v16, %v215_v17  ;;  %v22859_v17 = vld [vmem:[#allocation2 + $0x840] sm:$0xff]  }
 0x11c   :  { %20471 = vmatprep.subr.bf16.mxu1 %v22776_v21  ;;  %v216_v21 = vld [vmem:[%s25323_s0 + $0x388] sm:$0xff] }
 0x11e   :  { %20450 = vmatpush3.bf16.msra.mxu0 %v22777_v22  ;;  %v18447_v22 = vcombine.low %v116_v18, %v216_v21 }
 0x11f   :  { %20472 = vmatpush3.bf16.msra.mxu1 %v22778_v23  ;;  %20451 = vmatprep.subr.bf16.mxu0 %v22779_v24  ;;  %v18448_v23 = vcombine.high %v116_v18, %v216_v21  ;;  %v22827_v24 = vld [vmem:[#allocation2 + $0x740] sm:$0xff]   ;;  %v22863_v21 = vld [vmem:[#allocation2 + $0x848] sm:$0xff]  }
 0x120   :  { %20473 = vmatprep.subr.bf16.mxu1 %v22780_v25  ;;  %v22828_v25 = vld [vmem:[#allocation2 + $0x7c0] sm:$0xff]  }
 0x121   :  { %v22860_v18 = vld [vmem:[#allocation2 + $0x8c0] sm:$0xff]  }
 0x122   :  { %20452 = vmatpush3.bf16.msra.mxu0 %v22781_v26  ;;  %v22829_v26 = vld [vmem:[#allocation2 + $0x700] sm:$0xff]  }
 0x123   :  { %20474 = vmatpush3.bf16.msra.mxu1 %v22782_v27  ;;  %20453 = vmatprep.subr.bf16.mxu0 %v22783_v28  ;;  %v22830_v27 = vld [vmem:[#allocation2 + $0x780] sm:$0xff]   ;;  %v22831_v28 = vld [vmem:[#allocation2 + $0x748] sm:$0xff]  }
 0x124   :  { %20475 = vmatprep.subr.bf16.mxu1 %v22784_v29  ;;  %v22832_v29 = vld [vmem:[#allocation2 + $0x7c8] sm:$0xff]  }
 0x126   :  { %20454 = vmatpush3.bf16.msra.mxu0 %v22785_v30  ;;  %v22833_v30 = vld [vmem:[#allocation2 + $0x708] sm:$0xff]  }
 0x127   :  { %20476 = vmatpush3.bf16.msra.mxu1 %v22786_v31  ;;  %20455 = vmatprep.subr.bf16.mxu0 %v22787_v32  ;;  %v22834_v31 = vld [vmem:[#allocation2 + $0x788] sm:$0xff]   ;;  %v22835_v32 = vld [vmem:[#allocation2 + $0x750] sm:$0xff]  }
 0x128   :  { %20477 = vmatprep.subr.bf16.mxu1 %v22788_v33  ;;  %v22836_v33 = vld [vmem:[#allocation2 + $0x7d0] sm:$0xff]  }
 0x12a   :  { %20456 = vmatpush3.bf16.msra.mxu0 %v22789_v34  ;;  %v22837_v34 = vld [vmem:[#allocation2 + $0x710] sm:$0xff]  }
 0x12b   :  { %20478 = vmatpush3.bf16.msra.mxu1 %v22790_v35  ;;  %20457 = vmatprep.subr.bf16.mxu0 %v22791_v36  ;;  %v22838_v35 = vld [vmem:[#allocation2 + $0x790] sm:$0xff]   ;;  %v22839_v36 = vld [vmem:[#allocation2 + $0x758] sm:$0xff]  }
 0x12c   :  { %20479 = vmatprep.subr.bf16.mxu1 %v22792_v37  ;;  %v22840_v37 = vld [vmem:[#allocation2 + $0x7d8] sm:$0xff]  }
 0x12e   :  { %20458 = vmatpush3.bf16.msra.mxu0 %v22793_v38 }
 0x12f   :  { %20480 = vmatpush3.bf16.msra.mxu1 %v22794_v39  ;;  %20487 = vmatprep.subr.bf16.mxu0 %v22795_v48  ;;  %v22841_v39 = vld [vmem:[#allocation2 + $0x718] sm:$0xff]  }
 0x130   :  { %20509 = vmatprep.subr.bf16.mxu1 %v22796_v49  ;;  %v22845_v49 = vld [vmem:[#allocation2 + $0x720] sm:$0xff]  }
 0x131   :  { %14553 = vmatmul.mubr.bf16.vlgmr.msra.gmra.mrb[20].mxu0 %v18441_v44 }
 0x132   :  { %14594 = vmatmul.mubr.bf16.vlgmr.msra.gmra.mrb[20].mxu1 %v18443_v46  ;;  %20488 = vmatpush3.bf16.msra.mxu0 %v22797_v50  ;;  %v22844_v46 = vld [vmem:[#allocation2 + $0x7e0] sm:$0xff]  }
 0x133   :  { %20510 = vmatpush3.bf16.msra.mxu1 %v22798_v51  ;;  %20489 = vmatprep.subr.bf16.mxu0 %v22799_v52  ;;  %v22846_v51 = vld [vmem:[#allocation2 + $0x7a0] sm:$0xff]  }
 0x134   :  { %20511 = vmatprep.subr.bf16.mxu1 %v22800_v53  ;;  %14634 = vmatprep.mubr.bf16.mxu0 %v18446_v20  ;;  %v18420_v52 = vld [vmem:[#allocation4] ss:$0 sm:$0xff] }
 0x135   :  { %14675 = vmatprep.mubr.bf16.mxu1 %v18448_v23  ;;  %v22862_v20 = vld [vmem:[#allocation2 + $0x880] sm:$0xff]   ;;  %v22865_v23 = vld [vmem:[#allocation2 + $0x808] sm:$0xff]  }
 0x136   :  { %20490 = vmatpush3.bf16.msra.mxu0 %v22801_v54 }
 0x137   :  { %20512 = vmatpush3.bf16.msra.mxu1 %v22802_v55  ;;  %20491 = vmatprep.subr.bf16.mxu0 %v22803_v56  ;;  %v22847_v55 = vld [vmem:[#allocation2 + $0x768] sm:$0xff]  }
 0x138   :  { %20513 = vmatprep.subr.bf16.mxu1 %v22804_v57 }
 0x13a   :  { %20492 = vmatpush3.bf16.msra.mxu0 %v22805_v58  ;;  %v22848_v58 = vld [vmem:[#allocation2 + $0x7e8] sm:$0xff]  }
 0x13b   :  { %20514 = vmatpush3.bf16.msra.mxu1 %v22806_v59  ;;  %20493 = vmatprep.subr.bf16.mxu0 %v22807_v60 }
 0x13c   :  { %20515 = vmatprep.subr.bf16.mxu1 %v22808_v61  ;;  %v22849_v61 = vld [vmem:[#allocation2 + $0x728] sm:$0xff]  }
 0x13e   :  { %20494 = vmatpush3.bf16.msra.mxu0 %v22809_v62 }
 0x13f   :  { %20516 = vmatpush3.bf16.msra.mxu1 %v22810_v63  ;;  %20495 = vmatprep.subr.bf16.mxu0 %v22811_v0  ;;  %v22850_v63 = vld [vmem:[#allocation2 + $0x7a8] sm:$0xff]  }
 0x140   :  { %20517 = vmatprep.subr.bf16.mxu1 %v22812_v1  ;;  %v22851_v1 = vld [vmem:[#allocation2 + $0x770] sm:$0xff]  }
 0x142   :  { %20496 = vmatpush3.bf16.msra.mxu0 %v22813_v2  ;;  %v22852_v2 = vld [vmem:[#allocation2 + $0x7f0] sm:$0xff]  }
 0x143   :  { %20518 = vmatpush3.bf16.msra.mxu1 %v22814_v3  ;;  %20497 = vmatprep.subr.bf16.mxu0 %v22815_v4  ;;  %v22853_v3 = vld [vmem:[#allocation2 + $0x730] sm:$0xff]  }
 0x144   :  { %20519 = vmatprep.subr.bf16.mxu1 %v22816_v5  ;;  %v22854_v4 = vld [vmem:[#allocation2 + $0x7b0] sm:$0xff]   ;;  %v22855_v5 = vld [vmem:[#allocation2 + $0x778] sm:$0xff]  }
 0x146   :  { %20498 = vmatpush3.bf16.msra.mxu0 %v22817_v6  ;;  %v22856_v6 = vld [vmem:[#allocation2 + $0x7f8] sm:$0xff]  }
 0x147   :  { %20520 = vmatpush3.bf16.msra.mxu1 %v22818_v7  ;;  %20499 = vmatprep.subr.bf16.mxu0 %v22819_v8  ;;  %v22857_v7 = vld [vmem:[#allocation2 + $0x738] sm:$0xff]  }
 0x148   :  { %20521 = vmatprep.subr.bf16.mxu1 %v22820_v9  ;;  %v22858_v8 = vld [vmem:[#allocation2 + $0x7b8] sm:$0xff]   ;;  %v117_v9 = vld [vmem:[%s25323_s0 + $0x70] sm:$0xff] }
 0x14a   :  { %20500 = vmatpush3.bf16.msra.mxu0 %v22821_v10  ;;  %v217_v10 = vld [vmem:[%s25323_s0 + $0x390] sm:$0xff] }
 0x14b   :  { %20522 = vmatpush3.bf16.msra.mxu1 %v22822_v11  ;;  %20501 = vmatprep.subr.bf16.mxu0 %v22823_v12  ;;  %v118_v11 = vld [vmem:[%s25323_s0 + $0x78] sm:$0xff] }
 0x14c   :  { %20523 = vmatprep.subr.bf16.mxu1 %v22824_v13  ;;  %v218_v12 = vld [vmem:[%s25323_s0 + $0x398] sm:$0xff]  ;;  %v18449_v13 = vcombine.low %v117_v9, %v217_v10 }
 0x14d   :  { %v18452_v16 = vcombine.high %v118_v11, %v218_v12 }
 0x14e   :  { %20502 = vmatpush3.bf16.msra.mxu0 %v22825_v14  ;;  %v18450_v14 = vcombine.high %v117_v9, %v217_v10  ;;  %v22891_v9 = vld [vmem:[#allocation2 + $0x940] sm:$0xff]  }
 0x14f   :  { %20524 = vmatpush3.bf16.msra.mxu1 %v22826_v15  ;;  %20531 = vmatprep.subr.bf16.mxu0 %v22827_v24  ;;  %v18451_v15 = vcombine.low %v118_v11, %v218_v12  ;;  %v22866_v24 = vld [vmem:[#allocation2 + $0x888] sm:$0xff]   ;;  %v22892_v10 = vld [vmem:[#allocation2 + $0x9c0] sm:$0xff]  }
 0x150   :  { %20553 = vmatprep.subr.bf16.mxu1 %v22828_v25  ;;  %v22867_v25 = vld [vmem:[#allocation2 + $0x850] sm:$0xff]   ;;  %v22893_v11 = vld [vmem:[#allocation2 + $0x900] sm:$0xff]  }
 0x151   :  { %14635 = vmatmul.mubr.bf16.vlgmr.msra.gmra.mrb[24].mxu0 %v18445_v19  ;;  %v22861_v19 = vld [vmem:[#allocation2 + $0x800] sm:$0xff]  }
 0x152   :  { %14676 = vmatmul.mubr.bf16.vlgmr.msra.gmra.mrb[24].mxu1 %v18447_v22  ;;  %20532 = vmatpush3.bf16.msra.mxu0 %v22829_v26  ;;  %v22864_v22 = vld [vmem:[#allocation2 + $0x8c8] sm:$0xff]   ;;  %v22868_v26 = vld [vmem:[#allocation2 + $0x8d0] sm:$0xff]   ;;  %v22894_v12 = vld [vmem:[#allocation2 + $0x980] sm:$0xff]  }
 0x153   :  { %20554 = vmatpush3.bf16.msra.mxu1 %v22830_v27  ;;  %20533 = vmatprep.subr.bf16.mxu0 %v22831_v28  ;;  %v22869_v27 = vld [vmem:[#allocation2 + $0x810] sm:$0xff]  }
 0x154   :  { %20555 = vmatprep.subr.bf16.mxu1 %v22832_v29  ;;  %14716 = vmatprep.mubr.bf16.mxu0 %v18450_v14  ;;  %v22870_v28 = vld [vmem:[#allocation2 + $0x890] sm:$0xff]   ;;  %v22871_v29 = vld [vmem:[#allocation2 + $0x858] sm:$0xff]   ;;  %v22896_v14 = vld [vmem:[#allocation2 + $0x9c8] sm:$0xff]  }
 0x155   :  { %14757 = vmatprep.mubr.bf16.mxu1 %v18452_v16  ;;  %v22898_v16 = vld [vmem:[#allocation2 + $0x988] sm:$0xff]  }
 0x156   :  { %20534 = vmatpush3.bf16.msra.mxu0 %v22833_v30  ;;  %v22872_v30 = vld [vmem:[#allocation2 + $0x8d8] sm:$0xff]  }
 0x157   :  { %20556 = vmatpush3.bf16.msra.mxu1 %v22834_v31  ;;  %20535 = vmatprep.subr.bf16.mxu0 %v22835_v32  ;;  %v22873_v32 = vld [vmem:[#allocation2 + $0x818] sm:$0xff]  }
 0x158   :  { %20557 = vmatprep.subr.bf16.mxu1 %v22836_v33 }
 0x15a   :  { %20536 = vmatpush3.bf16.msra.mxu0 %v22837_v34  ;;  %v22874_v34 = vld [vmem:[#allocation2 + $0x898] sm:$0xff]  }
 0x15b   :  { %20558 = vmatpush3.bf16.msra.mxu1 %v22838_v35  ;;  %20537 = vmatprep.subr.bf16.mxu0 %v22839_v36  ;;  %v22875_v36 = vld [vmem:[#allocation2 + $0x860] sm:$0xff]  }
 0x15c   :  { %20559 = vmatprep.subr.bf16.mxu1 %v22840_v37 }
 0x15e   :  { %20538 = vmatpush3.bf16.msra.mxu0 %v22841_v39  ;;  %v22876_v39 = vld [vmem:[#allocation2 + $0x8e0] sm:$0xff]  }
 0x15f   :  { %20560 = vmatpush3.bf16.msra.mxu1 %v22842_v41  ;;  %20539 = vmatprep.subr.bf16.mxu0 %v22843_v43 }
 0x160   :  { %20561 = vmatprep.subr.bf16.mxu1 %v22844_v46 }
 0x162   :  { %20540 = vmatpush3.bf16.msra.mxu0 %v22845_v49 }
 0x163   :  { %20562 = vmatpush3.bf16.msra.mxu1 %v22846_v51  ;;  %20541 = vmatprep.subr.bf16.mxu0 %v22847_v55  ;;  %v22880_v51 = vld [vmem:[#allocation2 + $0x8e8] sm:$0xff]  }
 0x164   :  { %v20239_v38 = vpop.f32.mrb[0].mxu0  ;;  %20563 = vmatprep.subr.bf16.mxu1 %v22848_v58  ;;  %v22882_v55 = vld [vmem:[#allocation2 + $0x8a8] sm:$0xff]   ;;  %v22884_v58 = vld [vmem:[#allocation2 + $0x8f0] sm:$0xff]  }
 0x165   :  { %v20261_v40 = vpop.f32.mrb[0].mxu1  ;;  %v20240_v42 = vpop.f32.mrb[1].mxu0 }
 0x166   :  { %v20241_v44 = vadd.f32 %v20240_v42, %v20239_v38  ;;  %v20262_v45 = vpop.f32.mrb[1].mxu1  ;;  %v20242_v48 = vpop.f32.mrb[2].mxu0  ;;  %20542 = vmatpush3.bf16.msra.mxu0 %v22849_v61  ;;  %v22877_v42 = vld [vmem:[#allocation2 + $0x820] sm:$0xff]   ;;  %v22887_v61 = vld [vmem:[#allocation2 + $0x878] sm:$0xff]  }
 0x167   :  { %v20263_v47 = vadd.f32 %v20262_v45, %v20261_v40  ;;  %v20264_v50 = vpop.f32.mrb[2].mxu1  ;;  %v20243_v53 = vpop.f32.mrb[3].mxu0  ;;  %20564 = vmatpush3.bf16.msra.mxu1 %v22850_v63  ;;  %20543 = vmatprep.subr.bf16.mxu0 %v22851_v1  ;;  %v22878_v45 = vld [vmem:[#allocation2 + $0x8a0] sm:$0xff]   ;;  %v22889_v63 = vld [vmem:[#allocation2 + $0x838] sm:$0xff]  }
 0x168   :  { %v14145_v54 = vadd.f32 %v20241_v44, %v18420_v52  ;;  %v20244_v56 = vadd.f32 %v20243_v53, %v20242_v48  ;;  %v20265_v57 = vpop.f32.mrb[3].mxu1  ;;  %20565 = vmatprep.subr.bf16.mxu1 %v22852_v2  ;;  %v22879_v48 = vld [vmem:[#allocation2 + $0x868] sm:$0xff]   ;;  %v119_v1 = vld [vmem:[%s25323_s0 + $0x80] sm:$0xff] }
 0x169   :  { %v20266_v59 = vadd.f32 %v20265_v57, %v20264_v50  ;;  %v22881_v53 = vld [vmem:[#allocation2 + $0x828] sm:$0xff]   ;;  %v22883_v57 = vld [vmem:[#allocation2 + $0x870] sm:$0xff]   ;;  %v219_v2 = vld [vmem:[%s25323_s0 + $0x3a0] sm:$0xff] }
 0x16a   :  { %v24549_v60 = vadd.f32 %v20263_v47, %v14145_v54  ;;  %v14148_v62 = vadd.f32 %v20244_v56, %v18420_v52  ;;  %20544 = vmatpush3.bf16.msra.mxu0 %v22853_v3  ;;  %v120_v3 = vld [vmem:[%s25323_s0 + $0x88] sm:$0xff] }
 0x16b   :  { %20566 = vmatpush3.bf16.msra.mxu1 %v22854_v4  ;;  %20545 = vmatprep.subr.bf16.mxu0 %v22855_v5  ;;  %v18453_v4 = vcombine.low %v119_v1, %v219_v2  ;;  %v18454_v5 = vcombine.high %v119_v1, %v219_v2  ;;  %v22923_v1 = vld [vmem:[#allocation2 + $0xa40] sm:$0xff]  }
 0x16c   :  { %v24551_v0 = vadd.f32 %v20266_v59, %v14148_v62  ;;  %20567 = vmatprep.subr.bf16.mxu1 %v22856_v6  ;;  %v22885_v59 = vld [vmem:[#allocation2 + $0x830] sm:$0xff]   ;;  %v22888_v62 = vld [vmem:[#allocation2 + $0x8f8] sm:$0xff]   ;;  %v220_v6 = vld [vmem:[%s25323_s0 + $0x3a8] sm:$0xff] }
 0x16d   :  { %v22924_v2 = vld [vmem:[#allocation2 + $0xac0] sm:$0xff]  }
 0x16e   :  { %20546 = vmatpush3.bf16.msra.mxu0 %v22857_v7  ;;  %v18455_v7 = vcombine.low %v120_v3, %v220_v6 }
 0x16f   :  { %20568 = vmatpush3.bf16.msra.mxu1 %v22858_v8  ;;  %20575 = vmatprep.subr.bf16.mxu0 %v22859_v17  ;;  %v18456_v8 = vcombine.high %v120_v3, %v220_v6  ;;  %v22899_v17 = vld [vmem:[#allocation2 + $0x950] sm:$0xff]   ;;  %v22925_v3 = vld [vmem:[#allocation2 + $0xa00] sm:$0xff]   ;;  %v22928_v6 = vld [vmem:[#allocation2 + $0xac8] sm:$0xff]  }
 0x170   :  { %20597 = vmatprep.subr.bf16.mxu1 %v22860_v18  ;;  %v22900_v18 = vld [vmem:[#allocation2 + $0x9d0] sm:$0xff]  }
 0x171   :  { %14717 = vmatmul.mubr.bf16.vlgmr.msra.gmra.mrb[28].mxu0 %v18449_v13  ;;  %v22895_v13 = vld [vmem:[#allocation2 + $0x948] sm:$0xff]  }
 0x172   :  { %14758 = vmatmul.mubr.bf16.vlgmr.msra.gmra.mrb[28].mxu1 %v18451_v15  ;;  %20576 = vmatpush3.bf16.msra.mxu0 %v22861_v19  ;;  %v22897_v15 = vld [vmem:[#allocation2 + $0x908] sm:$0xff]   ;;  %v22901_v19 = vld [vmem:[#allocation2 + $0x910] sm:$0xff]  }
 0x173   :  { %20598 = vmatpush3.bf16.msra.mxu1 %v22862_v20  ;;  %20577 = vmatprep.subr.bf16.mxu0 %v22863_v21  ;;  %v22902_v20 = vld [vmem:[#allocation2 + $0x990] sm:$0xff]   ;;  %v22903_v21 = vld [vmem:[#allocation2 + $0x958] sm:$0xff]  }
 0x174   :  { %20599 = vmatprep.subr.bf16.mxu1 %v22864_v22  ;;  %14798 = vmatprep.mubr.bf16.mxu0 %v18454_v5  ;;  %v22904_v22 = vld [vmem:[#allocation2 + $0x9d8] sm:$0xff]   ;;  %v22927_v5 = vld [vmem:[#allocation2 + $0xa48] sm:$0xff]  }
 0x175   :  { %14839 = vmatprep.mubr.bf16.mxu1 %v18456_v8  ;;  %v22930_v8 = vld [vmem:[#allocation2 + $0xa88] sm:$0xff]  }
 0x176   :  { %20578 = vmatpush3.bf16.msra.mxu0 %v22865_v23 }
 0x177   :  { %20600 = vmatpush3.bf16.msra.mxu1 %v22866_v24  ;;  %20579 = vmatprep.subr.bf16.mxu0 %v22867_v25  ;;  %v22905_v24 = vld [vmem:[#allocation2 + $0x918] sm:$0xff]  }
 0x178   :  { %20601 = vmatprep.subr.bf16.mxu1 %v22868_v26  ;;  %v22906_v26 = vld [vmem:[#allocation2 + $0x998] sm:$0xff]  }
 0x17a   :  { %20580 = vmatpush3.bf16.msra.mxu0 %v22869_v27 }
 0x17b   :  { %20602 = vmatpush3.bf16.msra.mxu1 %v22870_v28  ;;  %20581 = vmatprep.subr.bf16.mxu0 %v22871_v29  ;;  %v22907_v28 = vld [vmem:[#allocation2 + $0x960] sm:$0xff]  }
 0x17c   :  { %20603 = vmatprep.subr.bf16.mxu1 %v22872_v30 }
 0x17e   :  { %20582 = vmatpush3.bf16.msra.mxu0 %v22873_v32 }
 0x17f   :  { %20604 = vmatpush3.bf16.msra.mxu1 %v22874_v34  ;;  %20583 = vmatprep.subr.bf16.mxu0 %v22875_v36  ;;  %v22909_v34 = vld [vmem:[#allocation2 + $0x920] sm:$0xff]  }
 0x180   :  { %20605 = vmatprep.subr.bf16.mxu1 %v22876_v39 }
 0x182   :  { %20584 = vmatpush3.bf16.msra.mxu0 %v22877_v42 }
 0x183   :  { %20606 = vmatpush3.bf16.msra.mxu1 %v22878_v45  ;;  %20585 = vmatprep.subr.bf16.mxu0 %v22879_v48  ;;  %v22913_v45 = vld [vmem:[#allocation2 + $0x928] sm:$0xff]  }
 0x184   :  { %v20283_v31 = vpop.f32.mrb[4].mxu0  ;;  %20607 = vmatprep.subr.bf16.mxu1 %v22880_v51  ;;  %v22914_v48 = vld [vmem:[#allocation2 + $0x9a8] sm:$0xff]   ;;  %v22917_v51 = vld [vmem:[#allocation2 + $0x930] sm:$0xff]  }
 0x185   :  { %v20305_v33 = vpop.f32.mrb[4].mxu1  ;;  %v20284_v35 = vpop.f32.mrb[5].mxu0 }
 0x186   :  { %v20285_v37 = vadd.f32 %v20284_v35, %v20283_v31  ;;  %v20306_v38 = vpop.f32.mrb[5].mxu1  ;;  %v20286_v41 = vpop.f32.mrb[6].mxu0  ;;  %20586 = vmatpush3.bf16.msra.mxu0 %v22881_v53  ;;  %v22908_v31 = vld [vmem:[#allocation2 + $0x9e0] sm:$0xff]   ;;  %v22919_v53 = vld [vmem:[#allocation2 + $0x978] sm:$0xff]  }
 0x187   :  { %v20307_v40 = vadd.f32 %v20306_v38, %v20305_v33  ;;  %v20308_v44 = vpop.f32.mrb[6].mxu1  ;;  %v20287_v46 = vpop.f32.mrb[7].mxu0  ;;  %20608 = vmatpush3.bf16.msra.mxu1 %v22882_v55  ;;  %20587 = vmatprep.subr.bf16.mxu0 %v22883_v57  ;;  %v22921_v55 = vld [vmem:[#allocation2 + $0x938] sm:$0xff]   ;;  %v121_v57 = vld [vmem:[%s25323_s0 + $0x90] sm:$0xff] }
 0x188   :  { %v14227_v43 = vadd.f32 %v20285_v37, %v24549_v60  ;;  %v20288_v49 = vadd.f32 %v20287_v46, %v20286_v41  ;;  %v20309_v50 = vpop.f32.mrb[7].mxu1  ;;  %20609 = vmatprep.subr.bf16.mxu1 %v22884_v58  ;;  %v22886_v60 = vld [vmem:[#allocation2 + $0x8b0] sm:$0xff]   ;;  %v22910_v37 = vld [vmem:[#allocation2 + $0x9a0] sm:$0xff]  }
 0x189   :  { %v20310_v52 = vadd.f32 %v20309_v50, %v20308_v44  ;;  %v22916_v50 = vld [vmem:[#allocation2 + $0x9f0] sm:$0xff]  }
 0x18a   :  { %v24566_v47 = vadd.f32 %v20307_v40, %v14227_v43  ;;  %v14230_v54 = vadd.f32 %v20288_v49, %v24551_v0  ;;  %20588 = vmatpush3.bf16.msra.mxu0 %v22885_v59  ;;  %v22890_v0 = vld [vmem:[#allocation2 + $0x8b8] sm:$0xff]   ;;  %v22911_v40 = vld [vmem:[#allocation2 + $0x968] sm:$0xff]   ;;  %v22915_v49 = vld [vmem:[#allocation2 + $0x970] sm:$0xff]  }
 0x18b   :  { %20610 = vmatpush3.bf16.msra.mxu1 %v22886_v60  ;;  %20589 = vmatprep.subr.bf16.mxu0 %v22887_v61  ;;  %v22912_v43 = vld [vmem:[#allocation2 + $0x9e8] sm:$0xff]   ;;  %v221_v58 = vld [vmem:[%s25323_s0 + $0x3b0] sm:$0xff]  ;;  %v122_v61 = vld [vmem:[%s25323_s0 + $0x98] sm:$0xff] }
 0x18c   :  { %v24569_v56 = vadd.f32 %v20310_v52, %v14230_v54  ;;  %20611 = vmatprep.subr.bf16.mxu1 %v22888_v62  ;;  %v22918_v52 = vld [vmem:[#allocation2 + $0x9b0] sm:$0xff]   ;;  %v22920_v54 = vld [vmem:[#allocation2 + $0x9f8] sm:$0xff]   ;;  %v18457_v59 = vcombine.low %v121_v57, %v221_v58  ;;  %v18458_v60 = vcombine.high %v121_v57, %v221_v58  ;;  %v22955_v57 = vld [vmem:[#allocation2 + $0xb40] sm:$0xff]  }
 0x18d   :  { %v222_v62 = vld [vmem:[%s25323_s0 + $0x3b8] sm:$0xff]  ;;  %v22956_v58 = vld [vmem:[#allocation2 + $0xbc0] sm:$0xff]  }
 0x18e   :  { %20590 = vmatpush3.bf16.msra.mxu0 %v22889_v63  ;;  %v18459_v63 = vcombine.low %v122_v61, %v222_v62 }
 0x18f   :  { %20612 = vmatpush3.bf16.msra.mxu1 %v22890_v0  ;;  %20619 = vmatprep.subr.bf16.mxu0 %v22891_v9  ;;  %v18460_v0 = vcombine.high %v122_v61, %v222_v62  ;;  %v22931_v9 = vld [vmem:[#allocation2 + $0xa50] sm:$0xff]   ;;  %v22959_v61 = vld [vmem:[#allocation2 + $0xb48] sm:$0xff]  }
 0x190   :  { %20641 = vmatprep.subr.bf16.mxu1 %v22892_v10  ;;  %v22932_v10 = vld [vmem:[#allocation2 + $0xad0] sm:$0xff]   ;;  %v22960_v62 = vld [vmem:[#allocation2 + $0xbc8] sm:$0xff]  }
 0x191   :  { %14799 = vmatmul.mubr.bf16.vlgmr.msra.gmra.mrb[32].mxu0 %v18453_v4  ;;  %v22926_v4 = vld [vmem:[#allocation2 + $0xa80] sm:$0xff]  }
 0x192   :  { %14840 = vmatmul.mubr.bf16.vlgmr.msra.gmra.mrb[32].mxu1 %v18455_v7  ;;  %20620 = vmatpush3.bf16.msra.mxu0 %v22893_v11  ;;  %v22929_v7 = vld [vmem:[#allocation2 + $0xa08] sm:$0xff]   ;;  %v22933_v11 = vld [vmem:[#allocation2 + $0xa10] sm:$0xff]  }
 0x193   :  { %20642 = vmatpush3.bf16.msra.mxu1 %v22894_v12  ;;  %20621 = vmatprep.subr.bf16.mxu0 %v22895_v13  ;;  %v22934_v12 = vld [vmem:[#allocation2 + $0xa90] sm:$0xff]   ;;  %v22935_v13 = vld [vmem:[#allocation2 + $0xa58] sm:$0xff]  }
 0x194   :  { %20643 = vmatprep.subr.bf16.mxu1 %v22896_v14  ;;  %14880 = vmatprep.mubr.bf16.mxu0 %v18458_v60  ;;  %v22936_v14 = vld [vmem:[#allocation2 + $0xad8] sm:$0xff]   ;;  %v22958_v60 = vld [vmem:[#allocation2 + $0xb80] sm:$0xff]  }
 0x195   :  { %14921 = vmatprep.mubr.bf16.mxu1 %v18460_v0  ;;  %v22962_v0 = vld [vmem:[#allocation2 + $0xb88] sm:$0xff]  }
 0x196   :  { %20622 = vmatpush3.bf16.msra.mxu0 %v22897_v15 }
 0x197   :  { %20644 = vmatpush3.bf16.msra.mxu1 %v22898_v16  ;;  %20623 = vmatprep.subr.bf16.mxu0 %v22899_v17  ;;  %v22937_v16 = vld [vmem:[#allocation2 + $0xa18] sm:$0xff]  }
 0x198   :  { %20645 = vmatprep.subr.bf16.mxu1 %v22900_v18  ;;  %v22938_v18 = vld [vmem:[#allocation2 + $0xa98] sm:$0xff]  }
 0x19a   :  { %20624 = vmatpush3.bf16.msra.mxu0 %v22901_v19 }
 0x19b   :  { %20646 = vmatpush3.bf16.msra.mxu1 %v22902_v20  ;;  %20625 = vmatprep.subr.bf16.mxu0 %v22903_v21  ;;  %v22939_v20 = vld [vmem:[#allocation2 + $0xa60] sm:$0xff]  }
 0x19c   :  { %20647 = vmatprep.subr.bf16.mxu1 %v22904_v22 }
 0x19e   :  { %20626 = vmatpush3.bf16.msra.mxu0 %v22905_v24 }
 0x19f   :  { %20648 = vmatpush3.bf16.msra.mxu1 %v22906_v26  ;;  %20627 = vmatprep.subr.bf16.mxu0 %v22907_v28  ;;  %v22941_v26 = vld [vmem:[#allocation2 + $0xa20] sm:$0xff]  }
 0x1a0   :  { %20649 = vmatprep.subr.bf16.mxu1 %v22908_v31 }
 0x1a2   :  { %20628 = vmatpush3.bf16.msra.mxu0 %v22909_v34 }
 0x1a3   :  { %20650 = vmatpush3.bf16.msra.mxu1 %v22910_v37  ;;  %20629 = vmatprep.subr.bf16.mxu0 %v22911_v40  ;;  %v22945_v37 = vld [vmem:[#allocation2 + $0xa28] sm:$0xff]  }
 0x1a4   :  { %v20327_v23 = vpop.f32.mrb[8].mxu0  ;;  %20651 = vmatprep.subr.bf16.mxu1 %v22912_v43  ;;  %v22946_v40 = vld [vmem:[#allocation2 + $0xaa8] sm:$0xff]   ;;  %v22949_v43 = vld [vmem:[#allocation2 + $0xa30] sm:$0xff]  }
 0x1a5   :  { %v20349_v25 = vpop.f32.mrb[8].mxu1  ;;  %v20328_v27 = vpop.f32.mrb[9].mxu0 }
 0x1a6   :  { %v20329_v29 = vadd.f32 %v20328_v27, %v20327_v23  ;;  %v20350_v30 = vpop.f32.mrb[9].mxu1  ;;  %v20330_v33 = vpop.f32.mrb[10].mxu0  ;;  %20630 = vmatpush3.bf16.msra.mxu0 %v22913_v45  ;;  %v22940_v23 = vld [vmem:[#allocation2 + $0xae0] sm:$0xff]   ;;  %v22951_v45 = vld [vmem:[#allocation2 + $0xa78] sm:$0xff]  }
 0x1a7   :  { %v20351_v32 = vadd.f32 %v20350_v30, %v20349_v25  ;;  %v20352_v36 = vpop.f32.mrb[10].mxu1  ;;  %v20331_v38 = vpop.f32.mrb[11].mxu0  ;;  %20652 = vmatpush3.bf16.msra.mxu1 %v22914_v48  ;;  %20631 = vmatprep.subr.bf16.mxu0 %v22915_v49  ;;  %v22953_v48 = vld [vmem:[#allocation2 + $0xa38] sm:$0xff]   ;;  %v123_v49 = vld [vmem:[%s25323_s0 + $0xa0] sm:$0xff] }
 0x1a8   :  { %v14309_v35 = vadd.f32 %v20329_v29, %v24566_v47  ;;  %v20332_v41 = vadd.f32 %v20331_v38, %v20330_v33  ;;  %v20353_v42 = vpop.f32.mrb[11].mxu1  ;;  %20653 = vmatprep.subr.bf16.mxu1 %v22916_v50  ;;  %v22942_v29 = vld [vmem:[#allocation2 + $0xaa0] sm:$0xff]  }
 0x1a9   :  { %v20354_v44 = vadd.f32 %v20353_v42, %v20352_v36  ;;  %v22948_v42 = vld [vmem:[#allocation2 + $0xaf0] sm:$0xff]   ;;  %v223_v50 = vld [vmem:[%s25323_s0 + $0x3c0] sm:$0xff] }
 0x1aa   :  { %v24584_v39 = vadd.f32 %v20351_v32, %v14309_v35  ;;  %v14312_v46 = vadd.f32 %v20332_v41, %v24569_v56  ;;  %20632 = vmatpush3.bf16.msra.mxu0 %v22917_v51  ;;  %v22922_v56 = vld [vmem:[#allocation2 + $0x9b8] sm:$0xff]   ;;  %v22943_v32 = vld [vmem:[#allocation2 + $0xa68] sm:$0xff]   ;;  %v22947_v41 = vld [vmem:[#allocation2 + $0xa70] sm:$0xff]  }
 0x1ab   :  { %20654 = vmatpush3.bf16.msra.mxu1 %v22918_v52  ;;  %20633 = vmatprep.subr.bf16.mxu0 %v22919_v53  ;;  %v22944_v35 = vld [vmem:[#allocation2 + $0xae8] sm:$0xff]   ;;  %v18461_v53 = vcombine.low %v123_v49, %v223_v50 }
 0x1ac   :  { %v24587_v47 = vadd.f32 %v20354_v44, %v14312_v46  ;;  %20655 = vmatprep.subr.bf16.mxu1 %v22920_v54  ;;  %v22950_v44 = vld [vmem:[#allocation2 + $0xab0] sm:$0xff]   ;;  %v22952_v46 = vld [vmem:[#allocation2 + $0xaf8] sm:$0xff]   ;;  %v124_v51 = vld [vmem:[%s25323_s0 + $0xa8] sm:$0xff]  ;;  %v18462_v54 = vcombine.high %v123_v49, %v223_v50 }
 0x1ad   :  { %v224_v52 = vld [vmem:[%s25323_s0 + $0x3c8] sm:$0xff]  ;;  %v22987_v49 = vld [vmem:[#allocation2 + $0xc40] sm:$0xff]  }
 0x1ae   :  { %20634 = vmatpush3.bf16.msra.mxu0 %v22921_v55  ;;  %v18463_v55 = vcombine.low %v124_v51, %v224_v52  ;;  %v22988_v50 = vld [vmem:[#allocation2 + $0xcc0] sm:$0xff]  }
 0x1af   :  { %20656 = vmatpush3.bf16.msra.mxu1 %v22922_v56  ;;  %20663 = vmatprep.subr.bf16.mxu0 %v22923_v1  ;;  %v18464_v56 = vcombine.high %v124_v51, %v224_v52  ;;  %v22963_v1 = vld [vmem:[#allocation2 + $0xb50] sm:$0xff]   ;;  %v22989_v51 = vld [vmem:[#allocation2 + $0xc00] sm:$0xff]  }
 0x1b0   :  { %20685 = vmatprep.subr.bf16.mxu1 %v22924_v2  ;;  %v22964_v2 = vld [vmem:[#allocation2 + $0xbd0] sm:$0xff]   ;;  %v22990_v52 = vld [vmem:[#allocation2 + $0xc80] sm:$0xff]  }
 0x1b1   :  { %14881 = vmatmul.mubr.bf16.vlgmr.msra.gmra.mrb[36].mxu0 %v18457_v59  ;;  %v22957_v59 = vld [vmem:[#allocation2 + $0xb00] sm:$0xff]  }
 0x1b2   :  { %14922 = vmatmul.mubr.bf16.vlgmr.msra.gmra.mrb[36].mxu1 %v18459_v63  ;;  %20664 = vmatpush3.bf16.msra.mxu0 %v22925_v3  ;;  %v22961_v63 = vld [vmem:[#allocation2 + $0xb08] sm:$0xff]   ;;  %v22965_v3 = vld [vmem:[#allocation2 + $0xb10] sm:$0xff]  }
 0x1b3   :  { %20686 = vmatpush3.bf16.msra.mxu1 %v22926_v4  ;;  %20665 = vmatprep.subr.bf16.mxu0 %v22927_v5  ;;  %v22966_v4 = vld [vmem:[#allocation2 + $0xb90] sm:$0xff]   ;;  %v22967_v5 = vld [vmem:[#allocation2 + $0xb58] sm:$0xff]  }
 0x1b4   :  { %20687 = vmatprep.subr.bf16.mxu1 %v22928_v6  ;;  %14962 = vmatprep.mubr.bf16.mxu0 %v18462_v54  ;;  %v22968_v6 = vld [vmem:[#allocation2 + $0xbd8] sm:$0xff]   ;;  %v22992_v54 = vld [vmem:[#allocation2 + $0xcc8] sm:$0xff]  }
 0x1b5   :  { %15003 = vmatprep.mubr.bf16.mxu1 %v18464_v56  ;;  %v22994_v56 = vld [vmem:[#allocation2 + $0xc88] sm:$0xff]  }
 0x1b6   :  { %20666 = vmatpush3.bf16.msra.mxu0 %v22929_v7 }
 0x1b7   :  { %20688 = vmatpush3.bf16.msra.mxu1 %v22930_v8  ;;  %20667 = vmatprep.subr.bf16.mxu0 %v22931_v9  ;;  %v22969_v8 = vld [vmem:[#allocation2 + $0xb18] sm:$0xff]  }
 0x1b8   :  { %20689 = vmatprep.subr.bf16.mxu1 %v22932_v10  ;;  %v22970_v10 = vld [vmem:[#allocation2 + $0xb98] sm:$0xff]  }
 0x1ba   :  { %20668 = vmatpush3.bf16.msra.mxu0 %v22933_v11 }
 0x1bb   :  { %20690 = vmatpush3.bf16.msra.mxu1 %v22934_v12  ;;  %20669 = vmatprep.subr.bf16.mxu0 %v22935_v13  ;;  %v22971_v12 = vld [vmem:[#allocation2 + $0xb60] sm:$0xff]  }
 0x1bc   :  { %20691 = vmatprep.subr.bf16.mxu1 %v22936_v14 }
 0x1be   :  { %20670 = vmatpush3.bf16.msra.mxu0 %v22937_v16 }
 0x1bf   :  { %20692 = vmatpush3.bf16.msra.mxu1 %v22938_v18  ;;  %20671 = vmatprep.subr.bf16.mxu0 %v22939_v20  ;;  %v22973_v18 = vld [vmem:[#allocation2 + $0xb20] sm:$0xff]  }
 0x1c0   :  { %20693 = vmatprep.subr.bf16.mxu1 %v22940_v23 }
 0x1c2   :  { %20672 = vmatpush3.bf16.msra.mxu0 %v22941_v26 }
 0x1c3   :  { %20694 = vmatpush3.bf16.msra.mxu1 %v22942_v29  ;;  %20673 = vmatprep.subr.bf16.mxu0 %v22943_v32  ;;  %v22977_v29 = vld [vmem:[#allocation2 + $0xb28] sm:$0xff]  }
 0x1c4   :  { %v20371_v15 = vpop.f32.mrb[12].mxu0  ;;  %20695 = vmatprep.subr.bf16.mxu1 %v22944_v35  ;;  %v22978_v32 = vld [vmem:[#allocation2 + $0xba8] sm:$0xff]   ;;  %v22981_v35 = vld [vmem:[#allocation2 + $0xb30] sm:$0xff]  }
 0x1c5   :  { %v20393_v17 = vpop.f32.mrb[12].mxu1  ;;  %v20372_v19 = vpop.f32.mrb[13].mxu0 }
 0x1c6   :  { %v20373_v21 = vadd.f32 %v20372_v19, %v20371_v15  ;;  %v20394_v22 = vpop.f32.mrb[13].mxu1  ;;  %v20374_v25 = vpop.f32.mrb[14].mxu0  ;;  %20674 = vmatpush3.bf16.msra.mxu0 %v22945_v37  ;;  %v22972_v15 = vld [vmem:[#allocation2 + $0xbe0] sm:$0xff]   ;;  %v22983_v37 = vld [vmem:[#allocation2 + $0xb78] sm:$0xff]  }
 0x1c7   :  { %v20395_v24 = vadd.f32 %v20394_v22, %v20393_v17  ;;  %v20396_v28 = vpop.f32.mrb[14].mxu1  ;;  %v20375_v30 = vpop.f32.mrb[15].mxu0  ;;  %20696 = vmatpush3.bf16.msra.mxu1 %v22946_v40  ;;  %20675 = vmatprep.subr.bf16.mxu0 %v22947_v41  ;;  %v22985_v40 = vld [vmem:[#allocation2 + $0xb38] sm:$0xff]   ;;  %v125_v41 = vld [vmem:[%s25323_s0 + $0xb0] sm:$0xff] }
 0x1c8   :  { %v14391_v27 = vadd.f32 %v20373_v21, %v24584_v39  ;;  %v20376_v33 = vadd.f32 %v20375_v30, %v20374_v25  ;;  %v20397_v34 = vpop.f32.mrb[15].mxu1  ;;  %20697 = vmatprep.subr.bf16.mxu1 %v22948_v42  ;;  %v22974_v21 = vld [vmem:[#allocation2 + $0xba0] sm:$0xff]   ;;  %v225_v42 = vld [vmem:[%s25323_s0 + $0x3d0] sm:$0xff] }
 0x1c9   :  { %v20398_v36 = vadd.f32 %v20397_v34, %v20396_v28  ;;  %v22980_v34 = vld [vmem:[#allocation2 + $0xbf0] sm:$0xff]  }
 0x1ca   :  { %v24602_v31 = vadd.f32 %v20395_v24, %v14391_v27  ;;  %v14394_v38 = vadd.f32 %v20376_v33, %v24587_v47  ;;  %20676 = vmatpush3.bf16.msra.mxu0 %v22949_v43  ;;  %v22954_v47 = vld [vmem:[#allocation2 + $0xab8] sm:$0xff]   ;;  %v22975_v24 = vld [vmem:[#allocation2 + $0xb68] sm:$0xff]   ;;  %v22979_v33 = vld [vmem:[#allocation2 + $0xb70] sm:$0xff]  }
 0x1cb   :  { %20698 = vmatpush3.bf16.msra.mxu1 %v22950_v44  ;;  %20677 = vmatprep.subr.bf16.mxu0 %v22951_v45  ;;  %v22976_v27 = vld [vmem:[#allocation2 + $0xbe8] sm:$0xff]   ;;  %v126_v43 = vld [vmem:[%s25323_s0 + $0xb8] sm:$0xff]  ;;  %v18465_v44 = vcombine.low %v125_v41, %v225_v42  ;;  %v18466_v45 = vcombine.high %v125_v41, %v225_v42  ;;  %v23019_v41 = vld [vmem:[#allocation2 + $0xd40] sm:$0xff]  }
 0x1cc   :  { %v24605_v39 = vadd.f32 %v20398_v36, %v14394_v38  ;;  %20699 = vmatprep.subr.bf16.mxu1 %v22952_v46  ;;  %v22982_v36 = vld [vmem:[#allocation2 + $0xbb0] sm:$0xff]   ;;  %v22984_v38 = vld [vmem:[#allocation2 + $0xbf8] sm:$0xff]   ;;  %v23020_v42 = vld [vmem:[#allocation2 + $0xdc0] sm:$0xff]  }
 0x1cd   :  { %v226_v46 = vld [vmem:[%s25323_s0 + $0x3d8] sm:$0xff] }
 0x1ce   :  { %20678 = vmatpush3.bf16.msra.mxu0 %v22953_v48  ;;  %v18467_v48 = vcombine.low %v126_v43, %v226_v46 }
 0x1cf   :  { %20700 = vmatpush3.bf16.msra.mxu1 %v22954_v47  ;;  %20707 = vmatprep.subr.bf16.mxu0 %v22955_v57  ;;  %v18468_v47 = vcombine.high %v126_v43, %v226_v46  ;;  %v22995_v57 = vld [vmem:[#allocation2 + $0xc50] sm:$0xff]   ;;  %v23021_v43 = vld [vmem:[#allocation2 + $0xd00] sm:$0xff]   ;;  %v23024_v46 = vld [vmem:[#allocation2 + $0xdc8] sm:$0xff]  }
 0x1d0   :  { %20729 = vmatprep.subr.bf16.mxu1 %v22956_v58  ;;  %v22996_v58 = vld [vmem:[#allocation2 + $0xcd0] sm:$0xff]  }
 0x1d1   :  { %14963 = vmatmul.mubr.bf16.vlgmr.msra.gmra.mrb[40].mxu0 %v18461_v53  ;;  %v22991_v53 = vld [vmem:[#allocation2 + $0xc48] sm:$0xff]  }
 0x1d2   :  { %15004 = vmatmul.mubr.bf16.vlgmr.msra.gmra.mrb[40].mxu1 %v18463_v55  ;;  %20708 = vmatpush3.bf16.msra.mxu0 %v22957_v59  ;;  %v22993_v55 = vld [vmem:[#allocation2 + $0xc08] sm:$0xff]   ;;  %v22997_v59 = vld [vmem:[#allocation2 + $0xc10] sm:$0xff]  }
 0x1d3   :  { %20730 = vmatpush3.bf16.msra.mxu1 %v22958_v60  ;;  %20709 = vmatprep.subr.bf16.mxu0 %v22959_v61  ;;  %v22998_v60 = vld [vmem:[#allocation2 + $0xc90] sm:$0xff]   ;;  %v22999_v61 = vld [vmem:[#allocation2 + $0xc58] sm:$0xff]  }
 0x1d4   :  { %20731 = vmatprep.subr.bf16.mxu1 %v22960_v62  ;;  %15044 = vmatprep.mubr.bf16.mxu0 %v18466_v45  ;;  %v23000_v62 = vld [vmem:[#allocation2 + $0xcd8] sm:$0xff]   ;;  %v23023_v45 = vld [vmem:[#allocation2 + $0xd48] sm:$0xff]  }
 0x1d5   :  { %15085 = vmatprep.mubr.bf16.mxu1 %v18468_v47  ;;  %v23026_v47 = vld [vmem:[#allocation2 + $0xd88] sm:$0xff]  }
 0x1d6   :  { %20710 = vmatpush3.bf16.msra.mxu0 %v22961_v63 }
 0x1d7   :  { %20732 = vmatpush3.bf16.msra.mxu1 %v22962_v0  ;;  %20711 = vmatprep.subr.bf16.mxu0 %v22963_v1  ;;  %v23001_v0 = vld [vmem:[#allocation2 + $0xc18] sm:$0xff]  }
 0x1d8   :  { %20733 = vmatprep.subr.bf16.mxu1 %v22964_v2  ;;  %v23002_v2 = vld [vmem:[#allocation2 + $0xc98] sm:$0xff]  }
 0x1da   :  { %20712 = vmatpush3.bf16.msra.mxu0 %v22965_v3 }
 0x1db   :  { %20734 = vmatpush3.bf16.msra.mxu1 %v22966_v4  ;;  %20713 = vmatprep.subr.bf16.mxu0 %v22967_v5  ;;  %v23003_v4 = vld [vmem:[#allocation2 + $0xc60] sm:$0xff]  }
 0x1dc   :  { %20735 = vmatprep.subr.bf16.mxu1 %v22968_v6 }
 0x1de   :  { %20714 = vmatpush3.bf16.msra.mxu0 %v22969_v8 }
 0x1df   :  { %20736 = vmatpush3.bf16.msra.mxu1 %v22970_v10  ;;  %20715 = vmatprep.subr.bf16.mxu0 %v22971_v12  ;;  %v23005_v10 = vld [vmem:[#allocation2 + $0xc20] sm:$0xff]  }
 0x1e0   :  { %20737 = vmatprep.subr.bf16.mxu1 %v22972_v15 }
 0x1e2   :  { %20716 = vmatpush3.bf16.msra.mxu0 %v22973_v18 }
 0x1e3   :  { %20738 = vmatpush3.bf16.msra.mxu1 %v22974_v21  ;;  %20717 = vmatprep.subr.bf16.mxu0 %v22975_v24  ;;  %v23009_v21 = vld [vmem:[#allocation2 + $0xc28] sm:$0xff]  }
 0x1e4   :  { %v20415_v7 = vpop.f32.mrb[16].mxu0  ;;  %20739 = vmatprep.subr.bf16.mxu1 %v22976_v27  ;;  %v23010_v24 = vld [vmem:[#allocation2 + $0xca8] sm:$0xff]   ;;  %v23013_v27 = vld [vmem:[#allocation2 + $0xc30] sm:$0xff]  }
 0x1e5   :  { %v20437_v9 = vpop.f32.mrb[16].mxu1  ;;  %v20416_v11 = vpop.f32.mrb[17].mxu0 }
 0x1e6   :  { %v20417_v13 = vadd.f32 %v20416_v11, %v20415_v7  ;;  %v20438_v14 = vpop.f32.mrb[17].mxu1  ;;  %v20418_v17 = vpop.f32.mrb[18].mxu0  ;;  %20718 = vmatpush3.bf16.msra.mxu0 %v22977_v29  ;;  %v23004_v7 = vld [vmem:[#allocation2 + $0xce0] sm:$0xff]   ;;  %v23015_v29 = vld [vmem:[#allocation2 + $0xc78] sm:$0xff]  }
 0x1e7   :  { %v20439_v16 = vadd.f32 %v20438_v14, %v20437_v9  ;;  %v20440_v20 = vpop.f32.mrb[18].mxu1  ;;  %v20419_v22 = vpop.f32.mrb[19].mxu0  ;;  %20740 = vmatpush3.bf16.msra.mxu1 %v22978_v32  ;;  %20719 = vmatprep.subr.bf16.mxu0 %v22979_v33  ;;  %v23017_v32 = vld [vmem:[#allocation2 + $0xc38] sm:$0xff]   ;;  %v127_v33 = vld [vmem:[%s25323_s0 + $0xc0] sm:$0xff] }
 0x1e8   :  { %v14473_v19 = vadd.f32 %v20417_v13, %v24602_v31  ;;  %v20420_v25 = vadd.f32 %v20419_v22, %v20418_v17  ;;  %v20441_v26 = vpop.f32.mrb[19].mxu1  ;;  %20741 = vmatprep.subr.bf16.mxu1 %v22980_v34  ;;  %v23006_v13 = vld [vmem:[#allocation2 + $0xca0] sm:$0xff]  }
 0x1e9   :  { %v20442_v28 = vadd.f32 %v20441_v26, %v20440_v20  ;;  %v23012_v26 = vld [vmem:[#allocation2 + $0xcf0] sm:$0xff]   ;;  %v227_v34 = vld [vmem:[%s25323_s0 + $0x3e0] sm:$0xff] }
 0x1ea   :  { %v24620_v23 = vadd.f32 %v20439_v16, %v14473_v19  ;;  %v14476_v30 = vadd.f32 %v20420_v25, %v24605_v39  ;;  %20720 = vmatpush3.bf16.msra.mxu0 %v22981_v35  ;;  %v22986_v39 = vld [vmem:[#allocation2 + $0xbb8] sm:$0xff]   ;;  %v23007_v16 = vld [vmem:[#allocation2 + $0xc68] sm:$0xff]   ;;  %v23011_v25 = vld [vmem:[#allocation2 + $0xc70] sm:$0xff]   ;;  %v18469_v35 = vcombine.low %v127_v33, %v227_v34 }
 0x1eb   :  { %20742 = vmatpush3.bf16.msra.mxu1 %v22982_v36  ;;  %20721 = vmatprep.subr.bf16.mxu0 %v22983_v37  ;;  %v23008_v19 = vld [vmem:[#allocation2 + $0xce8] sm:$0xff]   ;;  %v18470_v36 = vcombine.high %v127_v33, %v227_v34  ;;  %v23051_v33 = vld [vmem:[#allocation2 + $0xe40] sm:$0xff]  }
 0x1ec   :  { %v24623_v31 = vadd.f32 %v20442_v28, %v14476_v30  ;;  %20743 = vmatprep.subr.bf16.mxu1 %v22984_v38  ;;  %v23014_v28 = vld [vmem:[#allocation2 + $0xcb0] sm:$0xff]   ;;  %v23016_v30 = vld [vmem:[#allocation2 + $0xcf8] sm:$0xff]   ;;  %v128_v37 = vld [vmem:[%s25323_s0 + $0xc8] sm:$0xff] }
 0x1ed   :  { %v228_v38 = vld [vmem:[%s25323_s0 + $0x3e8] sm:$0xff]  ;;  %v23052_v34 = vld [vmem:[#allocation2 + $0xec0] sm:$0xff]  }
 0x1ee   :  { %20722 = vmatpush3.bf16.msra.mxu0 %v22985_v40  ;;  %v18471_v40 = vcombine.low %v128_v37, %v228_v38 }
 0x1ef   :  { %20744 = vmatpush3.bf16.msra.mxu1 %v22986_v39  ;;  %20751 = vmatprep.subr.bf16.mxu0 %v22987_v49  ;;  %v18472_v39 = vcombine.high %v128_v37, %v228_v38  ;;  %v23027_v49 = vld [vmem:[#allocation2 + $0xd50] sm:$0xff]   ;;  %v23055_v37 = vld [vmem:[#allocation2 + $0xe48] sm:$0xff]  }
 0x1f0   :  { %20773 = vmatprep.subr.bf16.mxu1 %v22988_v50  ;;  %v23028_v50 = vld [vmem:[#allocation2 + $0xdd0] sm:$0xff]   ;;  %v23056_v38 = vld [vmem:[#allocation2 + $0xec8] sm:$0xff]  }
 0x1f1   :  { %15045 = vmatmul.mubr.bf16.vlgmr.msra.gmra.mrb[44].mxu0 %v18465_v44  ;;  %v23022_v44 = vld [vmem:[#allocation2 + $0xd80] sm:$0xff]  }
 0x1f2   :  { %15086 = vmatmul.mubr.bf16.vlgmr.msra.gmra.mrb[44].mxu1 %v18467_v48  ;;  %20752 = vmatpush3.bf16.msra.mxu0 %v22989_v51  ;;  %v23025_v48 = vld [vmem:[#allocation2 + $0xd08] sm:$0xff]   ;;  %v23029_v51 = vld [vmem:[#allocation2 + $0xd10] sm:$0xff]  }
 0x1f3   :  { %20774 = vmatpush3.bf16.msra.mxu1 %v22990_v52  ;;  %20753 = vmatprep.subr.bf16.mxu0 %v22991_v53  ;;  %v23030_v52 = vld [vmem:[#allocation2 + $0xd90] sm:$0xff]   ;;  %v23031_v53 = vld [vmem:[#allocation2 + $0xd58] sm:$0xff]  }
 0x1f4   :  { %20775 = vmatprep.subr.bf16.mxu1 %v22992_v54  ;;  %15126 = vmatprep.mubr.bf16.mxu0 %v18470_v36  ;;  %v23032_v54 = vld [vmem:[#allocation2 + $0xdd8] sm:$0xff]   ;;  %v23054_v36 = vld [vmem:[#allocation2 + $0xe80] sm:$0xff]  }
 0x1f5   :  { %15167 = vmatprep.mubr.bf16.mxu1 %v18472_v39  ;;  %v23058_v39 = vld [vmem:[#allocation2 + $0xe88] sm:$0xff]  }
 0x1f6   :  { %20754 = vmatpush3.bf16.msra.mxu0 %v22993_v55 }
 0x1f7   :  { %20776 = vmatpush3.bf16.msra.mxu1 %v22994_v56  ;;  %20755 = vmatprep.subr.bf16.mxu0 %v22995_v57  ;;  %v23033_v56 = vld [vmem:[#allocation2 + $0xd18] sm:$0xff]  }
 0x1f8   :  { %20777 = vmatprep.subr.bf16.mxu1 %v22996_v58  ;;  %v23034_v58 = vld [vmem:[#allocation2 + $0xd98] sm:$0xff]  }
 0x1fa   :  { %20756 = vmatpush3.bf16.msra.mxu0 %v22997_v59 }
 0x1fb   :  { %20778 = vmatpush3.bf16.msra.mxu1 %v22998_v60  ;;  %20757 = vmatprep.subr.bf16.mxu0 %v22999_v61  ;;  %v23035_v60 = vld [vmem:[#allocation2 + $0xd60] sm:$0xff]  }
 0x1fc   :  { %20779 = vmatprep.subr.bf16.mxu1 %v23000_v62 }
 0x1fe   :  { %20758 = vmatpush3.bf16.msra.mxu0 %v23001_v0 }
 0x1ff   :  { %20780 = vmatpush3.bf16.msra.mxu1 %v23002_v2  ;;  %20759 = vmatprep.subr.bf16.mxu0 %v23003_v4  ;;  %v23037_v2 = vld [vmem:[#allocation2 + $0xd20] sm:$0xff]  }
 0x200   :  { %20781 = vmatprep.subr.bf16.mxu1 %v23004_v7 }
 0x202   :  { %20760 = vmatpush3.bf16.msra.mxu0 %v23005_v10 }
 0x203   :  { %20782 = vmatpush3.bf16.msra.mxu1 %v23006_v13  ;;  %20761 = vmatprep.subr.bf16.mxu0 %v23007_v16  ;;  %v23041_v13 = vld [vmem:[#allocation2 + $0xd28] sm:$0xff]  }
 0x204   :  { %v20459_v63 = vpop.f32.mrb[20].mxu0  ;;  %20783 = vmatprep.subr.bf16.mxu1 %v23008_v19  ;;  %v23042_v16 = vld [vmem:[#allocation2 + $0xda8] sm:$0xff]   ;;  %v23045_v19 = vld [vmem:[#allocation2 + $0xd30] sm:$0xff]  }
 0x205   :  { %v20481_v1 = vpop.f32.mrb[20].mxu1  ;;  %v20460_v3 = vpop.f32.mrb[21].mxu0 }
 0x206   :  { %v20461_v5 = vadd.f32 %v20460_v3, %v20459_v63  ;;  %v20482_v6 = vpop.f32.mrb[21].mxu1  ;;  %v20462_v9 = vpop.f32.mrb[22].mxu0  ;;  %20762 = vmatpush3.bf16.msra.mxu0 %v23009_v21  ;;  %v23036_v63 = vld [vmem:[#allocation2 + $0xde0] sm:$0xff]   ;;  %v23047_v21 = vld [vmem:[#allocation2 + $0xd78] sm:$0xff]  }
 0x207   :  { %v20483_v8 = vadd.f32 %v20482_v6, %v20481_v1  ;;  %v20484_v12 = vpop.f32.mrb[22].mxu1  ;;  %v20463_v14 = vpop.f32.mrb[23].mxu0  ;;  %20784 = vmatpush3.bf16.msra.mxu1 %v23010_v24  ;;  %20763 = vmatprep.subr.bf16.mxu0 %v23011_v25  ;;  %v23049_v24 = vld [vmem:[#allocation2 + $0xd38] sm:$0xff]   ;;  %v129_v25 = vld [vmem:[%s25323_s0 + $0xd0] sm:$0xff] }
 0x208   :  { %v14555_v11 = vadd.f32 %v20461_v5, %v24620_v23  ;;  %v20464_v17 = vadd.f32 %v20463_v14, %v20462_v9  ;;  %v20485_v18 = vpop.f32.mrb[23].mxu1  ;;  %20785 = vmatprep.subr.bf16.mxu1 %v23012_v26  ;;  %v23038_v5 = vld [vmem:[#allocation2 + $0xda0] sm:$0xff]   ;;  %v229_v26 = vld [vmem:[%s25323_s0 + $0x3f0] sm:$0xff] }
 0x209   :  { %v20486_v20 = vadd.f32 %v20485_v18, %v20484_v12  ;;  %v23044_v18 = vld [vmem:[#allocation2 + $0xdf0] sm:$0xff]  }
 0x20a   :  { %v24638_v15 = vadd.f32 %v20483_v8, %v14555_v11  ;;  %v14558_v22 = vadd.f32 %v20464_v17, %v24623_v31  ;;  %20764 = vmatpush3.bf16.msra.mxu0 %v23013_v27  ;;  %v23018_v31 = vld [vmem:[#allocation2 + $0xcb8] sm:$0xff]   ;;  %v23039_v8 = vld [vmem:[#allocation2 + $0xd68] sm:$0xff]   ;;  %v23043_v17 = vld [vmem:[#allocation2 + $0xd70] sm:$0xff]  }
 0x20b   :  { %20786 = vmatpush3.bf16.msra.mxu1 %v23014_v28  ;;  %20765 = vmatprep.subr.bf16.mxu0 %v23015_v29  ;;  %v23040_v11 = vld [vmem:[#allocation2 + $0xde8] sm:$0xff]   ;;  %v130_v27 = vld [vmem:[%s25323_s0 + $0xd8] sm:$0xff]  ;;  %v18473_v29 = vcombine.low %v129_v25, %v229_v26 }
 0x20c   :  { %v24641_v23 = vadd.f32 %v20486_v20, %v14558_v22  ;;  %20787 = vmatprep.subr.bf16.mxu1 %v23016_v30  ;;  %v23046_v20 = vld [vmem:[#allocation2 + $0xdb0] sm:$0xff]   ;;  %v23048_v22 = vld [vmem:[#allocation2 + $0xdf8] sm:$0xff]   ;;  %v18474_v30 = vcombine.high %v129_v25, %v229_v26  ;;  %v23083_v25 = vld [vmem:[#allocation2 + $0xf40] sm:$0xff]  }
 0x20d   :  { %v230_v28 = vld [vmem:[%s25323_s0 + $0x3f8] sm:$0xff]  ;;  %v23084_v26 = vld [vmem:[#allocation2 + $0xfc0] sm:$0xff]  }
 0x20e   :  { %20766 = vmatpush3.bf16.msra.mxu0 %v23017_v32  ;;  %v18475_v32 = vcombine.low %v130_v27, %v230_v28 }
 0x20f   :  { %20788 = vmatpush3.bf16.msra.mxu1 %v23018_v31  ;;  %20795 = vmatprep.subr.bf16.mxu0 %v23019_v41  ;;  %v18476_v31 = vcombine.high %v130_v27, %v230_v28  ;;  %v23059_v41 = vld [vmem:[#allocation2 + $0xe50] sm:$0xff]   ;;  %v23085_v27 = vld [vmem:[#allocation2 + $0xf00] sm:$0xff]  }
 0x210   :  { %20817 = vmatprep.subr.bf16.mxu1 %v23020_v42  ;;  %v23060_v42 = vld [vmem:[#allocation2 + $0xed0] sm:$0xff]   ;;  %v23086_v28 = vld [vmem:[#allocation2 + $0xf80] sm:$0xff]  }
 0x211   :  { %15127 = vmatmul.mubr.bf16.vlgmr.msra.gmra.mrb[48].mxu0 %v18469_v35  ;;  %v23053_v35 = vld [vmem:[#allocation2 + $0xe00] sm:$0xff]  }
 0x212   :  { %15168 = vmatmul.mubr.bf16.vlgmr.msra.gmra.mrb[48].mxu1 %v18471_v40  ;;  %20796 = vmatpush3.bf16.msra.mxu0 %v23021_v43  ;;  %v23057_v40 = vld [vmem:[#allocation2 + $0xe08] sm:$0xff]   ;;  %v23061_v43 = vld [vmem:[#allocation2 + $0xe10] sm:$0xff]  }
 0x213   :  { %20818 = vmatpush3.bf16.msra.mxu1 %v23022_v44  ;;  %20797 = vmatprep.subr.bf16.mxu0 %v23023_v45  ;;  %v23062_v44 = vld [vmem:[#allocation2 + $0xe90] sm:$0xff]   ;;  %v23063_v45 = vld [vmem:[#allocation2 + $0xe58] sm:$0xff]  }
 0x214   :  { %20819 = vmatprep.subr.bf16.mxu1 %v23024_v46  ;;  %15208 = vmatprep.mubr.bf16.mxu0 %v18474_v30  ;;  %v23064_v46 = vld [vmem:[#allocation2 + $0xed8] sm:$0xff]   ;;  %v23088_v30 = vld [vmem:[#allocation2 + $0xfc8] sm:$0xff]  }
 0x215   :  { %15249 = vmatprep.mubr.bf16.mxu1 %v18476_v31  ;;  %v23090_v31 = vld [vmem:[#allocation2 + $0xf88] sm:$0xff]  }
 0x216   :  { %20798 = vmatpush3.bf16.msra.mxu0 %v23025_v48  ;;  %v23065_v48 = vld [vmem:[#allocation2 + $0xe18] sm:$0xff]  }
 0x217   :  { %20820 = vmatpush3.bf16.msra.mxu1 %v23026_v47  ;;  %20799 = vmatprep.subr.bf16.mxu0 %v23027_v49  ;;  %v23066_v49 = vld [vmem:[#allocation2 + $0xe98] sm:$0xff]  }
 0x218   :  { %20821 = vmatprep.subr.bf16.mxu1 %v23028_v50 }
 0x21a   :  { %20800 = vmatpush3.bf16.msra.mxu0 %v23029_v51  ;;  %v23067_v51 = vld [vmem:[#allocation2 + $0xe60] sm:$0xff]  }
 0x21b   :  { %20822 = vmatpush3.bf16.msra.mxu1 %v23030_v52  ;;  %20801 = vmatprep.subr.bf16.mxu0 %v23031_v53  ;;  %v23068_v53 = vld [vmem:[#allocation2 + $0xee0] sm:$0xff]  }
 0x21c   :  { %20823 = vmatprep.subr.bf16.mxu1 %v23032_v54 }
 0x21e   :  { %20802 = vmatpush3.bf16.msra.mxu0 %v23033_v56  ;;  %v23069_v56 = vld [vmem:[#allocation2 + $0xe20] sm:$0xff]  }
 0x21f   :  { %20824 = vmatpush3.bf16.msra.mxu1 %v23034_v58  ;;  %20803 = vmatprep.subr.bf16.mxu0 %v23035_v60 }
 0x220   :  { %20825 = vmatprep.subr.bf16.mxu1 %v23036_v63 }
 0x222   :  { %20804 = vmatpush3.bf16.msra.mxu0 %v23037_v2 }
 0x223   :  { %20826 = vmatpush3.bf16.msra.mxu1 %v23038_v5  ;;  %20805 = vmatprep.subr.bf16.mxu0 %v23039_v8 }
 0x224   :  { %v20503_v55 = vpop.f32.mrb[24].mxu0  ;;  %20827 = vmatprep.subr.bf16.mxu1 %v23040_v11  ;;  %v23077_v11 = vld [vmem:[#allocation2 + $0xe30] sm:$0xff]  }
 0x225   :  { %v20525_v57 = vpop.f32.mrb[24].mxu1  ;;  %v20504_v59 = vpop.f32.mrb[25].mxu0 }
 0x226   :  { %v20505_v61 = vadd.f32 %v20504_v59, %v20503_v55  ;;  %v20526_v62 = vpop.f32.mrb[25].mxu1  ;;  %v20506_v1 = vpop.f32.mrb[26].mxu0  ;;  %20806 = vmatpush3.bf16.msra.mxu0 %v23041_v13  ;;  %v23070_v59 = vld [vmem:[#allocation2 + $0xea0] sm:$0xff]   ;;  %v23079_v13 = vld [vmem:[#allocation2 + $0xe78] sm:$0xff]  }
 0x227   :  { %v20527_v0 = vadd.f32 %v20526_v62, %v20525_v57  ;;  %v20528_v4 = vpop.f32.mrb[26].mxu1  ;;  %v20507_v6 = vpop.f32.mrb[27].mxu0  ;;  %20828 = vmatpush3.bf16.msra.mxu1 %v23042_v16  ;;  %20807 = vmatprep.subr.bf16.mxu0 %v23043_v17  ;;  %v23071_v62 = vld [vmem:[#allocation2 + $0xe68] sm:$0xff]   ;;  %v23081_v16 = vld [vmem:[#allocation2 + $0xe38] sm:$0xff]  }
 0x228   :  { %v14637_v3 = vadd.f32 %v20505_v61, %v24638_v15  ;;  %v20508_v9 = vadd.f32 %v20507_v6, %v20506_v1  ;;  %v20529_v10 = vpop.f32.mrb[27].mxu1  ;;  %20829 = vmatprep.subr.bf16.mxu1 %v23044_v18  ;;  %v23072_v1 = vld [vmem:[#allocation2 + $0xee8] sm:$0xff]   ;;  %v23082_v17 = vld [vmem:[#allocation2 + $0xeb8] sm:$0xff]   ;;  %v231_v18 = vld [vmem:[%s25323_s0 + $0x400] sm:$0xff] }
 0x229   :  { %v20530_v12 = vadd.f32 %v20529_v10, %v20528_v4  ;;  %v23073_v4 = vld [vmem:[#allocation2 + $0xe28] sm:$0xff]   ;;  %v23076_v10 = vld [vmem:[#allocation2 + $0xef0] sm:$0xff]  }
 0x22a   :  { %v24656_v7 = vadd.f32 %v20527_v0, %v14637_v3  ;;  %v14640_v14 = vadd.f32 %v20508_v9, %v24641_v23  ;;  %20808 = vmatpush3.bf16.msra.mxu0 %v23045_v19  ;;  %v23050_v23 = vld [vmem:[#allocation2 + $0xdb8] sm:$0xff]   ;;  %v23074_v6 = vld [vmem:[#allocation2 + $0xea8] sm:$0xff]   ;;  %v23075_v9 = vld [vmem:[#allocation2 + $0xe70] sm:$0xff]  }
 0x22b   :  { %20830 = vmatpush3.bf16.msra.mxu1 %v23046_v20  ;;  %20809 = vmatprep.subr.bf16.mxu0 %v23047_v21  ;;  %v132_v19 = vld [vmem:[%s25323_s0 + $0xe8] sm:$0xff] }
 0x22c   :  { %v24659_v15 = vadd.f32 %v20530_v12, %v14640_v14  ;;  %20831 = vmatprep.subr.bf16.mxu1 %v23048_v22  ;;  %v23078_v12 = vld [vmem:[#allocation2 + $0xeb0] sm:$0xff]   ;;  %v23080_v14 = vld [vmem:[#allocation2 + $0xef8] sm:$0xff]   ;;  %v232_v22 = vld [vmem:[%s25323_s0 + $0x408] sm:$0xff] }
 0x22e   :  { %20810 = vmatpush3.bf16.msra.mxu0 %v23049_v24  ;;  %v18479_v24 = vcombine.low %v132_v19, %v232_v22 }
 0x22f   :  { %20832 = vmatpush3.bf16.msra.mxu1 %v23050_v23  ;;  %20839 = vmatprep.subr.bf16.mxu0 %v23051_v33  ;;  %v18480_v23 = vcombine.high %v132_v19, %v232_v22  ;;  %v23091_v33 = vld [vmem:[#allocation2 + $0xf50] sm:$0xff]   ;;  %v23117_v19 = vld [vmem:[#allocation2 + $0x1000] sm:$0xff]   ;;  %v23120_v22 = vld [vmem:[#allocation2 + $0x10c8] sm:$0xff]  }
 0x230   :  { %20861 = vmatprep.subr.bf16.mxu1 %v23052_v34  ;;  %v23092_v34 = vld [vmem:[#allocation2 + $0xfd0] sm:$0xff]  }
 0x231   :  { %15209 = vmatmul.mubr.bf16.vlgmr.msra.gmra.mrb[52].mxu0 %v18473_v29  ;;  %v23087_v29 = vld [vmem:[#allocation2 + $0xf48] sm:$0xff]  }
 0x232   :  { %15250 = vmatmul.mubr.bf16.vlgmr.msra.gmra.mrb[52].mxu1 %v18475_v32  ;;  %20840 = vmatpush3.bf16.msra.mxu0 %v23053_v35  ;;  %v23089_v32 = vld [vmem:[#allocation2 + $0xf08] sm:$0xff]   ;;  %v23093_v35 = vld [vmem:[#allocation2 + $0xf10] sm:$0xff]  }
 0x233   :  { %20862 = vmatpush3.bf16.msra.mxu1 %v23054_v36  ;;  %20841 = vmatprep.subr.bf16.mxu0 %v23055_v37  ;;  %v23094_v36 = vld [vmem:[#allocation2 + $0xf90] sm:$0xff]   ;;  %v23095_v37 = vld [vmem:[#allocation2 + $0xf58] sm:$0xff]  }
 0x234   :  { %20863 = vmatprep.subr.bf16.mxu1 %v23056_v38  ;;  %15331 = vmatprep.mubr.bf16.mxu1 %v18480_v23  ;;  %v23096_v38 = vld [vmem:[#allocation2 + $0xfd8] sm:$0xff]   ;;  %v23122_v23 = vld [vmem:[#allocation2 + $0x1088] sm:$0xff]  }
 0x236   :  { %20842 = vmatpush3.bf16.msra.mxu0 %v23057_v40 }
 0x237   :  { %20864 = vmatpush3.bf16.msra.mxu1 %v23058_v39  ;;  %20843 = vmatprep.subr.bf16.mxu0 %v23059_v41  ;;  %v23097_v39 = vld [vmem:[#allocation2 + $0xf18] sm:$0xff]  }
 0x238   :  { %20865 = vmatprep.subr.bf16.mxu1 %v23060_v42  ;;  %v23098_v42 = vld [vmem:[#allocation2 + $0xf98] sm:$0xff]  }
 0x23a   :  { %20844 = vmatpush3.bf16.msra.mxu0 %v23061_v43 }
 0x23b   :  { %20866 = vmatpush3.bf16.msra.mxu1 %v23062_v44  ;;  %20845 = vmatprep.subr.bf16.mxu0 %v23063_v45  ;;  %v23099_v44 = vld [vmem:[#allocation2 + $0xf60] sm:$0xff]  }
 0x23c   :  { %20867 = vmatprep.subr.bf16.mxu1 %v23064_v46 }
 0x23e   :  { %20846 = vmatpush3.bf16.msra.mxu0 %v23065_v48  ;;  %v23100_v48 = vld [vmem:[#allocation2 + $0xfe0] sm:$0xff]  }
 0x23f   :  { %20868 = vmatpush3.bf16.msra.mxu1 %v23066_v49  ;;  %20847 = vmatprep.subr.bf16.mxu0 %v23067_v51 }
 0x240   :  { %20869 = vmatprep.subr.bf16.mxu1 %v23068_v53  ;;  %v23102_v53 = vld [vmem:[#allocation2 + $0xfa0] sm:$0xff]  }
 0x242   :  { %20848 = vmatpush3.bf16.msra.mxu0 %v23069_v56  ;;  %v23103_v56 = vld [vmem:[#allocation2 + $0xf68] sm:$0xff]  }
 0x243   :  { %20870 = vmatpush3.bf16.msra.mxu1 %v23070_v59  ;;  %20849 = vmatprep.subr.bf16.mxu0 %v23071_v62  ;;  %v23104_v59 = vld [vmem:[#allocation2 + $0xfe8] sm:$0xff]  }
 0x244   :  { %v20547_v47 = vpop.f32.mrb[28].mxu0  ;;  %20871 = vmatprep.subr.bf16.mxu1 %v23072_v1  ;;  %v23107_v1 = vld [vmem:[#allocation2 + $0xf70] sm:$0xff]  }
 0x245   :  { %v20569_v50 = vpop.f32.mrb[28].mxu1  ;;  %v20548_v52 = vpop.f32.mrb[29].mxu0 }
 0x246   :  { %v20549_v54 = vadd.f32 %v20548_v52, %v20547_v47  ;;  %v20570_v55 = vpop.f32.mrb[29].mxu1  ;;  %v20550_v58 = vpop.f32.mrb[30].mxu0  ;;  %20850 = vmatpush3.bf16.msra.mxu0 %v23073_v4  ;;  %v23110_v4 = vld [vmem:[#allocation2 + $0xfb0] sm:$0xff]  }
 0x247   :  { %v20571_v57 = vadd.f32 %v20570_v55, %v20569_v50  ;;  %v20572_v61 = vpop.f32.mrb[30].mxu1  ;;  %v20551_v63 = vpop.f32.mrb[31].mxu0  ;;  %20872 = vmatpush3.bf16.msra.mxu1 %v23074_v6  ;;  %20851 = vmatprep.subr.bf16.mxu0 %v23075_v9  ;;  %v23101_v50 = vld [vmem:[#allocation2 + $0xf20] sm:$0xff]   ;;  %v23112_v6 = vld [vmem:[#allocation2 + $0xff8] sm:$0xff]  }
 0x248   :  { %v14719_v60 = vadd.f32 %v20549_v54, %v24656_v7  ;;  %v20552_v2 = vadd.f32 %v20551_v63, %v20550_v58  ;;  %v20573_v3 = vpop.f32.mrb[31].mxu1  ;;  %20873 = vmatprep.subr.bf16.mxu1 %v23076_v10  ;;  %v23106_v63 = vld [vmem:[#allocation2 + $0xfa8] sm:$0xff]   ;;  %v23114_v9 = vld [vmem:[#allocation2 + $0xfb8] sm:$0xff]   ;;  %v233_v10 = vld [vmem:[%s25323_s0 + $0x410] sm:$0xff] }
 0x249   :  { %v20574_v5 = vadd.f32 %v20573_v3, %v20572_v61  ;;  %v23105_v61 = vld [vmem:[#allocation2 + $0xf28] sm:$0xff]   ;;  %v23109_v3 = vld [vmem:[#allocation2 + $0xf30] sm:$0xff]  }
 0x24a   :  { %v24674_v0 = vadd.f32 %v20571_v57, %v14719_v60  ;;  %v14722_v8 = vadd.f32 %v20552_v2, %v24659_v15  ;;  %20852 = vmatpush3.bf16.msra.mxu0 %v23077_v11  ;;  %v131_v15 = vld [vmem:[%s25323_s0 + $0xe0] sm:$0xff]  ;;  %v23108_v2 = vld [vmem:[#allocation2 + $0xff0] sm:$0xff]  }
 0x24b   :  { %20874 = vmatpush3.bf16.msra.mxu1 %v23078_v12  ;;  %20853 = vmatprep.subr.bf16.mxu0 %v23079_v13  ;;  %v18477_v20 = vcombine.low %v131_v15, %v231_v18  ;;  %v18478_v21 = vcombine.high %v131_v15, %v231_v18  ;;  %v134_v13 = vld [vmem:[%s25323_s0 + $0xf8] sm:$0xff]  ;;  %v23115_v15 = vld [vmem:[#allocation2 + $0x1040] sm:$0xff]  }
 0x24c   :  { %v24677_v7 = vadd.f32 %v20574_v5, %v14722_v8  ;;  %20875 = vmatprep.subr.bf16.mxu1 %v23080_v14  ;;  %v23111_v5 = vld [vmem:[#allocation2 + $0xf78] sm:$0xff]   ;;  %v23116_v18 = vld [vmem:[#allocation2 + $0x10c0] sm:$0xff]  }
 0x24d   :  { %15290 = vmatprep.mubr.bf16.mxu0 %v18478_v21  ;;  %v23113_v8 = vld [vmem:[#allocation2 + $0xf38] sm:$0xff]   ;;  %v23119_v21 = vld [vmem:[#allocation2 + $0x1048] sm:$0xff]  }
 0x24e   :  { %20854 = vmatpush3.bf16.msra.mxu0 %v23081_v16  ;;  %v234_v14 = vld [vmem:[%s25323_s0 + $0x418] sm:$0xff] }
 0x24f   :  { %20876 = vmatpush3.bf16.msra.mxu1 %v23082_v17  ;;  %20883 = vmatprep.subr.bf16.mxu0 %v23083_v25  ;;  %v18483_v16 = vcombine.low %v134_v13, %v234_v14  ;;  %v18484_v17 = vcombine.high %v134_v13, %v234_v14  ;;  %v23123_v25 = vld [vmem:[#allocation2 + $0x1050] sm:$0xff]   ;;  %v23151_v13 = vld [vmem:[#allocation2 + $0x1148] sm:$0xff]  }
 0x250   :  { %20905 = vmatprep.subr.bf16.mxu1 %v23084_v26  ;;  %v23124_v26 = vld [vmem:[#allocation2 + $0x10d0] sm:$0xff]   ;;  %v23152_v14 = vld [vmem:[#allocation2 + $0x11c8] sm:$0xff]  }
 0x251   :  { %15291 = vmatmul.mubr.bf16.vlgmr.msra.gmra.mrb[56].mxu0 %v18477_v20  ;;  %v23118_v20 = vld [vmem:[#allocation2 + $0x1080] sm:$0xff]  }
 0x252   :  { %15332 = vmatmul.mubr.bf16.vlgmr.msra.gmra.mrb[56].mxu1 %v18479_v24  ;;  %20884 = vmatpush3.bf16.msra.mxu0 %v23085_v27  ;;  %v23121_v24 = vld [vmem:[#allocation2 + $0x1008] sm:$0xff]   ;;  %v23125_v27 = vld [vmem:[#allocation2 + $0x1010] sm:$0xff]  }
 0x253   :  { %20906 = vmatpush3.bf16.msra.mxu1 %v23086_v28  ;;  %20885 = vmatprep.subr.bf16.mxu0 %v23087_v29  ;;  %v23126_v28 = vld [vmem:[#allocation2 + $0x1090] sm:$0xff]   ;;  %v23127_v29 = vld [vmem:[#allocation2 + $0x1058] sm:$0xff]  }
 0x254   :  { %20907 = vmatprep.subr.bf16.mxu1 %v23088_v30  ;;  %15413 = vmatprep.mubr.bf16.mxu1 %v18484_v17  ;;  %v23128_v30 = vld [vmem:[#allocation2 + $0x10d8] sm:$0xff]   ;;  %v23154_v17 = vld [vmem:[#allocation2 + $0x1188] sm:$0xff]  }
 0x256   :  { %20886 = vmatpush3.bf16.msra.mxu0 %v23089_v32 }
 0x257   :  { %20908 = vmatpush3.bf16.msra.mxu1 %v23090_v31  ;;  %20887 = vmatprep.subr.bf16.mxu0 %v23091_v33  ;;  %v23129_v31 = vld [vmem:[#allocation2 + $0x1018] sm:$0xff]  }
 0x258   :  { %20909 = vmatprep.subr.bf16.mxu1 %v23092_v34  ;;  %v23130_v34 = vld [vmem:[#allocation2 + $0x1098] sm:$0xff]  }
 0x25a   :  { %20888 = vmatpush3.bf16.msra.mxu0 %v23093_v35 }
 0x25b   :  { %20910 = vmatpush3.bf16.msra.mxu1 %v23094_v36  ;;  %20889 = vmatprep.subr.bf16.mxu0 %v23095_v37  ;;  %v23131_v36 = vld [vmem:[#allocation2 + $0x1060] sm:$0xff]  }
 0x25c   :  { %20911 = vmatprep.subr.bf16.mxu1 %v23096_v38 }
 0x25e   :  { %20890 = vmatpush3.bf16.msra.mxu0 %v23097_v39 }
 0x25f   :  { %20912 = vmatpush3.bf16.msra.mxu1 %v23098_v42  ;;  %20891 = vmatprep.subr.bf16.mxu0 %v23099_v44  ;;  %v23133_v42 = vld [vmem:[#allocation2 + $0x1020] sm:$0xff]  }
 0x260   :  { %20913 = vmatprep.subr.bf16.mxu1 %v23100_v48 }
 0x262   :  { %20892 = vmatpush3.bf16.msra.mxu0 %v23101_v50 }
 0x263   :  { %20914 = vmatpush3.bf16.msra.mxu1 %v23102_v53  ;;  %20893 = vmatprep.subr.bf16.mxu0 %v23103_v56  ;;  %v23137_v53 = vld [vmem:[#allocation2 + $0x1028] sm:$0xff]  }
 0x264   :  { %v20591_v40 = vpop.f32.mrb[32].mxu0  ;;  %20915 = vmatprep.subr.bf16.mxu1 %v23104_v59  ;;  %v23138_v56 = vld [vmem:[#allocation2 + $0x10a8] sm:$0xff]   ;;  %v23141_v59 = vld [vmem:[#allocation2 + $0x1030] sm:$0xff]  }
 0x265   :  { %v20613_v41 = vpop.f32.mrb[32].mxu1  ;;  %v20592_v43 = vpop.f32.mrb[33].mxu0 }
 0x266   :  { %v20593_v45 = vadd.f32 %v20592_v43, %v20591_v40  ;;  %v20614_v46 = vpop.f32.mrb[33].mxu1  ;;  %v20594_v49 = vpop.f32.mrb[34].mxu0  ;;  %20894 = vmatpush3.bf16.msra.mxu0 %v23105_v61  ;;  %v23132_v40 = vld [vmem:[#allocation2 + $0x10e0] sm:$0xff]   ;;  %v23143_v61 = vld [vmem:[#allocation2 + $0x1078] sm:$0xff]  }
 0x267   :  { %v20615_v47 = vadd.f32 %v20614_v46, %v20613_v41  ;;  %v20616_v52 = vpop.f32.mrb[34].mxu1  ;;  %v20595_v54 = vpop.f32.mrb[35].mxu0  ;;  %20916 = vmatpush3.bf16.msra.mxu1 %v23106_v63  ;;  %20895 = vmatprep.subr.bf16.mxu0 %v23107_v1  ;;  %v23145_v63 = vld [vmem:[#allocation2 + $0x1038] sm:$0xff]   ;;  %v135_v1 = vld [vmem:[%s25323_s0 + $0x100] sm:$0xff] }
 0x268   :  { %v14801_v51 = vadd.f32 %v20593_v45, %v24674_v0  ;;  %v20596_v57 = vadd.f32 %v20595_v54, %v20594_v49  ;;  %v20617_v58 = vpop.f32.mrb[35].mxu1  ;;  %20917 = vmatprep.subr.bf16.mxu1 %v23108_v2  ;;  %v23134_v45 = vld [vmem:[#allocation2 + $0x10a0] sm:$0xff]  }
 0x269   :  { %v20618_v60 = vadd.f32 %v20617_v58, %v20616_v52  ;;  %v23140_v58 = vld [vmem:[#allocation2 + $0x10f0] sm:$0xff]   ;;  %v235_v2 = vld [vmem:[%s25323_s0 + $0x420] sm:$0xff] }
 0x26a   :  { %v24692_v55 = vadd.f32 %v20615_v47, %v14801_v51  ;;  %v14804_v62 = vadd.f32 %v20596_v57, %v24677_v7  ;;  %20896 = vmatpush3.bf16.msra.mxu0 %v23109_v3  ;;  %v133_v7 = vld [vmem:[%s25323_s0 + $0xf0] sm:$0xff]  ;;  %v23135_v47 = vld [vmem:[#allocation2 + $0x1068] sm:$0xff]  }
 0x26b   :  { %20918 = vmatpush3.bf16.msra.mxu1 %v23110_v4  ;;  %20897 = vmatprep.subr.bf16.mxu0 %v23111_v5  ;;  %v18481_v11 = vcombine.low %v133_v7, %v233_v10  ;;  %v18482_v12 = vcombine.high %v133_v7, %v233_v10  ;;  %v23136_v51 = vld [vmem:[#allocation2 + $0x10e8] sm:$0xff]   ;;  %v23139_v57 = vld [vmem:[#allocation2 + $0x1070] sm:$0xff]   ;;  %v18485_v5 = vcombine.low %v135_v1, %v235_v2  ;;  %v23147_v7 = vld [vmem:[#allocation2 + $0x1140] sm:$0xff]  }
 0x26c   :  { %v24695_v0 = vadd.f32 %v20618_v60, %v14804_v62  ;;  %20919 = vmatprep.subr.bf16.mxu1 %v23112_v6  ;;  %v23142_v60 = vld [vmem:[#allocation2 + $0x10b0] sm:$0xff]   ;;  %v23144_v62 = vld [vmem:[#allocation2 + $0x10f8] sm:$0xff]   ;;  %v136_v3 = vld [vmem:[%s25323_s0 + $0x108] sm:$0xff]  ;;  %v18486_v6 = vcombine.high %v135_v1, %v235_v2 }
 0x26d   :  { %15372 = vmatprep.mubr.bf16.mxu0 %v18482_v12  ;;  %v236_v4 = vld [vmem:[%s25323_s0 + $0x428] sm:$0xff]  ;;  %v23148_v10 = vld [vmem:[#allocation2 + $0x11c0] sm:$0xff]  }
 0x26e   :  { %20898 = vmatpush3.bf16.msra.mxu0 %v23113_v8  ;;  %v18487_v8 = vcombine.low %v136_v3, %v236_v4  ;;  %v23150_v12 = vld [vmem:[#allocation2 + $0x1180] sm:$0xff]  }
 0x26f   :  { %20920 = vmatpush3.bf16.msra.mxu1 %v23114_v9  ;;  %20927 = vmatprep.subr.bf16.mxu0 %v23115_v15  ;;  %v18488_v9 = vcombine.high %v136_v3, %v236_v4  ;;  %v23155_v15 = vld [vmem:[#allocation2 + $0x1150] sm:$0xff]   ;;  %v23179_v1 = vld [vmem:[#allocation2 + $0x1240] sm:$0xff]  }
 0x270   :  { %20949 = vmatprep.subr.bf16.mxu1 %v23116_v18  ;;  %v23156_v18 = vld [vmem:[#allocation2 + $0x11d0] sm:$0xff]   ;;  %v23180_v2 = vld [vmem:[#allocation2 + $0x12c0] sm:$0xff]  }
 0x271   :  { %15373 = vmatmul.mubr.bf16.vlgmr.msra.gmra.mrb[60].mxu0 %v18481_v11  ;;  %v23149_v11 = vld [vmem:[#allocation2 + $0x1100] sm:$0xff]  }
 0x272   :  { %15414 = vmatmul.mubr.bf16.vlgmr.msra.gmra.mrb[60].mxu1 %v18483_v16  ;;  %20928 = vmatpush3.bf16.msra.mxu0 %v23117_v19  ;;  %v23153_v16 = vld [vmem:[#allocation2 + $0x1108] sm:$0xff]   ;;  %v23157_v19 = vld [vmem:[#allocation2 + $0x1110] sm:$0xff]   ;;  %v23181_v3 = vld [vmem:[#allocation2 + $0x1200] sm:$0xff]  }
 0x273   :  { %20950 = vmatpush3.bf16.msra.mxu1 %v23118_v20  ;;  %20929 = vmatprep.subr.bf16.mxu0 %v23119_v21  ;;  %v23158_v20 = vld [vmem:[#allocation2 + $0x1190] sm:$0xff]   ;;  %v23159_v21 = vld [vmem:[#allocation2 + $0x1158] sm:$0xff]   ;;  %v23182_v4 = vld [vmem:[#allocation2 + $0x1280] sm:$0xff]  }
 0x274   :  { %20951 = vmatprep.subr.bf16.mxu1 %v23120_v22  ;;  %15454 = vmatprep.mubr.bf16.mxu0 %v18486_v6  ;;  %v23160_v22 = vld [vmem:[#allocation2 + $0x11d8] sm:$0xff]   ;;  %v23184_v6 = vld [vmem:[#allocation2 + $0x12c8] sm:$0xff]  }
 0x275   :  { %15495 = vmatprep.mubr.bf16.mxu1 %v18488_v9  ;;  %v23186_v9 = vld [vmem:[#allocation2 + $0x1288] sm:$0xff]  }
 0x276   :  { %20930 = vmatpush3.bf16.msra.mxu0 %v23121_v24  ;;  %v23161_v24 = vld [vmem:[#allocation2 + $0x1118] sm:$0xff]  }
 0x277   :  { %20952 = vmatpush3.bf16.msra.mxu1 %v23122_v23  ;;  %20931 = vmatprep.subr.bf16.mxu0 %v23123_v25  ;;  %v23162_v25 = vld [vmem:[#allocation2 + $0x1198] sm:$0xff]  }
 0x278   :  { %20953 = vmatprep.subr.bf16.mxu1 %v23124_v26 }
 0x27a   :  { %20932 = vmatpush3.bf16.msra.mxu0 %v23125_v27  ;;  %v23163_v27 = vld [vmem:[#allocation2 + $0x1160] sm:$0xff]  }
 0x27b   :  { %20954 = vmatpush3.bf16.msra.mxu1 %v23126_v28  ;;  %20933 = vmatprep.subr.bf16.mxu0 %v23127_v29  ;;  %v23164_v29 = vld [vmem:[#allocation2 + $0x11e0] sm:$0xff]  }
 0x27c   :  { %20955 = vmatprep.subr.bf16.mxu1 %v23128_v30 }
 0x27e   :  { %20934 = vmatpush3.bf16.msra.mxu0 %v23129_v31  ;;  %v23165_v31 = vld [vmem:[#allocation2 + $0x1120] sm:$0xff]  }
 0x27f   :  { %20956 = vmatpush3.bf16.msra.mxu1 %v23130_v34  ;;  %20935 = vmatprep.subr.bf16.mxu0 %v23131_v36 }
 0x280   :  { %20957 = vmatprep.subr.bf16.mxu1 %v23132_v40 }
 0x282   :  { %20936 = vmatpush3.bf16.msra.mxu0 %v23133_v42 }
 0x283   :  { %20958 = vmatpush3.bf16.msra.mxu1 %v23134_v45  ;;  %20937 = vmatprep.subr.bf16.mxu0 %v23135_v47 }
 0x284   :  { %v20635_v32 = vpop.f32.mrb[36].mxu0  ;;  %20959 = vmatprep.subr.bf16.mxu1 %v23136_v51  ;;  %v23173_v51 = vld [vmem:[#allocation2 + $0x1130] sm:$0xff]  }
 0x285   :  { %v20657_v33 = vpop.f32.mrb[36].mxu1  ;;  %v20636_v35 = vpop.f32.mrb[37].mxu0 }
 0x286   :  { %v20637_v37 = vadd.f32 %v20636_v35, %v20635_v32  ;;  %v20658_v38 = vpop.f32.mrb[37].mxu1  ;;  %v20638_v41 = vpop.f32.mrb[38].mxu0  ;;  %20938 = vmatpush3.bf16.msra.mxu0 %v23137_v53  ;;  %v23166_v35 = vld [vmem:[#allocation2 + $0x11a0] sm:$0xff]   ;;  %v23175_v53 = vld [vmem:[#allocation2 + $0x1178] sm:$0xff]  }
 0x287   :  { %v20659_v39 = vadd.f32 %v20658_v38, %v20657_v33  ;;  %v20660_v44 = vpop.f32.mrb[38].mxu1  ;;  %v20639_v46 = vpop.f32.mrb[39].mxu0  ;;  %20960 = vmatpush3.bf16.msra.mxu1 %v23138_v56  ;;  %20939 = vmatprep.subr.bf16.mxu0 %v23139_v57  ;;  %v23167_v38 = vld [vmem:[#allocation2 + $0x1168] sm:$0xff]   ;;  %v23177_v56 = vld [vmem:[#allocation2 + $0x1138] sm:$0xff]  }
 0x288   :  { %v14883_v43 = vadd.f32 %v20637_v37, %v24692_v55  ;;  %v20640_v49 = vadd.f32 %v20639_v46, %v20638_v41  ;;  %v20661_v50 = vpop.f32.mrb[39].mxu1  ;;  %20961 = vmatprep.subr.bf16.mxu1 %v23140_v58  ;;  %v23168_v41 = vld [vmem:[#allocation2 + $0x11e8] sm:$0xff]   ;;  %v23178_v57 = vld [vmem:[#allocation2 + $0x11b8] sm:$0xff]   ;;  %v237_v58 = vld [vmem:[%s25323_s0 + $0x430] sm:$0xff] }
 0x289   :  { %v20662_v52 = vadd.f32 %v20661_v50, %v20660_v44  ;;  %v23169_v44 = vld [vmem:[#allocation2 + $0x1128] sm:$0xff]   ;;  %v23172_v50 = vld [vmem:[#allocation2 + $0x11f0] sm:$0xff]  }
 0x28a   :  { %v24710_v48 = vadd.f32 %v20659_v39, %v14883_v43  ;;  %v14886_v54 = vadd.f32 %v20640_v49, %v24695_v0  ;;  %20940 = vmatpush3.bf16.msra.mxu0 %v23141_v59  ;;  %v23146_v0 = vld [vmem:[#allocation2 + $0x10b8] sm:$0xff]   ;;  %v23170_v46 = vld [vmem:[#allocation2 + $0x11a8] sm:$0xff]   ;;  %v23171_v49 = vld [vmem:[#allocation2 + $0x1170] sm:$0xff]  }
 0x28b   :  { %20962 = vmatpush3.bf16.msra.mxu1 %v23142_v60  ;;  %20941 = vmatprep.subr.bf16.mxu0 %v23143_v61  ;;  %v138_v59 = vld [vmem:[%s25323_s0 + $0x118] sm:$0xff] }
 0x28c   :  { %v24713_v55 = vadd.f32 %v20662_v52, %v14886_v54  ;;  %20963 = vmatprep.subr.bf16.mxu1 %v23144_v62  ;;  %v23174_v52 = vld [vmem:[#allocation2 + $0x11b0] sm:$0xff]   ;;  %v23176_v54 = vld [vmem:[#allocation2 + $0x11f8] sm:$0xff]  }
 0x28d   :  { %v238_v62 = vld [vmem:[%s25323_s0 + $0x438] sm:$0xff] }
 0x28e   :  { %20942 = vmatpush3.bf16.msra.mxu0 %v23145_v63  ;;  %v18491_v63 = vcombine.low %v138_v59, %v238_v62 }
 0x28f   :  { %20964 = vmatpush3.bf16.msra.mxu1 %v23146_v0  ;;  %20971 = vmatprep.subr.bf16.mxu0 %v23147_v7  ;;  %v18492_v0 = vcombine.high %v138_v59, %v238_v62  ;;  %v23187_v7 = vld [vmem:[#allocation2 + $0x1250] sm:$0xff]   ;;  %v23213_v59 = vld [vmem:[#allocation2 + $0x1300] sm:$0xff]   ;;  %v23216_v62 = vld [vmem:[#allocation2 + $0x13c8] sm:$0xff]  }
 0x290   :  { %20993 = vmatprep.subr.bf16.mxu1 %v23148_v10  ;;  %v23188_v10 = vld [vmem:[#allocation2 + $0x12d0] sm:$0xff]  }
 0x291   :  { %15455 = vmatmul.mubr.bf16.vlgmr.msra.gmra.mrb[64].mxu0 %v18485_v5  ;;  %v23183_v5 = vld [vmem:[#allocation2 + $0x1248] sm:$0xff]  }
 0x292   :  { %15496 = vmatmul.mubr.bf16.vlgmr.msra.gmra.mrb[64].mxu1 %v18487_v8  ;;  %20972 = vmatpush3.bf16.msra.mxu0 %v23149_v11  ;;  %v23185_v8 = vld [vmem:[#allocation2 + $0x1208] sm:$0xff]   ;;  %v23189_v11 = vld [vmem:[#allocation2 + $0x1210] sm:$0xff]  }
 0x293   :  { %20994 = vmatpush3.bf16.msra.mxu1 %v23150_v12  ;;  %20973 = vmatprep.subr.bf16.mxu0 %v23151_v13  ;;  %v23190_v12 = vld [vmem:[#allocation2 + $0x1290] sm:$0xff]   ;;  %v23191_v13 = vld [vmem:[#allocation2 + $0x1258] sm:$0xff]  }
 0x294   :  { %20995 = vmatprep.subr.bf16.mxu1 %v23152_v14  ;;  %15577 = vmatprep.mubr.bf16.mxu1 %v18492_v0  ;;  %v23192_v14 = vld [vmem:[#allocation2 + $0x12d8] sm:$0xff]   ;;  %v23218_v0 = vld [vmem:[#allocation2 + $0x1388] sm:$0xff]  }
 0x296   :  { %20974 = vmatpush3.bf16.msra.mxu0 %v23153_v16 }
 0x297   :  { %20996 = vmatpush3.bf16.msra.mxu1 %v23154_v17  ;;  %20975 = vmatprep.subr.bf16.mxu0 %v23155_v15  ;;  %v23193_v17 = vld [vmem:[#allocation2 + $0x1218] sm:$0xff]  }
 0x298   :  { %20997 = vmatprep.subr.bf16.mxu1 %v23156_v18  ;;  %v23194_v18 = vld [vmem:[#allocation2 + $0x1298] sm:$0xff]  }
 0x29a   :  { %20976 = vmatpush3.bf16.msra.mxu0 %v23157_v19 }
 0x29b   :  { %20998 = vmatpush3.bf16.msra.mxu1 %v23158_v20  ;;  %20977 = vmatprep.subr.bf16.mxu0 %v23159_v21  ;;  %v23195_v20 = vld [vmem:[#allocation2 + $0x1260] sm:$0xff]  }
 0x29c   :  { %20999 = vmatprep.subr.bf16.mxu1 %v23160_v22 }
 0x29e   :  { %20978 = vmatpush3.bf16.msra.mxu0 %v23161_v24  ;;  %v23196_v24 = vld [vmem:[#allocation2 + $0x12e0] sm:$0xff]  }
 0x29f   :  { %21000 = vmatpush3.bf16.msra.mxu1 %v23162_v25  ;;  %20979 = vmatprep.subr.bf16.mxu0 %v23163_v27 }
 0x2a0   :  { %21001 = vmatprep.subr.bf16.mxu1 %v23164_v29  ;;  %v23198_v29 = vld [vmem:[#allocation2 + $0x12a0] sm:$0xff]  }
 0x2a2   :  { %20980 = vmatpush3.bf16.msra.mxu0 %v23165_v31  ;;  %v23199_v31 = vld [vmem:[#allocation2 + $0x1268] sm:$0xff]  }
 0x2a3   :  { %21002 = vmatpush3.bf16.msra.mxu1 %v23166_v35  ;;  %20981 = vmatprep.subr.bf16.mxu0 %v23167_v38  ;;  %v23200_v35 = vld [vmem:[#allocation2 + $0x12e8] sm:$0xff]  }
 0x2a4   :  { %v20679_v23 = vpop.f32.mrb[40].mxu0  ;;  %21003 = vmatprep.subr.bf16.mxu1 %v23168_v41  ;;  %v23203_v41 = vld [vmem:[#allocation2 + $0x1270] sm:$0xff]  }
 0x2a5   :  { %v20701_v26 = vpop.f32.mrb[40].mxu1  ;;  %v20680_v28 = vpop.f32.mrb[41].mxu0 }
 0x2a6   :  { %v20681_v30 = vadd.f32 %v20680_v28, %v20679_v23  ;;  %v20702_v32 = vpop.f32.mrb[41].mxu1  ;;  %v20682_v34 = vpop.f32.mrb[42].mxu0  ;;  %20982 = vmatpush3.bf16.msra.mxu0 %v23169_v44  ;;  %v23206_v44 = vld [vmem:[#allocation2 + $0x12b0] sm:$0xff]  }
 0x2a7   :  { %v20703_v33 = vadd.f32 %v20702_v32, %v20701_v26  ;;  %v20704_v37 = vpop.f32.mrb[42].mxu1  ;;  %v20683_v40 = vpop.f32.mrb[43].mxu0  ;;  %21004 = vmatpush3.bf16.msra.mxu1 %v23170_v46  ;;  %20983 = vmatprep.subr.bf16.mxu0 %v23171_v49  ;;  %v23197_v26 = vld [vmem:[#allocation2 + $0x1220] sm:$0xff]   ;;  %v23208_v46 = vld [vmem:[#allocation2 + $0x12f8] sm:$0xff]  }
 0x2a8   :  { %v14965_v36 = vadd.f32 %v20681_v30, %v24710_v48  ;;  %v20684_v42 = vadd.f32 %v20683_v40, %v20682_v34  ;;  %v20705_v43 = vpop.f32.mrb[43].mxu1  ;;  %21005 = vmatprep.subr.bf16.mxu1 %v23172_v50  ;;  %v23202_v40 = vld [vmem:[#allocation2 + $0x12a8] sm:$0xff]   ;;  %v23210_v49 = vld [vmem:[#allocation2 + $0x12b8] sm:$0xff]   ;;  %v239_v50 = vld [vmem:[%s25323_s0 + $0x440] sm:$0xff] }
 0x2a9   :  { %v20706_v45 = vadd.f32 %v20705_v43, %v20704_v37  ;;  %v23201_v37 = vld [vmem:[#allocation2 + $0x1228] sm:$0xff]   ;;  %v23205_v43 = vld [vmem:[#allocation2 + $0x1230] sm:$0xff]  }
 0x2aa   :  { %v24728_v39 = vadd.f32 %v20703_v33, %v14965_v36  ;;  %v14968_v47 = vadd.f32 %v20684_v42, %v24713_v55  ;;  %20984 = vmatpush3.bf16.msra.mxu0 %v23173_v51  ;;  %v137_v55 = vld [vmem:[%s25323_s0 + $0x110] sm:$0xff] }
 0x2ab   :  { %21006 = vmatpush3.bf16.msra.mxu1 %v23174_v52  ;;  %20985 = vmatprep.subr.bf16.mxu0 %v23175_v53  ;;  %v18489_v60 = vcombine.low %v137_v55, %v237_v58  ;;  %v18490_v61 = vcombine.high %v137_v55, %v237_v58  ;;  %v23204_v42 = vld [vmem:[#allocation2 + $0x12f0] sm:$0xff]   ;;  %v140_v53 = vld [vmem:[%s25323_s0 + $0x128] sm:$0xff]  ;;  %v23211_v55 = vld [vmem:[#allocation2 + $0x1340] sm:$0xff]  }
 0x2ac   :  { %v24731_v48 = vadd.f32 %v20706_v45, %v14968_v47  ;;  %21007 = vmatprep.subr.bf16.mxu1 %v23176_v54  ;;  %v23207_v45 = vld [vmem:[#allocation2 + $0x1278] sm:$0xff]   ;;  %v240_v54 = vld [vmem:[%s25323_s0 + $0x448] sm:$0xff]  ;;  %v23212_v58 = vld [vmem:[#allocation2 + $0x13c0] sm:$0xff]  }
 0x2ad   :  { %15536 = vmatprep.mubr.bf16.mxu0 %v18490_v61  ;;  %v23209_v47 = vld [vmem:[#allocation2 + $0x1238] sm:$0xff]   ;;  %v23215_v61 = vld [vmem:[#allocation2 + $0x1348] sm:$0xff]  }
 0x2ae   :  { %20986 = vmatpush3.bf16.msra.mxu0 %v23177_v56  ;;  %v18495_v56 = vcombine.low %v140_v53, %v240_v54 }
 0x2af   :  { %21008 = vmatpush3.bf16.msra.mxu1 %v23178_v57  ;;  %21015 = vmatprep.subr.bf16.mxu0 %v23179_v1  ;;  %v18496_v57 = vcombine.high %v140_v53, %v240_v54  ;;  %v23219_v1 = vld [vmem:[#allocation2 + $0x1350] sm:$0xff]   ;;  %v23247_v53 = vld [vmem:[#allocation2 + $0x1448] sm:$0xff]  }
 0x2b0   :  { %21037 = vmatprep.subr.bf16.mxu1 %v23180_v2  ;;  %v23220_v2 = vld [vmem:[#allocation2 + $0x13d0] sm:$0xff]   ;;  %v23248_v54 = vld [vmem:[#allocation2 + $0x14c8] sm:$0xff]  }
 0x2b1   :  { %15537 = vmatmul.mubr.bf16.vlgmr.msra.gmra.mrb[68].mxu0 %v18489_v60  ;;  %v23214_v60 = vld [vmem:[#allocation2 + $0x1380] sm:$0xff]  }
 0x2b2   :  { %15578 = vmatmul.mubr.bf16.vlgmr.msra.gmra.mrb[68].mxu1 %v18491_v63  ;;  %21016 = vmatpush3.bf16.msra.mxu0 %v23181_v3  ;;  %v23217_v63 = vld [vmem:[#allocation2 + $0x1308] sm:$0xff]   ;;  %v23221_v3 = vld [vmem:[#allocation2 + $0x1310] sm:$0xff]  }
 0x2b3   :  { %21038 = vmatpush3.bf16.msra.mxu1 %v23182_v4  ;;  %21017 = vmatprep.subr.bf16.mxu0 %v23183_v5  ;;  %v23222_v4 = vld [vmem:[#allocation2 + $0x1390] sm:$0xff]   ;;  %v23223_v5 = vld [vmem:[#allocation2 + $0x1358] sm:$0xff]  }
 0x2b4   :  { %21039 = vmatprep.subr.bf16.mxu1 %v23184_v6  ;;  %15659 = vmatprep.mubr.bf16.mxu1 %v18496_v57  ;;  %v23224_v6 = vld [vmem:[#allocation2 + $0x13d8] sm:$0xff]   ;;  %v23250_v57 = vld [vmem:[#allocation2 + $0x1488] sm:$0xff]  }
 0x2b6   :  { %21018 = vmatpush3.bf16.msra.mxu0 %v23185_v8 }
 0x2b7   :  { %21040 = vmatpush3.bf16.msra.mxu1 %v23186_v9  ;;  %21019 = vmatprep.subr.bf16.mxu0 %v23187_v7  ;;  %v23225_v9 = vld [vmem:[#allocation2 + $0x1318] sm:$0xff]  }
 0x2b8   :  { %21041 = vmatprep.subr.bf16.mxu1 %v23188_v10  ;;  %v23226_v10 = vld [vmem:[#allocation2 + $0x1398] sm:$0xff]  }
 0x2ba   :  { %21020 = vmatpush3.bf16.msra.mxu0 %v23189_v11 }
 0x2bb   :  { %21042 = vmatpush3.bf16.msra.mxu1 %v23190_v12  ;;  %21021 = vmatprep.subr.bf16.mxu0 %v23191_v13  ;;  %v23227_v12 = vld [vmem:[#allocation2 + $0x1360] sm:$0xff]  }
 0x2bc   :  { %21043 = vmatprep.subr.bf16.mxu1 %v23192_v14 }
 0x2be   :  { %21022 = vmatpush3.bf16.msra.mxu0 %v23193_v17 }
 0x2bf   :  { %21044 = vmatpush3.bf16.msra.mxu1 %v23194_v18  ;;  %21023 = vmatprep.subr.bf16.mxu0 %v23195_v20  ;;  %v23229_v18 = vld [vmem:[#allocation2 + $0x1320] sm:$0xff]  }
 0x2c0   :  { %21045 = vmatprep.subr.bf16.mxu1 %v23196_v24 }
 0x2c2   :  { %21024 = vmatpush3.bf16.msra.mxu0 %v23197_v26 }
 0x2c3   :  { %21046 = vmatpush3.bf16.msra.mxu1 %v23198_v29  ;;  %21025 = vmatprep.subr.bf16.mxu0 %v23199_v31  ;;  %v23233_v29 = vld [vmem:[#allocation2 + $0x1328] sm:$0xff]  }
 0x2c4   :  { %v20723_v16 = vpop.f32.mrb[44].mxu0  ;;  %21047 = vmatprep.subr.bf16.mxu1 %v23200_v35  ;;  %v23234_v31 = vld [vmem:[#allocation2 + $0x13a8] sm:$0xff]   ;;  %v23237_v35 = vld [vmem:[#allocation2 + $0x1330] sm:$0xff]  }
 0x2c5   :  { %v20745_v15 = vpop.f32.mrb[44].mxu1  ;;  %v20724_v19 = vpop.f32.mrb[45].mxu0 }
 0x2c6   :  { %v20725_v21 = vadd.f32 %v20724_v19, %v20723_v16  ;;  %v20746_v22 = vpop.f32.mrb[45].mxu1  ;;  %v20726_v25 = vpop.f32.mrb[46].mxu0  ;;  %21026 = vmatpush3.bf16.msra.mxu0 %v23201_v37  ;;  %v23228_v16 = vld [vmem:[#allocation2 + $0x13e0] sm:$0xff]   ;;  %v23239_v37 = vld [vmem:[#allocation2 + $0x1378] sm:$0xff]  }
 0x2c7   :  { %v20747_v23 = vadd.f32 %v20746_v22, %v20745_v15  ;;  %v20748_v28 = vpop.f32.mrb[46].mxu1  ;;  %v20727_v30 = vpop.f32.mrb[47].mxu0  ;;  %21048 = vmatpush3.bf16.msra.mxu1 %v23202_v40  ;;  %21027 = vmatprep.subr.bf16.mxu0 %v23203_v41  ;;  %v23241_v40 = vld [vmem:[#allocation2 + $0x1338] sm:$0xff]   ;;  %v141_v41 = vld [vmem:[%s25323_s0 + $0x130] sm:$0xff] }
 0x2c8   :  { %v15047_v27 = vadd.f32 %v20725_v21, %v24728_v39  ;;  %v20728_v33 = vadd.f32 %v20727_v30, %v20726_v25  ;;  %v20749_v34 = vpop.f32.mrb[47].mxu1  ;;  %21049 = vmatprep.subr.bf16.mxu1 %v23204_v42  ;;  %v23230_v21 = vld [vmem:[#allocation2 + $0x13a0] sm:$0xff]   ;;  %v241_v42 = vld [vmem:[%s25323_s0 + $0x450] sm:$0xff] }
 0x2c9   :  { %v20750_v36 = vadd.f32 %v20749_v34, %v20748_v28  ;;  %v23236_v34 = vld [vmem:[#allocation2 + $0x13f0] sm:$0xff]  }
 0x2ca   :  { %v24746_v32 = vadd.f32 %v20747_v23, %v15047_v27  ;;  %v15050_v38 = vadd.f32 %v20728_v33, %v24731_v48  ;;  %21028 = vmatpush3.bf16.msra.mxu0 %v23205_v43  ;;  %v139_v48 = vld [vmem:[%s25323_s0 + $0x120] sm:$0xff]  ;;  %v23231_v23 = vld [vmem:[#allocation2 + $0x1368] sm:$0xff]   ;;  %v23235_v33 = vld [vmem:[#allocation2 + $0x1370] sm:$0xff]  }
 0x2cb   :  { %21050 = vmatpush3.bf16.msra.mxu1 %v23206_v44  ;;  %21029 = vmatprep.subr.bf16.mxu0 %v23207_v45  ;;  %v18493_v51 = vcombine.low %v139_v48, %v239_v50  ;;  %v18494_v52 = vcombine.high %v139_v48, %v239_v50  ;;  %v23232_v27 = vld [vmem:[#allocation2 + $0x13e8] sm:$0xff]   ;;  %v142_v43 = vld [vmem:[%s25323_s0 + $0x138] sm:$0xff]  ;;  %v18497_v45 = vcombine.low %v141_v41, %v241_v42  ;;  %v23243_v48 = vld [vmem:[#allocation2 + $0x1440] sm:$0xff]  }
 0x2cc   :  { %v24749_v39 = vadd.f32 %v20750_v36, %v15050_v38  ;;  %21051 = vmatprep.subr.bf16.mxu1 %v23208_v46  ;;  %v23238_v36 = vld [vmem:[#allocation2 + $0x13b0] sm:$0xff]   ;;  %v23240_v38 = vld [vmem:[#allocation2 + $0x13f8] sm:$0xff]   ;;  %v18498_v46 = vcombine.high %v141_v41, %v241_v42  ;;  %v23244_v50 = vld [vmem:[#allocation2 + $0x14c0] sm:$0xff]  }
 0x2cd   :  { %15618 = vmatprep.mubr.bf16.mxu0 %v18494_v52  ;;  %v242_v44 = vld [vmem:[%s25323_s0 + $0x458] sm:$0xff]  ;;  %v23246_v52 = vld [vmem:[#allocation2 + $0x1480] sm:$0xff]  }
 0x2ce   :  { %21030 = vmatpush3.bf16.msra.mxu0 %v23209_v47  ;;  %v18499_v47 = vcombine.low %v142_v43, %v242_v44  ;;  %v23275_v41 = vld [vmem:[#allocation2 + $0x1540] sm:$0xff]  }
 0x2cf   :  { %21052 = vmatpush3.bf16.msra.mxu1 %v23210_v49  ;;  %21059 = vmatprep.subr.bf16.mxu0 %v23211_v55  ;;  %v18500_v49 = vcombine.high %v142_v43, %v242_v44  ;;  %v23251_v55 = vld [vmem:[#allocation2 + $0x1450] sm:$0xff]   ;;  %v23276_v42 = vld [vmem:[#allocation2 + $0x15c0] sm:$0xff]  }
 0x2d0   :  { %21081 = vmatprep.subr.bf16.mxu1 %v23212_v58  ;;  %v23252_v58 = vld [vmem:[#allocation2 + $0x14d0] sm:$0xff]   ;;  %v23277_v43 = vld [vmem:[#allocation2 + $0x1500] sm:$0xff]  }
 0x2d1   :  { %15619 = vmatmul.mubr.bf16.vlgmr.msra.gmra.mrb[72].mxu0 %v18493_v51  ;;  %v23245_v51 = vld [vmem:[#allocation2 + $0x1400] sm:$0xff]  }
 0x2d2   :  { %15660 = vmatmul.mubr.bf16.vlgmr.msra.gmra.mrb[72].mxu1 %v18495_v56  ;;  %21060 = vmatpush3.bf16.msra.mxu0 %v23213_v59  ;;  %v23249_v56 = vld [vmem:[#allocation2 + $0x1408] sm:$0xff]   ;;  %v23253_v59 = vld [vmem:[#allocation2 + $0x1410] sm:$0xff]   ;;  %v23278_v44 = vld [vmem:[#allocation2 + $0x1580] sm:$0xff]  }
 0x2d3   :  { %21082 = vmatpush3.bf16.msra.mxu1 %v23214_v60  ;;  %21061 = vmatprep.subr.bf16.mxu0 %v23215_v61  ;;  %v23254_v60 = vld [vmem:[#allocation2 + $0x1490] sm:$0xff]   ;;  %v23255_v61 = vld [vmem:[#allocation2 + $0x1458] sm:$0xff]  }
 0x2d4   :  { %21083 = vmatprep.subr.bf16.mxu1 %v23216_v62  ;;  %15700 = vmatprep.mubr.bf16.mxu0 %v18498_v46  ;;  %v23256_v62 = vld [vmem:[#allocation2 + $0x14d8] sm:$0xff]   ;;  %v23280_v46 = vld [vmem:[#allocation2 + $0x15c8] sm:$0xff]  }
 0x2d5   :  { %15741 = vmatprep.mubr.bf16.mxu1 %v18500_v49  ;;  %v23282_v49 = vld [vmem:[#allocation2 + $0x1588] sm:$0xff]  }
 0x2d6   :  { %21062 = vmatpush3.bf16.msra.mxu0 %v23217_v63  ;;  %v23257_v63 = vld [vmem:[#allocation2 + $0x1418] sm:$0xff]  }
 0x2d7   :  { %21084 = vmatpush3.bf16.msra.mxu1 %v23218_v0  ;;  %21063 = vmatprep.subr.bf16.mxu0 %v23219_v1  ;;  %v23258_v1 = vld [vmem:[#allocation2 + $0x1498] sm:$0xff]  }
 0x2d8   :  { %21085 = vmatprep.subr.bf16.mxu1 %v23220_v2 }
 0x2da   :  { %21064 = vmatpush3.bf16.msra.mxu0 %v23221_v3  ;;  %v23259_v3 = vld [vmem:[#allocation2 + $0x1460] sm:$0xff]  }
 0x2db   :  { %21086 = vmatpush3.bf16.msra.mxu1 %v23222_v4  ;;  %21065 = vmatprep.subr.bf16.mxu0 %v23223_v5  ;;  %v23260_v5 = vld [vmem:[#allocation2 + $0x14e0] sm:$0xff]  }
 0x2dc   :  { %21087 = vmatprep.subr.bf16.mxu1 %v23224_v6 }
 0x2de   :  { %21066 = vmatpush3.bf16.msra.mxu0 %v23225_v9  ;;  %v23261_v9 = vld [vmem:[#allocation2 + $0x1420] sm:$0xff]  }
 0x2df   :  { %21088 = vmatpush3.bf16.msra.mxu1 %v23226_v10  ;;  %21067 = vmatprep.subr.bf16.mxu0 %v23227_v12 }
 0x2e0   :  { %21089 = vmatprep.subr.bf16.mxu1 %v23228_v16 }
 0x2e2   :  { %21068 = vmatpush3.bf16.msra.mxu0 %v23229_v18 }
 0x2e3   :  { %21090 = vmatpush3.bf16.msra.mxu1 %v23230_v21  ;;  %21069 = vmatprep.subr.bf16.mxu0 %v23231_v23 }
 0x2e4   :  { %v20767_v8 = vpop.f32.mrb[48].mxu0  ;;  %21091 = vmatprep.subr.bf16.mxu1 %v23232_v27  ;;  %v23269_v27 = vld [vmem:[#allocation2 + $0x1430] sm:$0xff]  }
 0x2e5   :  { %v20789_v7 = vpop.f32.mrb[48].mxu1  ;;  %v20768_v11 = vpop.f32.mrb[49].mxu0 }
 0x2e6   :  { %v20769_v13 = vadd.f32 %v20768_v11, %v20767_v8  ;;  %v20790_v14 = vpop.f32.mrb[49].mxu1  ;;  %v20770_v15 = vpop.f32.mrb[50].mxu0  ;;  %21070 = vmatpush3.bf16.msra.mxu0 %v23233_v29  ;;  %v23262_v11 = vld [vmem:[#allocation2 + $0x14a0] sm:$0xff]   ;;  %v23271_v29 = vld [vmem:[#allocation2 + $0x1478] sm:$0xff]  }
 0x2e7   :  { %v20791_v17 = vadd.f32 %v20790_v14, %v20789_v7  ;;  %v20792_v20 = vpop.f32.mrb[50].mxu1  ;;  %v20771_v22 = vpop.f32.mrb[51].mxu0  ;;  %21092 = vmatpush3.bf16.msra.mxu1 %v23234_v31  ;;  %21071 = vmatprep.subr.bf16.mxu0 %v23235_v33  ;;  %v23263_v14 = vld [vmem:[#allocation2 + $0x1468] sm:$0xff]   ;;  %v23273_v31 = vld [vmem:[#allocation2 + $0x1438] sm:$0xff]  }
 0x2e8   :  { %v15129_v19 = vadd.f32 %v20769_v13, %v24746_v32  ;;  %v20772_v25 = vadd.f32 %v20771_v22, %v20770_v15  ;;  %v20793_v26 = vpop.f32.mrb[51].mxu1  ;;  %21093 = vmatprep.subr.bf16.mxu1 %v23236_v34  ;;  %v23264_v15 = vld [vmem:[#allocation2 + $0x14e8] sm:$0xff]   ;;  %v23274_v33 = vld [vmem:[#allocation2 + $0x14b8] sm:$0xff]   ;;  %v243_v34 = vld [vmem:[%s25323_s0 + $0x460] sm:$0xff] }
 0x2e9   :  { %v20794_v28 = vadd.f32 %v20793_v26, %v20792_v20  ;;  %v23265_v20 = vld [vmem:[#allocation2 + $0x1428] sm:$0xff]   ;;  %v23268_v26 = vld [vmem:[#allocation2 + $0x14f0] sm:$0xff]  }
 0x2ea   :  { %v24764_v24 = vadd.f32 %v20791_v17, %v15129_v19  ;;  %v15132_v30 = vadd.f32 %v20772_v25, %v24749_v39  ;;  %21072 = vmatpush3.bf16.msra.mxu0 %v23237_v35  ;;  %v23242_v39 = vld [vmem:[#allocation2 + $0x13b8] sm:$0xff]   ;;  %v23266_v22 = vld [vmem:[#allocation2 + $0x14a8] sm:$0xff]   ;;  %v23267_v25 = vld [vmem:[#allocation2 + $0x1470] sm:$0xff]  }
 0x2eb   :  { %21094 = vmatpush3.bf16.msra.mxu1 %v23238_v36  ;;  %21073 = vmatprep.subr.bf16.mxu0 %v23239_v37  ;;  %v144_v35 = vld [vmem:[%s25323_s0 + $0x148] sm:$0xff] }
 0x2ec   :  { %v24767_v32 = vadd.f32 %v20794_v28, %v15132_v30  ;;  %21095 = vmatprep.subr.bf16.mxu1 %v23240_v38  ;;  %v23270_v28 = vld [vmem:[#allocation2 + $0x14b0] sm:$0xff]   ;;  %v23272_v30 = vld [vmem:[#allocation2 + $0x14f8] sm:$0xff]   ;;  %v244_v38 = vld [vmem:[%s25323_s0 + $0x468] sm:$0xff] }
 0x2ee   :  { %21074 = vmatpush3.bf16.msra.mxu0 %v23241_v40  ;;  %v18503_v40 = vcombine.low %v144_v35, %v244_v38 }
 0x2ef   :  { %21096 = vmatpush3.bf16.msra.mxu1 %v23242_v39  ;;  %21103 = vmatprep.subr.bf16.mxu0 %v23243_v48  ;;  %v18504_v39 = vcombine.high %v144_v35, %v244_v38  ;;  %v23283_v48 = vld [vmem:[#allocation2 + $0x1550] sm:$0xff]   ;;  %v23309_v35 = vld [vmem:[#allocation2 + $0x1600] sm:$0xff]   ;;  %v23312_v38 = vld [vmem:[#allocation2 + $0x16c8] sm:$0xff]  }
 0x2f0   :  { %21125 = vmatprep.subr.bf16.mxu1 %v23244_v50  ;;  %v23284_v50 = vld [vmem:[#allocation2 + $0x15d0] sm:$0xff]  }
 0x2f1   :  { %15701 = vmatmul.mubr.bf16.vlgmr.msra.gmra.mrb[76].mxu0 %v18497_v45  ;;  %v23279_v45 = vld [vmem:[#allocation2 + $0x1548] sm:$0xff]  }
 0x2f2   :  { %15742 = vmatmul.mubr.bf16.vlgmr.msra.gmra.mrb[76].mxu1 %v18499_v47  ;;  %21104 = vmatpush3.bf16.msra.mxu0 %v23245_v51  ;;  %v23281_v47 = vld [vmem:[#allocation2 + $0x1508] sm:$0xff]   ;;  %v23285_v51 = vld [vmem:[#allocation2 + $0x1510] sm:$0xff]  }
 0x2f3   :  { %21126 = vmatpush3.bf16.msra.mxu1 %v23246_v52  ;;  %21105 = vmatprep.subr.bf16.mxu0 %v23247_v53  ;;  %v23286_v52 = vld [vmem:[#allocation2 + $0x1590] sm:$0xff]   ;;  %v23287_v53 = vld [vmem:[#allocation2 + $0x1558] sm:$0xff]  }
 0x2f4   :  { %21127 = vmatprep.subr.bf16.mxu1 %v23248_v54  ;;  %15823 = vmatprep.mubr.bf16.mxu1 %v18504_v39  ;;  %v23288_v54 = vld [vmem:[#allocation2 + $0x15d8] sm:$0xff]   ;;  %v23314_v39 = vld [vmem:[#allocation2 + $0x1688] sm:$0xff]  }
 0x2f6   :  { %21106 = vmatpush3.bf16.msra.mxu0 %v23249_v56 }
 0x2f7   :  { %21128 = vmatpush3.bf16.msra.mxu1 %v23250_v57  ;;  %21107 = vmatprep.subr.bf16.mxu0 %v23251_v55  ;;  %v23289_v57 = vld [vmem:[#allocation2 + $0x1518] sm:$0xff]  }
 0x2f8   :  { %21129 = vmatprep.subr.bf16.mxu1 %v23252_v58  ;;  %v23290_v58 = vld [vmem:[#allocation2 + $0x1598] sm:$0xff]  }
 0x2fa   :  { %21108 = vmatpush3.bf16.msra.mxu0 %v23253_v59 }
 0x2fb   :  { %21130 = vmatpush3.bf16.msra.mxu1 %v23254_v60  ;;  %21109 = vmatprep.subr.bf16.mxu0 %v23255_v61  ;;  %v23291_v60 = vld [vmem:[#allocation2 + $0x1560] sm:$0xff]  }
 0x2fc   :  { %21131 = vmatprep.subr.bf16.mxu1 %v23256_v62 }
 0x2fe   :  { %21110 = vmatpush3.bf16.msra.mxu0 %v23257_v63  ;;  %v23292_v63 = vld [vmem:[#allocation2 + $0x15e0] sm:$0xff]  }
 0x2ff   :  { %21132 = vmatpush3.bf16.msra.mxu1 %v23258_v1  ;;  %21111 = vmatprep.subr.bf16.mxu0 %v23259_v3 }
 0x300   :  { %21133 = vmatprep.subr.bf16.mxu1 %v23260_v5  ;;  %v23294_v5 = vld [vmem:[#allocation2 + $0x15a0] sm:$0xff]  }
 0x302   :  { %21112 = vmatpush3.bf16.msra.mxu0 %v23261_v9  ;;  %v23295_v9 = vld [vmem:[#allocation2 + $0x1568] sm:$0xff]  }
 0x303   :  { %21134 = vmatpush3.bf16.msra.mxu1 %v23262_v11  ;;  %21113 = vmatprep.subr.bf16.mxu0 %v23263_v14  ;;  %v23296_v11 = vld [vmem:[#allocation2 + $0x15e8] sm:$0xff]  }
 0x304   :  { %v20811_v0 = vpop.f32.mrb[52].mxu0  ;;  %21135 = vmatprep.subr.bf16.mxu1 %v23264_v15  ;;  %v23299_v15 = vld [vmem:[#allocation2 + $0x1570] sm:$0xff]  }
 0x305   :  { %v20833_v2 = vpop.f32.mrb[52].mxu1  ;;  %v20812_v4 = vpop.f32.mrb[53].mxu0 }
 0x306   :  { %v20813_v6 = vadd.f32 %v20812_v4, %v20811_v0  ;;  %v20834_v8 = vpop.f32.mrb[53].mxu1  ;;  %v20814_v10 = vpop.f32.mrb[54].mxu0  ;;  %21114 = vmatpush3.bf16.msra.mxu0 %v23265_v20  ;;  %v23302_v20 = vld [vmem:[#allocation2 + $0x15b0] sm:$0xff]  }
 0x307   :  { %v20835_v7 = vadd.f32 %v20834_v8, %v20833_v2  ;;  %v20836_v13 = vpop.f32.mrb[54].mxu1  ;;  %v20815_v16 = vpop.f32.mrb[55].mxu0  ;;  %21136 = vmatpush3.bf16.msra.mxu1 %v23266_v22  ;;  %21115 = vmatprep.subr.bf16.mxu0 %v23267_v25  ;;  %v23293_v2 = vld [vmem:[#allocation2 + $0x1520] sm:$0xff]   ;;  %v23304_v22 = vld [vmem:[#allocation2 + $0x15f8] sm:$0xff]  }
 0x308   :  { %v15211_v12 = vadd.f32 %v20813_v6, %v24764_v24  ;;  %v20816_v18 = vadd.f32 %v20815_v16, %v20814_v10  ;;  %v20837_v19 = vpop.f32.mrb[55].mxu1  ;;  %21137 = vmatprep.subr.bf16.mxu1 %v23268_v26  ;;  %v23298_v16 = vld [vmem:[#allocation2 + $0x15a8] sm:$0xff]   ;;  %v23306_v25 = vld [vmem:[#allocation2 + $0x15b8] sm:$0xff]   ;;  %v245_v26 = vld [vmem:[%s25323_s0 + $0x470] sm:$0xff] }
 0x309   :  { %v20838_v21 = vadd.f32 %v20837_v19, %v20836_v13  ;;  %v23297_v13 = vld [vmem:[#allocation2 + $0x1528] sm:$0xff]   ;;  %v23301_v19 = vld [vmem:[#allocation2 + $0x1530] sm:$0xff]  }
 0x30a   :  { %v24782_v17 = vadd.f32 %v20835_v7, %v15211_v12  ;;  %v15214_v23 = vadd.f32 %v20816_v18, %v24767_v32  ;;  %21116 = vmatpush3.bf16.msra.mxu0 %v23269_v27  ;;  %v143_v32 = vld [vmem:[%s25323_s0 + $0x140] sm:$0xff]  ;;  %v23300_v18 = vld [vmem:[#allocation2 + $0x15f0] sm:$0xff]  }
 0x30b   :  { %21138 = vmatpush3.bf16.msra.mxu1 %v23270_v28  ;;  %21117 = vmatprep.subr.bf16.mxu0 %v23271_v29  ;;  %v18501_v36 = vcombine.low %v143_v32, %v243_v34  ;;  %v18502_v37 = vcombine.high %v143_v32, %v243_v34  ;;  %v146_v29 = vld [vmem:[%s25323_s0 + $0x158] sm:$0xff]  ;;  %v23307_v32 = vld [vmem:[#allocation2 + $0x1640] sm:$0xff]  }
 0x30c   :  { %v24785_v24 = vadd.f32 %v20838_v21, %v15214_v23  ;;  %21139 = vmatprep.subr.bf16.mxu1 %v23272_v30  ;;  %v23303_v21 = vld [vmem:[#allocation2 + $0x1578] sm:$0xff]   ;;  %v23308_v34 = vld [vmem:[#allocation2 + $0x16c0] sm:$0xff]  }
 0x30d   :  { %15782 = vmatprep.mubr.bf16.mxu0 %v18502_v37  ;;  %v23305_v23 = vld [vmem:[#allocation2 + $0x1538] sm:$0xff]   ;;  %v23311_v37 = vld [vmem:[#allocation2 + $0x1648] sm:$0xff]  }
 0x30e   :  { %21118 = vmatpush3.bf16.msra.mxu0 %v23273_v31  ;;  %v246_v30 = vld [vmem:[%s25323_s0 + $0x478] sm:$0xff] }
 0x30f   :  { %21140 = vmatpush3.bf16.msra.mxu1 %v23274_v33  ;;  %21147 = vmatprep.subr.bf16.mxu0 %v23275_v41  ;;  %v18507_v31 = vcombine.low %v146_v29, %v246_v30  ;;  %v18508_v33 = vcombine.high %v146_v29, %v246_v30  ;;  %v23315_v41 = vld [vmem:[#allocation2 + $0x1650] sm:$0xff]   ;;  %v23343_v29 = vld [vmem:[#allocation2 + $0x1748] sm:$0xff]  }
 0x310   :  { %21169 = vmatprep.subr.bf16.mxu1 %v23276_v42  ;;  %v23316_v42 = vld [vmem:[#allocation2 + $0x16d0] sm:$0xff]   ;;  %v23344_v30 = vld [vmem:[#allocation2 + $0x17c8] sm:$0xff]  }
 0x311   :  { %15783 = vmatmul.mubr.bf16.vlgmr.msra.gmra.mrb[80].mxu0 %v18501_v36  ;;  %v23310_v36 = vld [vmem:[#allocation2 + $0x1680] sm:$0xff]  }
 0x312   :  { %15824 = vmatmul.mubr.bf16.vlgmr.msra.gmra.mrb[80].mxu1 %v18503_v40  ;;  %21148 = vmatpush3.bf16.msra.mxu0 %v23277_v43  ;;  %v23313_v40 = vld [vmem:[#allocation2 + $0x1608] sm:$0xff]   ;;  %v23317_v43 = vld [vmem:[#allocation2 + $0x1610] sm:$0xff]  }
 0x313   :  { %21170 = vmatpush3.bf16.msra.mxu1 %v23278_v44  ;;  %21149 = vmatprep.subr.bf16.mxu0 %v23279_v45  ;;  %v23318_v44 = vld [vmem:[#allocation2 + $0x1690] sm:$0xff]   ;;  %v23319_v45 = vld [vmem:[#allocation2 + $0x1658] sm:$0xff]  }
 0x314   :  { %21171 = vmatprep.subr.bf16.mxu1 %v23280_v46  ;;  %15905 = vmatprep.mubr.bf16.mxu1 %v18508_v33  ;;  %v23320_v46 = vld [vmem:[#allocation2 + $0x16d8] sm:$0xff]   ;;  %v23346_v33 = vld [vmem:[#allocation2 + $0x1788] sm:$0xff]  }
 0x316   :  { %21150 = vmatpush3.bf16.msra.mxu0 %v23281_v47 }
 0x317   :  { %21172 = vmatpush3.bf16.msra.mxu1 %v23282_v49  ;;  %21151 = vmatprep.subr.bf16.mxu0 %v23283_v48  ;;  %v23321_v49 = vld [vmem:[#allocation2 + $0x1618] sm:$0xff]  }
 0x318   :  { %21173 = vmatprep.subr.bf16.mxu1 %v23284_v50  ;;  %v23322_v50 = vld [vmem:[#allocation2 + $0x1698] sm:$0xff]  }
 0x31a   :  { %21152 = vmatpush3.bf16.msra.mxu0 %v23285_v51 }
 0x31b   :  { %21174 = vmatpush3.bf16.msra.mxu1 %v23286_v52  ;;  %21153 = vmatprep.subr.bf16.mxu0 %v23287_v53  ;;  %v23323_v52 = vld [vmem:[#allocation2 + $0x1660] sm:$0xff]  }
 0x31c   :  { %21175 = vmatprep.subr.bf16.mxu1 %v23288_v54 }
 0x31e   :  { %21154 = vmatpush3.bf16.msra.mxu0 %v23289_v57 }
 0x31f   :  { %21176 = vmatpush3.bf16.msra.mxu1 %v23290_v58  ;;  %21155 = vmatprep.subr.bf16.mxu0 %v23291_v60  ;;  %v23325_v58 = vld [vmem:[#allocation2 + $0x1620] sm:$0xff]  }
 0x320   :  { %21177 = vmatprep.subr.bf16.mxu1 %v23292_v63 }
 0x322   :  { %21156 = vmatpush3.bf16.msra.mxu0 %v23293_v2 }
 0x323   :  { %21178 = vmatpush3.bf16.msra.mxu1 %v23294_v5  ;;  %21157 = vmatprep.subr.bf16.mxu0 %v23295_v9  ;;  %v23329_v5 = vld [vmem:[#allocation2 + $0x1628] sm:$0xff]  }
 0x324   :  { %v20855_v56 = vpop.f32.mrb[56].mxu0  ;;  %21179 = vmatprep.subr.bf16.mxu1 %v23296_v11  ;;  %v23330_v9 = vld [vmem:[#allocation2 + $0x16a8] sm:$0xff]   ;;  %v23333_v11 = vld [vmem:[#allocation2 + $0x1630] sm:$0xff]  }
 0x325   :  { %v20877_v55 = vpop.f32.mrb[56].mxu1  ;;  %v20856_v59 = vpop.f32.mrb[57].mxu0 }
 0x326   :  { %v20857_v61 = vadd.f32 %v20856_v59, %v20855_v56  ;;  %v20878_v62 = vpop.f32.mrb[57].mxu1  ;;  %v20858_v1 = vpop.f32.mrb[58].mxu0  ;;  %21158 = vmatpush3.bf16.msra.mxu0 %v23297_v13  ;;  %v23324_v56 = vld [vmem:[#allocation2 + $0x16e0] sm:$0xff]   ;;  %v23335_v13 = vld [vmem:[#allocation2 + $0x1678] sm:$0xff]  }
 0x327   :  { %v20879_v0 = vadd.f32 %v20878_v62, %v20877_v55  ;;  %v20880_v4 = vpop.f32.mrb[58].mxu1  ;;  %v20859_v6 = vpop.f32.mrb[59].mxu0  ;;  %21180 = vmatpush3.bf16.msra.mxu1 %v23298_v16  ;;  %21159 = vmatprep.subr.bf16.mxu0 %v23299_v15  ;;  %v23337_v16 = vld [vmem:[#allocation2 + $0x1638] sm:$0xff]   ;;  %v147_v15 = vld [vmem:[%s25323_s0 + $0x160] sm:$0xff] }
 0x328   :  { %v15293_v3 = vadd.f32 %v20857_v61, %v24782_v17  ;;  %v20860_v7 = vadd.f32 %v20859_v6, %v20858_v1  ;;  %v20881_v10 = vpop.f32.mrb[59].mxu1  ;;  %21181 = vmatprep.subr.bf16.mxu1 %v23300_v18  ;;  %v23326_v61 = vld [vmem:[#allocation2 + $0x16a0] sm:$0xff]  }
 0x329   :  { %v20882_v12 = vadd.f32 %v20881_v10, %v20880_v4  ;;  %v23332_v10 = vld [vmem:[#allocation2 + $0x16f0] sm:$0xff]   ;;  %v247_v18 = vld [vmem:[%s25323_s0 + $0x480] sm:$0xff] }
 0x32a   :  { %v24800_v8 = vadd.f32 %v20879_v0, %v15293_v3  ;;  %v15296_v14 = vadd.f32 %v20860_v7, %v24785_v24  ;;  %21160 = vmatpush3.bf16.msra.mxu0 %v23301_v19  ;;  %v145_v24 = vld [vmem:[%s25323_s0 + $0x150] sm:$0xff]  ;;  %v23327_v0 = vld [vmem:[#allocation2 + $0x1668] sm:$0xff]  }
 0x32b   :  { %21182 = vmatpush3.bf16.msra.mxu1 %v23302_v20  ;;  %21161 = vmatprep.subr.bf16.mxu0 %v23303_v21  ;;  %v18505_v27 = vcombine.low %v145_v24, %v245_v26  ;;  %v18506_v28 = vcombine.high %v145_v24, %v245_v26  ;;  %v23328_v3 = vld [vmem:[#allocation2 + $0x16e8] sm:$0xff]   ;;  %v23331_v7 = vld [vmem:[#allocation2 + $0x1670] sm:$0xff]   ;;  %v18509_v21 = vcombine.low %v147_v15, %v247_v18  ;;  %v23339_v24 = vld [vmem:[#allocation2 + $0x1740] sm:$0xff]  }
 0x32c   :  { %v24803_v17 = vadd.f32 %v20882_v12, %v15296_v14  ;;  %21183 = vmatprep.subr.bf16.mxu1 %v23304_v22  ;;  %v23334_v12 = vld [vmem:[#allocation2 + $0x16b0] sm:$0xff]   ;;  %v23336_v14 = vld [vmem:[#allocation2 + $0x16f8] sm:$0xff]   ;;  %v148_v19 = vld [vmem:[%s25323_s0 + $0x168] sm:$0xff]  ;;  %v18510_v22 = vcombine.high %v147_v15, %v247_v18 }
 0x32d   :  { %15864 = vmatprep.mubr.bf16.mxu0 %v18506_v28  ;;  %v248_v20 = vld [vmem:[%s25323_s0 + $0x488] sm:$0xff]  ;;  %v23340_v26 = vld [vmem:[#allocation2 + $0x17c0] sm:$0xff]  }
 0x32e   :  { %21162 = vmatpush3.bf16.msra.mxu0 %v23305_v23  ;;  %v18511_v23 = vcombine.low %v148_v19, %v248_v20  ;;  %v23342_v28 = vld [vmem:[#allocation2 + $0x1780] sm:$0xff]  }
 0x32f   :  { %21184 = vmatpush3.bf16.msra.mxu1 %v23306_v25  ;;  %21191 = vmatprep.subr.bf16.mxu0 %v23307_v32  ;;  %v18512_v25 = vcombine.high %v148_v19, %v248_v20  ;;  %v23347_v32 = vld [vmem:[#allocation2 + $0x1750] sm:$0xff]   ;;  %v23371_v15 = vld [vmem:[#allocation2 + $0x1840] sm:$0xff]  }
 0x330   :  { %21213 = vmatprep.subr.bf16.mxu1 %v23308_v34  ;;  %v23348_v34 = vld [vmem:[#allocation2 + $0x17d0] sm:$0xff]   ;;  %v23372_v18 = vld [vmem:[#allocation2 + $0x18c0] sm:$0xff]  }
 0x331   :  { %15865 = vmatmul.mubr.bf16.vlgmr.msra.gmra.mrb[84].mxu0 %v18505_v27  ;;  %v23341_v27 = vld [vmem:[#allocation2 + $0x1700] sm:$0xff]  }
 0x332   :  { %15906 = vmatmul.mubr.bf16.vlgmr.msra.gmra.mrb[84].mxu1 %v18507_v31  ;;  %21192 = vmatpush3.bf16.msra.mxu0 %v23309_v35  ;;  %v23345_v31 = vld [vmem:[#allocation2 + $0x1708] sm:$0xff]   ;;  %v23349_v35 = vld [vmem:[#allocation2 + $0x1710] sm:$0xff]   ;;  %v23373_v19 = vld [vmem:[#allocation2 + $0x1800] sm:$0xff]  }
 0x333   :  { %21214 = vmatpush3.bf16.msra.mxu1 %v23310_v36  ;;  %21193 = vmatprep.subr.bf16.mxu0 %v23311_v37  ;;  %v23350_v36 = vld [vmem:[#allocation2 + $0x1790] sm:$0xff]   ;;  %v23351_v37 = vld [vmem:[#allocation2 + $0x1758] sm:$0xff]   ;;  %v23374_v20 = vld [vmem:[#allocation2 + $0x1880] sm:$0xff]  }
 0x334   :  { %21215 = vmatprep.subr.bf16.mxu1 %v23312_v38  ;;  %15946 = vmatprep.mubr.bf16.mxu0 %v18510_v22  ;;  %v23352_v38 = vld [vmem:[#allocation2 + $0x17d8] sm:$0xff]   ;;  %v23376_v22 = vld [vmem:[#allocation2 + $0x18c8] sm:$0xff]  }
 0x335   :  { %15987 = vmatprep.mubr.bf16.mxu1 %v18512_v25  ;;  %v23378_v25 = vld [vmem:[#allocation2 + $0x1888] sm:$0xff]  }
 0x336   :  { %21194 = vmatpush3.bf16.msra.mxu0 %v23313_v40  ;;  %v23353_v40 = vld [vmem:[#allocation2 + $0x1718] sm:$0xff]  }
 0x337   :  { %21216 = vmatpush3.bf16.msra.mxu1 %v23314_v39  ;;  %21195 = vmatprep.subr.bf16.mxu0 %v23315_v41  ;;  %v23354_v41 = vld [vmem:[#allocation2 + $0x1798] sm:$0xff]  }
 0x338   :  { %21217 = vmatprep.subr.bf16.mxu1 %v23316_v42 }
 0x33a   :  { %21196 = vmatpush3.bf16.msra.mxu0 %v23317_v43  ;;  %v23355_v43 = vld [vmem:[#allocation2 + $0x1760] sm:$0xff]  }
 0x33b   :  { %21218 = vmatpush3.bf16.msra.mxu1 %v23318_v44  ;;  %21197 = vmatprep.subr.bf16.mxu0 %v23319_v45  ;;  %v23356_v45 = vld [vmem:[#allocation2 + $0x17e0] sm:$0xff]  }
 0x33c   :  { %21219 = vmatprep.subr.bf16.mxu1 %v23320_v46 }
 0x33e   :  { %21198 = vmatpush3.bf16.msra.mxu0 %v23321_v49  ;;  %v23357_v49 = vld [vmem:[#allocation2 + $0x1720] sm:$0xff]  }
 0x33f   :  { %21220 = vmatpush3.bf16.msra.mxu1 %v23322_v50  ;;  %21199 = vmatprep.subr.bf16.mxu0 %v23323_v52 }
 0x340   :  { %21221 = vmatprep.subr.bf16.mxu1 %v23324_v56 }
 0x342   :  { %21200 = vmatpush3.bf16.msra.mxu0 %v23325_v58 }
 0x343   :  { %21222 = vmatpush3.bf16.msra.mxu1 %v23326_v61  ;;  %21201 = vmatprep.subr.bf16.mxu0 %v23327_v0 }
 0x344   :  { %v20899_v47 = vpop.f32.mrb[60].mxu0  ;;  %21223 = vmatprep.subr.bf16.mxu1 %v23328_v3  ;;  %v23365_v3 = vld [vmem:[#allocation2 + $0x1730] sm:$0xff]  }
 0x345   :  { %v20921_v48 = vpop.f32.mrb[60].mxu1  ;;  %v20900_v51 = vpop.f32.mrb[61].mxu0 }
 0x346   :  { %v20901_v53 = vadd.f32 %v20900_v51, %v20899_v47  ;;  %v20922_v54 = vpop.f32.mrb[61].mxu1  ;;  %v20902_v55 = vpop.f32.mrb[62].mxu0  ;;  %21202 = vmatpush3.bf16.msra.mxu0 %v23329_v5  ;;  %v23358_v51 = vld [vmem:[#allocation2 + $0x17a0] sm:$0xff]   ;;  %v23367_v5 = vld [vmem:[#allocation2 + $0x1778] sm:$0xff]  }
 0x347   :  { %v20923_v57 = vadd.f32 %v20922_v54, %v20921_v48  ;;  %v20924_v60 = vpop.f32.mrb[62].mxu1  ;;  %v20903_v62 = vpop.f32.mrb[63].mxu0  ;;  %21224 = vmatpush3.bf16.msra.mxu1 %v23330_v9  ;;  %21203 = vmatprep.subr.bf16.mxu0 %v23331_v7  ;;  %v23359_v54 = vld [vmem:[#allocation2 + $0x1768] sm:$0xff]   ;;  %v23369_v9 = vld [vmem:[#allocation2 + $0x1738] sm:$0xff]  }
 0x348   :  { %v15375_v59 = vadd.f32 %v20901_v53, %v24800_v8  ;;  %v20904_v1 = vadd.f32 %v20903_v62, %v20902_v55  ;;  %v20925_v2 = vpop.f32.mrb[63].mxu1  ;;  %21225 = vmatprep.subr.bf16.mxu1 %v23332_v10  ;;  %v23360_v55 = vld [vmem:[#allocation2 + $0x17e8] sm:$0xff]   ;;  %v23370_v7 = vld [vmem:[#allocation2 + $0x17b8] sm:$0xff]   ;;  %v249_v10 = vld [vmem:[%s25323_s0 + $0x490] sm:$0xff] }
 0x349   :  { %v20926_v4 = vadd.f32 %v20925_v2, %v20924_v60  ;;  %v23361_v60 = vld [vmem:[#allocation2 + $0x1728] sm:$0xff]   ;;  %v23364_v2 = vld [vmem:[#allocation2 + $0x17f0] sm:$0xff]  }
 0x34a   :  { %v24818_v63 = vadd.f32 %v20923_v57, %v15375_v59  ;;  %v15378_v6 = vadd.f32 %v20904_v1, %v24803_v17  ;;  %21204 = vmatpush3.bf16.msra.mxu0 %v23333_v11  ;;  %v23338_v17 = vld [vmem:[#allocation2 + $0x16b8] sm:$0xff]   ;;  %v23362_v62 = vld [vmem:[#allocation2 + $0x17a8] sm:$0xff]   ;;  %v23363_v1 = vld [vmem:[#allocation2 + $0x1770] sm:$0xff]  }
 0x34b   :  { %21226 = vmatpush3.bf16.msra.mxu1 %v23334_v12  ;;  %21205 = vmatprep.subr.bf16.mxu0 %v23335_v13  ;;  %v150_v11 = vld [vmem:[%s25323_s0 + $0x178] sm:$0xff] }
 0x34c   :  { %v24821_v8 = vadd.f32 %v20926_v4, %v15378_v6  ;;  %21227 = vmatprep.subr.bf16.mxu1 %v23336_v14  ;;  %v23366_v4 = vld [vmem:[#allocation2 + $0x17b0] sm:$0xff]   ;;  %v23368_v6 = vld [vmem:[#allocation2 + $0x17f8] sm:$0xff]  }
 0x34d   :  { %v250_v14 = vld [vmem:[%s25323_s0 + $0x498] sm:$0xff] }
 0x34e   :  { %21206 = vmatpush3.bf16.msra.mxu0 %v23337_v16  ;;  %v18515_v16 = vcombine.low %v150_v11, %v250_v14 }
 0x34f   :  { %21228 = vmatpush3.bf16.msra.mxu1 %v23338_v17  ;;  %21235 = vmatprep.subr.bf16.mxu0 %v23339_v24  ;;  %v18516_v17 = vcombine.high %v150_v11, %v250_v14  ;;  %v23379_v24 = vld [vmem:[#allocation2 + $0x1850] sm:$0xff]   ;;  %v23405_v11 = vld [vmem:[#allocation2 + $0x1900] sm:$0xff]   ;;  %v23408_v14 = vld [vmem:[#allocation2 + $0x19c8] sm:$0xff]  }
 0x350   :  { %21257 = vmatprep.subr.bf16.mxu1 %v23340_v26  ;;  %v23380_v26 = vld [vmem:[#allocation2 + $0x18d0] sm:$0xff]  }
 0x351   :  { %15947 = vmatmul.mubr.bf16.vlgmr.msra.gmra.mrb[88].mxu0 %v18509_v21  ;;  %v23375_v21 = vld [vmem:[#allocation2 + $0x1848] sm:$0xff]  }
 0x352   :  { %15988 = vmatmul.mubr.bf16.vlgmr.msra.gmra.mrb[88].mxu1 %v18511_v23  ;;  %21236 = vmatpush3.bf16.msra.mxu0 %v23341_v27  ;;  %v23377_v23 = vld [vmem:[#allocation2 + $0x1808] sm:$0xff]   ;;  %v23381_v27 = vld [vmem:[#allocation2 + $0x1810] sm:$0xff]  }
 0x353   :  { %21258 = vmatpush3.bf16.msra.mxu1 %v23342_v28  ;;  %21237 = vmatprep.subr.bf16.mxu0 %v23343_v29  ;;  %v23382_v28 = vld [vmem:[#allocation2 + $0x1890] sm:$0xff]   ;;  %v23383_v29 = vld [vmem:[#allocation2 + $0x1858] sm:$0xff]  }
 0x354   :  { %21259 = vmatprep.subr.bf16.mxu1 %v23344_v30  ;;  %16069 = vmatprep.mubr.bf16.mxu1 %v18516_v17  ;;  %v23384_v30 = vld [vmem:[#allocation2 + $0x18d8] sm:$0xff]   ;;  %v23410_v17 = vld [vmem:[#allocation2 + $0x1988] sm:$0xff]  }
 0x356   :  { %21238 = vmatpush3.bf16.msra.mxu0 %v23345_v31 }
 0x357   :  { %21260 = vmatpush3.bf16.msra.mxu1 %v23346_v33  ;;  %21239 = vmatprep.subr.bf16.mxu0 %v23347_v32  ;;  %v23385_v33 = vld [vmem:[#allocation2 + $0x1818] sm:$0xff]  }
 0x358   :  { %21261 = vmatprep.subr.bf16.mxu1 %v23348_v34  ;;  %v23386_v34 = vld [vmem:[#allocation2 + $0x1898] sm:$0xff]  }
 0x35a   :  { %21240 = vmatpush3.bf16.msra.mxu0 %v23349_v35 }
 0x35b   :  { %21262 = vmatpush3.bf16.msra.mxu1 %v23350_v36  ;;  %21241 = vmatprep.subr.bf16.mxu0 %v23351_v37  ;;  %v23387_v36 = vld [vmem:[#allocation2 + $0x1860] sm:$0xff]  }
 0x35c   :  { %21263 = vmatprep.subr.bf16.mxu1 %v23352_v38 }
 0x35e   :  { %21242 = vmatpush3.bf16.msra.mxu0 %v23353_v40  ;;  %v23388_v40 = vld [vmem:[#allocation2 + $0x18e0] sm:$0xff]  }
 0x35f   :  { %21264 = vmatpush3.bf16.msra.mxu1 %v23354_v41  ;;  %21243 = vmatprep.subr.bf16.mxu0 %v23355_v43 }
 0x360   :  { %21265 = vmatprep.subr.bf16.mxu1 %v23356_v45  ;;  %v23390_v45 = vld [vmem:[#allocation2 + $0x18a0] sm:$0xff]  }
 0x362   :  { %21244 = vmatpush3.bf16.msra.mxu0 %v23357_v49  ;;  %v23391_v49 = vld [vmem:[#allocation2 + $0x1868] sm:$0xff]  }
 0x363   :  { %21266 = vmatpush3.bf16.msra.mxu1 %v23358_v51  ;;  %21245 = vmatprep.subr.bf16.mxu0 %v23359_v54  ;;  %v23392_v51 = vld [vmem:[#allocation2 + $0x18e8] sm:$0xff]  }
 0x364   :  { %v20943_v39 = vpop.f32.mrb[64].mxu0  ;;  %21267 = vmatprep.subr.bf16.mxu1 %v23360_v55  ;;  %v23395_v55 = vld [vmem:[#allocation2 + $0x1870] sm:$0xff]  }
 0x365   :  { %v20965_v42 = vpop.f32.mrb[64].mxu1  ;;  %v20944_v44 = vpop.f32.mrb[65].mxu0 }
 0x366   :  { %v20945_v46 = vadd.f32 %v20944_v44, %v20943_v39  ;;  %v20966_v47 = vpop.f32.mrb[65].mxu1  ;;  %v20946_v50 = vpop.f32.mrb[66].mxu0  ;;  %21246 = vmatpush3.bf16.msra.mxu0 %v23361_v60  ;;  %v23398_v60 = vld [vmem:[#allocation2 + $0x18b0] sm:$0xff]  }
 0x367   :  { %v20967_v48 = vadd.f32 %v20966_v47, %v20965_v42  ;;  %v20968_v53 = vpop.f32.mrb[66].mxu1  ;;  %v20947_v56 = vpop.f32.mrb[67].mxu0  ;;  %21268 = vmatpush3.bf16.msra.mxu1 %v23362_v62  ;;  %21247 = vmatprep.subr.bf16.mxu0 %v23363_v1  ;;  %v23389_v42 = vld [vmem:[#allocation2 + $0x1820] sm:$0xff]   ;;  %v23400_v62 = vld [vmem:[#allocation2 + $0x18f8] sm:$0xff]  }
 0x368   :  { %v15457_v52 = vadd.f32 %v20945_v46, %v24818_v63  ;;  %v20948_v58 = vadd.f32 %v20947_v56, %v20946_v50  ;;  %v20969_v59 = vpop.f32.mrb[67].mxu1  ;;  %21269 = vmatprep.subr.bf16.mxu1 %v23364_v2  ;;  %v23394_v56 = vld [vmem:[#allocation2 + $0x18a8] sm:$0xff]   ;;  %v23402_v1 = vld [vmem:[#allocation2 + $0x18b8] sm:$0xff]   ;;  %v251_v2 = vld [vmem:[%s25323_s0 + $0x4a0] sm:$0xff] }
 0x369   :  { %v20970_v61 = vadd.f32 %v20969_v59, %v20968_v53  ;;  %v23393_v53 = vld [vmem:[#allocation2 + $0x1828] sm:$0xff]   ;;  %v23397_v59 = vld [vmem:[#allocation2 + $0x1830] sm:$0xff]  }
 0x36a   :  { %v24836_v57 = vadd.f32 %v20967_v48, %v15457_v52  ;;  %v15460_v0 = vadd.f32 %v20948_v58, %v24821_v8  ;;  %21248 = vmatpush3.bf16.msra.mxu0 %v23365_v3  ;;  %v149_v8 = vld [vmem:[%s25323_s0 + $0x170] sm:$0xff] }
 0x36b   :  { %21270 = vmatpush3.bf16.msra.mxu1 %v23366_v4  ;;  %21249 = vmatprep.subr.bf16.mxu0 %v23367_v5  ;;  %v18513_v12 = vcombine.low %v149_v8, %v249_v10  ;;  %v18514_v13 = vcombine.high %v149_v8, %v249_v10  ;;  %v23396_v58 = vld [vmem:[#allocation2 + $0x18f0] sm:$0xff]   ;;  %v152_v5 = vld [vmem:[%s25323_s0 + $0x188] sm:$0xff]  ;;  %v23403_v8 = vld [vmem:[#allocation2 + $0x1940] sm:$0xff]  }
 0x36c   :  { %v24839_v63 = vadd.f32 %v20970_v61, %v15460_v0  ;;  %21271 = vmatprep.subr.bf16.mxu1 %v23368_v6  ;;  %v23399_v61 = vld [vmem:[#allocation2 + $0x1878] sm:$0xff]   ;;  %v252_v6 = vld [vmem:[%s25323_s0 + $0x4a8] sm:$0xff]  ;;  %v23404_v10 = vld [vmem:[#allocation2 + $0x19c0] sm:$0xff]  }
 0x36d   :  { %16028 = vmatprep.mubr.bf16.mxu0 %v18514_v13  ;;  %v23401_v0 = vld [vmem:[#allocation2 + $0x1838] sm:$0xff]   ;;  %v23407_v13 = vld [vmem:[#allocation2 + $0x1948] sm:$0xff]  }
 0x36e   :  { %21250 = vmatpush3.bf16.msra.mxu0 %v23369_v9  ;;  %v18519_v9 = vcombine.low %v152_v5, %v252_v6 }
 0x36f   :  { %21272 = vmatpush3.bf16.msra.mxu1 %v23370_v7  ;;  %21279 = vmatprep.subr.bf16.mxu0 %v23371_v15  ;;  %v18520_v7 = vcombine.high %v152_v5, %v252_v6  ;;  %v23411_v15 = vld [vmem:[#allocation2 + $0x1950] sm:$0xff]   ;;  %v23439_v5 = vld [vmem:[#allocation2 + $0x1a48] sm:$0xff]  }
 0x370   :  { %21301 = vmatprep.subr.bf16.mxu1 %v23372_v18  ;;  %v23412_v18 = vld [vmem:[#allocation2 + $0x19d0] sm:$0xff]   ;;  %v23440_v6 = vld [vmem:[#allocation2 + $0x1ac8] sm:$0xff]  }
 0x371   :  { %16029 = vmatmul.mubr.bf16.vlgmr.msra.gmra.mrb[92].mxu0 %v18513_v12  ;;  %v23406_v12 = vld [vmem:[#allocation2 + $0x1980] sm:$0xff]  }
 0x372   :  { %16070 = vmatmul.mubr.bf16.vlgmr.msra.gmra.mrb[92].mxu1 %v18515_v16  ;;  %21280 = vmatpush3.bf16.msra.mxu0 %v23373_v19  ;;  %v23409_v16 = vld [vmem:[#allocation2 + $0x1908] sm:$0xff]   ;;  %v23413_v19 = vld [vmem:[#allocation2 + $0x1910] sm:$0xff]  }
 0x373   :  { %21302 = vmatpush3.bf16.msra.mxu1 %v23374_v20  ;;  %21281 = vmatprep.subr.bf16.mxu0 %v23375_v21  ;;  %v23414_v20 = vld [vmem:[#allocation2 + $0x1990] sm:$0xff]   ;;  %v23415_v21 = vld [vmem:[#allocation2 + $0x1958] sm:$0xff]  }
 0x374   :  { %21303 = vmatprep.subr.bf16.mxu1 %v23376_v22  ;;  %16151 = vmatprep.mubr.bf16.mxu1 %v18520_v7  ;;  %v23416_v22 = vld [vmem:[#allocation2 + $0x19d8] sm:$0xff]   ;;  %v23442_v7 = vld [vmem:[#allocation2 + $0x1a88] sm:$0xff]  }
 0x376   :  { %21282 = vmatpush3.bf16.msra.mxu0 %v23377_v23 }
 0x377   :  { %21304 = vmatpush3.bf16.msra.mxu1 %v23378_v25  ;;  %21283 = vmatprep.subr.bf16.mxu0 %v23379_v24  ;;  %v23417_v25 = vld [vmem:[#allocation2 + $0x1918] sm:$0xff]  }
 0x378   :  { %21305 = vmatprep.subr.bf16.mxu1 %v23380_v26  ;;  %v23418_v26 = vld [vmem:[#allocation2 + $0x1998] sm:$0xff]  }
 0x37a   :  { %21284 = vmatpush3.bf16.msra.mxu0 %v23381_v27 }
 0x37b   :  { %21306 = vmatpush3.bf16.msra.mxu1 %v23382_v28  ;;  %21285 = vmatprep.subr.bf16.mxu0 %v23383_v29  ;;  %v23419_v28 = vld [vmem:[#allocation2 + $0x1960] sm:$0xff]  }
 0x37c   :  { %21307 = vmatprep.subr.bf16.mxu1 %v23384_v30 }
 0x37e   :  { %21286 = vmatpush3.bf16.msra.mxu0 %v23385_v33 }
 0x37f   :  { %21308 = vmatpush3.bf16.msra.mxu1 %v23386_v34  ;;  %21287 = vmatprep.subr.bf16.mxu0 %v23387_v36  ;;  %v23421_v34 = vld [vmem:[#allocation2 + $0x1920] sm:$0xff]  }
 0x380   :  { %21309 = vmatprep.subr.bf16.mxu1 %v23388_v40 }
 0x382   :  { %21288 = vmatpush3.bf16.msra.mxu0 %v23389_v42 }
 0x383   :  { %21310 = vmatpush3.bf16.msra.mxu1 %v23390_v45  ;;  %21289 = vmatprep.subr.bf16.mxu0 %v23391_v49  ;;  %v23425_v45 = vld [vmem:[#allocation2 + $0x1928] sm:$0xff]  }
 0x384   :  { %v20987_v31 = vpop.f32.mrb[68].mxu0  ;;  %21311 = vmatprep.subr.bf16.mxu1 %v23392_v51  ;;  %v23426_v49 = vld [vmem:[#allocation2 + $0x19a8] sm:$0xff]   ;;  %v23429_v51 = vld [vmem:[#allocation2 + $0x1930] sm:$0xff]  }
 0x385   :  { %v21009_v32 = vpop.f32.mrb[68].mxu1  ;;  %v20988_v35 = vpop.f32.mrb[69].mxu0 }
 0x386   :  { %v20989_v37 = vadd.f32 %v20988_v35, %v20987_v31  ;;  %v21010_v38 = vpop.f32.mrb[69].mxu1  ;;  %v20990_v41 = vpop.f32.mrb[70].mxu0  ;;  %21290 = vmatpush3.bf16.msra.mxu0 %v23393_v53  ;;  %v23420_v31 = vld [vmem:[#allocation2 + $0x19e0] sm:$0xff]   ;;  %v23431_v53 = vld [vmem:[#allocation2 + $0x1978] sm:$0xff]  }
 0x387   :  { %v21011_v39 = vadd.f32 %v21010_v38, %v21009_v32  ;;  %v21012_v44 = vpop.f32.mrb[70].mxu1  ;;  %v20991_v46 = vpop.f32.mrb[71].mxu0  ;;  %21312 = vmatpush3.bf16.msra.mxu1 %v23394_v56  ;;  %21291 = vmatprep.subr.bf16.mxu0 %v23395_v55  ;;  %v23433_v56 = vld [vmem:[#allocation2 + $0x1938] sm:$0xff]   ;;  %v153_v55 = vld [vmem:[%s25323_s0 + $0x190] sm:$0xff] }
 0x388   :  { %v15539_v43 = vadd.f32 %v20989_v37, %v24836_v57  ;;  %v20992_v48 = vadd.f32 %v20991_v46, %v20990_v41  ;;  %v21013_v50 = vpop.f32.mrb[71].mxu1  ;;  %21313 = vmatprep.subr.bf16.mxu1 %v23396_v58  ;;  %v23422_v37 = vld [vmem:[#allocation2 + $0x19a0] sm:$0xff]   ;;  %v253_v58 = vld [vmem:[%s25323_s0 + $0x4b0] sm:$0xff] }
 0x389   :  { %v21014_v52 = vadd.f32 %v21013_v50, %v21012_v44  ;;  %v23428_v50 = vld [vmem:[#allocation2 + $0x19f0] sm:$0xff]  }
 0x38a   :  { %v24854_v47 = vadd.f32 %v21011_v39, %v15539_v43  ;;  %v15542_v54 = vadd.f32 %v20992_v48, %v24839_v63  ;;  %21292 = vmatpush3.bf16.msra.mxu0 %v23397_v59  ;;  %v151_v63 = vld [vmem:[%s25323_s0 + $0x180] sm:$0xff]  ;;  %v23423_v39 = vld [vmem:[#allocation2 + $0x1968] sm:$0xff]   ;;  %v23427_v48 = vld [vmem:[#allocation2 + $0x1970] sm:$0xff]  }
 0x38b   :  { %21314 = vmatpush3.bf16.msra.mxu1 %v23398_v60  ;;  %21293 = vmatprep.subr.bf16.mxu0 %v23399_v61  ;;  %v18517_v3 = vcombine.low %v151_v63, %v251_v2  ;;  %v18518_v4 = vcombine.high %v151_v63, %v251_v2  ;;  %v23424_v43 = vld [vmem:[#allocation2 + $0x19e8] sm:$0xff]   ;;  %v154_v59 = vld [vmem:[%s25323_s0 + $0x198] sm:$0xff]  ;;  %v18521_v61 = vcombine.low %v153_v55, %v253_v58  ;;  %v23435_v63 = vld [vmem:[#allocation2 + $0x1a40] sm:$0xff]  }
 0x38c   :  { %v24857_v57 = vadd.f32 %v21014_v52, %v15542_v54  ;;  %21315 = vmatprep.subr.bf16.mxu1 %v23400_v62  ;;  %v23430_v52 = vld [vmem:[#allocation2 + $0x19b0] sm:$0xff]   ;;  %v23432_v54 = vld [vmem:[#allocation2 + $0x19f8] sm:$0xff]   ;;  %v18522_v62 = vcombine.high %v153_v55, %v253_v58  ;;  %v23436_v2 = vld [vmem:[#allocation2 + $0x1ac0] sm:$0xff]  }
 0x38d   :  { %16110 = vmatprep.mubr.bf16.mxu0 %v18518_v4  ;;  %v254_v60 = vld [vmem:[%s25323_s0 + $0x4b8] sm:$0xff]  ;;  %v23438_v4 = vld [vmem:[#allocation2 + $0x1a80] sm:$0xff]  }
 0x38e   :  { %21294 = vmatpush3.bf16.msra.mxu0 %v23401_v0  ;;  %v18523_v0 = vcombine.low %v154_v59, %v254_v60  ;;  %v23467_v55 = vld [vmem:[#allocation2 + $0x1b40] sm:$0xff]  }
 0x38f   :  { %21316 = vmatpush3.bf16.msra.mxu1 %v23402_v1  ;;  %21323 = vmatprep.subr.bf16.mxu0 %v23403_v8  ;;  %v18524_v1 = vcombine.high %v154_v59, %v254_v60  ;;  %v23443_v8 = vld [vmem:[#allocation2 + $0x1a50] sm:$0xff]   ;;  %v23468_v58 = vld [vmem:[#allocation2 + $0x1bc0] sm:$0xff]  }
 0x390   :  { %21345 = vmatprep.subr.bf16.mxu1 %v23404_v10  ;;  %v23444_v10 = vld [vmem:[#allocation2 + $0x1ad0] sm:$0xff]   ;;  %v23469_v59 = vld [vmem:[#allocation2 + $0x1b00] sm:$0xff]  }
 0x391   :  { %16111 = vmatmul.mubr.bf16.vlgmr.msra.gmra.mrb[96].mxu0 %v18517_v3  ;;  %v23437_v3 = vld [vmem:[#allocation2 + $0x1a00] sm:$0xff]  }
 0x392   :  { %16152 = vmatmul.mubr.bf16.vlgmr.msra.gmra.mrb[96].mxu1 %v18519_v9  ;;  %21324 = vmatpush3.bf16.msra.mxu0 %v23405_v11  ;;  %v23441_v9 = vld [vmem:[#allocation2 + $0x1a08] sm:$0xff]   ;;  %v23445_v11 = vld [vmem:[#allocation2 + $0x1a10] sm:$0xff]   ;;  %v23470_v60 = vld [vmem:[#allocation2 + $0x1b80] sm:$0xff]  }
 0x393   :  { %21346 = vmatpush3.bf16.msra.mxu1 %v23406_v12  ;;  %21325 = vmatprep.subr.bf16.mxu0 %v23407_v13  ;;  %v23446_v12 = vld [vmem:[#allocation2 + $0x1a90] sm:$0xff]   ;;  %v23447_v13 = vld [vmem:[#allocation2 + $0x1a58] sm:$0xff]  }
 0x394   :  { %21347 = vmatprep.subr.bf16.mxu1 %v23408_v14  ;;  %16192 = vmatprep.mubr.bf16.mxu0 %v18522_v62  ;;  %v23448_v14 = vld [vmem:[#allocation2 + $0x1ad8] sm:$0xff]   ;;  %v23472_v62 = vld [vmem:[#allocation2 + $0x1bc8] sm:$0xff]  }
 0x395   :  { %16233 = vmatprep.mubr.bf16.mxu1 %v18524_v1  ;;  %v23474_v1 = vld [vmem:[#allocation2 + $0x1b88] sm:$0xff]  }
 0x396   :  { %21326 = vmatpush3.bf16.msra.mxu0 %v23409_v16  ;;  %v23449_v16 = vld [vmem:[#allocation2 + $0x1a18] sm:$0xff]  }
 0x397   :  { %21348 = vmatpush3.bf16.msra.mxu1 %v23410_v17  ;;  %21327 = vmatprep.subr.bf16.mxu0 %v23411_v15  ;;  %v23450_v15 = vld [vmem:[#allocation2 + $0x1a98] sm:$0xff]  }
 0x398   :  { %21349 = vmatprep.subr.bf16.mxu1 %v23412_v18 }
 0x39a   :  { %21328 = vmatpush3.bf16.msra.mxu0 %v23413_v19  ;;  %v23451_v19 = vld [vmem:[#allocation2 + $0x1a60] sm:$0xff]  }
 0x39b   :  { %21350 = vmatpush3.bf16.msra.mxu1 %v23414_v20  ;;  %21329 = vmatprep.subr.bf16.mxu0 %v23415_v21  ;;  %v23452_v21 = vld [vmem:[#allocation2 + $0x1ae0] sm:$0xff]  }
 0x39c   :  { %21351 = vmatprep.subr.bf16.mxu1 %v23416_v22 }
 0x39e   :  { %21330 = vmatpush3.bf16.msra.mxu0 %v23417_v25  ;;  %v23453_v25 = vld [vmem:[#allocation2 + $0x1a20] sm:$0xff]  }
 0x39f   :  { %21352 = vmatpush3.bf16.msra.mxu1 %v23418_v26  ;;  %21331 = vmatprep.subr.bf16.mxu0 %v23419_v28 }
 0x3a0   :  { %21353 = vmatprep.subr.bf16.mxu1 %v23420_v31 }
 0x3a2   :  { %21332 = vmatpush3.bf16.msra.mxu0 %v23421_v34 }
 0x3a3   :  { %21354 = vmatpush3.bf16.msra.mxu1 %v23422_v37  ;;  %21333 = vmatprep.subr.bf16.mxu0 %v23423_v39 }
 0x3a4   :  { %v21031_v23 = vpop.f32.mrb[72].mxu0  ;;  %21355 = vmatprep.subr.bf16.mxu1 %v23424_v43  ;;  %v23461_v43 = vld [vmem:[#allocation2 + $0x1a30] sm:$0xff]  }
 0x3a5   :  { %v21053_v24 = vpop.f32.mrb[72].mxu1  ;;  %v21032_v27 = vpop.f32.mrb[73].mxu0 }
 0x3a6   :  { %v21033_v29 = vadd.f32 %v21032_v27, %v21031_v23  ;;  %v21054_v30 = vpop.f32.mrb[73].mxu1  ;;  %v21034_v32 = vpop.f32.mrb[74].mxu0  ;;  %21334 = vmatpush3.bf16.msra.mxu0 %v23425_v45  ;;  %v23454_v27 = vld [vmem:[#allocation2 + $0x1aa0] sm:$0xff]   ;;  %v23463_v45 = vld [vmem:[#allocation2 + $0x1a78] sm:$0xff]  }
 0x3a7   :  { %v21055_v33 = vadd.f32 %v21054_v30, %v21053_v24  ;;  %v21056_v36 = vpop.f32.mrb[74].mxu1  ;;  %v21035_v38 = vpop.f32.mrb[75].mxu0  ;;  %21356 = vmatpush3.bf16.msra.mxu1 %v23426_v49  ;;  %21335 = vmatprep.subr.bf16.mxu0 %v23427_v48  ;;  %v23455_v30 = vld [vmem:[#allocation2 + $0x1a68] sm:$0xff]   ;;  %v23465_v49 = vld [vmem:[#allocation2 + $0x1a38] sm:$0xff]  }
 0x3a8   :  { %v15621_v35 = vadd.f32 %v21033_v29, %v24854_v47  ;;  %v21036_v41 = vadd.f32 %v21035_v38, %v21034_v32  ;;  %v21057_v42 = vpop.f32.mrb[75].mxu1  ;;  %21357 = vmatprep.subr.bf16.mxu1 %v23428_v50  ;;  %v23456_v32 = vld [vmem:[#allocation2 + $0x1ae8] sm:$0xff]   ;;  %v23466_v48 = vld [vmem:[#allocation2 + $0x1ab8] sm:$0xff]   ;;  %v255_v50 = vld [vmem:[%s25323_s0 + $0x4c0] sm:$0xff] }
 0x3a9   :  { %v21058_v44 = vadd.f32 %v21057_v42, %v21056_v36  ;;  %v23457_v36 = vld [vmem:[#allocation2 + $0x1a28] sm:$0xff]   ;;  %v23460_v42 = vld [vmem:[#allocation2 + $0x1af0] sm:$0xff]  }
 0x3aa   :  { %v24872_v40 = vadd.f32 %v21055_v33, %v15621_v35  ;;  %v15624_v46 = vadd.f32 %v21036_v41, %v24857_v57  ;;  %21336 = vmatpush3.bf16.msra.mxu0 %v23429_v51  ;;  %v23434_v57 = vld [vmem:[#allocation2 + $0x19b8] sm:$0xff]   ;;  %v23458_v38 = vld [vmem:[#allocation2 + $0x1aa8] sm:$0xff]   ;;  %v23459_v41 = vld [vmem:[#allocation2 + $0x1a70] sm:$0xff]  }
 0x3ab   :  { %21358 = vmatpush3.bf16.msra.mxu1 %v23430_v52  ;;  %21337 = vmatprep.subr.bf16.mxu0 %v23431_v53  ;;  %v156_v51 = vld [vmem:[%s25323_s0 + $0x1a8] sm:$0xff] }
 0x3ac   :  { %v24875_v47 = vadd.f32 %v21058_v44, %v15624_v46  ;;  %21359 = vmatprep.subr.bf16.mxu1 %v23432_v54  ;;  %v23462_v44 = vld [vmem:[#allocation2 + $0x1ab0] sm:$0xff]   ;;  %v23464_v46 = vld [vmem:[#allocation2 + $0x1af8] sm:$0xff]   ;;  %v256_v54 = vld [vmem:[%s25323_s0 + $0x4c8] sm:$0xff] }
 0x3ae   :  { %21338 = vmatpush3.bf16.msra.mxu0 %v23433_v56  ;;  %v18527_v56 = vcombine.low %v156_v51, %v256_v54 }
 0x3af   :  { %21360 = vmatpush3.bf16.msra.mxu1 %v23434_v57  ;;  %21367 = vmatprep.subr.bf16.mxu0 %v23435_v63  ;;  %v18528_v57 = vcombine.high %v156_v51, %v256_v54  ;;  %v23475_v63 = vld [vmem:[#allocation2 + $0x1b50] sm:$0xff]   ;;  %v23501_v51 = vld [vmem:[#allocation2 + $0x1c00] sm:$0xff]   ;;  %v23504_v54 = vld [vmem:[#allocation2 + $0x1cc8] sm:$0xff]  }
 0x3b0   :  { %21389 = vmatprep.subr.bf16.mxu1 %v23436_v2  ;;  %v23476_v2 = vld [vmem:[#allocation2 + $0x1bd0] sm:$0xff]  }
 0x3b1   :  { %16193 = vmatmul.mubr.bf16.vlgmr.msra.gmra.mrb[100].mxu0 %v18521_v61  ;;  %v23471_v61 = vld [vmem:[#allocation2 + $0x1b48] sm:$0xff]  }
 0x3b2   :  { %16234 = vmatmul.mubr.bf16.vlgmr.msra.gmra.mrb[100].mxu1 %v18523_v0  ;;  %21368 = vmatpush3.bf16.msra.mxu0 %v23437_v3  ;;  %v23473_v0 = vld [vmem:[#allocation2 + $0x1b08] sm:$0xff]   ;;  %v23477_v3 = vld [vmem:[#allocation2 + $0x1b10] sm:$0xff]  }
 0x3b3   :  { %21390 = vmatpush3.bf16.msra.mxu1 %v23438_v4  ;;  %21369 = vmatprep.subr.bf16.mxu0 %v23439_v5  ;;  %v23478_v4 = vld [vmem:[#allocation2 + $0x1b90] sm:$0xff]   ;;  %v23479_v5 = vld [vmem:[#allocation2 + $0x1b58] sm:$0xff]  }
 0x3b4   :  { %21391 = vmatprep.subr.bf16.mxu1 %v23440_v6  ;;  %16315 = vmatprep.mubr.bf16.mxu1 %v18528_v57  ;;  %v23480_v6 = vld [vmem:[#allocation2 + $0x1bd8] sm:$0xff]   ;;  %v23506_v57 = vld [vmem:[#allocation2 + $0x1c88] sm:$0xff]  }
 0x3b6   :  { %21370 = vmatpush3.bf16.msra.mxu0 %v23441_v9 }
 0x3b7   :  { %21392 = vmatpush3.bf16.msra.mxu1 %v23442_v7  ;;  %21371 = vmatprep.subr.bf16.mxu0 %v23443_v8  ;;  %v23481_v7 = vld [vmem:[#allocation2 + $0x1b18] sm:$0xff]  }
 0x3b8   :  { %21393 = vmatprep.subr.bf16.mxu1 %v23444_v10  ;;  %v23482_v10 = vld [vmem:[#allocation2 + $0x1b98] sm:$0xff]  }
 0x3ba   :  { %21372 = vmatpush3.bf16.msra.mxu0 %v23445_v11 }
 0x3bb   :  { %21394 = vmatpush3.bf16.msra.mxu1 %v23446_v12  ;;  %21373 = vmatprep.subr.bf16.mxu0 %v23447_v13  ;;  %v23483_v12 = vld [vmem:[#allocation2 + $0x1b60] sm:$0xff]  }
 0x3bc   :  { %21395 = vmatprep.subr.bf16.mxu1 %v23448_v14 }
 0x3be   :  { %21374 = vmatpush3.bf16.msra.mxu0 %v23449_v16  ;;  %v23484_v16 = vld [vmem:[#allocation2 + $0x1be0] sm:$0xff]  }
 0x3bf   :  { %21396 = vmatpush3.bf16.msra.mxu1 %v23450_v15  ;;  %21375 = vmatprep.subr.bf16.mxu0 %v23451_v19 }
 0x3c0   :  { %21397 = vmatprep.subr.bf16.mxu1 %v23452_v21  ;;  %v23486_v21 = vld [vmem:[#allocation2 + $0x1ba0] sm:$0xff]  }
 0x3c2   :  { %21376 = vmatpush3.bf16.msra.mxu0 %v23453_v25  ;;  %v23487_v25 = vld [vmem:[#allocation2 + $0x1b68] sm:$0xff]  }
 0x3c3   :  { %21398 = vmatpush3.bf16.msra.mxu1 %v23454_v27  ;;  %21377 = vmatprep.subr.bf16.mxu0 %v23455_v30  ;;  %v23488_v27 = vld [vmem:[#allocation2 + $0x1be8] sm:$0xff]  }
 0x3c4   :  { %v21075_v17 = vpop.f32.mrb[76].mxu0  ;;  %21399 = vmatprep.subr.bf16.mxu1 %v23456_v32  ;;  %v23491_v32 = vld [vmem:[#allocation2 + $0x1b70] sm:$0xff]  }
 0x3c5   :  { %v21097_v18 = vpop.f32.mrb[76].mxu1  ;;  %v21076_v20 = vpop.f32.mrb[77].mxu0 }
 0x3c6   :  { %v21077_v22 = vadd.f32 %v21076_v20, %v21075_v17  ;;  %v21098_v23 = vpop.f32.mrb[77].mxu1  ;;  %v21078_v26 = vpop.f32.mrb[78].mxu0  ;;  %21378 = vmatpush3.bf16.msra.mxu0 %v23457_v36  ;;  %v23494_v36 = vld [vmem:[#allocation2 + $0x1bb0] sm:$0xff]  }
 0x3c7   :  { %v21099_v24 = vadd.f32 %v21098_v23, %v21097_v18  ;;  %v21100_v29 = vpop.f32.mrb[78].mxu1  ;;  %v21079_v31 = vpop.f32.mrb[79].mxu0  ;;  %21400 = vmatpush3.bf16.msra.mxu1 %v23458_v38  ;;  %21379 = vmatprep.subr.bf16.mxu0 %v23459_v41  ;;  %v23485_v18 = vld [vmem:[#allocation2 + $0x1b20] sm:$0xff]   ;;  %v23496_v38 = vld [vmem:[#allocation2 + $0x1bf8] sm:$0xff]  }
 0x3c8   :  { %v15703_v28 = vadd.f32 %v21077_v22, %v24872_v40  ;;  %v21080_v34 = vadd.f32 %v21079_v31, %v21078_v26  ;;  %v21101_v35 = vpop.f32.mrb[79].mxu1  ;;  %21401 = vmatprep.subr.bf16.mxu1 %v23460_v42  ;;  %v23490_v31 = vld [vmem:[#allocation2 + $0x1ba8] sm:$0xff]   ;;  %v23498_v41 = vld [vmem:[#allocation2 + $0x1bb8] sm:$0xff]   ;;  %v257_v42 = vld [vmem:[%s25323_s0 + $0x4d0] sm:$0xff] }
 0x3c9   :  { %v21102_v37 = vadd.f32 %v21101_v35, %v21100_v29  ;;  %v23489_v29 = vld [vmem:[#allocation2 + $0x1b28] sm:$0xff]   ;;  %v23493_v35 = vld [vmem:[#allocation2 + $0x1b30] sm:$0xff]  }
 0x3ca   :  { %v24890_v33 = vadd.f32 %v21099_v24, %v15703_v28  ;;  %v15706_v39 = vadd.f32 %v21080_v34, %v24875_v47  ;;  %21380 = vmatpush3.bf16.msra.mxu0 %v23461_v43  ;;  %v155_v47 = vld [vmem:[%s25323_s0 + $0x1a0] sm:$0xff]  ;;  %v23492_v34 = vld [vmem:[#allocation2 + $0x1bf0] sm:$0xff]  }
 0x3cb   :  { %21402 = vmatpush3.bf16.msra.mxu1 %v23462_v44  ;;  %21381 = vmatprep.subr.bf16.mxu0 %v23463_v45  ;;  %v18525_v52 = vcombine.low %v155_v47, %v255_v50  ;;  %v18526_v53 = vcombine.high %v155_v47, %v255_v50  ;;  %v158_v45 = vld [vmem:[%s25323_s0 + $0x1b8] sm:$0xff]  ;;  %v23499_v47 = vld [vmem:[#allocation2 + $0x1c40] sm:$0xff]  }
 0x3cc   :  { %v24893_v40 = vadd.f32 %v21102_v37, %v15706_v39  ;;  %21403 = vmatprep.subr.bf16.mxu1 %v23464_v46  ;;  %v23495_v37 = vld [vmem:[#allocation2 + $0x1b78] sm:$0xff]   ;;  %v23500_v50 = vld [vmem:[#allocation2 + $0x1cc0] sm:$0xff]  }
 0x3cd   :  { %16274 = vmatprep.mubr.bf16.mxu0 %v18526_v53  ;;  %v23497_v39 = vld [vmem:[#allocation2 + $0x1b38] sm:$0xff]   ;;  %v23503_v53 = vld [vmem:[#allocation2 + $0x1c48] sm:$0xff]  }
 0x3ce   :  { %21382 = vmatpush3.bf16.msra.mxu0 %v23465_v49  ;;  %v258_v46 = vld [vmem:[%s25323_s0 + $0x4d8] sm:$0xff] }
 0x3cf   :  { %21404 = vmatpush3.bf16.msra.mxu1 %v23466_v48  ;;  %21411 = vmatprep.subr.bf16.mxu0 %v23467_v55  ;;  %v18531_v49 = vcombine.low %v158_v45, %v258_v46  ;;  %v18532_v48 = vcombine.high %v158_v45, %v258_v46  ;;  %v23507_v55 = vld [vmem:[#allocation2 + $0x1c50] sm:$0xff]   ;;  %v23535_v45 = vld [vmem:[#allocation2 + $0x1d48] sm:$0xff]  }
 0x3d0   :  { %21433 = vmatprep.subr.bf16.mxu1 %v23468_v58  ;;  %v23508_v58 = vld [vmem:[#allocation2 + $0x1cd0] sm:$0xff]   ;;  %v23536_v46 = vld [vmem:[#allocation2 + $0x1dc8] sm:$0xff]  }
 0x3d1   :  { %16275 = vmatmul.mubr.bf16.vlgmr.msra.gmra.mrb[104].mxu0 %v18525_v52  ;;  %v23502_v52 = vld [vmem:[#allocation2 + $0x1c80] sm:$0xff]  }
 0x3d2   :  { %16316 = vmatmul.mubr.bf16.vlgmr.msra.gmra.mrb[104].mxu1 %v18527_v56  ;;  %21412 = vmatpush3.bf16.msra.mxu0 %v23469_v59  ;;  %v23505_v56 = vld [vmem:[#allocation2 + $0x1c08] sm:$0xff]   ;;  %v23509_v59 = vld [vmem:[#allocation2 + $0x1c10] sm:$0xff]  }
 0x3d3   :  { %21434 = vmatpush3.bf16.msra.mxu1 %v23470_v60  ;;  %21413 = vmatprep.subr.bf16.mxu0 %v23471_v61  ;;  %v23510_v60 = vld [vmem:[#allocation2 + $0x1c90] sm:$0xff]   ;;  %v23511_v61 = vld [vmem:[#allocation2 + $0x1c58] sm:$0xff]  }
 0x3d4   :  { %21435 = vmatprep.subr.bf16.mxu1 %v23472_v62  ;;  %16397 = vmatprep.mubr.bf16.mxu1 %v18532_v48  ;;  %v23512_v62 = vld [vmem:[#allocation2 + $0x1cd8] sm:$0xff]   ;;  %v23538_v48 = vld [vmem:[#allocation2 + $0x1d88] sm:$0xff]  }
 0x3d6   :  { %21414 = vmatpush3.bf16.msra.mxu0 %v23473_v0 }
 0x3d7   :  { %21436 = vmatpush3.bf16.msra.mxu1 %v23474_v1  ;;  %21415 = vmatprep.subr.bf16.mxu0 %v23475_v63  ;;  %v23513_v1 = vld [vmem:[#allocation2 + $0x1c18] sm:$0xff]  }
 0x3d8   :  { %21437 = vmatprep.subr.bf16.mxu1 %v23476_v2  ;;  %v23514_v2 = vld [vmem:[#allocation2 + $0x1c98] sm:$0xff]  }
 0x3da   :  { %21416 = vmatpush3.bf16.msra.mxu0 %v23477_v3 }
 0x3db   :  { %21438 = vmatpush3.bf16.msra.mxu1 %v23478_v4  ;;  %21417 = vmatprep.subr.bf16.mxu0 %v23479_v5  ;;  %v23515_v4 = vld [vmem:[#allocation2 + $0x1c60] sm:$0xff]  }
 0x3dc   :  { %21439 = vmatprep.subr.bf16.mxu1 %v23480_v6 }
 0x3de   :  { %21418 = vmatpush3.bf16.msra.mxu0 %v23481_v7 }
 0x3df   :  { %21440 = vmatpush3.bf16.msra.mxu1 %v23482_v10  ;;  %21419 = vmatprep.subr.bf16.mxu0 %v23483_v12  ;;  %v23517_v10 = vld [vmem:[#allocation2 + $0x1c20] sm:$0xff]  }
 0x3e0   :  { %21441 = vmatprep.subr.bf16.mxu1 %v23484_v16 }
 0x3e2   :  { %21420 = vmatpush3.bf16.msra.mxu0 %v23485_v18 }
 0x3e3   :  { %21442 = vmatpush3.bf16.msra.mxu1 %v23486_v21  ;;  %21421 = vmatprep.subr.bf16.mxu0 %v23487_v25  ;;  %v23521_v21 = vld [vmem:[#allocation2 + $0x1c28] sm:$0xff]  }
 0x3e4   :  { %v21119_v9 = vpop.f32.mrb[80].mxu0  ;;  %21443 = vmatprep.subr.bf16.mxu1 %v23488_v27  ;;  %v23522_v25 = vld [vmem:[#allocation2 + $0x1ca8] sm:$0xff]   ;;  %v23525_v27 = vld [vmem:[#allocation2 + $0x1c30] sm:$0xff]  }
 0x3e5   :  { %v21141_v8 = vpop.f32.mrb[80].mxu1  ;;  %v21120_v11 = vpop.f32.mrb[81].mxu0 }
 0x3e6   :  { %v21121_v13 = vadd.f32 %v21120_v11, %v21119_v9  ;;  %v21142_v14 = vpop.f32.mrb[81].mxu1  ;;  %v21122_v15 = vpop.f32.mrb[82].mxu0  ;;  %21422 = vmatpush3.bf16.msra.mxu0 %v23489_v29  ;;  %v23516_v9 = vld [vmem:[#allocation2 + $0x1ce0] sm:$0xff]   ;;  %v23527_v29 = vld [vmem:[#allocation2 + $0x1c78] sm:$0xff]  }
 0x3e7   :  { %v21143_v17 = vadd.f32 %v21142_v14, %v21141_v8  ;;  %v21144_v20 = vpop.f32.mrb[82].mxu1  ;;  %v21123_v22 = vpop.f32.mrb[83].mxu0  ;;  %21444 = vmatpush3.bf16.msra.mxu1 %v23490_v31  ;;  %21423 = vmatprep.subr.bf16.mxu0 %v23491_v32  ;;  %v23529_v31 = vld [vmem:[#allocation2 + $0x1c38] sm:$0xff]   ;;  %v159_v32 = vld [vmem:[%s25323_s0 + $0x1c0] sm:$0xff] }
 0x3e8   :  { %v15785_v19 = vadd.f32 %v21121_v13, %v24890_v33  ;;  %v21124_v24 = vadd.f32 %v21123_v22, %v21122_v15  ;;  %v21145_v26 = vpop.f32.mrb[83].mxu1  ;;  %21445 = vmatprep.subr.bf16.mxu1 %v23492_v34  ;;  %v23518_v13 = vld [vmem:[#allocation2 + $0x1ca0] sm:$0xff]  }
 0x3e9   :  { %v21146_v28 = vadd.f32 %v21145_v26, %v21144_v20  ;;  %v23524_v26 = vld [vmem:[#allocation2 + $0x1cf0] sm:$0xff]   ;;  %v259_v34 = vld [vmem:[%s25323_s0 + $0x4e0] sm:$0xff] }
 0x3ea   :  { %v24908_v23 = vadd.f32 %v21143_v17, %v15785_v19  ;;  %v15788_v30 = vadd.f32 %v21124_v24, %v24893_v40  ;;  %21424 = vmatpush3.bf16.msra.mxu0 %v23493_v35  ;;  %v157_v40 = vld [vmem:[%s25323_s0 + $0x1b0] sm:$0xff]  ;;  %v23519_v17 = vld [vmem:[#allocation2 + $0x1c68] sm:$0xff]  }
 0x3eb   :  { %21446 = vmatpush3.bf16.msra.mxu1 %v23494_v36  ;;  %21425 = vmatprep.subr.bf16.mxu0 %v23495_v37  ;;  %v18529_v43 = vcombine.low %v157_v40, %v257_v42  ;;  %v18530_v44 = vcombine.high %v157_v40, %v257_v42  ;;  %v23520_v19 = vld [vmem:[#allocation2 + $0x1ce8] sm:$0xff]   ;;  %v23523_v24 = vld [vmem:[#allocation2 + $0x1c70] sm:$0xff]   ;;  %v18533_v37 = vcombine.low %v159_v32, %v259_v34  ;;  %v23531_v40 = vld [vmem:[#allocation2 + $0x1d40] sm:$0xff]  }
 0x3ec   :  { %v24911_v33 = vadd.f32 %v21146_v28, %v15788_v30  ;;  %21447 = vmatprep.subr.bf16.mxu1 %v23496_v38  ;;  %v23526_v28 = vld [vmem:[#allocation2 + $0x1cb0] sm:$0xff]   ;;  %v23528_v30 = vld [vmem:[#allocation2 + $0x1cf8] sm:$0xff]   ;;  %v160_v35 = vld [vmem:[%s25323_s0 + $0x1c8] sm:$0xff]  ;;  %v18534_v38 = vcombine.high %v159_v32, %v259_v34 }
 0x3ed   :  { %16356 = vmatprep.mubr.bf16.mxu0 %v18530_v44  ;;  %v260_v36 = vld [vmem:[%s25323_s0 + $0x4e8] sm:$0xff]  ;;  %v23532_v42 = vld [vmem:[#allocation2 + $0x1dc0] sm:$0xff]  }
 0x3ee   :  { %21426 = vmatpush3.bf16.msra.mxu0 %v23497_v39  ;;  %v18535_v39 = vcombine.low %v160_v35, %v260_v36  ;;  %v23534_v44 = vld [vmem:[#allocation2 + $0x1d80] sm:$0xff]  }
 0x3ef   :  { %21448 = vmatpush3.bf16.msra.mxu1 %v23498_v41  ;;  %21455 = vmatprep.subr.bf16.mxu0 %v23499_v47  ;;  %v18536_v41 = vcombine.high %v160_v35, %v260_v36  ;;  %v23539_v47 = vld [vmem:[#allocation2 + $0x1d50] sm:$0xff]   ;;  %v23563_v32 = vld [vmem:[#allocation2 + $0x1e40] sm:$0xff]  }
 0x3f0   :  { %21477 = vmatprep.subr.bf16.mxu1 %v23500_v50  ;;  %v23540_v50 = vld [vmem:[#allocation2 + $0x1dd0] sm:$0xff]   ;;  %v23564_v34 = vld [vmem:[#allocation2 + $0x1ec0] sm:$0xff]  }
 0x3f1   :  { %16357 = vmatmul.mubr.bf16.vlgmr.msra.gmra.mrb[108].mxu0 %v18529_v43  ;;  %v23533_v43 = vld [vmem:[#allocation2 + $0x1d00] sm:$0xff]  }
 0x3f2   :  { %16398 = vmatmul.mubr.bf16.vlgmr.msra.gmra.mrb[108].mxu1 %v18531_v49  ;;  %21456 = vmatpush3.bf16.msra.mxu0 %v23501_v51  ;;  %v23537_v49 = vld [vmem:[#allocation2 + $0x1d08] sm:$0xff]   ;;  %v23541_v51 = vld [vmem:[#allocation2 + $0x1d10] sm:$0xff]   ;;  %v23565_v35 = vld [vmem:[#allocation2 + $0x1e00] sm:$0xff]  }
 0x3f3   :  { %21478 = vmatpush3.bf16.msra.mxu1 %v23502_v52  ;;  %21457 = vmatprep.subr.bf16.mxu0 %v23503_v53  ;;  %v23542_v52 = vld [vmem:[#allocation2 + $0x1d90] sm:$0xff]   ;;  %v23543_v53 = vld [vmem:[#allocation2 + $0x1d58] sm:$0xff]   ;;  %v23566_v36 = vld [vmem:[#allocation2 + $0x1e80] sm:$0xff]  }
 0x3f4   :  { %21479 = vmatprep.subr.bf16.mxu1 %v23504_v54  ;;  %16438 = vmatprep.mubr.bf16.mxu0 %v18534_v38  ;;  %v23544_v54 = vld [vmem:[#allocation2 + $0x1dd8] sm:$0xff]   ;;  %v23568_v38 = vld [vmem:[#allocation2 + $0x1ec8] sm:$0xff]  }
 0x3f5   :  { %16479 = vmatprep.mubr.bf16.mxu1 %v18536_v41  ;;  %v23570_v41 = vld [vmem:[#allocation2 + $0x1e88] sm:$0xff]  }
 0x3f6   :  { %21458 = vmatpush3.bf16.msra.mxu0 %v23505_v56  ;;  %v23545_v56 = vld [vmem:[#allocation2 + $0x1d18] sm:$0xff]  }
 0x3f7   :  { %21480 = vmatpush3.bf16.msra.mxu1 %v23506_v57  ;;  %21459 = vmatprep.subr.bf16.mxu0 %v23507_v55  ;;  %v23546_v55 = vld [vmem:[#allocation2 + $0x1d98] sm:$0xff]  }
 0x3f8   :  { %21481 = vmatprep.subr.bf16.mxu1 %v23508_v58 }
 0x3fa   :  { %21460 = vmatpush3.bf16.msra.mxu0 %v23509_v59  ;;  %v23547_v59 = vld [vmem:[#allocation2 + $0x1d60] sm:$0xff]  }
 0x3fb   :  { %21482 = vmatpush3.bf16.msra.mxu1 %v23510_v60  ;;  %21461 = vmatprep.subr.bf16.mxu0 %v23511_v61  ;;  %v23548_v61 = vld [vmem:[#allocation2 + $0x1de0] sm:$0xff]  }
 0x3fc   :  { %21483 = vmatprep.subr.bf16.mxu1 %v23512_v62 }
 0x3fe   :  { %21462 = vmatpush3.bf16.msra.mxu0 %v23513_v1  ;;  %v23549_v1 = vld [vmem:[#allocation2 + $0x1d20] sm:$0xff]  }
 0x3ff   :  { %21484 = vmatpush3.bf16.msra.mxu1 %v23514_v2  ;;  %21463 = vmatprep.subr.bf16.mxu0 %v23515_v4 }
 0x400   :  { %21485 = vmatprep.subr.bf16.mxu1 %v23516_v9 }
 0x402   :  { %21464 = vmatpush3.bf16.msra.mxu0 %v23517_v10 }
 0x403   :  { %21486 = vmatpush3.bf16.msra.mxu1 %v23518_v13  ;;  %21465 = vmatprep.subr.bf16.mxu0 %v23519_v17 }
 0x404   :  { %v21163_v0 = vpop.f32.mrb[84].mxu0  ;;  %21487 = vmatprep.subr.bf16.mxu1 %v23520_v19  ;;  %v23557_v19 = vld [vmem:[#allocation2 + $0x1d30] sm:$0xff]  }
 0x405   :  { %v21185_v63 = vpop.f32.mrb[84].mxu1  ;;  %v21164_v3 = vpop.f32.mrb[85].mxu0 }
 0x406   :  { %v21165_v5 = vadd.f32 %v21164_v3, %v21163_v0  ;;  %v21186_v6 = vpop.f32.mrb[85].mxu1  ;;  %v21166_v8 = vpop.f32.mrb[86].mxu0  ;;  %21466 = vmatpush3.bf16.msra.mxu0 %v23521_v21  ;;  %v23550_v3 = vld [vmem:[#allocation2 + $0x1da0] sm:$0xff]   ;;  %v23559_v21 = vld [vmem:[#allocation2 + $0x1d78] sm:$0xff]  }
 0x407   :  { %v21187_v7 = vadd.f32 %v21186_v6, %v21185_v63  ;;  %v21188_v12 = vpop.f32.mrb[86].mxu1  ;;  %v21167_v14 = vpop.f32.mrb[87].mxu0  ;;  %21488 = vmatpush3.bf16.msra.mxu1 %v23522_v25  ;;  %21467 = vmatprep.subr.bf16.mxu0 %v23523_v24  ;;  %v23551_v6 = vld [vmem:[#allocation2 + $0x1d68] sm:$0xff]   ;;  %v23561_v25 = vld [vmem:[#allocation2 + $0x1d38] sm:$0xff]  }
 0x408   :  { %v15867_v11 = vadd.f32 %v21165_v5, %v24908_v23  ;;  %v21168_v15 = vadd.f32 %v21167_v14, %v21166_v8  ;;  %v21189_v18 = vpop.f32.mrb[87].mxu1  ;;  %21489 = vmatprep.subr.bf16.mxu1 %v23524_v26  ;;  %v23552_v8 = vld [vmem:[#allocation2 + $0x1de8] sm:$0xff]   ;;  %v23562_v24 = vld [vmem:[#allocation2 + $0x1db8] sm:$0xff]   ;;  %v261_v26 = vld [vmem:[%s25323_s0 + $0x4f0] sm:$0xff] }
 0x409   :  { %v21190_v20 = vadd.f32 %v21189_v18, %v21188_v12  ;;  %v23553_v12 = vld [vmem:[#allocation2 + $0x1d28] sm:$0xff]   ;;  %v23556_v18 = vld [vmem:[#allocation2 + $0x1df0] sm:$0xff]  }
 0x40a   :  { %v24926_v16 = vadd.f32 %v21187_v7, %v15867_v11  ;;  %v15870_v22 = vadd.f32 %v21168_v15, %v24911_v33  ;;  %21468 = vmatpush3.bf16.msra.mxu0 %v23525_v27  ;;  %v23530_v33 = vld [vmem:[#allocation2 + $0x1cb8] sm:$0xff]   ;;  %v23554_v14 = vld [vmem:[#allocation2 + $0x1da8] sm:$0xff]   ;;  %v23555_v15 = vld [vmem:[#allocation2 + $0x1d70] sm:$0xff]  }
 0x40b   :  { %21490 = vmatpush3.bf16.msra.mxu1 %v23526_v28  ;;  %21469 = vmatprep.subr.bf16.mxu0 %v23527_v29  ;;  %v162_v27 = vld [vmem:[%s25323_s0 + $0x1d8] sm:$0xff] }
 0x40c   :  { %v24929_v23 = vadd.f32 %v21190_v20, %v15870_v22  ;;  %21491 = vmatprep.subr.bf16.mxu1 %v23528_v30  ;;  %v23558_v20 = vld [vmem:[#allocation2 + $0x1db0] sm:$0xff]   ;;  %v23560_v22 = vld [vmem:[#allocation2 + $0x1df8] sm:$0xff]  }
 0x40d   :  { %v262_v30 = vld [vmem:[%s25323_s0 + $0x4f8] sm:$0xff] }
 0x40e   :  { %21470 = vmatpush3.bf16.msra.mxu0 %v23529_v31  ;;  %v18539_v31 = vcombine.low %v162_v27, %v262_v30 }
 0x40f   :  { %21492 = vmatpush3.bf16.msra.mxu1 %v23530_v33  ;;  %21499 = vmatprep.subr.bf16.mxu0 %v23531_v40  ;;  %v18540_v33 = vcombine.high %v162_v27, %v262_v30  ;;  %v23571_v40 = vld [vmem:[#allocation2 + $0x1e50] sm:$0xff]   ;;  %v23597_v27 = vld [vmem:[#allocation2 + $0x1f00] sm:$0xff]   ;;  %v23600_v30 = vld [vmem:[#allocation2 + $0x1fc8] sm:$0xff]  }
 0x410   :  { %21521 = vmatprep.subr.bf16.mxu1 %v23532_v42  ;;  %v23572_v42 = vld [vmem:[#allocation2 + $0x1ed0] sm:$0xff]  }
 0x411   :  { %16439 = vmatmul.mubr.bf16.vlgmr.msra.gmra.mrb[112].mxu0 %v18533_v37  ;;  %v23567_v37 = vld [vmem:[#allocation2 + $0x1e48] sm:$0xff]  }
 0x412   :  { %16480 = vmatmul.mubr.bf16.vlgmr.msra.gmra.mrb[112].mxu1 %v18535_v39  ;;  %21500 = vmatpush3.bf16.msra.mxu0 %v23533_v43  ;;  %v23569_v39 = vld [vmem:[#allocation2 + $0x1e08] sm:$0xff]   ;;  %v23573_v43 = vld [vmem:[#allocation2 + $0x1e10] sm:$0xff]  }
 0x413   :  { %21522 = vmatpush3.bf16.msra.mxu1 %v23534_v44  ;;  %21501 = vmatprep.subr.bf16.mxu0 %v23535_v45  ;;  %v23574_v44 = vld [vmem:[#allocation2 + $0x1e90] sm:$0xff]   ;;  %v23575_v45 = vld [vmem:[#allocation2 + $0x1e58] sm:$0xff]  }
 0x414   :  { %21523 = vmatprep.subr.bf16.mxu1 %v23536_v46  ;;  %16561 = vmatprep.mubr.bf16.mxu1 %v18540_v33  ;;  %v23576_v46 = vld [vmem:[#allocation2 + $0x1ed8] sm:$0xff]   ;;  %v23602_v33 = vld [vmem:[#allocation2 + $0x1f88] sm:$0xff]  }
 0x416   :  { %21502 = vmatpush3.bf16.msra.mxu0 %v23537_v49 }
 0x417   :  { %21524 = vmatpush3.bf16.msra.mxu1 %v23538_v48  ;;  %21503 = vmatprep.subr.bf16.mxu0 %v23539_v47  ;;  %v23577_v48 = vld [vmem:[#allocation2 + $0x1e18] sm:$0xff]  }
 0x418   :  { %21525 = vmatprep.subr.bf16.mxu1 %v23540_v50  ;;  %v23578_v50 = vld [vmem:[#allocation2 + $0x1e98] sm:$0xff]  }
 0x41a   :  { %21504 = vmatpush3.bf16.msra.mxu0 %v23541_v51 }
 0x41b   :  { %21526 = vmatpush3.bf16.msra.mxu1 %v23542_v52  ;;  %21505 = vmatprep.subr.bf16.mxu0 %v23543_v53  ;;  %v23579_v52 = vld [vmem:[#allocation2 + $0x1e60] sm:$0xff]  }
 0x41c   :  { %21527 = vmatprep.subr.bf16.mxu1 %v23544_v54 }
 0x41e   :  { %21506 = vmatpush3.bf16.msra.mxu0 %v23545_v56  ;;  %v23580_v56 = vld [vmem:[#allocation2 + $0x1ee0] sm:$0xff]  }
 0x41f   :  { %21528 = vmatpush3.bf16.msra.mxu1 %v23546_v55  ;;  %21507 = vmatprep.subr.bf16.mxu0 %v23547_v59 }
 0x420   :  { %21529 = vmatprep.subr.bf16.mxu1 %v23548_v61  ;;  %v23582_v61 = vld [vmem:[#allocation2 + $0x1ea0] sm:$0xff]  }
 0x422   :  { %21508 = vmatpush3.bf16.msra.mxu0 %v23549_v1  ;;  %v23583_v1 = vld [vmem:[#allocation2 + $0x1e68] sm:$0xff]  }
 0x423   :  { %21530 = vmatpush3.bf16.msra.mxu1 %v23550_v3  ;;  %21509 = vmatprep.subr.bf16.mxu0 %v23551_v6  ;;  %v23584_v3 = vld [vmem:[#allocation2 + $0x1ee8] sm:$0xff]  }
 0x424   :  { %v21207_v57 = vpop.f32.mrb[88].mxu0  ;;  %21531 = vmatprep.subr.bf16.mxu1 %v23552_v8  ;;  %v23587_v8 = vld [vmem:[#allocation2 + $0x1e70] sm:$0xff]  }
 0x425   :  { %v21229_v58 = vpop.f32.mrb[88].mxu1  ;;  %v21208_v60 = vpop.f32.mrb[89].mxu0 }
 0x426   :  { %v21209_v62 = vadd.f32 %v21208_v60, %v21207_v57  ;;  %v21230_v0 = vpop.f32.mrb[89].mxu1  ;;  %v21210_v2 = vpop.f32.mrb[90].mxu0  ;;  %21510 = vmatpush3.bf16.msra.mxu0 %v23553_v12  ;;  %v23590_v12 = vld [vmem:[#allocation2 + $0x1eb0] sm:$0xff]  }
 0x427   :  { %v21231_v63 = vadd.f32 %v21230_v0, %v21229_v58  ;;  %v21232_v5 = vpop.f32.mrb[90].mxu1  ;;  %v21211_v9 = vpop.f32.mrb[91].mxu0  ;;  %21532 = vmatpush3.bf16.msra.mxu1 %v23554_v14  ;;  %21511 = vmatprep.subr.bf16.mxu0 %v23555_v15  ;;  %v23581_v58 = vld [vmem:[#allocation2 + $0x1e20] sm:$0xff]   ;;  %v23592_v14 = vld [vmem:[#allocation2 + $0x1ef8] sm:$0xff]  }
 0x428   :  { %v15949_v4 = vadd.f32 %v21209_v62, %v24926_v16  ;;  %v21212_v10 = vadd.f32 %v21211_v9, %v21210_v2  ;;  %v21233_v11 = vpop.f32.mrb[91].mxu1  ;;  %21533 = vmatprep.subr.bf16.mxu1 %v23556_v18  ;;  %v23586_v9 = vld [vmem:[#allocation2 + $0x1ea8] sm:$0xff]   ;;  %v23594_v15 = vld [vmem:[#allocation2 + $0x1eb8] sm:$0xff]   ;;  %v263_v18 = vld [vmem:[%s25323_s0 + $0x500] sm:$0xff] }
 0x429   :  { %v21234_v13 = vadd.f32 %v21233_v11, %v21232_v5  ;;  %v23585_v5 = vld [vmem:[#allocation2 + $0x1e28] sm:$0xff]   ;;  %v23589_v11 = vld [vmem:[#allocation2 + $0x1e30] sm:$0xff]  }
 0x42a   :  { %v24944_v7 = vadd.f32 %v21231_v63, %v15949_v4  ;;  %v15952_v17 = vadd.f32 %v21212_v10, %v24929_v23  ;;  %21512 = vmatpush3.bf16.msra.mxu0 %v23557_v19  ;;  %v161_v23 = vld [vmem:[%s25323_s0 + $0x1d0] sm:$0xff] }
 0x42b   :  { %21534 = vmatpush3.bf16.msra.mxu1 %v23558_v20  ;;  %21513 = vmatprep.subr.bf16.mxu0 %v23559_v21  ;;  %v18537_v28 = vcombine.low %v161_v23, %v261_v26  ;;  %v18538_v29 = vcombine.high %v161_v23, %v261_v26  ;;  %v23588_v10 = vld [vmem:[#allocation2 + $0x1ef0] sm:$0xff]   ;;  %v164_v21 = vld [vmem:[%s25323_s0 + $0x1e8] sm:$0xff]  ;;  %v23595_v23 = vld [vmem:[#allocation2 + $0x1f40] sm:$0xff]  }
 0x42c   :  { %v24947_v16 = vadd.f32 %v21234_v13, %v15952_v17  ;;  %21535 = vmatprep.subr.bf16.mxu1 %v23560_v22  ;;  %v23591_v13 = vld [vmem:[#allocation2 + $0x1e78] sm:$0xff]   ;;  %v264_v22 = vld [vmem:[%s25323_s0 + $0x508] sm:$0xff]  ;;  %v23596_v26 = vld [vmem:[#allocation2 + $0x1fc0] sm:$0xff]  }
 0x42d   :  { %16520 = vmatprep.mubr.bf16.mxu0 %v18538_v29  ;;  %v23593_v17 = vld [vmem:[#allocation2 + $0x1e38] sm:$0xff]   ;;  %v23599_v29 = vld [vmem:[#allocation2 + $0x1f48] sm:$0xff]  }
 0x42e   :  { %21514 = vmatpush3.bf16.msra.mxu0 %v23561_v25  ;;  %v18543_v25 = vcombine.low %v164_v21, %v264_v22 }
 0x42f   :  { %21536 = vmatpush3.bf16.msra.mxu1 %v23562_v24  ;;  %21543 = vmatprep.subr.bf16.mxu0 %v23563_v32  ;;  %v18544_v24 = vcombine.high %v164_v21, %v264_v22  ;;  %v23603_v32 = vld [vmem:[#allocation2 + $0x1f50] sm:$0xff]   ;;  %v23631_v21 = vld [vmem:[#allocation2 + $0x2048] sm:$0xff]  }
 0x430   :  { %21565 = vmatprep.subr.bf16.mxu1 %v23564_v34  ;;  %v23604_v34 = vld [vmem:[#allocation2 + $0x1fd0] sm:$0xff]   ;;  %v23632_v22 = vld [vmem:[#allocation2 + $0x20c8] sm:$0xff]  }
 0x431   :  { %16521 = vmatmul.mubr.bf16.vlgmr.msra.gmra.mrb[116].mxu0 %v18537_v28  ;;  %v23598_v28 = vld [vmem:[#allocation2 + $0x1f80] sm:$0xff]  }
 0x432   :  { %16562 = vmatmul.mubr.bf16.vlgmr.msra.gmra.mrb[116].mxu1 %v18539_v31  ;;  %21544 = vmatpush3.bf16.msra.mxu0 %v23565_v35  ;;  %v23601_v31 = vld [vmem:[#allocation2 + $0x1f08] sm:$0xff]   ;;  %v23605_v35 = vld [vmem:[#allocation2 + $0x1f10] sm:$0xff]  }
 0x433   :  { %21566 = vmatpush3.bf16.msra.mxu1 %v23566_v36  ;;  %21545 = vmatprep.subr.bf16.mxu0 %v23567_v37  ;;  %v23606_v36 = vld [vmem:[#allocation2 + $0x1f90] sm:$0xff]   ;;  %v23607_v37 = vld [vmem:[#allocation2 + $0x1f58] sm:$0xff]  }
 0x434   :  { %21567 = vmatprep.subr.bf16.mxu1 %v23568_v38  ;;  %16643 = vmatprep.mubr.bf16.mxu1 %v18544_v24  ;;  %v23608_v38 = vld [vmem:[#allocation2 + $0x1fd8] sm:$0xff]   ;;  %v23634_v24 = vld [vmem:[#allocation2 + $0x2088] sm:$0xff]  }
 0x436   :  { %21546 = vmatpush3.bf16.msra.mxu0 %v23569_v39 }
 0x437   :  { %21568 = vmatpush3.bf16.msra.mxu1 %v23570_v41  ;;  %21547 = vmatprep.subr.bf16.mxu0 %v23571_v40  ;;  %v23609_v41 = vld [vmem:[#allocation2 + $0x1f18] sm:$0xff]  }
 0x438   :  { %21569 = vmatprep.subr.bf16.mxu1 %v23572_v42  ;;  %v23610_v42 = vld [vmem:[#allocation2 + $0x1f98] sm:$0xff]  }
 0x43a   :  { %21548 = vmatpush3.bf16.msra.mxu0 %v23573_v43 }
 0x43b   :  { %21570 = vmatpush3.bf16.msra.mxu1 %v23574_v44  ;;  %21549 = vmatprep.subr.bf16.mxu0 %v23575_v45  ;;  %v23611_v44 = vld [vmem:[#allocation2 + $0x1f60] sm:$0xff]  }
 0x43c   :  { %21571 = vmatprep.subr.bf16.mxu1 %v23576_v46 }
 0x43e   :  { %21550 = vmatpush3.bf16.msra.mxu0 %v23577_v48 }
 0x43f   :  { %21572 = vmatpush3.bf16.msra.mxu1 %v23578_v50  ;;  %21551 = vmatprep.subr.bf16.mxu0 %v23579_v52  ;;  %v23613_v50 = vld [vmem:[#allocation2 + $0x1f20] sm:$0xff]  }
 0x440   :  { %21573 = vmatprep.subr.bf16.mxu1 %v23580_v56 }
 0x442   :  { %21552 = vmatpush3.bf16.msra.mxu0 %v23581_v58 }
 0x443   :  { %21574 = vmatpush3.bf16.msra.mxu1 %v23582_v61  ;;  %21553 = vmatprep.subr.bf16.mxu0 %v23583_v1  ;;  %v23617_v61 = vld [vmem:[#allocation2 + $0x1f28] sm:$0xff]  }
 0x444   :  { %v21251_v49 = vpop.f32.mrb[92].mxu0  ;;  %21575 = vmatprep.subr.bf16.mxu1 %v23584_v3  ;;  %v23618_v1 = vld [vmem:[#allocation2 + $0x1fa8] sm:$0xff]   ;;  %v23621_v3 = vld [vmem:[#allocation2 + $0x1f30] sm:$0xff]  }
 0x445   :  { %v21273_v47 = vpop.f32.mrb[92].mxu1  ;;  %v21252_v51 = vpop.f32.mrb[93].mxu0 }
 0x446   :  { %v21253_v53 = vadd.f32 %v21252_v51, %v21251_v49  ;;  %v21274_v54 = vpop.f32.mrb[93].mxu1  ;;  %v21254_v55 = vpop.f32.mrb[94].mxu0  ;;  %21554 = vmatpush3.bf16.msra.mxu0 %v23585_v5  ;;  %v23612_v49 = vld [vmem:[#allocation2 + $0x1fe0] sm:$0xff]   ;;  %v23623_v5 = vld [vmem:[#allocation2 + $0x1f78] sm:$0xff]  }
 0x447   :  { %v21275_v57 = vadd.f32 %v21274_v54, %v21273_v47  ;;  %v21276_v60 = vpop.f32.mrb[94].mxu1  ;;  %v21255_v62 = vpop.f32.mrb[95].mxu0  ;;  %21576 = vmatpush3.bf16.msra.mxu1 %v23586_v9  ;;  %21555 = vmatprep.subr.bf16.mxu0 %v23587_v8  ;;  %v23625_v9 = vld [vmem:[#allocation2 + $0x1f38] sm:$0xff]   ;;  %v165_v8 = vld [vmem:[%s25323_s0 + $0x1f0] sm:$0xff] }
 0x448   :  { %v16031_v59 = vadd.f32 %v21253_v53, %v24944_v7  ;;  %v21256_v63 = vadd.f32 %v21255_v62, %v21254_v55  ;;  %v21277_v2 = vpop.f32.mrb[95].mxu1  ;;  %21577 = vmatprep.subr.bf16.mxu1 %v23588_v10  ;;  %v23614_v53 = vld [vmem:[#allocation2 + $0x1fa0] sm:$0xff]   ;;  %v265_v10 = vld [vmem:[%s25323_s0 + $0x510] sm:$0xff] }
 0x449   :  { %v21278_v4 = vadd.f32 %v21277_v2, %v21276_v60  ;;  %v23620_v2 = vld [vmem:[#allocation2 + $0x1ff0] sm:$0xff]  }
 0x44a   :  { %v24962_v0 = vadd.f32 %v21275_v57, %v16031_v59  ;;  %v16034_v6 = vadd.f32 %v21256_v63, %v24947_v16  ;;  %21556 = vmatpush3.bf16.msra.mxu0 %v23589_v11  ;;  %v163_v16 = vld [vmem:[%s25323_s0 + $0x1e0] sm:$0xff]  ;;  %v23615_v57 = vld [vmem:[#allocation2 + $0x1f68] sm:$0xff]   ;;  %v23619_v63 = vld [vmem:[#allocation2 + $0x1f70] sm:$0xff]  }
 0x44b   :  { %21578 = vmatpush3.bf16.msra.mxu1 %v23590_v12  ;;  %21557 = vmatprep.subr.bf16.mxu0 %v23591_v13  ;;  %v18541_v19 = vcombine.low %v163_v16, %v263_v18  ;;  %v18542_v20 = vcombine.high %v163_v16, %v263_v18  ;;  %v23616_v59 = vld [vmem:[#allocation2 + $0x1fe8] sm:$0xff]   ;;  %v166_v11 = vld [vmem:[%s25323_s0 + $0x1f8] sm:$0xff]  ;;  %v18545_v13 = vcombine.low %v165_v8, %v265_v10  ;;  %v23627_v16 = vld [vmem:[#allocation2 + $0x2040] sm:$0xff]  }
 0x44c   :  { %v24965_v7 = vadd.f32 %v21278_v4, %v16034_v6  ;;  %21579 = vmatprep.subr.bf16.mxu1 %v23592_v14  ;;  %v23622_v4 = vld [vmem:[#allocation2 + $0x1fb0] sm:$0xff]   ;;  %v23624_v6 = vld [vmem:[#allocation2 + $0x1ff8] sm:$0xff]   ;;  %v18546_v14 = vcombine.high %v165_v8, %v265_v10  ;;  %v23628_v18 = vld [vmem:[#allocation2 + $0x20c0] sm:$0xff]  }
 0x44d   :  { %16602 = vmatprep.mubr.bf16.mxu0 %v18542_v20  ;;  %v266_v12 = vld [vmem:[%s25323_s0 + $0x518] sm:$0xff]  ;;  %v23630_v20 = vld [vmem:[#allocation2 + $0x2080] sm:$0xff]  }
 0x44e   :  { %21558 = vmatpush3.bf16.msra.mxu0 %v23593_v17  ;;  %v18547_v17 = vcombine.low %v166_v11, %v266_v12  ;;  %v23659_v8 = vld [vmem:[#allocation2 + $0x2140] sm:$0xff]  }
 0x44f   :  { %21580 = vmatpush3.bf16.msra.mxu1 %v23594_v15  ;;  %21587 = vmatprep.subr.bf16.mxu0 %v23595_v23  ;;  %v18548_v15 = vcombine.high %v166_v11, %v266_v12  ;;  %v23635_v23 = vld [vmem:[#allocation2 + $0x2050] sm:$0xff]   ;;  %v23660_v10 = vld [vmem:[#allocation2 + $0x21c0] sm:$0xff]  }
 0x450   :  { %21609 = vmatprep.subr.bf16.mxu1 %v23596_v26  ;;  %v23636_v26 = vld [vmem:[#allocation2 + $0x20d0] sm:$0xff]   ;;  %v23661_v11 = vld [vmem:[#allocation2 + $0x2100] sm:$0xff]  }
 0x451   :  { %16603 = vmatmul.mubr.bf16.vlgmr.msra.gmra.mrb[120].mxu0 %v18541_v19  ;;  %v23629_v19 = vld [vmem:[#allocation2 + $0x2000] sm:$0xff]  }
 0x452   :  { %16644 = vmatmul.mubr.bf16.vlgmr.msra.gmra.mrb[120].mxu1 %v18543_v25  ;;  %21588 = vmatpush3.bf16.msra.mxu0 %v23597_v27  ;;  %v23633_v25 = vld [vmem:[#allocation2 + $0x2008] sm:$0xff]   ;;  %v23637_v27 = vld [vmem:[#allocation2 + $0x2010] sm:$0xff]   ;;  %v23662_v12 = vld [vmem:[#allocation2 + $0x2180] sm:$0xff]  }
 0x453   :  { %21610 = vmatpush3.bf16.msra.mxu1 %v23598_v28  ;;  %21589 = vmatprep.subr.bf16.mxu0 %v23599_v29  ;;  %v23638_v28 = vld [vmem:[#allocation2 + $0x2090] sm:$0xff]   ;;  %v23639_v29 = vld [vmem:[#allocation2 + $0x2058] sm:$0xff]  }
 0x454   :  { %21611 = vmatprep.subr.bf16.mxu1 %v23600_v30  ;;  %16684 = vmatprep.mubr.bf16.mxu0 %v18546_v14  ;;  %v23640_v30 = vld [vmem:[#allocation2 + $0x20d8] sm:$0xff]   ;;  %v23664_v14 = vld [vmem:[#allocation2 + $0x21c8] sm:$0xff]  }
 0x455   :  { %16725 = vmatprep.mubr.bf16.mxu1 %v18548_v15  ;;  %v23666_v15 = vld [vmem:[#allocation2 + $0x2188] sm:$0xff]  }
 0x456   :  { %21590 = vmatpush3.bf16.msra.mxu0 %v23601_v31  ;;  %v23641_v31 = vld [vmem:[#allocation2 + $0x2018] sm:$0xff]  }
 0x457   :  { %21612 = vmatpush3.bf16.msra.mxu1 %v23602_v33  ;;  %21591 = vmatprep.subr.bf16.mxu0 %v23603_v32  ;;  %v23642_v32 = vld [vmem:[#allocation2 + $0x2098] sm:$0xff]  }
 0x458   :  { %21613 = vmatprep.subr.bf16.mxu1 %v23604_v34 }
 0x45a   :  { %21592 = vmatpush3.bf16.msra.mxu0 %v23605_v35  ;;  %v23643_v35 = vld [vmem:[#allocation2 + $0x2060] sm:$0xff]  }
 0x45b   :  { %21614 = vmatpush3.bf16.msra.mxu1 %v23606_v36  ;;  %21593 = vmatprep.subr.bf16.mxu0 %v23607_v37  ;;  %v23644_v37 = vld [vmem:[#allocation2 + $0x20e0] sm:$0xff]  }
 0x45c   :  { %21615 = vmatprep.subr.bf16.mxu1 %v23608_v38 }
 0x45e   :  { %21594 = vmatpush3.bf16.msra.mxu0 %v23609_v41  ;;  %v23645_v41 = vld [vmem:[#allocation2 + $0x2020] sm:$0xff]  }
 0x45f   :  { %21616 = vmatpush3.bf16.msra.mxu1 %v23610_v42  ;;  %21595 = vmatprep.subr.bf16.mxu0 %v23611_v44 }
 0x460   :  { %21617 = vmatprep.subr.bf16.mxu1 %v23612_v49 }
 0x462   :  { %21596 = vmatpush3.bf16.msra.mxu0 %v23613_v50 }
 0x463   :  { %21618 = vmatpush3.bf16.msra.mxu1 %v23614_v53  ;;  %21597 = vmatprep.subr.bf16.mxu0 %v23615_v57 }
 0x464   :  { %v21295_v39 = vpop.f32.mrb[96].mxu0  ;;  %21619 = vmatprep.subr.bf16.mxu1 %v23616_v59  ;;  %v23653_v59 = vld [vmem:[#allocation2 + $0x2030] sm:$0xff]  }
 0x465   :  { %v21317_v40 = vpop.f32.mrb[96].mxu1  ;;  %v21296_v43 = vpop.f32.mrb[97].mxu0 }
 0x466   :  { %v21297_v45 = vadd.f32 %v21296_v43, %v21295_v39  ;;  %v21318_v46 = vpop.f32.mrb[97].mxu1  ;;  %v21298_v47 = vpop.f32.mrb[98].mxu0  ;;  %21598 = vmatpush3.bf16.msra.mxu0 %v23617_v61  ;;  %v23646_v43 = vld [vmem:[#allocation2 + $0x20a0] sm:$0xff]   ;;  %v23655_v61 = vld [vmem:[#allocation2 + $0x2078] sm:$0xff]  }
 0x467   :  { %v21319_v48 = vadd.f32 %v21318_v46, %v21317_v40  ;;  %v21320_v52 = vpop.f32.mrb[98].mxu1  ;;  %v21299_v54 = vpop.f32.mrb[99].mxu0  ;;  %21620 = vmatpush3.bf16.msra.mxu1 %v23618_v1  ;;  %21599 = vmatprep.subr.bf16.mxu0 %v23619_v63  ;;  %v23647_v46 = vld [vmem:[#allocation2 + $0x2068] sm:$0xff]   ;;  %v23657_v1 = vld [vmem:[#allocation2 + $0x2038] sm:$0xff]  }
 0x468   :  { %v16113_v51 = vadd.f32 %v21297_v45, %v24962_v0  ;;  %v21300_v55 = vadd.f32 %v21299_v54, %v21298_v47  ;;  %v21321_v58 = vpop.f32.mrb[99].mxu1  ;;  %21621 = vmatprep.subr.bf16.mxu1 %v23620_v2  ;;  %v23648_v47 = vld [vmem:[#allocation2 + $0x20e8] sm:$0xff]   ;;  %v23658_v63 = vld [vmem:[#allocation2 + $0x20b8] sm:$0xff]   ;;  %v267_v2 = vld [vmem:[%s25323_s0 + $0x520] sm:$0xff] }
 0x469   :  { %v21322_v60 = vadd.f32 %v21321_v58, %v21320_v52  ;;  %v23649_v52 = vld [vmem:[#allocation2 + $0x2028] sm:$0xff]   ;;  %v23652_v58 = vld [vmem:[#allocation2 + $0x20f0] sm:$0xff]  }
 0x46a   :  { %v24980_v56 = vadd.f32 %v21319_v48, %v16113_v51  ;;  %v16116_v62 = vadd.f32 %v21300_v55, %v24965_v7  ;;  %21600 = vmatpush3.bf16.msra.mxu0 %v23621_v3  ;;  %v23626_v7 = vld [vmem:[#allocation2 + $0x1fb8] sm:$0xff]   ;;  %v23650_v54 = vld [vmem:[#allocation2 + $0x20a8] sm:$0xff]   ;;  %v23651_v55 = vld [vmem:[#allocation2 + $0x2070] sm:$0xff]  }
 0x46b   :  { %21622 = vmatpush3.bf16.msra.mxu1 %v23622_v4  ;;  %21601 = vmatprep.subr.bf16.mxu0 %v23623_v5  ;;  %v168_v3 = vld [vmem:[%s25323_s0 + $0x208] sm:$0xff] }
 0x46c   :  { %v24983_v0 = vadd.f32 %v21322_v60, %v16116_v62  ;;  %21623 = vmatprep.subr.bf16.mxu1 %v23624_v6  ;;  %v23654_v60 = vld [vmem:[#allocation2 + $0x20b0] sm:$0xff]   ;;  %v23656_v62 = vld [vmem:[#allocation2 + $0x20f8] sm:$0xff]   ;;  %v268_v6 = vld [vmem:[%s25323_s0 + $0x528] sm:$0xff] }
 0x46e   :  { %21602 = vmatpush3.bf16.msra.mxu0 %v23625_v9  ;;  %v18551_v9 = vcombine.low %v168_v3, %v268_v6 }
 0x46f   :  { %21624 = vmatpush3.bf16.msra.mxu1 %v23626_v7  ;;  %21631 = vmatprep.subr.bf16.mxu0 %v23627_v16  ;;  %v18552_v7 = vcombine.high %v168_v3, %v268_v6  ;;  %v23667_v16 = vld [vmem:[#allocation2 + $0x2150] sm:$0xff]   ;;  %v23693_v3 = vld [vmem:[#allocation2 + $0x2200] sm:$0xff]   ;;  %v23696_v6 = vld [vmem:[#allocation2 + $0x22c8] sm:$0xff]  }
 0x470   :  { %21653 = vmatprep.subr.bf16.mxu1 %v23628_v18  ;;  %v23668_v18 = vld [vmem:[#allocation2 + $0x21d0] sm:$0xff]  }
 0x471   :  { %16685 = vmatmul.mubr.bf16.vlgmr.msra.gmra.mrb[124].mxu0 %v18545_v13  ;;  %v23663_v13 = vld [vmem:[#allocation2 + $0x2148] sm:$0xff]  }
 0x472   :  { %16726 = vmatmul.mubr.bf16.vlgmr.msra.gmra.mrb[124].mxu1 %v18547_v17  ;;  %21632 = vmatpush3.bf16.msra.mxu0 %v23629_v19  ;;  %v23665_v17 = vld [vmem:[#allocation2 + $0x2108] sm:$0xff]   ;;  %v23669_v19 = vld [vmem:[#allocation2 + $0x2110] sm:$0xff]  }
 0x473   :  { %21654 = vmatpush3.bf16.msra.mxu1 %v23630_v20  ;;  %21633 = vmatprep.subr.bf16.mxu0 %v23631_v21  ;;  %v23670_v20 = vld [vmem:[#allocation2 + $0x2190] sm:$0xff]   ;;  %v23671_v21 = vld [vmem:[#allocation2 + $0x2158] sm:$0xff]  }
 0x474   :  { %21655 = vmatprep.subr.bf16.mxu1 %v23632_v22  ;;  %16807 = vmatprep.mubr.bf16.mxu1 %v18552_v7  ;;  %v23672_v22 = vld [vmem:[#allocation2 + $0x21d8] sm:$0xff]   ;;  %v23698_v7 = vld [vmem:[#allocation2 + $0x2288] sm:$0xff]  }
 0x476   :  { %21634 = vmatpush3.bf16.msra.mxu0 %v23633_v25 }
 0x477   :  { %21656 = vmatpush3.bf16.msra.mxu1 %v23634_v24  ;;  %21635 = vmatprep.subr.bf16.mxu0 %v23635_v23  ;;  %v23673_v24 = vld [vmem:[#allocation2 + $0x2118] sm:$0xff]  }
 0x478   :  { %21657 = vmatprep.subr.bf16.mxu1 %v23636_v26  ;;  %v23674_v26 = vld [vmem:[#allocation2 + $0x2198] sm:$0xff]  }
 0x47a   :  { %21636 = vmatpush3.bf16.msra.mxu0 %v23637_v27 }
 0x47b   :  { %21658 = vmatpush3.bf16.msra.mxu1 %v23638_v28  ;;  %21637 = vmatprep.subr.bf16.mxu0 %v23639_v29  ;;  %v23675_v28 = vld [vmem:[#allocation2 + $0x2160] sm:$0xff]  }
 0x47c   :  { %21659 = vmatprep.subr.bf16.mxu1 %v23640_v30 }
 0x47e   :  { %21638 = vmatpush3.bf16.msra.mxu0 %v23641_v31  ;;  %v23676_v31 = vld [vmem:[#allocation2 + $0x21e0] sm:$0xff]  }
 0x47f   :  { %21660 = vmatpush3.bf16.msra.mxu1 %v23642_v32  ;;  %21639 = vmatprep.subr.bf16.mxu0 %v23643_v35 }
 0x480   :  { %21661 = vmatprep.subr.bf16.mxu1 %v23644_v37  ;;  %v23678_v37 = vld [vmem:[#allocation2 + $0x21a0] sm:$0xff]  }
 0x482   :  { %21640 = vmatpush3.bf16.msra.mxu0 %v23645_v41  ;;  %v23679_v41 = vld [vmem:[#allocation2 + $0x2168] sm:$0xff]  }
 0x483   :  { %21662 = vmatpush3.bf16.msra.mxu1 %v23646_v43  ;;  %21641 = vmatprep.subr.bf16.mxu0 %v23647_v46  ;;  %v23680_v43 = vld [vmem:[#allocation2 + $0x21e8] sm:$0xff]  }
 0x484   :  { %v21339_v33 = vpop.f32.mrb[100].mxu0  ;;  %21663 = vmatprep.subr.bf16.mxu1 %v23648_v47  ;;  %v23683_v47 = vld [vmem:[#allocation2 + $0x2170] sm:$0xff]  }
 0x485   :  { %v21361_v34 = vpop.f32.mrb[100].mxu1  ;;  %v21340_v36 = vpop.f32.mrb[101].mxu0 }
 0x486   :  { %v21341_v38 = vadd.f32 %v21340_v36, %v21339_v33  ;;  %v21362_v39 = vpop.f32.mrb[101].mxu1  ;;  %v21342_v42 = vpop.f32.mrb[102].mxu0  ;;  %21642 = vmatpush3.bf16.msra.mxu0 %v23649_v52  ;;  %v23686_v52 = vld [vmem:[#allocation2 + $0x21b0] sm:$0xff]  }
 0x487   :  { %v21363_v40 = vadd.f32 %v21362_v39, %v21361_v34  ;;  %v21364_v45 = vpop.f32.mrb[102].mxu1  ;;  %v21343_v49 = vpop.f32.mrb[103].mxu0  ;;  %21664 = vmatpush3.bf16.msra.mxu1 %v23650_v54  ;;  %21643 = vmatprep.subr.bf16.mxu0 %v23651_v55  ;;  %v23677_v34 = vld [vmem:[#allocation2 + $0x2120] sm:$0xff]   ;;  %v23688_v54 = vld [vmem:[#allocation2 + $0x21f8] sm:$0xff]  }
 0x488   :  { %v16195_v44 = vadd.f32 %v21341_v38, %v24980_v56  ;;  %v21344_v50 = vadd.f32 %v21343_v49, %v21342_v42  ;;  %v21365_v51 = vpop.f32.mrb[103].mxu1  ;;  %21665 = vmatprep.subr.bf16.mxu1 %v23652_v58  ;;  %v23682_v49 = vld [vmem:[#allocation2 + $0x21a8] sm:$0xff]   ;;  %v23690_v55 = vld [vmem:[#allocation2 + $0x21b8] sm:$0xff]   ;;  %v269_v58 = vld [vmem:[%s25323_s0 + $0x530] sm:$0xff] }
 0x489   :  { %v21366_v53 = vadd.f32 %v21365_v51, %v21364_v45  ;;  %v23681_v45 = vld [vmem:[#allocation2 + $0x2128] sm:$0xff]   ;;  %v23685_v51 = vld [vmem:[#allocation2 + $0x2130] sm:$0xff]  }
 0x48a   :  { %v24998_v48 = vadd.f32 %v21363_v40, %v16195_v44  ;;  %v16198_v57 = vadd.f32 %v21344_v50, %v24983_v0  ;;  %21644 = vmatpush3.bf16.msra.mxu0 %v23653_v59  ;;  %v167_v0 = vld [vmem:[%s25323_s0 + $0x200] sm:$0xff]  ;;  %v23684_v50 = vld [vmem:[#allocation2 + $0x21f0] sm:$0xff]  }
 0x48b   :  { %21666 = vmatpush3.bf16.msra.mxu1 %v23654_v60  ;;  %21645 = vmatprep.subr.bf16.mxu0 %v23655_v61  ;;  %v18549_v4 = vcombine.low %v167_v0, %v267_v2  ;;  %v18550_v5 = vcombine.high %v167_v0, %v267_v2  ;;  %v170_v61 = vld [vmem:[%s25323_s0 + $0x218] sm:$0xff]  ;;  %v23691_v0 = vld [vmem:[#allocation2 + $0x2240] sm:$0xff]  }
 0x48c   :  { %v25001_v56 = vadd.f32 %v21366_v53, %v16198_v57  ;;  %21667 = vmatprep.subr.bf16.mxu1 %v23656_v62  ;;  %v23687_v53 = vld [vmem:[#allocation2 + $0x2178] sm:$0xff]   ;;  %v23692_v2 = vld [vmem:[#allocation2 + $0x22c0] sm:$0xff]  }
 0x48d   :  { %16766 = vmatprep.mubr.bf16.mxu0 %v18550_v5  ;;  %v23689_v57 = vld [vmem:[#allocation2 + $0x2138] sm:$0xff]   ;;  %v23695_v5 = vld [vmem:[#allocation2 + $0x2248] sm:$0xff]  }
 0x48e   :  { %21646 = vmatpush3.bf16.msra.mxu0 %v23657_v1  ;;  %v270_v62 = vld [vmem:[%s25323_s0 + $0x538] sm:$0xff] }
 0x48f   :  { %21668 = vmatpush3.bf16.msra.mxu1 %v23658_v63  ;;  %21675 = vmatprep.subr.bf16.mxu0 %v23659_v8  ;;  %v18555_v1 = vcombine.low %v170_v61, %v270_v62  ;;  %v18556_v63 = vcombine.high %v170_v61, %v270_v62  ;;  %v23699_v8 = vld [vmem:[#allocation2 + $0x2250] sm:$0xff]   ;;  %v23727_v61 = vld [vmem:[#allocation2 + $0x2348] sm:$0xff]  }
 0x490   :  { %21697 = vmatprep.subr.bf16.mxu1 %v23660_v10  ;;  %v23700_v10 = vld [vmem:[#allocation2 + $0x22d0] sm:$0xff]   ;;  %v23728_v62 = vld [vmem:[#allocation2 + $0x23c8] sm:$0xff]  }
 0x491   :  { %16767 = vmatmul.mubr.bf16.vlgmr.msra.gmra.mrb[128].mxu0 %v18549_v4  ;;  %v23694_v4 = vld [vmem:[#allocation2 + $0x2280] sm:$0xff]  }
 0x492   :  { %16808 = vmatmul.mubr.bf16.vlgmr.msra.gmra.mrb[128].mxu1 %v18551_v9  ;;  %21676 = vmatpush3.bf16.msra.mxu0 %v23661_v11  ;;  %v23697_v9 = vld [vmem:[#allocation2 + $0x2208] sm:$0xff]   ;;  %v23701_v11 = vld [vmem:[#allocation2 + $0x2210] sm:$0xff]  }
 0x493   :  { %21698 = vmatpush3.bf16.msra.mxu1 %v23662_v12  ;;  %21677 = vmatprep.subr.bf16.mxu0 %v23663_v13  ;;  %v23702_v12 = vld [vmem:[#allocation2 + $0x2290] sm:$0xff]   ;;  %v23703_v13 = vld [vmem:[#allocation2 + $0x2258] sm:$0xff]  }
 0x494   :  { %21699 = vmatprep.subr.bf16.mxu1 %v23664_v14  ;;  %16889 = vmatprep.mubr.bf16.mxu1 %v18556_v63  ;;  %v23704_v14 = vld [vmem:[#allocation2 + $0x22d8] sm:$0xff]   ;;  %v23730_v63 = vld [vmem:[#allocation2 + $0x2388] sm:$0xff]  }
 0x496   :  { %21678 = vmatpush3.bf16.msra.mxu0 %v23665_v17 }
 0x497   :  { %21700 = vmatpush3.bf16.msra.mxu1 %v23666_v15  ;;  %21679 = vmatprep.subr.bf16.mxu0 %v23667_v16  ;;  %v23705_v15 = vld [vmem:[#allocation2 + $0x2218] sm:$0xff]  }
 0x498   :  { %21701 = vmatprep.subr.bf16.mxu1 %v23668_v18  ;;  %v23706_v18 = vld [vmem:[#allocation2 + $0x2298] sm:$0xff]  }
 0x49a   :  { %21680 = vmatpush3.bf16.msra.mxu0 %v23669_v19 }
 0x49b   :  { %21702 = vmatpush3.bf16.msra.mxu1 %v23670_v20  ;;  %21681 = vmatprep.subr.bf16.mxu0 %v23671_v21  ;;  %v23707_v20 = vld [vmem:[#allocation2 + $0x2260] sm:$0xff]  }
 0x49c   :  { %21703 = vmatprep.subr.bf16.mxu1 %v23672_v22 }
 0x49e   :  { %21682 = vmatpush3.bf16.msra.mxu0 %v23673_v24 }
 0x49f   :  { %21704 = vmatpush3.bf16.msra.mxu1 %v23674_v26  ;;  %21683 = vmatprep.subr.bf16.mxu0 %v23675_v28  ;;  %v23709_v26 = vld [vmem:[#allocation2 + $0x2220] sm:$0xff]  }
 0x4a0   :  { %21705 = vmatprep.subr.bf16.mxu1 %v23676_v31 }
 0x4a2   :  { %21684 = vmatpush3.bf16.msra.mxu0 %v23677_v34 }
 0x4a3   :  { %21706 = vmatpush3.bf16.msra.mxu1 %v23678_v37  ;;  %21685 = vmatprep.subr.bf16.mxu0 %v23679_v41  ;;  %v23713_v37 = vld [vmem:[#allocation2 + $0x2228] sm:$0xff]  }
 0x4a4   :  { %v21383_v25 = vpop.f32.mrb[104].mxu0  ;;  %21707 = vmatprep.subr.bf16.mxu1 %v23680_v43  ;;  %v23714_v41 = vld [vmem:[#allocation2 + $0x22a8] sm:$0xff]   ;;  %v23717_v43 = vld [vmem:[#allocation2 + $0x2230] sm:$0xff]  }
 0x4a5   :  { %v21405_v23 = vpop.f32.mrb[104].mxu1  ;;  %v21384_v27 = vpop.f32.mrb[105].mxu0 }
 0x4a6   :  { %v21385_v29 = vadd.f32 %v21384_v27, %v21383_v25  ;;  %v21406_v30 = vpop.f32.mrb[105].mxu1  ;;  %v21386_v32 = vpop.f32.mrb[106].mxu0  ;;  %21686 = vmatpush3.bf16.msra.mxu0 %v23681_v45  ;;  %v23708_v25 = vld [vmem:[#allocation2 + $0x22e0] sm:$0xff]   ;;  %v23719_v45 = vld [vmem:[#allocation2 + $0x2278] sm:$0xff]  }
 0x4a7   :  { %v21407_v33 = vadd.f32 %v21406_v30, %v21405_v23  ;;  %v21408_v36 = vpop.f32.mrb[106].mxu1  ;;  %v21387_v38 = vpop.f32.mrb[107].mxu0  ;;  %21708 = vmatpush3.bf16.msra.mxu1 %v23682_v49  ;;  %21687 = vmatprep.subr.bf16.mxu0 %v23683_v47  ;;  %v23721_v49 = vld [vmem:[#allocation2 + $0x2238] sm:$0xff]   ;;  %v171_v47 = vld [vmem:[%s25323_s0 + $0x220] sm:$0xff] }
 0x4a8   :  { %v16277_v35 = vadd.f32 %v21385_v29, %v24998_v48  ;;  %v21388_v40 = vadd.f32 %v21387_v38, %v21386_v32  ;;  %v21409_v42 = vpop.f32.mrb[107].mxu1  ;;  %21709 = vmatprep.subr.bf16.mxu1 %v23684_v50  ;;  %v23710_v29 = vld [vmem:[#allocation2 + $0x22a0] sm:$0xff]  }
 0x4a9   :  { %v21410_v44 = vadd.f32 %v21409_v42, %v21408_v36  ;;  %v23716_v42 = vld [vmem:[#allocation2 + $0x22f0] sm:$0xff]   ;;  %v271_v50 = vld [vmem:[%s25323_s0 + $0x540] sm:$0xff] }
 0x4aa   :  { %v25016_v39 = vadd.f32 %v21407_v33, %v16277_v35  ;;  %v16280_v46 = vadd.f32 %v21388_v40, %v25001_v56  ;;  %21688 = vmatpush3.bf16.msra.mxu0 %v23685_v51  ;;  %v169_v56 = vld [vmem:[%s25323_s0 + $0x210] sm:$0xff]  ;;  %v23711_v33 = vld [vmem:[#allocation2 + $0x2268] sm:$0xff]  }
 0x4ab   :  { %21710 = vmatpush3.bf16.msra.mxu1 %v23686_v52  ;;  %21689 = vmatprep.subr.bf16.mxu0 %v23687_v53  ;;  %v18553_v59 = vcombine.low %v169_v56, %v269_v58  ;;  %v18554_v60 = vcombine.high %v169_v56, %v269_v58  ;;  %v23712_v35 = vld [vmem:[#allocation2 + $0x22e8] sm:$0xff]   ;;  %v23715_v40 = vld [vmem:[#allocation2 + $0x2270] sm:$0xff]   ;;  %v18557_v53 = vcombine.low %v171_v47, %v271_v50  ;;  %v23723_v56 = vld [vmem:[#allocation2 + $0x2340] sm:$0xff]  }
 0x4ac   :  { %v25019_v48 = vadd.f32 %v21410_v44, %v16280_v46  ;;  %21711 = vmatprep.subr.bf16.mxu1 %v23688_v54  ;;  %v23718_v44 = vld [vmem:[#allocation2 + $0x22b0] sm:$0xff]   ;;  %v23720_v46 = vld [vmem:[#allocation2 + $0x22f8] sm:$0xff]   ;;  %v172_v51 = vld [vmem:[%s25323_s0 + $0x228] sm:$0xff]  ;;  %v18558_v54 = vcombine.high %v171_v47, %v271_v50 }
 0x4ad   :  { %16848 = vmatprep.mubr.bf16.mxu0 %v18554_v60  ;;  %v272_v52 = vld [vmem:[%s25323_s0 + $0x548] sm:$0xff]  ;;  %v23724_v58 = vld [vmem:[#allocation2 + $0x23c0] sm:$0xff]  }
 0x4ae   :  { %21690 = vmatpush3.bf16.msra.mxu0 %v23689_v57  ;;  %v18559_v57 = vcombine.low %v172_v51, %v272_v52  ;;  %v23726_v60 = vld [vmem:[#allocation2 + $0x2380] sm:$0xff]  }
 0x4af   :  { %21712 = vmatpush3.bf16.msra.mxu1 %v23690_v55  ;;  %21719 = vmatprep.subr.bf16.mxu0 %v23691_v0  ;;  %v18560_v55 = vcombine.high %v172_v51, %v272_v52  ;;  %v23731_v0 = vld [vmem:[#allocation2 + $0x2350] sm:$0xff]   ;;  %v23755_v47 = vld [vmem:[#allocation2 + $0x2440] sm:$0xff]  }
 0x4b0   :  { %21741 = vmatprep.subr.bf16.mxu1 %v23692_v2  ;;  %v23732_v2 = vld [vmem:[#allocation2 + $0x23d0] sm:$0xff]   ;;  %v23756_v50 = vld [vmem:[#allocation2 + $0x24c0] sm:$0xff]  }
 0x4b1   :  { %16849 = vmatmul.mubr.bf16.vlgmr.msra.gmra.mrb[132].mxu0 %v18553_v59  ;;  %v23725_v59 = vld [vmem:[#allocation2 + $0x2300] sm:$0xff]  }
 0x4b2   :  { %16890 = vmatmul.mubr.bf16.vlgmr.msra.gmra.mrb[132].mxu1 %v18555_v1  ;;  %21720 = vmatpush3.bf16.msra.mxu0 %v23693_v3  ;;  %v23729_v1 = vld [vmem:[#allocation2 + $0x2308] sm:$0xff]   ;;  %v23733_v3 = vld [vmem:[#allocation2 + $0x2310] sm:$0xff]   ;;  %v23757_v51 = vld [vmem:[#allocation2 + $0x2400] sm:$0xff]  }
 0x4b3   :  { %21742 = vmatpush3.bf16.msra.mxu1 %v23694_v4  ;;  %21721 = vmatprep.subr.bf16.mxu0 %v23695_v5  ;;  %v23734_v4 = vld [vmem:[#allocation2 + $0x2390] sm:$0xff]   ;;  %v23735_v5 = vld [vmem:[#allocation2 + $0x2358] sm:$0xff]   ;;  %v23758_v52 = vld [vmem:[#allocation2 + $0x2480] sm:$0xff]  }
 0x4b4   :  { %21743 = vmatprep.subr.bf16.mxu1 %v23696_v6  ;;  %16930 = vmatprep.mubr.bf16.mxu0 %v18558_v54  ;;  %v23736_v6 = vld [vmem:[#allocation2 + $0x23d8] sm:$0xff]   ;;  %v23760_v54 = vld [vmem:[#allocation2 + $0x24c8] sm:$0xff]  }
 0x4b5   :  { %16971 = vmatprep.mubr.bf16.mxu1 %v18560_v55  ;;  %v23762_v55 = vld [vmem:[#allocation2 + $0x2488] sm:$0xff]  }
 0x4b6   :  { %21722 = vmatpush3.bf16.msra.mxu0 %v23697_v9  ;;  %v23737_v9 = vld [vmem:[#allocation2 + $0x2318] sm:$0xff]  }
 0x4b7   :  { %21744 = vmatpush3.bf16.msra.mxu1 %v23698_v7  ;;  %21723 = vmatprep.subr.bf16.mxu0 %v23699_v8  ;;  %v23738_v8 = vld [vmem:[#allocation2 + $0x2398] sm:$0xff]  }
 0x4b8   :  { %21745 = vmatprep.subr.bf16.mxu1 %v23700_v10 }
 0x4ba   :  { %21724 = vmatpush3.bf16.msra.mxu0 %v23701_v11  ;;  %v23739_v11 = vld [vmem:[#allocation2 + $0x2360] sm:$0xff]  }
 0x4bb   :  { %21746 = vmatpush3.bf16.msra.mxu1 %v23702_v12  ;;  %21725 = vmatprep.subr.bf16.mxu0 %v23703_v13  ;;  %v23740_v13 = vld [vmem:[#allocation2 + $0x23e0] sm:$0xff]  }
 0x4bc   :  { %21747 = vmatprep.subr.bf16.mxu1 %v23704_v14 }
 0x4be   :  { %21726 = vmatpush3.bf16.msra.mxu0 %v23705_v15  ;;  %v23741_v15 = vld [vmem:[#allocation2 + $0x2320] sm:$0xff]  }
 0x4bf   :  { %21748 = vmatpush3.bf16.msra.mxu1 %v23706_v18  ;;  %21727 = vmatprep.subr.bf16.mxu0 %v23707_v20 }
 0x4c0   :  { %21749 = vmatprep.subr.bf16.mxu1 %v23708_v25 }
 0x4c2   :  { %21728 = vmatpush3.bf16.msra.mxu0 %v23709_v26 }
 0x4c3   :  { %21750 = vmatpush3.bf16.msra.mxu1 %v23710_v29  ;;  %21729 = vmatprep.subr.bf16.mxu0 %v23711_v33 }
 0x4c4   :  { %v21427_v17 = vpop.f32.mrb[108].mxu0  ;;  %21751 = vmatprep.subr.bf16.mxu1 %v23712_v35  ;;  %v23749_v35 = vld [vmem:[#allocation2 + $0x2330] sm:$0xff]  }
 0x4c5   :  { %v21449_v16 = vpop.f32.mrb[108].mxu1  ;;  %v21428_v19 = vpop.f32.mrb[109].mxu0 }
 0x4c6   :  { %v21429_v21 = vadd.f32 %v21428_v19, %v21427_v17  ;;  %v21450_v22 = vpop.f32.mrb[109].mxu1  ;;  %v21430_v23 = vpop.f32.mrb[110].mxu0  ;;  %21730 = vmatpush3.bf16.msra.mxu0 %v23713_v37  ;;  %v23742_v19 = vld [vmem:[#allocation2 + $0x23a0] sm:$0xff]   ;;  %v23751_v37 = vld [vmem:[#allocation2 + $0x2378] sm:$0xff]  }
 0x4c7   :  { %v21451_v24 = vadd.f32 %v21450_v22, %v21449_v16  ;;  %v21452_v28 = vpop.f32.mrb[110].mxu1  ;;  %v21431_v30 = vpop.f32.mrb[111].mxu0  ;;  %21752 = vmatpush3.bf16.msra.mxu1 %v23714_v41  ;;  %21731 = vmatprep.subr.bf16.mxu0 %v23715_v40  ;;  %v23743_v22 = vld [vmem:[#allocation2 + $0x2368] sm:$0xff]   ;;  %v23753_v41 = vld [vmem:[#allocation2 + $0x2338] sm:$0xff]  }
 0x4c8   :  { %v16359_v27 = vadd.f32 %v21429_v21, %v25016_v39  ;;  %v21432_v32 = vadd.f32 %v21431_v30, %v21430_v23  ;;  %v21453_v34 = vpop.f32.mrb[111].mxu1  ;;  %21753 = vmatprep.subr.bf16.mxu1 %v23716_v42  ;;  %v23744_v23 = vld [vmem:[#allocation2 + $0x23e8] sm:$0xff]   ;;  %v23754_v40 = vld [vmem:[#allocation2 + $0x23b8] sm:$0xff]   ;;  %v273_v42 = vld [vmem:[%s25323_s0 + $0x550] sm:$0xff] }
 0x4c9   :  { %v21454_v36 = vadd.f32 %v21453_v34, %v21452_v28  ;;  %v23745_v28 = vld [vmem:[#allocation2 + $0x2328] sm:$0xff]   ;;  %v23748_v34 = vld [vmem:[#allocation2 + $0x23f0] sm:$0xff]  }
 0x4ca   :  { %v25034_v31 = vadd.f32 %v21451_v24, %v16359_v27  ;;  %v16362_v38 = vadd.f32 %v21432_v32, %v25019_v48  ;;  %21732 = vmatpush3.bf16.msra.mxu0 %v23717_v43  ;;  %v23722_v48 = vld [vmem:[#allocation2 + $0x22b8] sm:$0xff]   ;;  %v23746_v30 = vld [vmem:[#allocation2 + $0x23a8] sm:$0xff]   ;;  %v23747_v32 = vld [vmem:[#allocation2 + $0x2370] sm:$0xff]  }
 0x4cb   :  { %21754 = vmatpush3.bf16.msra.mxu1 %v23718_v44  ;;  %21733 = vmatprep.subr.bf16.mxu0 %v23719_v45  ;;  %v174_v43 = vld [vmem:[%s25323_s0 + $0x238] sm:$0xff] }
 0x4cc   :  { %v25037_v39 = vadd.f32 %v21454_v36, %v16362_v38  ;;  %21755 = vmatprep.subr.bf16.mxu1 %v23720_v46  ;;  %v23750_v36 = vld [vmem:[#allocation2 + $0x23b0] sm:$0xff]   ;;  %v23752_v38 = vld [vmem:[#allocation2 + $0x23f8] sm:$0xff]  }
 0x4cd   :  { %v274_v46 = vld [vmem:[%s25323_s0 + $0x558] sm:$0xff] }
 0x4ce   :  { %21734 = vmatpush3.bf16.msra.mxu0 %v23721_v49  ;;  %v18563_v49 = vcombine.low %v174_v43, %v274_v46 }
 0x4cf   :  { %21756 = vmatpush3.bf16.msra.mxu1 %v23722_v48  ;;  %21763 = vmatprep.subr.bf16.mxu0 %v23723_v56  ;;  %v18564_v48 = vcombine.high %v174_v43, %v274_v46  ;;  %v23763_v56 = vld [vmem:[#allocation2 + $0x2450] sm:$0xff]   ;;  %v23789_v43 = vld [vmem:[#allocation2 + $0x2500] sm:$0xff]   ;;  %v23792_v46 = vld [vmem:[#allocation2 + $0x25c8] sm:$0xff]  }
 0x4d0   :  { %21785 = vmatprep.subr.bf16.mxu1 %v23724_v58  ;;  %v23764_v58 = vld [vmem:[#allocation2 + $0x24d0] sm:$0xff]  }
 0x4d1   :  { %16931 = vmatmul.mubr.bf16.vlgmr.msra.gmra.mrb[136].mxu0 %v18557_v53  ;;  %v23759_v53 = vld [vmem:[#allocation2 + $0x2448] sm:$0xff]  }
 0x4d2   :  { %16972 = vmatmul.mubr.bf16.vlgmr.msra.gmra.mrb[136].mxu1 %v18559_v57  ;;  %21764 = vmatpush3.bf16.msra.mxu0 %v23725_v59  ;;  %v23761_v57 = vld [vmem:[#allocation2 + $0x2408] sm:$0xff]   ;;  %v23765_v59 = vld [vmem:[#allocation2 + $0x2410] sm:$0xff]  }
 0x4d3   :  { %21786 = vmatpush3.bf16.msra.mxu1 %v23726_v60  ;;  %21765 = vmatprep.subr.bf16.mxu0 %v23727_v61  ;;  %v23766_v60 = vld [vmem:[#allocation2 + $0x2490] sm:$0xff]   ;;  %v23767_v61 = vld [vmem:[#allocation2 + $0x2458] sm:$0xff]  }
 0x4d4   :  { %21787 = vmatprep.subr.bf16.mxu1 %v23728_v62  ;;  %17053 = vmatprep.mubr.bf16.mxu1 %v18564_v48  ;;  %v23768_v62 = vld [vmem:[#allocation2 + $0x24d8] sm:$0xff]   ;;  %v23794_v48 = vld [vmem:[#allocation2 + $0x2588] sm:$0xff]  }
 0x4d6   :  { %21766 = vmatpush3.bf16.msra.mxu0 %v23729_v1 }
 0x4d7   :  { %21788 = vmatpush3.bf16.msra.mxu1 %v23730_v63  ;;  %21767 = vmatprep.subr.bf16.mxu0 %v23731_v0  ;;  %v23769_v63 = vld [vmem:[#allocation2 + $0x2418] sm:$0xff]  }
 0x4d8   :  { %21789 = vmatprep.subr.bf16.mxu1 %v23732_v2  ;;  %v23770_v2 = vld [vmem:[#allocation2 + $0x2498] sm:$0xff]  }
 0x4da   :  { %21768 = vmatpush3.bf16.msra.mxu0 %v23733_v3 }
 0x4db   :  { %21790 = vmatpush3.bf16.msra.mxu1 %v23734_v4  ;;  %21769 = vmatprep.subr.bf16.mxu0 %v23735_v5  ;;  %v23771_v4 = vld [vmem:[#allocation2 + $0x2460] sm:$0xff]  }
 0x4dc   :  { %21791 = vmatprep.subr.bf16.mxu1 %v23736_v6 }
 0x4de   :  { %21770 = vmatpush3.bf16.msra.mxu0 %v23737_v9  ;;  %v23772_v9 = vld [vmem:[#allocation2 + $0x24e0] sm:$0xff]  }
 0x4df   :  { %21792 = vmatpush3.bf16.msra.mxu1 %v23738_v8  ;;  %21771 = vmatprep.subr.bf16.mxu0 %v23739_v11 }
 0x4e0   :  { %21793 = vmatprep.subr.bf16.mxu1 %v23740_v13  ;;  %v23774_v13 = vld [vmem:[#allocation2 + $0x24a0] sm:$0xff]  }
 0x4e2   :  { %21772 = vmatpush3.bf16.msra.mxu0 %v23741_v15  ;;  %v23775_v15 = vld [vmem:[#allocation2 + $0x2468] sm:$0xff]  }
 0x4e3   :  { %21794 = vmatpush3.bf16.msra.mxu1 %v23742_v19  ;;  %21773 = vmatprep.subr.bf16.mxu0 %v23743_v22  ;;  %v23776_v19 = vld [vmem:[#allocation2 + $0x24e8] sm:$0xff]  }
 0x4e4   :  { %v21471_v7 = vpop.f32.mrb[112].mxu0  ;;  %21795 = vmatprep.subr.bf16.mxu1 %v23744_v23  ;;  %v23779_v23 = vld [vmem:[#allocation2 + $0x2470] sm:$0xff]  }
 0x4e5   :  { %v21493_v10 = vpop.f32.mrb[112].mxu1  ;;  %v21472_v12 = vpop.f32.mrb[113].mxu0 }
 0x4e6   :  { %v21473_v14 = vadd.f32 %v21472_v12, %v21471_v7  ;;  %v21494_v17 = vpop.f32.mrb[113].mxu1  ;;  %v21474_v18 = vpop.f32.mrb[114].mxu0  ;;  %21774 = vmatpush3.bf16.msra.mxu0 %v23745_v28  ;;  %v23782_v28 = vld [vmem:[#allocation2 + $0x24b0] sm:$0xff]  }
 0x4e7   :  { %v21495_v16 = vadd.f32 %v21494_v17, %v21493_v10  ;;  %v21496_v21 = vpop.f32.mrb[114].mxu1  ;;  %v21475_v25 = vpop.f32.mrb[115].mxu0  ;;  %21796 = vmatpush3.bf16.msra.mxu1 %v23746_v30  ;;  %21775 = vmatprep.subr.bf16.mxu0 %v23747_v32  ;;  %v23773_v10 = vld [vmem:[#allocation2 + $0x2420] sm:$0xff]   ;;  %v23784_v30 = vld [vmem:[#allocation2 + $0x24f8] sm:$0xff]  }
 0x4e8   :  { %v16441_v20 = vadd.f32 %v21473_v14, %v25034_v31  ;;  %v21476_v26 = vadd.f32 %v21475_v25, %v21474_v18  ;;  %v21497_v27 = vpop.f32.mrb[115].mxu1  ;;  %21797 = vmatprep.subr.bf16.mxu1 %v23748_v34  ;;  %v23778_v25 = vld [vmem:[#allocation2 + $0x24a8] sm:$0xff]   ;;  %v23786_v32 = vld [vmem:[#allocation2 + $0x24b8] sm:$0xff]   ;;  %v275_v34 = vld [vmem:[%s25323_s0 + $0x560] sm:$0xff] }
 0x4e9   :  { %v21498_v29 = vadd.f32 %v21497_v27, %v21496_v21  ;;  %v23777_v21 = vld [vmem:[#allocation2 + $0x2428] sm:$0xff]   ;;  %v23781_v27 = vld [vmem:[#allocation2 + $0x2430] sm:$0xff]  }
 0x4ea   :  { %v25052_v24 = vadd.f32 %v21495_v16, %v16441_v20  ;;  %v16444_v33 = vadd.f32 %v21476_v26, %v25037_v39  ;;  %21776 = vmatpush3.bf16.msra.mxu0 %v23749_v35  ;;  %v173_v39 = vld [vmem:[%s25323_s0 + $0x230] sm:$0xff] }
 0x4eb   :  { %21798 = vmatpush3.bf16.msra.mxu1 %v23750_v36  ;;  %21777 = vmatprep.subr.bf16.mxu0 %v23751_v37  ;;  %v18561_v44 = vcombine.low %v173_v39, %v273_v42  ;;  %v18562_v45 = vcombine.high %v173_v39, %v273_v42  ;;  %v23780_v26 = vld [vmem:[#allocation2 + $0x24f0] sm:$0xff]   ;;  %v176_v37 = vld [vmem:[%s25323_s0 + $0x248] sm:$0xff]  ;;  %v23787_v39 = vld [vmem:[#allocation2 + $0x2540] sm:$0xff]  }
 0x4ec   :  { %v25055_v31 = vadd.f32 %v21498_v29, %v16444_v33  ;;  %21799 = vmatprep.subr.bf16.mxu1 %v23752_v38  ;;  %v23783_v29 = vld [vmem:[#allocation2 + $0x2478] sm:$0xff]   ;;  %v276_v38 = vld [vmem:[%s25323_s0 + $0x568] sm:$0xff]  ;;  %v23788_v42 = vld [vmem:[#allocation2 + $0x25c0] sm:$0xff]  }
 0x4ed   :  { %17012 = vmatprep.mubr.bf16.mxu0 %v18562_v45  ;;  %v23785_v33 = vld [vmem:[#allocation2 + $0x2438] sm:$0xff]   ;;  %v23791_v45 = vld [vmem:[#allocation2 + $0x2548] sm:$0xff]  }
 0x4ee   :  { %21778 = vmatpush3.bf16.msra.mxu0 %v23753_v41  ;;  %v18567_v41 = vcombine.low %v176_v37, %v276_v38 }
 0x4ef   :  { %21800 = vmatpush3.bf16.msra.mxu1 %v23754_v40  ;;  %21807 = vmatprep.subr.bf16.mxu0 %v23755_v47  ;;  %v18568_v40 = vcombine.high %v176_v37, %v276_v38  ;;  %v23795_v47 = vld [vmem:[#allocation2 + $0x2550] sm:$0xff]   ;;  %v23823_v37 = vld [vmem:[#allocation2 + $0x2648] sm:$0xff]  }
 0x4f0   :  { %21829 = vmatprep.subr.bf16.mxu1 %v23756_v50  ;;  %v23796_v50 = vld [vmem:[#allocation2 + $0x25d0] sm:$0xff]   ;;  %v23824_v38 = vld [vmem:[#allocation2 + $0x26c8] sm:$0xff]  }
 0x4f1   :  { %17013 = vmatmul.mubr.bf16.vlgmr.msra.gmra.mrb[140].mxu0 %v18561_v44  ;;  %v23790_v44 = vld [vmem:[#allocation2 + $0x2580] sm:$0xff]  }
 0x4f2   :  { %17054 = vmatmul.mubr.bf16.vlgmr.msra.gmra.mrb[140].mxu1 %v18563_v49  ;;  %21808 = vmatpush3.bf16.msra.mxu0 %v23757_v51  ;;  %v23793_v49 = vld [vmem:[#allocation2 + $0x2508] sm:$0xff]   ;;  %v23797_v51 = vld [vmem:[#allocation2 + $0x2510] sm:$0xff]  }
 0x4f3   :  { %21830 = vmatpush3.bf16.msra.mxu1 %v23758_v52  ;;  %21809 = vmatprep.subr.bf16.mxu0 %v23759_v53  ;;  %v23798_v52 = vld [vmem:[#allocation2 + $0x2590] sm:$0xff]   ;;  %v23799_v53 = vld [vmem:[#allocation2 + $0x2558] sm:$0xff]  }
 0x4f4   :  { %21831 = vmatprep.subr.bf16.mxu1 %v23760_v54  ;;  %17135 = vmatprep.mubr.bf16.mxu1 %v18568_v40  ;;  %v23800_v54 = vld [vmem:[#allocation2 + $0x25d8] sm:$0xff]   ;;  %v23826_v40 = vld [vmem:[#allocation2 + $0x2688] sm:$0xff]  }
 0x4f6   :  { %21810 = vmatpush3.bf16.msra.mxu0 %v23761_v57 }
 0x4f7   :  { %21832 = vmatpush3.bf16.msra.mxu1 %v23762_v55  ;;  %21811 = vmatprep.subr.bf16.mxu0 %v23763_v56  ;;  %v23801_v55 = vld [vmem:[#allocation2 + $0x2518] sm:$0xff]  }
 0x4f8   :  { %21833 = vmatprep.subr.bf16.mxu1 %v23764_v58  ;;  %v23802_v58 = vld [vmem:[#allocation2 + $0x2598] sm:$0xff]  }
 0x4fa   :  { %21812 = vmatpush3.bf16.msra.mxu0 %v23765_v59 }
 0x4fb   :  { %21834 = vmatpush3.bf16.msra.mxu1 %v23766_v60  ;;  %21813 = vmatprep.subr.bf16.mxu0 %v23767_v61  ;;  %v23803_v60 = vld [vmem:[#allocation2 + $0x2560] sm:$0xff]  }
 0x4fc   :  { %21835 = vmatprep.subr.bf16.mxu1 %v23768_v62 }
 0x4fe   :  { %21814 = vmatpush3.bf16.msra.mxu0 %v23769_v63 }
 0x4ff   :  { %21836 = vmatpush3.bf16.msra.mxu1 %v23770_v2  ;;  %21815 = vmatprep.subr.bf16.mxu0 %v23771_v4  ;;  %v23805_v2 = vld [vmem:[#allocation2 + $0x2520] sm:$0xff]  }
 0x500   :  { %21837 = vmatprep.subr.bf16.mxu1 %v23772_v9 }
 0x502   :  { %21816 = vmatpush3.bf16.msra.mxu0 %v23773_v10 }
 0x503   :  { %21838 = vmatpush3.bf16.msra.mxu1 %v23774_v13  ;;  %21817 = vmatprep.subr.bf16.mxu0 %v23775_v15  ;;  %v23809_v13 = vld [vmem:[#allocation2 + $0x2528] sm:$0xff]  }
 0x504   :  { %v21515_v1 = vpop.f32.mrb[116].mxu0  ;;  %21839 = vmatprep.subr.bf16.mxu1 %v23776_v19  ;;  %v23810_v15 = vld [vmem:[#allocation2 + $0x25a8] sm:$0xff]   ;;  %v23813_v19 = vld [vmem:[#allocation2 + $0x2530] sm:$0xff]  }
 0x505   :  { %v21537_v0 = vpop.f32.mrb[116].mxu1  ;;  %v21516_v3 = vpop.f32.mrb[117].mxu0 }
 0x506   :  { %v21517_v5 = vadd.f32 %v21516_v3, %v21515_v1  ;;  %v21538_v6 = vpop.f32.mrb[117].mxu1  ;;  %v21518_v8 = vpop.f32.mrb[118].mxu0  ;;  %21818 = vmatpush3.bf16.msra.mxu0 %v23777_v21  ;;  %v23804_v1 = vld [vmem:[#allocation2 + $0x25e0] sm:$0xff]   ;;  %v23815_v21 = vld [vmem:[#allocation2 + $0x2578] sm:$0xff]  }
 0x507   :  { %v21539_v7 = vadd.f32 %v21538_v6, %v21537_v0  ;;  %v21540_v12 = vpop.f32.mrb[118].mxu1  ;;  %v21519_v14 = vpop.f32.mrb[119].mxu0  ;;  %21840 = vmatpush3.bf16.msra.mxu1 %v23778_v25  ;;  %21819 = vmatprep.subr.bf16.mxu0 %v23779_v23  ;;  %v23817_v25 = vld [vmem:[#allocation2 + $0x2538] sm:$0xff]   ;;  %v177_v23 = vld [vmem:[%s25323_s0 + $0x250] sm:$0xff] }
 0x508   :  { %v16523_v11 = vadd.f32 %v21517_v5, %v25052_v24  ;;  %v21520_v16 = vadd.f32 %v21519_v14, %v21518_v8  ;;  %v21541_v18 = vpop.f32.mrb[119].mxu1  ;;  %21841 = vmatprep.subr.bf16.mxu1 %v23780_v26  ;;  %v23806_v5 = vld [vmem:[#allocation2 + $0x25a0] sm:$0xff]   ;;  %v277_v26 = vld [vmem:[%s25323_s0 + $0x570] sm:$0xff] }
 0x509   :  { %v21542_v20 = vadd.f32 %v21541_v18, %v21540_v12  ;;  %v23812_v18 = vld [vmem:[#allocation2 + $0x25f0] sm:$0xff]  }
 0x50a   :  { %v25070_v17 = vadd.f32 %v21539_v7, %v16523_v11  ;;  %v16526_v22 = vadd.f32 %v21520_v16, %v25055_v31  ;;  %21820 = vmatpush3.bf16.msra.mxu0 %v23781_v27  ;;  %v175_v31 = vld [vmem:[%s25323_s0 + $0x240] sm:$0xff]  ;;  %v23807_v7 = vld [vmem:[#allocation2 + $0x2568] sm:$0xff]   ;;  %v23811_v16 = vld [vmem:[#allocation2 + $0x2570] sm:$0xff]  }
 0x50b   :  { %21842 = vmatpush3.bf16.msra.mxu1 %v23782_v28  ;;  %21821 = vmatprep.subr.bf16.mxu0 %v23783_v29  ;;  %v18565_v35 = vcombine.low %v175_v31, %v275_v34  ;;  %v18566_v36 = vcombine.high %v175_v31, %v275_v34  ;;  %v23808_v11 = vld [vmem:[#allocation2 + $0x25e8] sm:$0xff]   ;;  %v178_v27 = vld [vmem:[%s25323_s0 + $0x258] sm:$0xff]  ;;  %v18569_v29 = vcombine.low %v177_v23, %v277_v26  ;;  %v23819_v31 = vld [vmem:[#allocation2 + $0x2640] sm:$0xff]  }
 0x50c   :  { %v25073_v24 = vadd.f32 %v21542_v20, %v16526_v22  ;;  %21843 = vmatprep.subr.bf16.mxu1 %v23784_v30  ;;  %v23814_v20 = vld [vmem:[#allocation2 + $0x25b0] sm:$0xff]   ;;  %v23816_v22 = vld [vmem:[#allocation2 + $0x25f8] sm:$0xff]   ;;  %v18570_v30 = vcombine.high %v177_v23, %v277_v26  ;;  %v23820_v34 = vld [vmem:[#allocation2 + $0x26c0] sm:$0xff]  }
 0x50d   :  { %17094 = vmatprep.mubr.bf16.mxu0 %v18566_v36  ;;  %v278_v28 = vld [vmem:[%s25323_s0 + $0x578] sm:$0xff]  ;;  %v23822_v36 = vld [vmem:[#allocation2 + $0x2680] sm:$0xff]  }
 0x50e   :  { %21822 = vmatpush3.bf16.msra.mxu0 %v23785_v33  ;;  %v18571_v33 = vcombine.low %v178_v27, %v278_v28  ;;  %v23851_v23 = vld [vmem:[#allocation2 + $0x2740] sm:$0xff]  }
 0x50f   :  { %21844 = vmatpush3.bf16.msra.mxu1 %v23786_v32  ;;  %21851 = vmatprep.subr.bf16.mxu0 %v23787_v39  ;;  %v18572_v32 = vcombine.high %v178_v27, %v278_v28  ;;  %v23827_v39 = vld [vmem:[#allocation2 + $0x2650] sm:$0xff]   ;;  %v23852_v26 = vld [vmem:[#allocation2 + $0x27c0] sm:$0xff]  }
 0x510   :  { %21873 = vmatprep.subr.bf16.mxu1 %v23788_v42  ;;  %v23828_v42 = vld [vmem:[#allocation2 + $0x26d0] sm:$0xff]   ;;  %v23853_v27 = vld [vmem:[#allocation2 + $0x2700] sm:$0xff]  }
 0x511   :  { %17095 = vmatmul.mubr.bf16.vlgmr.msra.gmra.mrb[144].mxu0 %v18565_v35  ;;  %v23821_v35 = vld [vmem:[#allocation2 + $0x2600] sm:$0xff]  }
 0x512   :  { %17136 = vmatmul.mubr.bf16.vlgmr.msra.gmra.mrb[144].mxu1 %v18567_v41  ;;  %21852 = vmatpush3.bf16.msra.mxu0 %v23789_v43  ;;  %v23825_v41 = vld [vmem:[#allocation2 + $0x2608] sm:$0xff]   ;;  %v23829_v43 = vld [vmem:[#allocation2 + $0x2610] sm:$0xff]   ;;  %v23854_v28 = vld [vmem:[#allocation2 + $0x2780] sm:$0xff]  }
 0x513   :  { %21874 = vmatpush3.bf16.msra.mxu1 %v23790_v44  ;;  %21853 = vmatprep.subr.bf16.mxu0 %v23791_v45  ;;  %v23830_v44 = vld [vmem:[#allocation2 + $0x2690] sm:$0xff]   ;;  %v23831_v45 = vld [vmem:[#allocation2 + $0x2658] sm:$0xff]  }
 0x514   :  { %21875 = vmatprep.subr.bf16.mxu1 %v23792_v46  ;;  %17176 = vmatprep.mubr.bf16.mxu0 %v18570_v30  ;;  %v23832_v46 = vld [vmem:[#allocation2 + $0x26d8] sm:$0xff]   ;;  %v23856_v30 = vld [vmem:[#allocation2 + $0x27c8] sm:$0xff]  }
 0x515   :  { %17217 = vmatprep.mubr.bf16.mxu1 %v18572_v32  ;;  %v23858_v32 = vld [vmem:[#allocation2 + $0x2788] sm:$0xff]  }
 0x516   :  { %21854 = vmatpush3.bf16.msra.mxu0 %v23793_v49  ;;  %v23833_v49 = vld [vmem:[#allocation2 + $0x2618] sm:$0xff]  }
 0x517   :  { %21876 = vmatpush3.bf16.msra.mxu1 %v23794_v48  ;;  %21855 = vmatprep.subr.bf16.mxu0 %v23795_v47  ;;  %v23834_v47 = vld [vmem:[#allocation2 + $0x2698] sm:$0xff]  }
 0x518   :  { %21877 = vmatprep.subr.bf16.mxu1 %v23796_v50 }
 0x51a   :  { %21856 = vmatpush3.bf16.msra.mxu0 %v23797_v51  ;;  %v23835_v51 = vld [vmem:[#allocation2 + $0x2660] sm:$0xff]  }
 0x51b   :  { %21878 = vmatpush3.bf16.msra.mxu1 %v23798_v52  ;;  %21857 = vmatprep.subr.bf16.mxu0 %v23799_v53  ;;  %v23836_v53 = vld [vmem:[#allocation2 + $0x26e0] sm:$0xff]  }
 0x51c   :  { %21879 = vmatprep.subr.bf16.mxu1 %v23800_v54 }
 0x51e   :  { %21858 = vmatpush3.bf16.msra.mxu0 %v23801_v55  ;;  %v23837_v55 = vld [vmem:[#allocation2 + $0x2620] sm:$0xff]  }
 0x51f   :  { %21880 = vmatpush3.bf16.msra.mxu1 %v23802_v58  ;;  %21859 = vmatprep.subr.bf16.mxu0 %v23803_v60 }
 0x520   :  { %21881 = vmatprep.subr.bf16.mxu1 %v23804_v1 }
 0x522   :  { %21860 = vmatpush3.bf16.msra.mxu0 %v23805_v2 }
 0x523   :  { %21882 = vmatpush3.bf16.msra.mxu1 %v23806_v5  ;;  %21861 = vmatprep.subr.bf16.mxu0 %v23807_v7 }
 0x524   :  { %v21559_v57 = vpop.f32.mrb[120].mxu0  ;;  %21883 = vmatprep.subr.bf16.mxu1 %v23808_v11  ;;  %v23845_v11 = vld [vmem:[#allocation2 + $0x2630] sm:$0xff]  }
 0x525   :  { %v21581_v56 = vpop.f32.mrb[120].mxu1  ;;  %v21560_v59 = vpop.f32.mrb[121].mxu0 }
 0x526   :  { %v21561_v61 = vadd.f32 %v21560_v59, %v21559_v57  ;;  %v21582_v62 = vpop.f32.mrb[121].mxu1  ;;  %v21562_v0 = vpop.f32.mrb[122].mxu0  ;;  %21862 = vmatpush3.bf16.msra.mxu0 %v23809_v13  ;;  %v23838_v59 = vld [vmem:[#allocation2 + $0x26a0] sm:$0xff]   ;;  %v23847_v13 = vld [vmem:[#allocation2 + $0x2678] sm:$0xff]  }
 0x527   :  { %v21583_v63 = vadd.f32 %v21582_v62, %v21581_v56  ;;  %v21584_v4 = vpop.f32.mrb[122].mxu1  ;;  %v21563_v6 = vpop.f32.mrb[123].mxu0  ;;  %21884 = vmatpush3.bf16.msra.mxu1 %v23810_v15  ;;  %21863 = vmatprep.subr.bf16.mxu0 %v23811_v16  ;;  %v23839_v62 = vld [vmem:[#allocation2 + $0x2668] sm:$0xff]   ;;  %v23849_v15 = vld [vmem:[#allocation2 + $0x2638] sm:$0xff]  }
 0x528   :  { %v16605_v3 = vadd.f32 %v21561_v61, %v25070_v17  ;;  %v21564_v8 = vadd.f32 %v21563_v6, %v21562_v0  ;;  %v21585_v10 = vpop.f32.mrb[123].mxu1  ;;  %21885 = vmatprep.subr.bf16.mxu1 %v23812_v18  ;;  %v23840_v0 = vld [vmem:[#allocation2 + $0x26e8] sm:$0xff]   ;;  %v23850_v16 = vld [vmem:[#allocation2 + $0x26b8] sm:$0xff]   ;;  %v279_v18 = vld [vmem:[%s25323_s0 + $0x580] sm:$0xff] }
 0x529   :  { %v21586_v12 = vadd.f32 %v21585_v10, %v21584_v4  ;;  %v23841_v4 = vld [vmem:[#allocation2 + $0x2628] sm:$0xff]   ;;  %v23844_v10 = vld [vmem:[#allocation2 + $0x26f0] sm:$0xff]  }
 0x52a   :  { %v25088_v9 = vadd.f32 %v21583_v63, %v16605_v3  ;;  %v16608_v14 = vadd.f32 %v21564_v8, %v25073_v24  ;;  %21864 = vmatpush3.bf16.msra.mxu0 %v23813_v19  ;;  %v23818_v24 = vld [vmem:[#allocation2 + $0x25b8] sm:$0xff]   ;;  %v23842_v6 = vld [vmem:[#allocation2 + $0x26a8] sm:$0xff]   ;;  %v23843_v8 = vld [vmem:[#allocation2 + $0x2670] sm:$0xff]  }
 0x52b   :  { %21886 = vmatpush3.bf16.msra.mxu1 %v23814_v20  ;;  %21865 = vmatprep.subr.bf16.mxu0 %v23815_v21  ;;  %v180_v19 = vld [vmem:[%s25323_s0 + $0x268] sm:$0xff] }
 0x52c   :  { %v25091_v17 = vadd.f32 %v21586_v12, %v16608_v14  ;;  %21887 = vmatprep.subr.bf16.mxu1 %v23816_v22  ;;  %v23846_v12 = vld [vmem:[#allocation2 + $0x26b0] sm:$0xff]   ;;  %v23848_v14 = vld [vmem:[#allocation2 + $0x26f8] sm:$0xff]   ;;  %v280_v22 = vld [vmem:[%s25323_s0 + $0x588] sm:$0xff] }
 0x52e   :  { %21866 = vmatpush3.bf16.msra.mxu0 %v23817_v25  ;;  %v18575_v25 = vcombine.low %v180_v19, %v280_v22 }
 0x52f   :  { %21888 = vmatpush3.bf16.msra.mxu1 %v23818_v24  ;;  %21895 = vmatprep.subr.bf16.mxu0 %v23819_v31  ;;  %v18576_v24 = vcombine.high %v180_v19, %v280_v22  ;;  %v23859_v31 = vld [vmem:[#allocation2 + $0x2750] sm:$0xff]   ;;  %v23885_v19 = vld [vmem:[#allocation2 + $0x2800] sm:$0xff]   ;;  %v23888_v22 = vld [vmem:[#allocation2 + $0x28c8] sm:$0xff]  }
 0x530   :  { %21917 = vmatprep.subr.bf16.mxu1 %v23820_v34  ;;  %v23860_v34 = vld [vmem:[#allocation2 + $0x27d0] sm:$0xff]  }
 0x531   :  { %17177 = vmatmul.mubr.bf16.vlgmr.msra.gmra.mrb[148].mxu0 %v18569_v29  ;;  %v23855_v29 = vld [vmem:[#allocation2 + $0x2748] sm:$0xff]  }
 0x532   :  { %17218 = vmatmul.mubr.bf16.vlgmr.msra.gmra.mrb[148].mxu1 %v18571_v33  ;;  %21896 = vmatpush3.bf16.msra.mxu0 %v23821_v35  ;;  %v23857_v33 = vld [vmem:[#allocation2 + $0x2708] sm:$0xff]   ;;  %v23861_v35 = vld [vmem:[#allocation2 + $0x2710] sm:$0xff]  }
 0x533   :  { %21918 = vmatpush3.bf16.msra.mxu1 %v23822_v36  ;;  %21897 = vmatprep.subr.bf16.mxu0 %v23823_v37  ;;  %v23862_v36 = vld [vmem:[#allocation2 + $0x2790] sm:$0xff]   ;;  %v23863_v37 = vld [vmem:[#allocation2 + $0x2758] sm:$0xff]  }
 0x534   :  { %21919 = vmatprep.subr.bf16.mxu1 %v23824_v38  ;;  %17299 = vmatprep.mubr.bf16.mxu1 %v18576_v24  ;;  %v23864_v38 = vld [vmem:[#allocation2 + $0x27d8] sm:$0xff]   ;;  %v23890_v24 = vld [vmem:[#allocation2 + $0x2888] sm:$0xff]  }
 0x536   :  { %21898 = vmatpush3.bf16.msra.mxu0 %v23825_v41 }
 0x537   :  { %21920 = vmatpush3.bf16.msra.mxu1 %v23826_v40  ;;  %21899 = vmatprep.subr.bf16.mxu0 %v23827_v39  ;;  %v23865_v40 = vld [vmem:[#allocation2 + $0x2718] sm:$0xff]  }
 0x538   :  { %21921 = vmatprep.subr.bf16.mxu1 %v23828_v42  ;;  %v23866_v42 = vld [vmem:[#allocation2 + $0x2798] sm:$0xff]  }
 0x53a   :  { %21900 = vmatpush3.bf16.msra.mxu0 %v23829_v43 }
 0x53b   :  { %21922 = vmatpush3.bf16.msra.mxu1 %v23830_v44  ;;  %21901 = vmatprep.subr.bf16.mxu0 %v23831_v45  ;;  %v23867_v44 = vld [vmem:[#allocation2 + $0x2760] sm:$0xff]  }
 0x53c   :  { %21923 = vmatprep.subr.bf16.mxu1 %v23832_v46 }
 0x53e   :  { %21902 = vmatpush3.bf16.msra.mxu0 %v23833_v49  ;;  %v23868_v49 = vld [vmem:[#allocation2 + $0x27e0] sm:$0xff]  }
 0x53f   :  { %21924 = vmatpush3.bf16.msra.mxu1 %v23834_v47  ;;  %21903 = vmatprep.subr.bf16.mxu0 %v23835_v51 }
 0x540   :  { %21925 = vmatprep.subr.bf16.mxu1 %v23836_v53  ;;  %v23870_v53 = vld [vmem:[#allocation2 + $0x27a0] sm:$0xff]  }
 0x542   :  { %21904 = vmatpush3.bf16.msra.mxu0 %v23837_v55  ;;  %v23871_v55 = vld [vmem:[#allocation2 + $0x2768] sm:$0xff]  }
 0x543   :  { %21926 = vmatpush3.bf16.msra.mxu1 %v23838_v59  ;;  %21905 = vmatprep.subr.bf16.mxu0 %v23839_v62  ;;  %v23872_v59 = vld [vmem:[#allocation2 + $0x27e8] sm:$0xff]  }
 0x544   :  { %v21603_v48 = vpop.f32.mrb[124].mxu0  ;;  %21927 = vmatprep.subr.bf16.mxu1 %v23840_v0  ;;  %v23875_v0 = vld [vmem:[#allocation2 + $0x2770] sm:$0xff]  }
 0x545   :  { %v21625_v50 = vpop.f32.mrb[124].mxu1  ;;  %v21604_v52 = vpop.f32.mrb[125].mxu0 }
 0x546   :  { %v21605_v54 = vadd.f32 %v21604_v52, %v21603_v48  ;;  %v21626_v57 = vpop.f32.mrb[125].mxu1  ;;  %v21606_v58 = vpop.f32.mrb[126].mxu0  ;;  %21906 = vmatpush3.bf16.msra.mxu0 %v23841_v4  ;;  %v23878_v4 = vld [vmem:[#allocation2 + $0x27b0] sm:$0xff]  }
 0x547   :  { %v21627_v56 = vadd.f32 %v21626_v57, %v21625_v50  ;;  %v21628_v61 = vpop.f32.mrb[126].mxu1  ;;  %v21607_v1 = vpop.f32.mrb[127].mxu0  ;;  %21928 = vmatpush3.bf16.msra.mxu1 %v23842_v6  ;;  %21907 = vmatprep.subr.bf16.mxu0 %v23843_v8  ;;  %v23869_v50 = vld [vmem:[#allocation2 + $0x2720] sm:$0xff]   ;;  %v23880_v6 = vld [vmem:[#allocation2 + $0x27f8] sm:$0xff]  }
 0x548   :  { %v16687_v60 = vadd.f32 %v21605_v54, %v25088_v9  ;;  %v21608_v2 = vadd.f32 %v21607_v1, %v21606_v58  ;;  %v21629_v3 = vpop.f32.mrb[127].mxu1  ;;  %21929 = vmatprep.subr.bf16.mxu1 %v23844_v10  ;;  %v23874_v1 = vld [vmem:[#allocation2 + $0x27a8] sm:$0xff]   ;;  %v23882_v8 = vld [vmem:[#allocation2 + $0x27b8] sm:$0xff]   ;;  %v281_v10 = vld [vmem:[%s25323_s0 + $0x590] sm:$0xff] }
 0x549   :  { %v21630_v5 = vadd.f32 %v21629_v3, %v21628_v61  ;;  %v23873_v61 = vld [vmem:[#allocation2 + $0x2728] sm:$0xff]   ;;  %v23877_v3 = vld [vmem:[#allocation2 + $0x2730] sm:$0xff]  }
 0x54a   :  { %v25106_v63 = vadd.f32 %v21627_v56, %v16687_v60  ;;  %v16690_v7 = vadd.f32 %v21608_v2, %v25091_v17  ;;  %21908 = vmatpush3.bf16.msra.mxu0 %v23845_v11  ;;  %v179_v17 = vld [vmem:[%s25323_s0 + $0x260] sm:$0xff]  ;;  %v23876_v2 = vld [vmem:[#allocation2 + $0x27f0] sm:$0xff]  }
 0x54b   :  { %21930 = vmatpush3.bf16.msra.mxu1 %v23846_v12  ;;  %21909 = vmatprep.subr.bf16.mxu0 %v23847_v13  ;;  %v18573_v20 = vcombine.low %v179_v17, %v279_v18  ;;  %v18574_v21 = vcombine.high %v179_v17, %v279_v18  ;;  %v182_v13 = vld [vmem:[%s25323_s0 + $0x278] sm:$0xff]  ;;  %v23883_v17 = vld [vmem:[#allocation2 + $0x2840] sm:$0xff]  }
 0x54c   :  { %v25109_v9 = vadd.f32 %v21630_v5, %v16690_v7  ;;  %21931 = vmatprep.subr.bf16.mxu1 %v23848_v14  ;;  %v23879_v5 = vld [vmem:[#allocation2 + $0x2778] sm:$0xff]   ;;  %v23884_v18 = vld [vmem:[#allocation2 + $0x28c0] sm:$0xff]  }
 0x54d   :  { %17258 = vmatprep.mubr.bf16.mxu0 %v18574_v21  ;;  %v23881_v7 = vld [vmem:[#allocation2 + $0x2738] sm:$0xff]   ;;  %v23887_v21 = vld [vmem:[#allocation2 + $0x2848] sm:$0xff]  }
 0x54e   :  { %21910 = vmatpush3.bf16.msra.mxu0 %v23849_v15  ;;  %v282_v14 = vld [vmem:[%s25323_s0 + $0x598] sm:$0xff] }
 0x54f   :  { %21932 = vmatpush3.bf16.msra.mxu1 %v23850_v16  ;;  %21939 = vmatprep.subr.bf16.mxu0 %v23851_v23  ;;  %v18579_v15 = vcombine.low %v182_v13, %v282_v14  ;;  %v18580_v16 = vcombine.high %v182_v13, %v282_v14  ;;  %v23891_v23 = vld [vmem:[#allocation2 + $0x2850] sm:$0xff]   ;;  %v23919_v13 = vld [vmem:[#allocation2 + $0x2948] sm:$0xff]  }
 0x550   :  { %21961 = vmatprep.subr.bf16.mxu1 %v23852_v26  ;;  %v23892_v26 = vld [vmem:[#allocation2 + $0x28d0] sm:$0xff]   ;;  %v23920_v14 = vld [vmem:[#allocation2 + $0x29c8] sm:$0xff]  }
 0x551   :  { %17259 = vmatmul.mubr.bf16.vlgmr.msra.gmra.mrb[152].mxu0 %v18573_v20  ;;  %v23886_v20 = vld [vmem:[#allocation2 + $0x2880] sm:$0xff]  }
 0x552   :  { %17300 = vmatmul.mubr.bf16.vlgmr.msra.gmra.mrb[152].mxu1 %v18575_v25  ;;  %21940 = vmatpush3.bf16.msra.mxu0 %v23853_v27  ;;  %v23889_v25 = vld [vmem:[#allocation2 + $0x2808] sm:$0xff]   ;;  %v23893_v27 = vld [vmem:[#allocation2 + $0x2810] sm:$0xff]  }
 0x553   :  { %21962 = vmatpush3.bf16.msra.mxu1 %v23854_v28  ;;  %21941 = vmatprep.subr.bf16.mxu0 %v23855_v29  ;;  %v23894_v28 = vld [vmem:[#allocation2 + $0x2890] sm:$0xff]   ;;  %v23895_v29 = vld [vmem:[#allocation2 + $0x2858] sm:$0xff]  }
 0x554   :  { %21963 = vmatprep.subr.bf16.mxu1 %v23856_v30  ;;  %17381 = vmatprep.mubr.bf16.mxu1 %v18580_v16  ;;  %v23896_v30 = vld [vmem:[#allocation2 + $0x28d8] sm:$0xff]   ;;  %v23922_v16 = vld [vmem:[#allocation2 + $0x2988] sm:$0xff]  }
 0x556   :  { %21942 = vmatpush3.bf16.msra.mxu0 %v23857_v33 }
 0x557   :  { %21964 = vmatpush3.bf16.msra.mxu1 %v23858_v32  ;;  %21943 = vmatprep.subr.bf16.mxu0 %v23859_v31  ;;  %v23897_v32 = vld [vmem:[#allocation2 + $0x2818] sm:$0xff]  }
 0x558   :  { %21965 = vmatprep.subr.bf16.mxu1 %v23860_v34  ;;  %v23898_v34 = vld [vmem:[#allocation2 + $0x2898] sm:$0xff]  }
 0x55a   :  { %21944 = vmatpush3.bf16.msra.mxu0 %v23861_v35 }
 0x55b   :  { %21966 = vmatpush3.bf16.msra.mxu1 %v23862_v36  ;;  %21945 = vmatprep.subr.bf16.mxu0 %v23863_v37  ;;  %v23899_v36 = vld [vmem:[#allocation2 + $0x2860] sm:$0xff]  }
 0x55c   :  { %21967 = vmatprep.subr.bf16.mxu1 %v23864_v38 }
 0x55e   :  { %21946 = vmatpush3.bf16.msra.mxu0 %v23865_v40 }
 0x55f   :  { %21968 = vmatpush3.bf16.msra.mxu1 %v23866_v42  ;;  %21947 = vmatprep.subr.bf16.mxu0 %v23867_v44  ;;  %v23901_v42 = vld [vmem:[#allocation2 + $0x2820] sm:$0xff]  }
 0x560   :  { %21969 = vmatprep.subr.bf16.mxu1 %v23868_v49 }
 0x562   :  { %21948 = vmatpush3.bf16.msra.mxu0 %v23869_v50 }
 0x563   :  { %21970 = vmatpush3.bf16.msra.mxu1 %v23870_v53  ;;  %21949 = vmatprep.subr.bf16.mxu0 %v23871_v55  ;;  %v23905_v53 = vld [vmem:[#allocation2 + $0x2828] sm:$0xff]  }
 0x564   :  { %v21647_v41 = vpop.f32.mrb[128].mxu0  ;;  %21971 = vmatprep.subr.bf16.mxu1 %v23872_v59  ;;  %v23906_v55 = vld [vmem:[#allocation2 + $0x28a8] sm:$0xff]   ;;  %v23909_v59 = vld [vmem:[#allocation2 + $0x2830] sm:$0xff]  }
 0x565   :  { %v21669_v39 = vpop.f32.mrb[128].mxu1  ;;  %v21648_v43 = vpop.f32.mrb[129].mxu0 }
 0x566   :  { %v21649_v45 = vadd.f32 %v21648_v43, %v21647_v41  ;;  %v21670_v46 = vpop.f32.mrb[129].mxu1  ;;  %v21650_v47 = vpop.f32.mrb[130].mxu0  ;;  %21950 = vmatpush3.bf16.msra.mxu0 %v23873_v61  ;;  %v23900_v41 = vld [vmem:[#allocation2 + $0x28e0] sm:$0xff]   ;;  %v23911_v61 = vld [vmem:[#allocation2 + $0x2878] sm:$0xff]  }
 0x567   :  { %v21671_v48 = vadd.f32 %v21670_v46, %v21669_v39  ;;  %v21672_v52 = vpop.f32.mrb[130].mxu1  ;;  %v21651_v54 = vpop.f32.mrb[131].mxu0  ;;  %21972 = vmatpush3.bf16.msra.mxu1 %v23874_v1  ;;  %21951 = vmatprep.subr.bf16.mxu0 %v23875_v0  ;;  %v23913_v1 = vld [vmem:[#allocation2 + $0x2838] sm:$0xff]   ;;  %v183_v0 = vld [vmem:[%s25323_s0 + $0x280] sm:$0xff] }
 0x568   :  { %v16769_v51 = vadd.f32 %v21649_v45, %v25106_v63  ;;  %v21652_v56 = vadd.f32 %v21651_v54, %v21650_v47  ;;  %v21673_v58 = vpop.f32.mrb[131].mxu1  ;;  %21973 = vmatprep.subr.bf16.mxu1 %v23876_v2  ;;  %v23902_v45 = vld [vmem:[#allocation2 + $0x28a0] sm:$0xff]  }
 0x569   :  { %v21674_v60 = vadd.f32 %v21673_v58, %v21672_v52  ;;  %v23908_v58 = vld [vmem:[#allocation2 + $0x28f0] sm:$0xff]   ;;  %v283_v2 = vld [vmem:[%s25323_s0 + $0x5a0] sm:$0xff] }
 0x56a   :  { %v25124_v57 = vadd.f32 %v21671_v48, %v16769_v51  ;;  %v16772_v62 = vadd.f32 %v21652_v56, %v25109_v9  ;;  %21952 = vmatpush3.bf16.msra.mxu0 %v23877_v3  ;;  %v181_v9 = vld [vmem:[%s25323_s0 + $0x270] sm:$0xff]  ;;  %v23903_v48 = vld [vmem:[#allocation2 + $0x2868] sm:$0xff]  }
 0x56b   :  { %21974 = vmatpush3.bf16.msra.mxu1 %v23878_v4  ;;  %21953 = vmatprep.subr.bf16.mxu0 %v23879_v5  ;;  %v18577_v11 = vcombine.low %v181_v9, %v281_v10  ;;  %v18578_v12 = vcombine.high %v181_v9, %v281_v10  ;;  %v23904_v51 = vld [vmem:[#allocation2 + $0x28e8] sm:$0xff]   ;;  %v23907_v56 = vld [vmem:[#allocation2 + $0x2870] sm:$0xff]   ;;  %v18581_v5 = vcombine.low %v183_v0, %v283_v2  ;;  %v23915_v9 = vld [vmem:[#allocation2 + $0x2940] sm:$0xff]  }
 0x56c   :  { %v25127_v63 = vadd.f32 %v21674_v60, %v16772_v62  ;;  %21975 = vmatprep.subr.bf16.mxu1 %v23880_v6  ;;  %v23910_v60 = vld [vmem:[#allocation2 + $0x28b0] sm:$0xff]   ;;  %v23912_v62 = vld [vmem:[#allocation2 + $0x28f8] sm:$0xff]   ;;  %v184_v3 = vld [vmem:[%s25323_s0 + $0x288] sm:$0xff]  ;;  %v18582_v6 = vcombine.high %v183_v0, %v283_v2 }
 0x56d   :  { %17340 = vmatprep.mubr.bf16.mxu0 %v18578_v12  ;;  %v284_v4 = vld [vmem:[%s25323_s0 + $0x5a8] sm:$0xff]  ;;  %v23916_v10 = vld [vmem:[#allocation2 + $0x29c0] sm:$0xff]  }
 0x56e   :  { %21954 = vmatpush3.bf16.msra.mxu0 %v23881_v7  ;;  %v18583_v7 = vcombine.low %v184_v3, %v284_v4  ;;  %v23918_v12 = vld [vmem:[#allocation2 + $0x2980] sm:$0xff]  }
 0x56f   :  { %21976 = vmatpush3.bf16.msra.mxu1 %v23882_v8  ;;  %21983 = vmatprep.subr.bf16.mxu0 %v23883_v17  ;;  %v18584_v8 = vcombine.high %v184_v3, %v284_v4  ;;  %v23923_v17 = vld [vmem:[#allocation2 + $0x2950] sm:$0xff]   ;;  %v23947_v0 = vld [vmem:[#allocation2 + $0x2a40] sm:$0xff]  }
 0x570   :  { %22005 = vmatprep.subr.bf16.mxu1 %v23884_v18  ;;  %v23924_v18 = vld [vmem:[#allocation2 + $0x29d0] sm:$0xff]   ;;  %v23948_v2 = vld [vmem:[#allocation2 + $0x2ac0] sm:$0xff]  }
 0x571   :  { %17341 = vmatmul.mubr.bf16.vlgmr.msra.gmra.mrb[156].mxu0 %v18577_v11  ;;  %v23917_v11 = vld [vmem:[#allocation2 + $0x2900] sm:$0xff]  }
 0x572   :  { %17382 = vmatmul.mubr.bf16.vlgmr.msra.gmra.mrb[156].mxu1 %v18579_v15  ;;  %21984 = vmatpush3.bf16.msra.mxu0 %v23885_v19  ;;  %v23921_v15 = vld [vmem:[#allocation2 + $0x2908] sm:$0xff]   ;;  %v23925_v19 = vld [vmem:[#allocation2 + $0x2910] sm:$0xff]   ;;  %v23949_v3 = vld [vmem:[#allocation2 + $0x2a00] sm:$0xff]  }
 0x573   :  { %22006 = vmatpush3.bf16.msra.mxu1 %v23886_v20  ;;  %21985 = vmatprep.subr.bf16.mxu0 %v23887_v21  ;;  %v23926_v20 = vld [vmem:[#allocation2 + $0x2990] sm:$0xff]   ;;  %v23927_v21 = vld [vmem:[#allocation2 + $0x2958] sm:$0xff]   ;;  %v23950_v4 = vld [vmem:[#allocation2 + $0x2a80] sm:$0xff]  }
 0x574   :  { %22007 = vmatprep.subr.bf16.mxu1 %v23888_v22  ;;  %17422 = vmatprep.mubr.bf16.mxu0 %v18582_v6  ;;  %v23928_v22 = vld [vmem:[#allocation2 + $0x29d8] sm:$0xff]   ;;  %v23952_v6 = vld [vmem:[#allocation2 + $0x2ac8] sm:$0xff]  }
 0x575   :  { %17463 = vmatprep.mubr.bf16.mxu1 %v18584_v8  ;;  %v23954_v8 = vld [vmem:[#allocation2 + $0x2a88] sm:$0xff]  }
 0x576   :  { %21986 = vmatpush3.bf16.msra.mxu0 %v23889_v25  ;;  %v23929_v25 = vld [vmem:[#allocation2 + $0x2918] sm:$0xff]  }
 0x577   :  { %22008 = vmatpush3.bf16.msra.mxu1 %v23890_v24  ;;  %21987 = vmatprep.subr.bf16.mxu0 %v23891_v23  ;;  %v23930_v23 = vld [vmem:[#allocation2 + $0x2998] sm:$0xff]  }
 0x578   :  { %22009 = vmatprep.subr.bf16.mxu1 %v23892_v26 }
 0x57a   :  { %21988 = vmatpush3.bf16.msra.mxu0 %v23893_v27  ;;  %v23931_v27 = vld [vmem:[#allocation2 + $0x2960] sm:$0xff]  }
 0x57b   :  { %22010 = vmatpush3.bf16.msra.mxu1 %v23894_v28  ;;  %21989 = vmatprep.subr.bf16.mxu0 %v23895_v29  ;;  %v23932_v29 = vld [vmem:[#allocation2 + $0x29e0] sm:$0xff]  }
 0x57c   :  { %22011 = vmatprep.subr.bf16.mxu1 %v23896_v30 }
 0x57e   :  { %21990 = vmatpush3.bf16.msra.mxu0 %v23897_v32  ;;  %v23933_v32 = vld [vmem:[#allocation2 + $0x2920] sm:$0xff]  }
 0x57f   :  { %22012 = vmatpush3.bf16.msra.mxu1 %v23898_v34  ;;  %21991 = vmatprep.subr.bf16.mxu0 %v23899_v36 }
 0x580   :  { %22013 = vmatprep.subr.bf16.mxu1 %v23900_v41 }
 0x582   :  { %21992 = vmatpush3.bf16.msra.mxu0 %v23901_v42 }
 0x583   :  { %22014 = vmatpush3.bf16.msra.mxu1 %v23902_v45  ;;  %21993 = vmatprep.subr.bf16.mxu0 %v23903_v48 }
 0x584   :  { %v21691_v33 = vpop.f32.mrb[132].mxu0  ;;  %22015 = vmatprep.subr.bf16.mxu1 %v23904_v51  ;;  %v23941_v51 = vld [vmem:[#allocation2 + $0x2930] sm:$0xff]  }
 0x585   :  { %v21713_v31 = vpop.f32.mrb[132].mxu1  ;;  %v21692_v35 = vpop.f32.mrb[133].mxu0 }
 0x586   :  { %v21693_v37 = vadd.f32 %v21692_v35, %v21691_v33  ;;  %v21714_v38 = vpop.f32.mrb[133].mxu1  ;;  %v21694_v39 = vpop.f32.mrb[134].mxu0  ;;  %21994 = vmatpush3.bf16.msra.mxu0 %v23905_v53  ;;  %v23934_v35 = vld [vmem:[#allocation2 + $0x29a0] sm:$0xff]   ;;  %v23943_v53 = vld [vmem:[#allocation2 + $0x2978] sm:$0xff]  }
 0x587   :  { %v21715_v40 = vadd.f32 %v21714_v38, %v21713_v31  ;;  %v21716_v44 = vpop.f32.mrb[134].mxu1  ;;  %v21695_v46 = vpop.f32.mrb[135].mxu0  ;;  %22016 = vmatpush3.bf16.msra.mxu1 %v23906_v55  ;;  %21995 = vmatprep.subr.bf16.mxu0 %v23907_v56  ;;  %v23935_v38 = vld [vmem:[#allocation2 + $0x2968] sm:$0xff]   ;;  %v23945_v55 = vld [vmem:[#allocation2 + $0x2938] sm:$0xff]  }
 0x588   :  { %v16851_v43 = vadd.f32 %v21693_v37, %v25124_v57  ;;  %v21696_v47 = vadd.f32 %v21695_v46, %v21694_v39  ;;  %v21717_v50 = vpop.f32.mrb[135].mxu1  ;;  %22017 = vmatprep.subr.bf16.mxu1 %v23908_v58  ;;  %v23936_v39 = vld [vmem:[#allocation2 + $0x29e8] sm:$0xff]   ;;  %v23946_v56 = vld [vmem:[#allocation2 + $0x29b8] sm:$0xff]   ;;  %v285_v58 = vld [vmem:[%s25323_s0 + $0x5b0] sm:$0xff] }
 0x589   :  { %v21718_v52 = vadd.f32 %v21717_v50, %v21716_v44  ;;  %v23937_v44 = vld [vmem:[#allocation2 + $0x2928] sm:$0xff]   ;;  %v23940_v50 = vld [vmem:[#allocation2 + $0x29f0] sm:$0xff]  }
 0x58a   :  { %v25142_v49 = vadd.f32 %v21715_v40, %v16851_v43  ;;  %v16854_v54 = vadd.f32 %v21696_v47, %v25127_v63  ;;  %21996 = vmatpush3.bf16.msra.mxu0 %v23909_v59  ;;  %v23914_v63 = vld [vmem:[#allocation2 + $0x28b8] sm:$0xff]   ;;  %v23938_v46 = vld [vmem:[#allocation2 + $0x29a8] sm:$0xff]   ;;  %v23939_v47 = vld [vmem:[#allocation2 + $0x2970] sm:$0xff]  }
 0x58b   :  { %22018 = vmatpush3.bf16.msra.mxu1 %v23910_v60  ;;  %21997 = vmatprep.subr.bf16.mxu0 %v23911_v61  ;;  %v186_v59 = vld [vmem:[%s25323_s0 + $0x298] sm:$0xff] }
 0x58c   :  { %v25145_v57 = vadd.f32 %v21718_v52, %v16854_v54  ;;  %22019 = vmatprep.subr.bf16.mxu1 %v23912_v62  ;;  %v23942_v52 = vld [vmem:[#allocation2 + $0x29b0] sm:$0xff]   ;;  %v23944_v54 = vld [vmem:[#allocation2 + $0x29f8] sm:$0xff]  }
 0x58d   :  { %v286_v62 = vld [vmem:[%s25323_s0 + $0x5b8] sm:$0xff] }
 0x58e   :  { %21998 = vmatpush3.bf16.msra.mxu0 %v23913_v1  ;;  %v18587_v1 = vcombine.low %v186_v59, %v286_v62 }
 0x58f   :  { %22020 = vmatpush3.bf16.msra.mxu1 %v23914_v63  ;;  %22027 = vmatprep.subr.bf16.mxu0 %v23915_v9  ;;  %v18588_v63 = vcombine.high %v186_v59, %v286_v62  ;;  %v23955_v9 = vld [vmem:[#allocation2 + $0x2a50] sm:$0xff]   ;;  %v23981_v59 = vld [vmem:[#allocation2 + $0x2b00] sm:$0xff]   ;;  %v23984_v62 = vld [vmem:[#allocation2 + $0x2bc8] sm:$0xff]  }
 0x590   :  { %22049 = vmatprep.subr.bf16.mxu1 %v23916_v10  ;;  %v23956_v10 = vld [vmem:[#allocation2 + $0x2ad0] sm:$0xff]  }
 0x591   :  { %17423 = vmatmul.mubr.bf16.vlgmr.msra.gmra.mrb[160].mxu0 %v18581_v5  ;;  %v23951_v5 = vld [vmem:[#allocation2 + $0x2a48] sm:$0xff]  }
 0x592   :  { %17464 = vmatmul.mubr.bf16.vlgmr.msra.gmra.mrb[160].mxu1 %v18583_v7  ;;  %22028 = vmatpush3.bf16.msra.mxu0 %v23917_v11  ;;  %v23953_v7 = vld [vmem:[#allocation2 + $0x2a08] sm:$0xff]   ;;  %v23957_v11 = vld [vmem:[#allocation2 + $0x2a10] sm:$0xff]  }
 0x593   :  { %22050 = vmatpush3.bf16.msra.mxu1 %v23918_v12  ;;  %22029 = vmatprep.subr.bf16.mxu0 %v23919_v13  ;;  %v23958_v12 = vld [vmem:[#allocation2 + $0x2a90] sm:$0xff]   ;;  %v23959_v13 = vld [vmem:[#allocation2 + $0x2a58] sm:$0xff]  }
 0x594   :  { %22051 = vmatprep.subr.bf16.mxu1 %v23920_v14  ;;  %17545 = vmatprep.mubr.bf16.mxu1 %v18588_v63  ;;  %v23960_v14 = vld [vmem:[#allocation2 + $0x2ad8] sm:$0xff]   ;;  %v23986_v63 = vld [vmem:[#allocation2 + $0x2b88] sm:$0xff]  }
 0x596   :  { %22030 = vmatpush3.bf16.msra.mxu0 %v23921_v15 }
 0x597   :  { %22052 = vmatpush3.bf16.msra.mxu1 %v23922_v16  ;;  %22031 = vmatprep.subr.bf16.mxu0 %v23923_v17  ;;  %v23961_v16 = vld [vmem:[#allocation2 + $0x2a18] sm:$0xff]  }
 0x598   :  { %22053 = vmatprep.subr.bf16.mxu1 %v23924_v18  ;;  %v23962_v18 = vld [vmem:[#allocation2 + $0x2a98] sm:$0xff]  }
 0x59a   :  { %22032 = vmatpush3.bf16.msra.mxu0 %v23925_v19 }
 0x59b   :  { %22054 = vmatpush3.bf16.msra.mxu1 %v23926_v20  ;;  %22033 = vmatprep.subr.bf16.mxu0 %v23927_v21  ;;  %v23963_v20 = vld [vmem:[#allocation2 + $0x2a60] sm:$0xff]  }
 0x59c   :  { %22055 = vmatprep.subr.bf16.mxu1 %v23928_v22 }
 0x59e   :  { %22034 = vmatpush3.bf16.msra.mxu0 %v23929_v25  ;;  %v23964_v25 = vld [vmem:[#allocation2 + $0x2ae0] sm:$0xff]  }
 0x59f   :  { %22056 = vmatpush3.bf16.msra.mxu1 %v23930_v23  ;;  %22035 = vmatprep.subr.bf16.mxu0 %v23931_v27 }
 0x5a0   :  { %22057 = vmatprep.subr.bf16.mxu1 %v23932_v29  ;;  %v23966_v29 = vld [vmem:[#allocation2 + $0x2aa0] sm:$0xff]  }
 0x5a2   :  { %22036 = vmatpush3.bf16.msra.mxu0 %v23933_v32  ;;  %v23967_v32 = vld [vmem:[#allocation2 + $0x2a68] sm:$0xff]  }
 0x5a3   :  { %22058 = vmatpush3.bf16.msra.mxu1 %v23934_v35  ;;  %22037 = vmatprep.subr.bf16.mxu0 %v23935_v38  ;;  %v23968_v35 = vld [vmem:[#allocation2 + $0x2ae8] sm:$0xff]  }
 0x5a4   :  { %v21735_v24 = vpop.f32.mrb[136].mxu0  ;;  %22059 = vmatprep.subr.bf16.mxu1 %v23936_v39  ;;  %v23971_v39 = vld [vmem:[#allocation2 + $0x2a70] sm:$0xff]  }
 0x5a5   :  { %v21757_v26 = vpop.f32.mrb[136].mxu1  ;;  %v21736_v28 = vpop.f32.mrb[137].mxu0 }
 0x5a6   :  { %v21737_v30 = vadd.f32 %v21736_v28, %v21735_v24  ;;  %v21758_v33 = vpop.f32.mrb[137].mxu1  ;;  %v21738_v34 = vpop.f32.mrb[138].mxu0  ;;  %22038 = vmatpush3.bf16.msra.mxu0 %v23937_v44  ;;  %v23974_v44 = vld [vmem:[#allocation2 + $0x2ab0] sm:$0xff]  }
 0x5a7   :  { %v21759_v31 = vadd.f32 %v21758_v33, %v21757_v26  ;;  %v21760_v37 = vpop.f32.mrb[138].mxu1  ;;  %v21739_v41 = vpop.f32.mrb[139].mxu0  ;;  %22060 = vmatpush3.bf16.msra.mxu1 %v23938_v46  ;;  %22039 = vmatprep.subr.bf16.mxu0 %v23939_v47  ;;  %v23965_v26 = vld [vmem:[#allocation2 + $0x2a20] sm:$0xff]   ;;  %v23976_v46 = vld [vmem:[#allocation2 + $0x2af8] sm:$0xff]  }
 0x5a8   :  { %v16933_v36 = vadd.f32 %v21737_v30, %v25142_v49  ;;  %v21740_v42 = vadd.f32 %v21739_v41, %v21738_v34  ;;  %v21761_v43 = vpop.f32.mrb[139].mxu1  ;;  %22061 = vmatprep.subr.bf16.mxu1 %v23940_v50  ;;  %v23970_v41 = vld [vmem:[#allocation2 + $0x2aa8] sm:$0xff]   ;;  %v23978_v47 = vld [vmem:[#allocation2 + $0x2ab8] sm:$0xff]   ;;  %v287_v50 = vld [vmem:[%s25323_s0 + $0x5c0] sm:$0xff] }
 0x5a9   :  { %v21762_v45 = vadd.f32 %v21761_v43, %v21760_v37  ;;  %v23969_v37 = vld [vmem:[#allocation2 + $0x2a28] sm:$0xff]   ;;  %v23973_v43 = vld [vmem:[#allocation2 + $0x2a30] sm:$0xff]  }
 0x5aa   :  { %v25160_v40 = vadd.f32 %v21759_v31, %v16933_v36  ;;  %v16936_v48 = vadd.f32 %v21740_v42, %v25145_v57  ;;  %22040 = vmatpush3.bf16.msra.mxu0 %v23941_v51  ;;  %v185_v57 = vld [vmem:[%s25323_s0 + $0x290] sm:$0xff] }
 0x5ab   :  { %22062 = vmatpush3.bf16.msra.mxu1 %v23942_v52  ;;  %22041 = vmatprep.subr.bf16.mxu0 %v23943_v53  ;;  %v18585_v60 = vcombine.low %v185_v57, %v285_v58  ;;  %v18586_v61 = vcombine.high %v185_v57, %v285_v58  ;;  %v23972_v42 = vld [vmem:[#allocation2 + $0x2af0] sm:$0xff]   ;;  %v188_v53 = vld [vmem:[%s25323_s0 + $0x2a8] sm:$0xff]  ;;  %v23979_v57 = vld [vmem:[#allocation2 + $0x2b40] sm:$0xff]  }
 0x5ac   :  { %v25163_v49 = vadd.f32 %v21762_v45, %v16936_v48  ;;  %22063 = vmatprep.subr.bf16.mxu1 %v23944_v54  ;;  %v23975_v45 = vld [vmem:[#allocation2 + $0x2a78] sm:$0xff]   ;;  %v288_v54 = vld [vmem:[%s25323_s0 + $0x5c8] sm:$0xff]  ;;  %v23980_v58 = vld [vmem:[#allocation2 + $0x2bc0] sm:$0xff]  }
 0x5ad   :  { %17504 = vmatprep.mubr.bf16.mxu0 %v18586_v61  ;;  %v23977_v48 = vld [vmem:[#allocation2 + $0x2a38] sm:$0xff]   ;;  %v23983_v61 = vld [vmem:[#allocation2 + $0x2b48] sm:$0xff]  }
 0x5ae   :  { %22042 = vmatpush3.bf16.msra.mxu0 %v23945_v55  ;;  %v18591_v55 = vcombine.low %v188_v53, %v288_v54 }
 0x5af   :  { %22064 = vmatpush3.bf16.msra.mxu1 %v23946_v56  ;;  %22071 = vmatprep.subr.bf16.mxu0 %v23947_v0  ;;  %v18592_v56 = vcombine.high %v188_v53, %v288_v54  ;;  %v23987_v0 = vld [vmem:[#allocation2 + $0x2b50] sm:$0xff]   ;;  %v24015_v53 = vld [vmem:[#allocation2 + $0x2c48] sm:$0xff]  }
 0x5b0   :  { %22093 = vmatprep.subr.bf16.mxu1 %v23948_v2  ;;  %v23988_v2 = vld [vmem:[#allocation2 + $0x2bd0] sm:$0xff]   ;;  %v24016_v54 = vld [vmem:[#allocation2 + $0x2cc8] sm:$0xff]  }
 0x5b1   :  { %17505 = vmatmul.mubr.bf16.vlgmr.msra.gmra.mrb[164].mxu0 %v18585_v60  ;;  %v23982_v60 = vld [vmem:[#allocation2 + $0x2b80] sm:$0xff]  }
 0x5b2   :  { %17546 = vmatmul.mubr.bf16.vlgmr.msra.gmra.mrb[164].mxu1 %v18587_v1  ;;  %22072 = vmatpush3.bf16.msra.mxu0 %v23949_v3  ;;  %v23985_v1 = vld [vmem:[#allocation2 + $0x2b08] sm:$0xff]   ;;  %v23989_v3 = vld [vmem:[#allocation2 + $0x2b10] sm:$0xff]  }
 0x5b3   :  { %22094 = vmatpush3.bf16.msra.mxu1 %v23950_v4  ;;  %22073 = vmatprep.subr.bf16.mxu0 %v23951_v5  ;;  %v23990_v4 = vld [vmem:[#allocation2 + $0x2b90] sm:$0xff]   ;;  %v23991_v5 = vld [vmem:[#allocation2 + $0x2b58] sm:$0xff]  }
 0x5b4   :  { %22095 = vmatprep.subr.bf16.mxu1 %v23952_v6  ;;  %17627 = vmatprep.mubr.bf16.mxu1 %v18592_v56  ;;  %v23992_v6 = vld [vmem:[#allocation2 + $0x2bd8] sm:$0xff]   ;;  %v24018_v56 = vld [vmem:[#allocation2 + $0x2c88] sm:$0xff]  }
 0x5b6   :  { %22074 = vmatpush3.bf16.msra.mxu0 %v23953_v7 }
 0x5b7   :  { %22096 = vmatpush3.bf16.msra.mxu1 %v23954_v8  ;;  %22075 = vmatprep.subr.bf16.mxu0 %v23955_v9  ;;  %v23993_v8 = vld [vmem:[#allocation2 + $0x2b18] sm:$0xff]  }
 0x5b8   :  { %22097 = vmatprep.subr.bf16.mxu1 %v23956_v10  ;;  %v23994_v10 = vld [vmem:[#allocation2 + $0x2b98] sm:$0xff]  }
 0x5ba   :  { %22076 = vmatpush3.bf16.msra.mxu0 %v23957_v11 }
 0x5bb   :  { %22098 = vmatpush3.bf16.msra.mxu1 %v23958_v12  ;;  %22077 = vmatprep.subr.bf16.mxu0 %v23959_v13  ;;  %v23995_v12 = vld [vmem:[#allocation2 + $0x2b60] sm:$0xff]  }
 0x5bc   :  { %22099 = vmatprep.subr.bf16.mxu1 %v23960_v14 }
 0x5be   :  { %22078 = vmatpush3.bf16.msra.mxu0 %v23961_v16 }
 0x5bf   :  { %22100 = vmatpush3.bf16.msra.mxu1 %v23962_v18  ;;  %22079 = vmatprep.subr.bf16.mxu0 %v23963_v20  ;;  %v23997_v18 = vld [vmem:[#allocation2 + $0x2b20] sm:$0xff]  }
 0x5c0   :  { %22101 = vmatprep.subr.bf16.mxu1 %v23964_v25 }
 0x5c2   :  { %22080 = vmatpush3.bf16.msra.mxu0 %v23965_v26 }
 0x5c3   :  { %22102 = vmatpush3.bf16.msra.mxu1 %v23966_v29  ;;  %22081 = vmatprep.subr.bf16.mxu0 %v23967_v32  ;;  %v24001_v29 = vld [vmem:[#allocation2 + $0x2b28] sm:$0xff]  }
 0x5c4   :  { %v21779_v15 = vpop.f32.mrb[140].mxu0  ;;  %22103 = vmatprep.subr.bf16.mxu1 %v23968_v35  ;;  %v24002_v32 = vld [vmem:[#allocation2 + $0x2ba8] sm:$0xff]   ;;  %v24005_v35 = vld [vmem:[#allocation2 + $0x2b30] sm:$0xff]  }
 0x5c5   :  { %v21801_v17 = vpop.f32.mrb[140].mxu1  ;;  %v21780_v19 = vpop.f32.mrb[141].mxu0 }
 0x5c6   :  { %v21781_v21 = vadd.f32 %v21780_v19, %v21779_v15  ;;  %v21802_v22 = vpop.f32.mrb[141].mxu1  ;;  %v21782_v23 = vpop.f32.mrb[142].mxu0  ;;  %22082 = vmatpush3.bf16.msra.mxu0 %v23969_v37  ;;  %v23996_v15 = vld [vmem:[#allocation2 + $0x2be0] sm:$0xff]   ;;  %v24007_v37 = vld [vmem:[#allocation2 + $0x2b78] sm:$0xff]  }
 0x5c7   :  { %v21803_v24 = vadd.f32 %v21802_v22, %v21801_v17  ;;  %v21804_v28 = vpop.f32.mrb[142].mxu1  ;;  %v21783_v30 = vpop.f32.mrb[143].mxu0  ;;  %22104 = vmatpush3.bf16.msra.mxu1 %v23970_v41  ;;  %22083 = vmatprep.subr.bf16.mxu0 %v23971_v39  ;;  %v24009_v41 = vld [vmem:[#allocation2 + $0x2b38] sm:$0xff]   ;;  %v189_v39 = vld [vmem:[%s25323_s0 + $0x2b0] sm:$0xff] }
 0x5c8   :  { %v17015_v27 = vadd.f32 %v21781_v21, %v25160_v40  ;;  %v21784_v31 = vadd.f32 %v21783_v30, %v21782_v23  ;;  %v21805_v34 = vpop.f32.mrb[143].mxu1  ;;  %22105 = vmatprep.subr.bf16.mxu1 %v23972_v42  ;;  %v23998_v21 = vld [vmem:[#allocation2 + $0x2ba0] sm:$0xff]   ;;  %v289_v42 = vld [vmem:[%s25323_s0 + $0x5d0] sm:$0xff] }
 0x5c9   :  { %v21806_v36 = vadd.f32 %v21805_v34, %v21804_v28  ;;  %v24004_v34 = vld [vmem:[#allocation2 + $0x2bf0] sm:$0xff]  }
 0x5ca   :  { %v25178_v33 = vadd.f32 %v21803_v24, %v17015_v27  ;;  %v17018_v38 = vadd.f32 %v21784_v31, %v25163_v49  ;;  %22084 = vmatpush3.bf16.msra.mxu0 %v23973_v43  ;;  %v187_v49 = vld [vmem:[%s25323_s0 + $0x2a0] sm:$0xff]  ;;  %v23999_v24 = vld [vmem:[#allocation2 + $0x2b68] sm:$0xff]   ;;  %v24003_v31 = vld [vmem:[#allocation2 + $0x2b70] sm:$0xff]  }
 0x5cb   :  { %22106 = vmatpush3.bf16.msra.mxu1 %v23974_v44  ;;  %22085 = vmatprep.subr.bf16.mxu0 %v23975_v45  ;;  %v18589_v51 = vcombine.low %v187_v49, %v287_v50  ;;  %v18590_v52 = vcombine.high %v187_v49, %v287_v50  ;;  %v24000_v27 = vld [vmem:[#allocation2 + $0x2be8] sm:$0xff]   ;;  %v190_v43 = vld [vmem:[%s25323_s0 + $0x2b8] sm:$0xff]  ;;  %v18593_v45 = vcombine.low %v189_v39, %v289_v42  ;;  %v24011_v49 = vld [vmem:[#allocation2 + $0x2c40] sm:$0xff]  }
 0x5cc   :  { %v25181_v40 = vadd.f32 %v21806_v36, %v17018_v38  ;;  %22107 = vmatprep.subr.bf16.mxu1 %v23976_v46  ;;  %v24006_v36 = vld [vmem:[#allocation2 + $0x2bb0] sm:$0xff]   ;;  %v24008_v38 = vld [vmem:[#allocation2 + $0x2bf8] sm:$0xff]   ;;  %v18594_v46 = vcombine.high %v189_v39, %v289_v42  ;;  %v24012_v50 = vld [vmem:[#allocation2 + $0x2cc0] sm:$0xff]  }
 0x5cd   :  { %17586 = vmatprep.mubr.bf16.mxu0 %v18590_v52  ;;  %v290_v44 = vld [vmem:[%s25323_s0 + $0x5d8] sm:$0xff]  ;;  %v24014_v52 = vld [vmem:[#allocation2 + $0x2c80] sm:$0xff]  }
 0x5ce   :  { %22086 = vmatpush3.bf16.msra.mxu0 %v23977_v48  ;;  %v18595_v48 = vcombine.low %v190_v43, %v290_v44  ;;  %v24043_v39 = vld [vmem:[#allocation2 + $0x2d40] sm:$0xff]  }
 0x5cf   :  { %22108 = vmatpush3.bf16.msra.mxu1 %v23978_v47  ;;  %22115 = vmatprep.subr.bf16.mxu0 %v23979_v57  ;;  %v18596_v47 = vcombine.high %v190_v43, %v290_v44  ;;  %v24019_v57 = vld [vmem:[#allocation2 + $0x2c50] sm:$0xff]   ;;  %v24044_v42 = vld [vmem:[#allocation2 + $0x2dc0] sm:$0xff]  }
 0x5d0   :  { %22137 = vmatprep.subr.bf16.mxu1 %v23980_v58  ;;  %v24020_v58 = vld [vmem:[#allocation2 + $0x2cd0] sm:$0xff]   ;;  %v24045_v43 = vld [vmem:[#allocation2 + $0x2d00] sm:$0xff]  }
 0x5d1   :  { %17587 = vmatmul.mubr.bf16.vlgmr.msra.gmra.mrb[168].mxu0 %v18589_v51  ;;  %v24013_v51 = vld [vmem:[#allocation2 + $0x2c00] sm:$0xff]  }
 0x5d2   :  { %17628 = vmatmul.mubr.bf16.vlgmr.msra.gmra.mrb[168].mxu1 %v18591_v55  ;;  %22116 = vmatpush3.bf16.msra.mxu0 %v23981_v59  ;;  %v24017_v55 = vld [vmem:[#allocation2 + $0x2c08] sm:$0xff]   ;;  %v24021_v59 = vld [vmem:[#allocation2 + $0x2c10] sm:$0xff]   ;;  %v24046_v44 = vld [vmem:[#allocation2 + $0x2d80] sm:$0xff]  }
 0x5d3   :  { %22138 = vmatpush3.bf16.msra.mxu1 %v23982_v60  ;;  %22117 = vmatprep.subr.bf16.mxu0 %v23983_v61  ;;  %v24022_v60 = vld [vmem:[#allocation2 + $0x2c90] sm:$0xff]   ;;  %v24023_v61 = vld [vmem:[#allocation2 + $0x2c58] sm:$0xff]  }
 0x5d4   :  { %22139 = vmatprep.subr.bf16.mxu1 %v23984_v62  ;;  %17668 = vmatprep.mubr.bf16.mxu0 %v18594_v46  ;;  %v24024_v62 = vld [vmem:[#allocation2 + $0x2cd8] sm:$0xff]   ;;  %v24048_v46 = vld [vmem:[#allocation2 + $0x2dc8] sm:$0xff]  }
 0x5d5   :  { %17709 = vmatprep.mubr.bf16.mxu1 %v18596_v47  ;;  %v24050_v47 = vld [vmem:[#allocation2 + $0x2d88] sm:$0xff]  }
 0x5d6   :  { %22118 = vmatpush3.bf16.msra.mxu0 %v23985_v1  ;;  %v24025_v1 = vld [vmem:[#allocation2 + $0x2c18] sm:$0xff]  }
 0x5d7   :  { %22140 = vmatpush3.bf16.msra.mxu1 %v23986_v63  ;;  %22119 = vmatprep.subr.bf16.mxu0 %v23987_v0  ;;  %v24026_v0 = vld [vmem:[#allocation2 + $0x2c98] sm:$0xff]  }
 0x5d8   :  { %22141 = vmatprep.subr.bf16.mxu1 %v23988_v2 }
 0x5da   :  { %22120 = vmatpush3.bf16.msra.mxu0 %v23989_v3  ;;  %v24027_v3 = vld [vmem:[#allocation2 + $0x2c60] sm:$0xff]  }
 0x5db   :  { %22142 = vmatpush3.bf16.msra.mxu1 %v23990_v4  ;;  %22121 = vmatprep.subr.bf16.mxu0 %v23991_v5  ;;  %v24028_v5 = vld [vmem:[#allocation2 + $0x2ce0] sm:$0xff]  }
 0x5dc   :  { %22143 = vmatprep.subr.bf16.mxu1 %v23992_v6 }
 0x5de   :  { %22122 = vmatpush3.bf16.msra.mxu0 %v23993_v8  ;;  %v24029_v8 = vld [vmem:[#allocation2 + $0x2c20] sm:$0xff]  }
 0x5df   :  { %22144 = vmatpush3.bf16.msra.mxu1 %v23994_v10  ;;  %22123 = vmatprep.subr.bf16.mxu0 %v23995_v12 }
 0x5e0   :  { %22145 = vmatprep.subr.bf16.mxu1 %v23996_v15 }
 0x5e2   :  { %22124 = vmatpush3.bf16.msra.mxu0 %v23997_v18 }
 0x5e3   :  { %22146 = vmatpush3.bf16.msra.mxu1 %v23998_v21  ;;  %22125 = vmatprep.subr.bf16.mxu0 %v23999_v24 }
 0x5e4   :  { %v21823_v7 = vpop.f32.mrb[144].mxu0  ;;  %22147 = vmatprep.subr.bf16.mxu1 %v24000_v27  ;;  %v24037_v27 = vld [vmem:[#allocation2 + $0x2c30] sm:$0xff]  }
 0x5e5   :  { %v21845_v9 = vpop.f32.mrb[144].mxu1  ;;  %v21824_v11 = vpop.f32.mrb[145].mxu0 }
 0x5e6   :  { %v21825_v13 = vadd.f32 %v21824_v11, %v21823_v7  ;;  %v21846_v14 = vpop.f32.mrb[145].mxu1  ;;  %v21826_v17 = vpop.f32.mrb[146].mxu0  ;;  %22126 = vmatpush3.bf16.msra.mxu0 %v24001_v29  ;;  %v24030_v11 = vld [vmem:[#allocation2 + $0x2ca0] sm:$0xff]   ;;  %v24039_v29 = vld [vmem:[#allocation2 + $0x2c78] sm:$0xff]  }
 0x5e7   :  { %v21847_v16 = vadd.f32 %v21846_v14, %v21845_v9  ;;  %v21848_v20 = vpop.f32.mrb[146].mxu1  ;;  %v21827_v22 = vpop.f32.mrb[147].mxu0  ;;  %22148 = vmatpush3.bf16.msra.mxu1 %v24002_v32  ;;  %22127 = vmatprep.subr.bf16.mxu0 %v24003_v31  ;;  %v24031_v14 = vld [vmem:[#allocation2 + $0x2c68] sm:$0xff]   ;;  %v24041_v32 = vld [vmem:[#allocation2 + $0x2c38] sm:$0xff]  }
 0x5e8   :  { %v17097_v19 = vadd.f32 %v21825_v13, %v25178_v33  ;;  %v21828_v23 = vadd.f32 %v21827_v22, %v21826_v17  ;;  %v21849_v26 = vpop.f32.mrb[147].mxu1  ;;  %22149 = vmatprep.subr.bf16.mxu1 %v24004_v34  ;;  %v24032_v17 = vld [vmem:[#allocation2 + $0x2ce8] sm:$0xff]   ;;  %v24042_v31 = vld [vmem:[#allocation2 + $0x2cb8] sm:$0xff]   ;;  %v291_v34 = vld [vmem:[%s25323_s0 + $0x5e0] sm:$0xff] }
 0x5e9   :  { %v21850_v28 = vadd.f32 %v21849_v26, %v21848_v20  ;;  %v24033_v20 = vld [vmem:[#allocation2 + $0x2c28] sm:$0xff]   ;;  %v24036_v26 = vld [vmem:[#allocation2 + $0x2cf0] sm:$0xff]  }
 0x5ea   :  { %v25196_v25 = vadd.f32 %v21847_v16, %v17097_v19  ;;  %v17100_v30 = vadd.f32 %v21828_v23, %v25181_v40  ;;  %22128 = vmatpush3.bf16.msra.mxu0 %v24005_v35  ;;  %v24010_v40 = vld [vmem:[#allocation2 + $0x2bb8] sm:$0xff]   ;;  %v24034_v22 = vld [vmem:[#allocation2 + $0x2ca8] sm:$0xff]   ;;  %v24035_v23 = vld [vmem:[#allocation2 + $0x2c70] sm:$0xff]  }
 0x5eb   :  { %22150 = vmatpush3.bf16.msra.mxu1 %v24006_v36  ;;  %22129 = vmatprep.subr.bf16.mxu0 %v24007_v37  ;;  %v192_v35 = vld [vmem:[%s25323_s0 + $0x2c8] sm:$0xff] }
 0x5ec   :  { %v25199_v33 = vadd.f32 %v21850_v28, %v17100_v30  ;;  %22151 = vmatprep.subr.bf16.mxu1 %v24008_v38  ;;  %v24038_v28 = vld [vmem:[#allocation2 + $0x2cb0] sm:$0xff]   ;;  %v24040_v30 = vld [vmem:[#allocation2 + $0x2cf8] sm:$0xff]   ;;  %v292_v38 = vld [vmem:[%s25323_s0 + $0x5e8] sm:$0xff] }
 0x5ee   :  { %22130 = vmatpush3.bf16.msra.mxu0 %v24009_v41  ;;  %v18599_v41 = vcombine.low %v192_v35, %v292_v38 }
 0x5ef   :  { %22152 = vmatpush3.bf16.msra.mxu1 %v24010_v40  ;;  %22159 = vmatprep.subr.bf16.mxu0 %v24011_v49  ;;  %v18600_v40 = vcombine.high %v192_v35, %v292_v38  ;;  %v24051_v49 = vld [vmem:[#allocation2 + $0x2d50] sm:$0xff]   ;;  %v24077_v35 = vld [vmem:[#allocation2 + $0x2e00] sm:$0xff]   ;;  %v24080_v38 = vld [vmem:[#allocation2 + $0x2ec8] sm:$0xff]  }
 0x5f0   :  { %22181 = vmatprep.subr.bf16.mxu1 %v24012_v50  ;;  %v24052_v50 = vld [vmem:[#allocation2 + $0x2dd0] sm:$0xff]  }
 0x5f1   :  { %17669 = vmatmul.mubr.bf16.vlgmr.msra.gmra.mrb[172].mxu0 %v18593_v45  ;;  %v24047_v45 = vld [vmem:[#allocation2 + $0x2d48] sm:$0xff]  }
 0x5f2   :  { %17710 = vmatmul.mubr.bf16.vlgmr.msra.gmra.mrb[172].mxu1 %v18595_v48  ;;  %22160 = vmatpush3.bf16.msra.mxu0 %v24013_v51  ;;  %v24049_v48 = vld [vmem:[#allocation2 + $0x2d08] sm:$0xff]   ;;  %v24053_v51 = vld [vmem:[#allocation2 + $0x2d10] sm:$0xff]  }
 0x5f3   :  { %22182 = vmatpush3.bf16.msra.mxu1 %v24014_v52  ;;  %22161 = vmatprep.subr.bf16.mxu0 %v24015_v53  ;;  %v24054_v52 = vld [vmem:[#allocation2 + $0x2d90] sm:$0xff]   ;;  %v24055_v53 = vld [vmem:[#allocation2 + $0x2d58] sm:$0xff]  }
 0x5f4   :  { %22183 = vmatprep.subr.bf16.mxu1 %v24016_v54  ;;  %17791 = vmatprep.mubr.bf16.mxu1 %v18600_v40  ;;  %v24056_v54 = vld [vmem:[#allocation2 + $0x2dd8] sm:$0xff]   ;;  %v24082_v40 = vld [vmem:[#allocation2 + $0x2e88] sm:$0xff]  }
 0x5f6   :  { %22162 = vmatpush3.bf16.msra.mxu0 %v24017_v55 }
 0x5f7   :  { %22184 = vmatpush3.bf16.msra.mxu1 %v24018_v56  ;;  %22163 = vmatprep.subr.bf16.mxu0 %v24019_v57  ;;  %v24057_v56 = vld [vmem:[#allocation2 + $0x2d18] sm:$0xff]  }
 0x5f8   :  { %22185 = vmatprep.subr.bf16.mxu1 %v24020_v58  ;;  %v24058_v58 = vld [vmem:[#allocation2 + $0x2d98] sm:$0xff]  }
 0x5fa   :  { %22164 = vmatpush3.bf16.msra.mxu0 %v24021_v59 }
 0x5fb   :  { %22186 = vmatpush3.bf16.msra.mxu1 %v24022_v60  ;;  %22165 = vmatprep.subr.bf16.mxu0 %v24023_v61  ;;  %v24059_v60 = vld [vmem:[#allocation2 + $0x2d60] sm:$0xff]  }
 0x5fc   :  { %22187 = vmatprep.subr.bf16.mxu1 %v24024_v62 }
 0x5fe   :  { %22166 = vmatpush3.bf16.msra.mxu0 %v24025_v1  ;;  %v24060_v1 = vld [vmem:[#allocation2 + $0x2de0] sm:$0xff]  }
 0x5ff   :  { %22188 = vmatpush3.bf16.msra.mxu1 %v24026_v0  ;;  %22167 = vmatprep.subr.bf16.mxu0 %v24027_v3 }
 0x600   :  { %22189 = vmatprep.subr.bf16.mxu1 %v24028_v5  ;;  %v24062_v5 = vld [vmem:[#allocation2 + $0x2da0] sm:$0xff]  }
 0x602   :  { %22168 = vmatpush3.bf16.msra.mxu0 %v24029_v8  ;;  %v24063_v8 = vld [vmem:[#allocation2 + $0x2d68] sm:$0xff]  }
 0x603   :  { %22190 = vmatpush3.bf16.msra.mxu1 %v24030_v11  ;;  %22169 = vmatprep.subr.bf16.mxu0 %v24031_v14  ;;  %v24064_v11 = vld [vmem:[#allocation2 + $0x2de8] sm:$0xff]  }
 0x604   :  { %v21867_v63 = vpop.f32.mrb[148].mxu0  ;;  %22191 = vmatprep.subr.bf16.mxu1 %v24032_v17  ;;  %v24067_v17 = vld [vmem:[#allocation2 + $0x2d70] sm:$0xff]  }
 0x605   :  { %v21889_v2 = vpop.f32.mrb[148].mxu1  ;;  %v21868_v4 = vpop.f32.mrb[149].mxu0 }
 0x606   :  { %v21869_v6 = vadd.f32 %v21868_v4, %v21867_v63  ;;  %v21890_v7 = vpop.f32.mrb[149].mxu1  ;;  %v21870_v10 = vpop.f32.mrb[150].mxu0  ;;  %22170 = vmatpush3.bf16.msra.mxu0 %v24033_v20  ;;  %v24070_v20 = vld [vmem:[#allocation2 + $0x2db0] sm:$0xff]  }
 0x607   :  { %v21891_v9 = vadd.f32 %v21890_v7, %v21889_v2  ;;  %v21892_v13 = vpop.f32.mrb[150].mxu1  ;;  %v21871_v15 = vpop.f32.mrb[151].mxu0  ;;  %22192 = vmatpush3.bf16.msra.mxu1 %v24034_v22  ;;  %22171 = vmatprep.subr.bf16.mxu0 %v24035_v23  ;;  %v24061_v2 = vld [vmem:[#allocation2 + $0x2d20] sm:$0xff]   ;;  %v24072_v22 = vld [vmem:[#allocation2 + $0x2df8] sm:$0xff]  }
 0x608   :  { %v17179_v12 = vadd.f32 %v21869_v6, %v25196_v25  ;;  %v21872_v18 = vadd.f32 %v21871_v15, %v21870_v10  ;;  %v21893_v19 = vpop.f32.mrb[151].mxu1  ;;  %22193 = vmatprep.subr.bf16.mxu1 %v24036_v26  ;;  %v24066_v15 = vld [vmem:[#allocation2 + $0x2da8] sm:$0xff]   ;;  %v24074_v23 = vld [vmem:[#allocation2 + $0x2db8] sm:$0xff]   ;;  %v293_v26 = vld [vmem:[%s25323_s0 + $0x5f0] sm:$0xff] }
 0x609   :  { %v21894_v21 = vadd.f32 %v21893_v19, %v21892_v13  ;;  %v24065_v13 = vld [vmem:[#allocation2 + $0x2d28] sm:$0xff]   ;;  %v24069_v19 = vld [vmem:[#allocation2 + $0x2d30] sm:$0xff]  }
 0x60a   :  { %v25214_v16 = vadd.f32 %v21891_v9, %v17179_v12  ;;  %v17182_v24 = vadd.f32 %v21872_v18, %v25199_v33  ;;  %22172 = vmatpush3.bf16.msra.mxu0 %v24037_v27  ;;  %v191_v33 = vld [vmem:[%s25323_s0 + $0x2c0] sm:$0xff]  ;;  %v24068_v18 = vld [vmem:[#allocation2 + $0x2df0] sm:$0xff]  }
 0x60b   :  { %22194 = vmatpush3.bf16.msra.mxu1 %v24038_v28  ;;  %22173 = vmatprep.subr.bf16.mxu0 %v24039_v29  ;;  %v18597_v36 = vcombine.low %v191_v33, %v291_v34  ;;  %v18598_v37 = vcombine.high %v191_v33, %v291_v34  ;;  %v194_v29 = vld [vmem:[%s25323_s0 + $0x2d8] sm:$0xff]  ;;  %v24075_v33 = vld [vmem:[#allocation2 + $0x2e40] sm:$0xff]  }
 0x60c   :  { %v25217_v25 = vadd.f32 %v21894_v21, %v17182_v24  ;;  %22195 = vmatprep.subr.bf16.mxu1 %v24040_v30  ;;  %v24071_v21 = vld [vmem:[#allocation2 + $0x2d78] sm:$0xff]   ;;  %v24076_v34 = vld [vmem:[#allocation2 + $0x2ec0] sm:$0xff]  }
 0x60d   :  { %17750 = vmatprep.mubr.bf16.mxu0 %v18598_v37  ;;  %v24073_v24 = vld [vmem:[#allocation2 + $0x2d38] sm:$0xff]   ;;  %v24079_v37 = vld [vmem:[#allocation2 + $0x2e48] sm:$0xff]  }
 0x60e   :  { %22174 = vmatpush3.bf16.msra.mxu0 %v24041_v32  ;;  %v294_v30 = vld [vmem:[%s25323_s0 + $0x5f8] sm:$0xff] }
 0x60f   :  { %22196 = vmatpush3.bf16.msra.mxu1 %v24042_v31  ;;  %22203 = vmatprep.subr.bf16.mxu0 %v24043_v39  ;;  %v18603_v32 = vcombine.low %v194_v29, %v294_v30  ;;  %v18604_v31 = vcombine.high %v194_v29, %v294_v30  ;;  %v24083_v39 = vld [vmem:[#allocation2 + $0x2e50] sm:$0xff]   ;;  %v24111_v29 = vld [vmem:[#allocation2 + $0x2f48] sm:$0xff]  }
 0x610   :  { %22225 = vmatprep.subr.bf16.mxu1 %v24044_v42  ;;  %v24084_v42 = vld [vmem:[#allocation2 + $0x2ed0] sm:$0xff]   ;;  %v24112_v30 = vld [vmem:[#allocation2 + $0x2fc8] sm:$0xff]  }
 0x611   :  { %17751 = vmatmul.mubr.bf16.vlgmr.msra.gmra.mrb[176].mxu0 %v18597_v36  ;;  %v24078_v36 = vld [vmem:[#allocation2 + $0x2e80] sm:$0xff]  }
 0x612   :  { %17792 = vmatmul.mubr.bf16.vlgmr.msra.gmra.mrb[176].mxu1 %v18599_v41  ;;  %22204 = vmatpush3.bf16.msra.mxu0 %v24045_v43  ;;  %v24081_v41 = vld [vmem:[#allocation2 + $0x2e08] sm:$0xff]   ;;  %v24085_v43 = vld [vmem:[#allocation2 + $0x2e10] sm:$0xff]  }
 0x613   :  { %22226 = vmatpush3.bf16.msra.mxu1 %v24046_v44  ;;  %22205 = vmatprep.subr.bf16.mxu0 %v24047_v45  ;;  %v24086_v44 = vld [vmem:[#allocation2 + $0x2e90] sm:$0xff]   ;;  %v24087_v45 = vld [vmem:[#allocation2 + $0x2e58] sm:$0xff]  }
 0x614   :  { %22227 = vmatprep.subr.bf16.mxu1 %v24048_v46  ;;  %17873 = vmatprep.mubr.bf16.mxu1 %v18604_v31  ;;  %v24088_v46 = vld [vmem:[#allocation2 + $0x2ed8] sm:$0xff]   ;;  %v24114_v31 = vld [vmem:[#allocation2 + $0x2f88] sm:$0xff]  }
 0x616   :  { %22206 = vmatpush3.bf16.msra.mxu0 %v24049_v48 }
 0x617   :  { %22228 = vmatpush3.bf16.msra.mxu1 %v24050_v47  ;;  %22207 = vmatprep.subr.bf16.mxu0 %v24051_v49  ;;  %v24089_v47 = vld [vmem:[#allocation2 + $0x2e18] sm:$0xff]  }
 0x618   :  { %22229 = vmatprep.subr.bf16.mxu1 %v24052_v50  ;;  %v24090_v50 = vld [vmem:[#allocation2 + $0x2e98] sm:$0xff]  }
 0x61a   :  { %22208 = vmatpush3.bf16.msra.mxu0 %v24053_v51 }
 0x61b   :  { %22230 = vmatpush3.bf16.msra.mxu1 %v24054_v52  ;;  %22209 = vmatprep.subr.bf16.mxu0 %v24055_v53  ;;  %v24091_v52 = vld [vmem:[#allocation2 + $0x2e60] sm:$0xff]  }
 0x61c   :  { %22231 = vmatprep.subr.bf16.mxu1 %v24056_v54 }
 0x61e   :  { %22210 = vmatpush3.bf16.msra.mxu0 %v24057_v56 }
 0x61f   :  { %22232 = vmatpush3.bf16.msra.mxu1 %v24058_v58  ;;  %22211 = vmatprep.subr.bf16.mxu0 %v24059_v60  ;;  %v24093_v58 = vld [vmem:[#allocation2 + $0x2e20] sm:$0xff]  }
 0x620   :  { %22233 = vmatprep.subr.bf16.mxu1 %v24060_v1 }
 0x622   :  { %22212 = vmatpush3.bf16.msra.mxu0 %v24061_v2 }
 0x623   :  { %22234 = vmatpush3.bf16.msra.mxu1 %v24062_v5  ;;  %22213 = vmatprep.subr.bf16.mxu0 %v24063_v8  ;;  %v24097_v5 = vld [vmem:[#allocation2 + $0x2e28] sm:$0xff]  }
 0x624   :  { %v21911_v55 = vpop.f32.mrb[152].mxu0  ;;  %22235 = vmatprep.subr.bf16.mxu1 %v24064_v11  ;;  %v24098_v8 = vld [vmem:[#allocation2 + $0x2ea8] sm:$0xff]   ;;  %v24101_v11 = vld [vmem:[#allocation2 + $0x2e30] sm:$0xff]  }
 0x625   :  { %v21933_v57 = vpop.f32.mrb[152].mxu1  ;;  %v21912_v59 = vpop.f32.mrb[153].mxu0 }
 0x626   :  { %v21913_v61 = vadd.f32 %v21912_v59, %v21911_v55  ;;  %v21934_v62 = vpop.f32.mrb[153].mxu1  ;;  %v21914_v0 = vpop.f32.mrb[154].mxu0  ;;  %22214 = vmatpush3.bf16.msra.mxu0 %v24065_v13  ;;  %v24092_v55 = vld [vmem:[#allocation2 + $0x2ee0] sm:$0xff]   ;;  %v24103_v13 = vld [vmem:[#allocation2 + $0x2e78] sm:$0xff]  }
 0x627   :  { %v21935_v63 = vadd.f32 %v21934_v62, %v21933_v57  ;;  %v21936_v4 = vpop.f32.mrb[154].mxu1  ;;  %v21915_v6 = vpop.f32.mrb[155].mxu0  ;;  %22236 = vmatpush3.bf16.msra.mxu1 %v24066_v15  ;;  %22215 = vmatprep.subr.bf16.mxu0 %v24067_v17  ;;  %v24105_v15 = vld [vmem:[#allocation2 + $0x2e38] sm:$0xff]   ;;  %v195_v17 = vld [vmem:[%s25323_s0 + $0x2e0] sm:$0xff] }
 0x628   :  { %v17261_v3 = vadd.f32 %v21913_v61, %v25214_v16  ;;  %v21916_v9 = vadd.f32 %v21915_v6, %v21914_v0  ;;  %v21937_v10 = vpop.f32.mrb[155].mxu1  ;;  %22237 = vmatprep.subr.bf16.mxu1 %v24068_v18  ;;  %v24094_v61 = vld [vmem:[#allocation2 + $0x2ea0] sm:$0xff]  }
 0x629   :  { %v21938_v12 = vadd.f32 %v21937_v10, %v21936_v4  ;;  %v24100_v10 = vld [vmem:[#allocation2 + $0x2ef0] sm:$0xff]   ;;  %v295_v18 = vld [vmem:[%s25323_s0 + $0x600] sm:$0xff] }
 0x62a   :  { %v25232_v7 = vadd.f32 %v21935_v63, %v17261_v3  ;;  %v17264_v14 = vadd.f32 %v21916_v9, %v25217_v25  ;;  %22216 = vmatpush3.bf16.msra.mxu0 %v24069_v19  ;;  %v193_v25 = vld [vmem:[%s25323_s0 + $0x2d0] sm:$0xff]  ;;  %v24095_v63 = vld [vmem:[#allocation2 + $0x2e68] sm:$0xff]  }
 0x62b   :  { %22238 = vmatpush3.bf16.msra.mxu1 %v24070_v20  ;;  %22217 = vmatprep.subr.bf16.mxu0 %v24071_v21  ;;  %v18601_v27 = vcombine.low %v193_v25, %v293_v26  ;;  %v18602_v28 = vcombine.high %v193_v25, %v293_v26  ;;  %v24096_v3 = vld [vmem:[#allocation2 + $0x2ee8] sm:$0xff]   ;;  %v24099_v9 = vld [vmem:[#allocation2 + $0x2e70] sm:$0xff]   ;;  %v18605_v21 = vcombine.low %v195_v17, %v295_v18  ;;  %v24107_v25 = vld [vmem:[#allocation2 + $0x2f40] sm:$0xff]  }
 0x62c   :  { %v25235_v16 = vadd.f32 %v21938_v12, %v17264_v14  ;;  %22239 = vmatprep.subr.bf16.mxu1 %v24072_v22  ;;  %v24102_v12 = vld [vmem:[#allocation2 + $0x2eb0] sm:$0xff]   ;;  %v24104_v14 = vld [vmem:[#allocation2 + $0x2ef8] sm:$0xff]   ;;  %v196_v19 = vld [vmem:[%s25323_s0 + $0x2e8] sm:$0xff]  ;;  %v18606_v22 = vcombine.high %v195_v17, %v295_v18 }
 0x62d   :  { %17832 = vmatprep.mubr.bf16.mxu0 %v18602_v28  ;;  %v296_v20 = vld [vmem:[%s25323_s0 + $0x608] sm:$0xff]  ;;  %v24108_v26 = vld [vmem:[#allocation2 + $0x2fc0] sm:$0xff]  }
 0x62e   :  { %22218 = vmatpush3.bf16.msra.mxu0 %v24073_v24  ;;  %v18607_v24 = vcombine.low %v196_v19, %v296_v20  ;;  %v24110_v28 = vld [vmem:[#allocation2 + $0x2f80] sm:$0xff]  }
 0x62f   :  { %22240 = vmatpush3.bf16.msra.mxu1 %v24074_v23  ;;  %22247 = vmatprep.subr.bf16.mxu0 %v24075_v33  ;;  %v18608_v23 = vcombine.high %v196_v19, %v296_v20  ;;  %v24115_v33 = vld [vmem:[#allocation2 + $0x2f50] sm:$0xff]   ;;  %v24139_v17 = vld [vmem:[#allocation2 + $0x3040] sm:$0xff]  }
 0x630   :  { %22269 = vmatprep.subr.bf16.mxu1 %v24076_v34  ;;  %v24116_v34 = vld [vmem:[#allocation2 + $0x2fd0] sm:$0xff]   ;;  %v24140_v18 = vld [vmem:[#allocation2 + $0x30c0] sm:$0xff]  }
 0x631   :  { %17833 = vmatmul.mubr.bf16.vlgmr.msra.gmra.mrb[180].mxu0 %v18601_v27  ;;  %v24109_v27 = vld [vmem:[#allocation2 + $0x2f00] sm:$0xff]  }
 0x632   :  { %17874 = vmatmul.mubr.bf16.vlgmr.msra.gmra.mrb[180].mxu1 %v18603_v32  ;;  %22248 = vmatpush3.bf16.msra.mxu0 %v24077_v35  ;;  %v24113_v32 = vld [vmem:[#allocation2 + $0x2f08] sm:$0xff]   ;;  %v24117_v35 = vld [vmem:[#allocation2 + $0x2f10] sm:$0xff]   ;;  %v24141_v19 = vld [vmem:[#allocation2 + $0x3000] sm:$0xff]  }
 0x633   :  { %22270 = vmatpush3.bf16.msra.mxu1 %v24078_v36  ;;  %22249 = vmatprep.subr.bf16.mxu0 %v24079_v37  ;;  %v24118_v36 = vld [vmem:[#allocation2 + $0x2f90] sm:$0xff]   ;;  %v24119_v37 = vld [vmem:[#allocation2 + $0x2f58] sm:$0xff]   ;;  %v24142_v20 = vld [vmem:[#allocation2 + $0x3080] sm:$0xff]  }
 0x634   :  { %22271 = vmatprep.subr.bf16.mxu1 %v24080_v38  ;;  %17914 = vmatprep.mubr.bf16.mxu0 %v18606_v22  ;;  %v24120_v38 = vld [vmem:[#allocation2 + $0x2fd8] sm:$0xff]   ;;  %v24144_v22 = vld [vmem:[#allocation2 + $0x30c8] sm:$0xff]  }
 0x635   :  { %17955 = vmatprep.mubr.bf16.mxu1 %v18608_v23  ;;  %v24146_v23 = vld [vmem:[#allocation2 + $0x3088] sm:$0xff]  }
 0x636   :  { %22250 = vmatpush3.bf16.msra.mxu0 %v24081_v41  ;;  %v24121_v41 = vld [vmem:[#allocation2 + $0x2f18] sm:$0xff]  }
 0x637   :  { %22272 = vmatpush3.bf16.msra.mxu1 %v24082_v40  ;;  %22251 = vmatprep.subr.bf16.mxu0 %v24083_v39  ;;  %v24122_v39 = vld [vmem:[#allocation2 + $0x2f98] sm:$0xff]  }
 0x638   :  { %22273 = vmatprep.subr.bf16.mxu1 %v24084_v42 }
 0x63a   :  { %22252 = vmatpush3.bf16.msra.mxu0 %v24085_v43  ;;  %v24123_v43 = vld [vmem:[#allocation2 + $0x2f60] sm:$0xff]  }
 0x63b   :  { %22274 = vmatpush3.bf16.msra.mxu1 %v24086_v44  ;;  %22253 = vmatprep.subr.bf16.mxu0 %v24087_v45  ;;  %v24124_v45 = vld [vmem:[#allocation2 + $0x2fe0] sm:$0xff]  }
 0x63c   :  { %22275 = vmatprep.subr.bf16.mxu1 %v24088_v46 }
 0x63e   :  { %22254 = vmatpush3.bf16.msra.mxu0 %v24089_v47  ;;  %v24125_v47 = vld [vmem:[#allocation2 + $0x2f20] sm:$0xff]  }
 0x63f   :  { %22276 = vmatpush3.bf16.msra.mxu1 %v24090_v50  ;;  %22255 = vmatprep.subr.bf16.mxu0 %v24091_v52 }
 0x640   :  { %22277 = vmatprep.subr.bf16.mxu1 %v24092_v55 }
 0x642   :  { %22256 = vmatpush3.bf16.msra.mxu0 %v24093_v58 }
 0x643   :  { %22278 = vmatpush3.bf16.msra.mxu1 %v24094_v61  ;;  %22257 = vmatprep.subr.bf16.mxu0 %v24095_v63 }
 0x644   :  { %v21955_v48 = vpop.f32.mrb[156].mxu0  ;;  %22279 = vmatprep.subr.bf16.mxu1 %v24096_v3  ;;  %v24133_v3 = vld [vmem:[#allocation2 + $0x2f30] sm:$0xff]  }
 0x645   :  { %v21977_v49 = vpop.f32.mrb[156].mxu1  ;;  %v21956_v51 = vpop.f32.mrb[157].mxu0 }
 0x646   :  { %v21957_v53 = vadd.f32 %v21956_v51, %v21955_v48  ;;  %v21978_v54 = vpop.f32.mrb[157].mxu1  ;;  %v21958_v57 = vpop.f32.mrb[158].mxu0  ;;  %22258 = vmatpush3.bf16.msra.mxu0 %v24097_v5  ;;  %v24126_v51 = vld [vmem:[#allocation2 + $0x2fa0] sm:$0xff]   ;;  %v24135_v5 = vld [vmem:[#allocation2 + $0x2f78] sm:$0xff]  }
 0x647   :  { %v21979_v56 = vadd.f32 %v21978_v54, %v21977_v49  ;;  %v21980_v60 = vpop.f32.mrb[158].mxu1  ;;  %v21959_v62 = vpop.f32.mrb[159].mxu0  ;;  %22280 = vmatpush3.bf16.msra.mxu1 %v24098_v8  ;;  %22259 = vmatprep.subr.bf16.mxu0 %v24099_v9  ;;  %v24127_v54 = vld [vmem:[#allocation2 + $0x2f68] sm:$0xff]   ;;  %v24137_v8 = vld [vmem:[#allocation2 + $0x2f38] sm:$0xff]  }
 0x648   :  { %v17343_v59 = vadd.f32 %v21957_v53, %v25232_v7  ;;  %v21960_v0 = vadd.f32 %v21959_v62, %v21958_v57  ;;  %v21981_v2 = vpop.f32.mrb[159].mxu1  ;;  %22281 = vmatprep.subr.bf16.mxu1 %v24100_v10  ;;  %v24128_v57 = vld [vmem:[#allocation2 + $0x2fe8] sm:$0xff]   ;;  %v24138_v9 = vld [vmem:[#allocation2 + $0x2fb8] sm:$0xff]   ;;  %v297_v10 = vld [vmem:[%s25323_s0 + $0x610] sm:$0xff] }
 0x649   :  { %v21982_v4 = vadd.f32 %v21981_v2, %v21980_v60  ;;  %v24129_v60 = vld [vmem:[#allocation2 + $0x2f28] sm:$0xff]   ;;  %v24132_v2 = vld [vmem:[#allocation2 + $0x2ff0] sm:$0xff]  }
 0x64a   :  { %v25250_v1 = vadd.f32 %v21979_v56, %v17343_v59  ;;  %v17346_v6 = vadd.f32 %v21960_v0, %v25235_v16  ;;  %22260 = vmatpush3.bf16.msra.mxu0 %v24101_v11  ;;  %v24106_v16 = vld [vmem:[#allocation2 + $0x2eb8] sm:$0xff]   ;;  %v24130_v62 = vld [vmem:[#allocation2 + $0x2fa8] sm:$0xff]   ;;  %v24131_v0 = vld [vmem:[#allocation2 + $0x2f70] sm:$0xff]  }
 0x64b   :  { %22282 = vmatpush3.bf16.msra.mxu1 %v24102_v12  ;;  %22261 = vmatprep.subr.bf16.mxu0 %v24103_v13  ;;  %v198_v11 = vld [vmem:[%s25323_s0 + $0x2f8] sm:$0xff] }
 0x64c   :  { %v25253_v7 = vadd.f32 %v21982_v4, %v17346_v6  ;;  %22283 = vmatprep.subr.bf16.mxu1 %v24104_v14  ;;  %v24134_v4 = vld [vmem:[#allocation2 + $0x2fb0] sm:$0xff]   ;;  %v24136_v6 = vld [vmem:[#allocation2 + $0x2ff8] sm:$0xff]  }
 0x64d   :  { %v298_v14 = vld [vmem:[%s25323_s0 + $0x618] sm:$0xff] }
 0x64e   :  { %22262 = vmatpush3.bf16.msra.mxu0 %v24105_v15  ;;  %v18611_v15 = vcombine.low %v198_v11, %v298_v14 }
 0x64f   :  { %22284 = vmatpush3.bf16.msra.mxu1 %v24106_v16  ;;  %22291 = vmatprep.subr.bf16.mxu0 %v24107_v25  ;;  %v18612_v16 = vcombine.high %v198_v11, %v298_v14  ;;  %v24147_v25 = vld [vmem:[#allocation2 + $0x3050] sm:$0xff]   ;;  %v24173_v11 = vld [vmem:[#allocation2 + $0x3100] sm:$0xff]   ;;  %v24176_v14 = vld [vmem:[#allocation2 + $0x31c8] sm:$0xff]  }
 0x650   :  { %22313 = vmatprep.subr.bf16.mxu1 %v24108_v26  ;;  %v24148_v26 = vld [vmem:[#allocation2 + $0x30d0] sm:$0xff]  }
 0x651   :  { %17915 = vmatmul.mubr.bf16.vlgmr.msra.gmra.mrb[184].mxu0 %v18605_v21  ;;  %v24143_v21 = vld [vmem:[#allocation2 + $0x3048] sm:$0xff]  }
 0x652   :  { %17956 = vmatmul.mubr.bf16.vlgmr.msra.gmra.mrb[184].mxu1 %v18607_v24  ;;  %22292 = vmatpush3.bf16.msra.mxu0 %v24109_v27  ;;  %v24145_v24 = vld [vmem:[#allocation2 + $0x3008] sm:$0xff]   ;;  %v24149_v27 = vld [vmem:[#allocation2 + $0x3010] sm:$0xff]  }
 0x653   :  { %22314 = vmatpush3.bf16.msra.mxu1 %v24110_v28  ;;  %22293 = vmatprep.subr.bf16.mxu0 %v24111_v29  ;;  %v24150_v28 = vld [vmem:[#allocation2 + $0x3090] sm:$0xff]   ;;  %v24151_v29 = vld [vmem:[#allocation2 + $0x3058] sm:$0xff]  }
 0x654   :  { %22315 = vmatprep.subr.bf16.mxu1 %v24112_v30  ;;  %18037 = vmatprep.mubr.bf16.mxu1 %v18612_v16  ;;  %v24152_v30 = vld [vmem:[#allocation2 + $0x30d8] sm:$0xff]   ;;  %v24178_v16 = vld [vmem:[#allocation2 + $0x3188] sm:$0xff]  }
 0x656   :  { %22294 = vmatpush3.bf16.msra.mxu0 %v24113_v32 }
 0x657   :  { %22316 = vmatpush3.bf16.msra.mxu1 %v24114_v31  ;;  %22295 = vmatprep.subr.bf16.mxu0 %v24115_v33  ;;  %v24153_v31 = vld [vmem:[#allocation2 + $0x3018] sm:$0xff]  }
 0x658   :  { %22317 = vmatprep.subr.bf16.mxu1 %v24116_v34  ;;  %v24154_v34 = vld [vmem:[#allocation2 + $0x3098] sm:$0xff]  }
 0x65a   :  { %22296 = vmatpush3.bf16.msra.mxu0 %v24117_v35 }
 0x65b   :  { %22318 = vmatpush3.bf16.msra.mxu1 %v24118_v36  ;;  %22297 = vmatprep.subr.bf16.mxu0 %v24119_v37  ;;  %v24155_v36 = vld [vmem:[#allocation2 + $0x3060] sm:$0xff]  }
 0x65c   :  { %22319 = vmatprep.subr.bf16.mxu1 %v24120_v38 }
 0x65e   :  { %22298 = vmatpush3.bf16.msra.mxu0 %v24121_v41  ;;  %v24156_v41 = vld [vmem:[#allocation2 + $0x30e0] sm:$0xff]  }
 0x65f   :  { %22320 = vmatpush3.bf16.msra.mxu1 %v24122_v39  ;;  %22299 = vmatprep.subr.bf16.mxu0 %v24123_v43 }
 0x660   :  { %22321 = vmatprep.subr.bf16.mxu1 %v24124_v45  ;;  %v24158_v45 = vld [vmem:[#allocation2 + $0x30a0] sm:$0xff]  }
 0x662   :  { %22300 = vmatpush3.bf16.msra.mxu0 %v24125_v47  ;;  %v24159_v47 = vld [vmem:[#allocation2 + $0x3068] sm:$0xff]  }
 0x663   :  { %22322 = vmatpush3.bf16.msra.mxu1 %v24126_v51  ;;  %22301 = vmatprep.subr.bf16.mxu0 %v24127_v54  ;;  %v24160_v51 = vld [vmem:[#allocation2 + $0x30e8] sm:$0xff]  }
 0x664   :  { %v21999_v40 = vpop.f32.mrb[160].mxu0  ;;  %22323 = vmatprep.subr.bf16.mxu1 %v24128_v57  ;;  %v24163_v57 = vld [vmem:[#allocation2 + $0x3070] sm:$0xff]  }
 0x665   :  { %v22021_v42 = vpop.f32.mrb[160].mxu1  ;;  %v22000_v44 = vpop.f32.mrb[161].mxu0 }
 0x666   :  { %v22001_v46 = vadd.f32 %v22000_v44, %v21999_v40  ;;  %v22022_v48 = vpop.f32.mrb[161].mxu1  ;;  %v22002_v50 = vpop.f32.mrb[162].mxu0  ;;  %22302 = vmatpush3.bf16.msra.mxu0 %v24129_v60  ;;  %v24166_v60 = vld [vmem:[#allocation2 + $0x30b0] sm:$0xff]  }
 0x667   :  { %v22023_v49 = vadd.f32 %v22022_v48, %v22021_v42  ;;  %v22024_v53 = vpop.f32.mrb[162].mxu1  ;;  %v22003_v55 = vpop.f32.mrb[163].mxu0  ;;  %22324 = vmatpush3.bf16.msra.mxu1 %v24130_v62  ;;  %22303 = vmatprep.subr.bf16.mxu0 %v24131_v0  ;;  %v24157_v42 = vld [vmem:[#allocation2 + $0x3020] sm:$0xff]   ;;  %v24168_v62 = vld [vmem:[#allocation2 + $0x30f8] sm:$0xff]  }
 0x668   :  { %v17425_v52 = vadd.f32 %v22001_v46, %v25250_v1  ;;  %v22004_v58 = vadd.f32 %v22003_v55, %v22002_v50  ;;  %v22025_v59 = vpop.f32.mrb[163].mxu1  ;;  %22325 = vmatprep.subr.bf16.mxu1 %v24132_v2  ;;  %v24162_v55 = vld [vmem:[#allocation2 + $0x30a8] sm:$0xff]   ;;  %v24170_v0 = vld [vmem:[#allocation2 + $0x30b8] sm:$0xff]   ;;  %v299_v2 = vld [vmem:[%s25323_s0 + $0x620] sm:$0xff] }
 0x669   :  { %v22026_v61 = vadd.f32 %v22025_v59, %v22024_v53  ;;  %v24161_v53 = vld [vmem:[#allocation2 + $0x3028] sm:$0xff]   ;;  %v24165_v59 = vld [vmem:[#allocation2 + $0x3030] sm:$0xff]  }
 0x66a   :  { %v25268_v56 = vadd.f32 %v22023_v49, %v17425_v52  ;;  %v17428_v63 = vadd.f32 %v22004_v58, %v25253_v7  ;;  %22304 = vmatpush3.bf16.msra.mxu0 %v24133_v3  ;;  %v197_v7 = vld [vmem:[%s25323_s0 + $0x2f0] sm:$0xff] }
 0x66b   :  { %22326 = vmatpush3.bf16.msra.mxu1 %v24134_v4  ;;  %22305 = vmatprep.subr.bf16.mxu0 %v24135_v5  ;;  %v18609_v12 = vcombine.low %v197_v7, %v297_v10  ;;  %v18610_v13 = vcombine.high %v197_v7, %v297_v10  ;;  %v24164_v58 = vld [vmem:[#allocation2 + $0x30f0] sm:$0xff]   ;;  %v200_v5 = vld [vmem:[%s25323_s0 + $0x308] sm:$0xff]  ;;  %v24171_v7 = vld [vmem:[#allocation2 + $0x3140] sm:$0xff]  }
 0x66c   :  { %v25271_v1 = vadd.f32 %v22026_v61, %v17428_v63  ;;  %22327 = vmatprep.subr.bf16.mxu1 %v24136_v6  ;;  %v24167_v61 = vld [vmem:[#allocation2 + $0x3078] sm:$0xff]   ;;  %v300_v6 = vld [vmem:[%s25323_s0 + $0x628] sm:$0xff]  ;;  %v24172_v10 = vld [vmem:[#allocation2 + $0x31c0] sm:$0xff]  }
 0x66d   :  { %17996 = vmatprep.mubr.bf16.mxu0 %v18610_v13  ;;  %v24169_v63 = vld [vmem:[#allocation2 + $0x3038] sm:$0xff]   ;;  %v24175_v13 = vld [vmem:[#allocation2 + $0x3148] sm:$0xff]  }
 0x66e   :  { %22306 = vmatpush3.bf16.msra.mxu0 %v24137_v8  ;;  %v18615_v8 = vcombine.low %v200_v5, %v300_v6 }
 0x66f   :  { %22328 = vmatpush3.bf16.msra.mxu1 %v24138_v9  ;;  %22335 = vmatprep.subr.bf16.mxu0 %v24139_v17  ;;  %v18616_v9 = vcombine.high %v200_v5, %v300_v6  ;;  %v24179_v17 = vld [vmem:[#allocation2 + $0x3150] sm:$0xff]  }
 0x670   :  { %22357 = vmatprep.subr.bf16.mxu1 %v24140_v18  ;;  %v24180_v18 = vld [vmem:[#allocation2 + $0x31d0] sm:$0xff]  }
 0x671   :  { %17997 = vmatmul.mubr.bf16.vlgmr.msra.gmra.mrb[188].mxu0 %v18609_v12  ;;  %v24174_v12 = vld [vmem:[#allocation2 + $0x3180] sm:$0xff]  }
 0x672   :  { %18038 = vmatmul.mubr.bf16.vlgmr.msra.gmra.mrb[188].mxu1 %v18611_v15  ;;  %22336 = vmatpush3.bf16.msra.mxu0 %v24141_v19  ;;  %v24177_v15 = vld [vmem:[#allocation2 + $0x3108] sm:$0xff]   ;;  %v24181_v19 = vld [vmem:[#allocation2 + $0x3110] sm:$0xff]  }
 0x673   :  { %22358 = vmatpush3.bf16.msra.mxu1 %v24142_v20  ;;  %22337 = vmatprep.subr.bf16.mxu0 %v24143_v21  ;;  %v24182_v20 = vld [vmem:[#allocation2 + $0x3190] sm:$0xff]   ;;  %v24183_v21 = vld [vmem:[#allocation2 + $0x3158] sm:$0xff]  }
 0x674   :  { %22359 = vmatprep.subr.bf16.mxu1 %v24144_v22  ;;  %18119 = vmatprep.mubr.bf16.mxu1 %v18616_v9  ;;  %v24184_v22 = vld [vmem:[#allocation2 + $0x31d8] sm:$0xff]  }
 0x676   :  { %22338 = vmatpush3.bf16.msra.mxu0 %v24145_v24 }
 0x677   :  { %22360 = vmatpush3.bf16.msra.mxu1 %v24146_v23  ;;  %22339 = vmatprep.subr.bf16.mxu0 %v24147_v25  ;;  %v24185_v23 = vld [vmem:[#allocation2 + $0x3118] sm:$0xff]  }
 0x678   :  { %22361 = vmatprep.subr.bf16.mxu1 %v24148_v26  ;;  %v24186_v26 = vld [vmem:[#allocation2 + $0x3198] sm:$0xff]  }
 0x67a   :  { %22340 = vmatpush3.bf16.msra.mxu0 %v24149_v27 }
 0x67b   :  { %22362 = vmatpush3.bf16.msra.mxu1 %v24150_v28  ;;  %22341 = vmatprep.subr.bf16.mxu0 %v24151_v29  ;;  %v24187_v28 = vld [vmem:[#allocation2 + $0x3160] sm:$0xff]  }
 0x67c   :  { %22363 = vmatprep.subr.bf16.mxu1 %v24152_v30 }
 0x67e   :  { %22342 = vmatpush3.bf16.msra.mxu0 %v24153_v31 }
 0x67f   :  { %22364 = vmatpush3.bf16.msra.mxu1 %v24154_v34  ;;  %22343 = vmatprep.subr.bf16.mxu0 %v24155_v36  ;;  %v24189_v34 = vld [vmem:[#allocation2 + $0x3120] sm:$0xff]  }
 0x680   :  { %22365 = vmatprep.subr.bf16.mxu1 %v24156_v41 }
 0x682   :  { %22344 = vmatpush3.bf16.msra.mxu0 %v24157_v42 }
 0x683   :  { %22366 = vmatpush3.bf16.msra.mxu1 %v24158_v45  ;;  %22345 = vmatprep.subr.bf16.mxu0 %v24159_v47  ;;  %v24193_v45 = vld [vmem:[#allocation2 + $0x3128] sm:$0xff]  }
 0x684   :  { %v22043_v32 = vpop.f32.mrb[164].mxu0  ;;  %22367 = vmatprep.subr.bf16.mxu1 %v24160_v51  ;;  %v24194_v47 = vld [vmem:[#allocation2 + $0x31a8] sm:$0xff]   ;;  %v24197_v51 = vld [vmem:[#allocation2 + $0x3130] sm:$0xff]  }
 0x685   :  { %v22065_v33 = vpop.f32.mrb[164].mxu1  ;;  %v22044_v35 = vpop.f32.mrb[165].mxu0 }
 0x686   :  { %v22045_v37 = vadd.f32 %v22044_v35, %v22043_v32  ;;  %v22066_v38 = vpop.f32.mrb[165].mxu1  ;;  %v22046_v39 = vpop.f32.mrb[166].mxu0  ;;  %22346 = vmatpush3.bf16.msra.mxu0 %v24161_v53  ;;  %v24188_v32 = vld [vmem:[#allocation2 + $0x31e0] sm:$0xff]   ;;  %v24199_v53 = vld [vmem:[#allocation2 + $0x3178] sm:$0xff]  }
 0x687   :  { %v22067_v40 = vadd.f32 %v22066_v38, %v22065_v33  ;;  %v22068_v44 = vpop.f32.mrb[166].mxu1  ;;  %v22047_v46 = vpop.f32.mrb[167].mxu0  ;;  %22368 = vmatpush3.bf16.msra.mxu1 %v24162_v55  ;;  %22347 = vmatprep.subr.bf16.mxu0 %v24163_v57  ;;  %v24201_v55 = vld [vmem:[#allocation2 + $0x3138] sm:$0xff]  }
 0x688   :  { %v17507_v43 = vadd.f32 %v22045_v37, %v25268_v56  ;;  %v22048_v49 = vadd.f32 %v22047_v46, %v22046_v39  ;;  %v22069_v50 = vpop.f32.mrb[167].mxu1  ;;  %22369 = vmatprep.subr.bf16.mxu1 %v24164_v58  ;;  %v24190_v37 = vld [vmem:[#allocation2 + $0x31a0] sm:$0xff]   ;;  %v24202_v57 = vld [vmem:[#allocation2 + $0x31b8] sm:$0xff]   ;;  %v301_v58 = vld [vmem:[%s25323_s0 + $0x630] sm:$0xff] }
 0x689   :  { %v22070_v52 = vadd.f32 %v22069_v50, %v22068_v44  ;;  %v24196_v50 = vld [vmem:[#allocation2 + $0x31f0] sm:$0xff]  }
 0x68a   :  { %v25286_v48 = vadd.f32 %v22067_v40, %v17507_v43  ;;  %v17510_v54 = vadd.f32 %v22048_v49, %v25271_v1  ;;  %22348 = vmatpush3.bf16.msra.mxu0 %v24165_v59  ;;  %v199_v1 = vld [vmem:[%s25323_s0 + $0x300] sm:$0xff]  ;;  %v24191_v40 = vld [vmem:[#allocation2 + $0x3168] sm:$0xff]   ;;  %v24195_v49 = vld [vmem:[#allocation2 + $0x3170] sm:$0xff]  }
 0x68b   :  { %22370 = vmatpush3.bf16.msra.mxu1 %v24166_v60  ;;  %22349 = vmatprep.subr.bf16.mxu0 %v24167_v61  ;;  %v18613_v3 = vcombine.low %v199_v1, %v299_v2  ;;  %v18614_v4 = vcombine.high %v199_v1, %v299_v2  ;;  %v24192_v43 = vld [vmem:[#allocation2 + $0x31e8] sm:$0xff]   ;;  %v202_v59 = vld [vmem:[%s25323_s0 + $0x318] sm:$0xff] }
 0x68c   :  { %v25289_v56 = vadd.f32 %v22070_v52, %v17510_v54  ;;  %22371 = vmatprep.subr.bf16.mxu1 %v24168_v62  ;;  %v24198_v52 = vld [vmem:[#allocation2 + $0x31b0] sm:$0xff]   ;;  %v24200_v54 = vld [vmem:[#allocation2 + $0x31f8] sm:$0xff]  }
 0x68d   :  { %18078 = vmatprep.mubr.bf16.mxu0 %v18614_v4  ;;  %v302_v60 = vld [vmem:[%s25323_s0 + $0x638] sm:$0xff] }
 0x68e   :  { %22350 = vmatpush3.bf16.msra.mxu0 %v24169_v63  ;;  %v18619_v63 = vcombine.low %v202_v59, %v302_v60 }
 0x68f   :  { %22372 = vmatpush3.bf16.msra.mxu1 %v24170_v0  ;;  %22379 = vmatprep.subr.bf16.mxu0 %v24171_v7  ;;  %v18620_v0 = vcombine.high %v202_v59, %v302_v60 }
 0x690   :  { %22401 = vmatprep.subr.bf16.mxu1 %v24172_v10 }
 0x691   :  { %18079 = vmatmul.mubr.bf16.vlgmr.msra.gmra.mrb[192].mxu0 %v18613_v3 }
 0x692   :  { %18120 = vmatmul.mubr.bf16.vlgmr.msra.gmra.mrb[192].mxu1 %v18615_v8  ;;  %22380 = vmatpush3.bf16.msra.mxu0 %v24173_v11 }
 0x693   :  { %22402 = vmatpush3.bf16.msra.mxu1 %v24174_v12  ;;  %22381 = vmatprep.subr.bf16.mxu0 %v24175_v13 }
 0x694   :  { %22403 = vmatprep.subr.bf16.mxu1 %v24176_v14  ;;  %18201 = vmatprep.mubr.bf16.mxu1 %v18620_v0 }
 0x696   :  { %22382 = vmatpush3.bf16.msra.mxu0 %v24177_v15 }
 0x697   :  { %22404 = vmatpush3.bf16.msra.mxu1 %v24178_v16  ;;  %22383 = vmatprep.subr.bf16.mxu0 %v24179_v17 }
 0x698   :  { %22405 = vmatprep.subr.bf16.mxu1 %v24180_v18 }
 0x69a   :  { %22384 = vmatpush3.bf16.msra.mxu0 %v24181_v19 }
 0x69b   :  { %22406 = vmatpush3.bf16.msra.mxu1 %v24182_v20  ;;  %22385 = vmatprep.subr.bf16.mxu0 %v24183_v21 }
 0x69c   :  { %22407 = vmatprep.subr.bf16.mxu1 %v24184_v22 }
 0x69e   :  { %22386 = vmatpush3.bf16.msra.mxu0 %v24185_v23 }
 0x69f   :  { %22408 = vmatpush3.bf16.msra.mxu1 %v24186_v26  ;;  %22387 = vmatprep.subr.bf16.mxu0 %v24187_v28 }
 0x6a0   :  { %22409 = vmatprep.subr.bf16.mxu1 %v24188_v32 }
 0x6a2   :  { %22388 = vmatpush3.bf16.msra.mxu0 %v24189_v34  ;;  %v18213_v34 = vld [vmem:[#allocation6 + $0x8] sm:$0xff] }
 0x6a3   :  { %22410 = vmatpush3.bf16.msra.mxu1 %v24190_v37  ;;  %22389 = vmatprep.subr.bf16.mxu0 %v24191_v40  ;;  %v18215_v37 = vld [vmem:[#allocation6 + $0x18] sm:$0xff]  ;;  %v18217_v40 = vld [vmem:[#allocation6 + $0x28] sm:$0xff] }
 0x6a4   :  { %v22087_v24 = vpop.f32.mrb[168].mxu0  ;;  %22411 = vmatprep.subr.bf16.mxu1 %v24192_v43  ;;  %v18219_v43 = vld [vmem:[#allocation6 + $0x38] sm:$0xff] }
 0x6a5   :  { %v22109_v25 = vpop.f32.mrb[168].mxu1  ;;  %v22088_v27 = vpop.f32.mrb[169].mxu0 }
 0x6a6   :  { %v22089_v29 = vadd.f32 %v22088_v27, %v22087_v24  ;;  %v22110_v30 = vpop.f32.mrb[169].mxu1  ;;  %v22090_v33 = vpop.f32.mrb[170].mxu0  ;;  %22390 = vmatpush3.bf16.msra.mxu0 %v24193_v45  ;;  %v18220_v45 = vld [vmem:[#allocation6 + $0x40] sm:$0xff] }
 0x6a7   :  { %v22111_v31 = vadd.f32 %v22110_v30, %v22109_v25  ;;  %v22112_v36 = vpop.f32.mrb[170].mxu1  ;;  %v22091_v38 = vpop.f32.mrb[171].mxu0  ;;  %22412 = vmatpush3.bf16.msra.mxu1 %v24194_v47  ;;  %22391 = vmatprep.subr.bf16.mxu0 %v24195_v49 }
 0x6a8   :  { %v17589_v35 = vadd.f32 %v22089_v29, %v25286_v48  ;;  %v22092_v39 = vadd.f32 %v22091_v38, %v22090_v33  ;;  %v22113_v42 = vpop.f32.mrb[171].mxu1  ;;  %22413 = vmatprep.subr.bf16.mxu1 %v24196_v50  ;;  %v18212_v33 = vld [vmem:[#allocation6] sm:$0xff] }
 0x6a9   :  { %v22114_v44 = vadd.f32 %v22113_v42, %v22112_v36  ;;  %v22529_v36 = vpack.c.bf16 %v18213_v34, %v18212_v33  ;;  %v18218_v42 = vld [vmem:[#allocation6 + $0x30] sm:$0xff] }
 0x6aa   :  { %v17630_v41 = vadd.f32 %v22111_v31, %v17589_v35  ;;  %v17592_v46 = vadd.f32 %v22092_v39, %v25289_v56  ;;  %22392 = vmatpush3.bf16.msra.mxu0 %v24197_v51  ;;  %v201_v56 = vld [vmem:[%s25323_s0 + $0x310] sm:$0xff] }
 0x6ab   :  { %22414 = vmatpush3.bf16.msra.mxu1 %v24198_v52  ;;  %22393 = vmatprep.subr.bf16.mxu0 %v24199_v53  ;;  %v18617_v61 = vcombine.low %v201_v56, %v301_v58  ;;  %v18618_v62 = vcombine.high %v201_v56, %v301_v58  ;;  %v18214_v35 = vld [vmem:[#allocation6 + $0x10] sm:$0xff]  ;;  %v18223_v58 = vld [vmem:[#allocation6 + $0x58] sm:$0xff] }
 0x6ac   :  { %v17633_v48 = vadd.f32 %v22114_v44, %v17592_v46  ;;  %22415 = vmatprep.subr.bf16.mxu1 %v24200_v54  ;;  %v22533_v38 = vpack.c.bf16 %v18215_v37, %v18214_v35  ;;  %v22541_v44 = vpack.c.bf16 %v18219_v43, %v18218_v42  ;;  %v18221_v46 = vld [vmem:[#allocation6 + $0x48] sm:$0xff]  ;;  %v18222_v56 = vld [vmem:[#allocation6 + $0x50] sm:$0xff] }
 0x6ad   :  { %18160 = vmatprep.mubr.bf16.mxu0 %v18618_v62  ;;  %v22545_v47 = vpack.c.bf16 %v18221_v46, %v18220_v45  ;;  %v22549_v62 = vpack.c.bf16 %v18223_v58, %v18222_v56  ;;  %v18324_v35 = vld [vmem:[#allocation9 + $0x60] sm:$0xff] }
 0x6ae   :  { %22394 = vmatpush3.bf16.msra.mxu0 %v24201_v55 }
 0x6af   :  { %22416 = vmatpush3.bf16.msra.mxu1 %v24202_v57  ;;  %22530 = vmatprep.subr.bf16.mxu0 %v22529_v36 }
 0x6b1   :  { %18161 = vmatmul.mubr.bf16.vlgmr.msra.gmra.mrb[196].mxu0 %v18617_v61 }
 0x6b2   :  { %18202 = vmatmul.mubr.bf16.vlgmr.msra.gmra.mrb[196].mxu1 %v18619_v63  ;;  %22532 = vmatpush3.bf16.msra.mxu0 %v22529_v36  ;;  %v18325_v36 = vld [vmem:[#allocation9 + $0x68] sm:$0xff] }
 0x6b3   :  { %22534 = vmatprep.subr.bf16.mxu0 %v22533_v38  ;;  %v22585_v42 = vpack.c.bf16 %v18325_v36, %v18324_v35  ;;  %v20221_v35 = vld [vmem:[#allocation7] ss:$0 sm:$0xff] }
 0x6b6   :  { %22536 = vmatpush3.bf16.msra.mxu0 %v22533_v38 }
 0x6c4   :  { %v22131_v1 = vpop.f32.mrb[172].mxu0 }
 0x6c5   :  { %v22153_v2 = vpop.f32.mrb[172].mxu1  ;;  %v22132_v3 = vpop.f32.mrb[173].mxu0 }
 0x6c6   :  { %v22154_v4 = vpop.f32.mrb[173].mxu1  ;;  %v22133_v5 = vadd.f32 %v22132_v3, %v22131_v1  ;;  %v22134_v8 = vpop.f32.mrb[174].mxu0  ;;  %v18225_v3 = vld [vmem:[#allocation6 + $0x68] sm:$0xff] }
 0x6c7   :  { %v22155_v6 = vadd.f32 %v22154_v4, %v22153_v2  ;;  %v22156_v9 = vpop.f32.mrb[174].mxu1  ;;  %v22135_v7 = vpop.f32.mrb[175].mxu0  ;;  %v18224_v2 = vld [vmem:[#allocation6 + $0x60] sm:$0xff] }
 0x6c8   :  { %v22157_v10 = vpop.f32.mrb[175].mxu1  ;;  %v17671_v11 = vadd.f32 %v22133_v5, %v17630_v41  ;;  %v22136_v12 = vadd.f32 %v22135_v7, %v22134_v8  ;;  %v18216_v41 = vld [vmem:[#allocation6 + $0x20] sm:$0xff]  ;;  %v22553_v5 = vpack.c.bf16 %v18225_v3, %v18224_v2  ;;  %v18227_v8 = vld [vmem:[#allocation6 + $0x78] sm:$0xff] }
 0x6c9   :  { %v22158_v13 = vadd.f32 %v22157_v10, %v22156_v9  ;;  %v22537_v39 = vpack.c.bf16 %v18217_v40, %v18216_v41  ;;  %v18312_v7 = vld [vmem:[#allocation9] sm:$0xff]  ;;  %v18313_v10 = vld [vmem:[#allocation9 + $0x8] sm:$0xff] }
 0x6ca   :  { %v17712_v14 = vadd.f32 %v22155_v6, %v17671_v11  ;;  %v17674_v15 = vadd.f32 %v22136_v12, %v17633_v48  ;;  %v18226_v6 = vld [vmem:[#allocation6 + $0x70] sm:$0xff]  ;;  %v22561_v12 = vpack.c.bf16 %v18313_v10, %v18312_v7 }
 0x6cb   :  { %22538 = vmatprep.subr.bf16.mxu0 %v22537_v39  ;;  %v22557_v9 = vpack.c.bf16 %v18227_v8, %v18226_v6  ;;  %v18314_v11 = vld [vmem:[#allocation9 + $0x10] sm:$0xff] }
 0x6cc   :  { %v17715_v16 = vadd.f32 %v22158_v13, %v17674_v15  ;;  %22540 = vmatpush3.bf16.msra.mxu0 %v22537_v39  ;;  %v18315_v13 = vld [vmem:[#allocation9 + $0x18] sm:$0xff]  ;;  %v18316_v15 = vld [vmem:[#allocation9 + $0x20] sm:$0xff]  ;;  %22562 = vmatprep.subr.bf16.mxu1 %v22561_v12 }
 0x6cd   :  { %22542 = vmatprep.subr.bf16.mxu0 %v22541_v44  ;;  %22564 = vmatpush3.bf16.msra.mxu1 %v22561_v12 }
 0x6d0   :  { %22544 = vmatpush3.bf16.msra.mxu0 %v22541_v44 }
 0x6d1   :  { %22546 = vmatprep.subr.bf16.mxu0 %v22545_v47 }
 0x6d4   :  { %22548 = vmatpush3.bf16.msra.mxu0 %v22545_v47 }
 0x6d5   :  { %22550 = vmatprep.subr.bf16.mxu0 %v22549_v62 }
 0x6d8   :  { %22552 = vmatpush3.bf16.msra.mxu0 %v22549_v62 }
 0x6d9   :  { %22554 = vmatprep.subr.bf16.mxu0 %v22553_v5 }
 0x6dc   :  { %22556 = vmatpush3.bf16.msra.mxu0 %v22553_v5 }
 0x6dd   :  { %22558 = vmatprep.subr.bf16.mxu0 %v22557_v9 }
 0x6e0   :  { %22560 = vmatpush3.bf16.msra.mxu0 %v22557_v9 }
 0x6e4   :  { %v22175_v17 = vpop.f32.mrb[176].mxu0 }
 0x6e5   :  { %v22197_v18 = vpop.f32.mrb[176].mxu1  ;;  %v22176_v19 = vpop.f32.mrb[177].mxu0 }
 0x6e6   :  { %v22177_v20 = vadd.f32 %v22176_v19, %v22175_v17  ;;  %v22198_v21 = vpop.f32.mrb[177].mxu1  ;;  %v22178_v22 = vpop.f32.mrb[178].mxu0  ;;  %v18319_v19 = vld [vmem:[#allocation9 + $0x38] sm:$0xff] }
 0x6e7   :  { %v22199_v24 = vadd.f32 %v22198_v21, %v22197_v18  ;;  %v22200_v23 = vpop.f32.mrb[178].mxu1  ;;  %v22179_v25 = vpop.f32.mrb[179].mxu0  ;;  %v18318_v18 = vld [vmem:[#allocation9 + $0x30] sm:$0xff]  ;;  %v18320_v21 = vld [vmem:[#allocation9 + $0x40] sm:$0xff] }
 0x6e8   :  { %v17753_v26 = vadd.f32 %v22177_v20, %v17712_v14  ;;  %v22180_v27 = vadd.f32 %v22179_v25, %v22178_v22  ;;  %v22201_v28 = vpop.f32.mrb[179].mxu1  ;;  %v22565_v14 = vpack.c.bf16 %v18315_v13, %v18314_v11  ;;  %v22573_v20 = vpack.c.bf16 %v18319_v19, %v18318_v18  ;;  %v18321_v22 = vld [vmem:[#allocation9 + $0x48] sm:$0xff]  ;;  %v18323_v25 = vld [vmem:[#allocation9 + $0x58] sm:$0xff] }
 0x6e9   :  { %v22202_v29 = vadd.f32 %v22201_v28, %v22200_v23  ;;  %v18322_v23 = vld [vmem:[#allocation9 + $0x50] sm:$0xff] }
 0x6ea   :  { %v17794_v30 = vadd.f32 %v22199_v24, %v17753_v26  ;;  %v17756_v32 = vadd.f32 %v22180_v27, %v17715_v16  ;;  %v18317_v16 = vld [vmem:[#allocation9 + $0x28] sm:$0xff]  ;;  %22566 = vmatprep.subr.bf16.mxu1 %v22565_v14  ;;  %v22577_v24 = vpack.c.bf16 %v18321_v22, %v18320_v21 }
 0x6eb   :  { %v22569_v17 = vpack.c.bf16 %v18317_v16, %v18316_v15  ;;  %22568 = vmatpush3.bf16.msra.mxu1 %v22565_v14 }
 0x6ec   :  { %v17797_v31 = vadd.f32 %v22202_v29, %v17756_v32 }
 0x6ed   :  { %22570 = vmatprep.subr.bf16.mxu1 %v22569_v17 }
 0x6ef   :  { %22572 = vmatpush3.bf16.msra.mxu1 %v22569_v17 }
 0x6f0   :  { %22574 = vmatprep.subr.bf16.mxu1 %v22573_v20 }
 0x6f3   :  { %22576 = vmatpush3.bf16.msra.mxu1 %v22573_v20 }
 0x6f4   :  { %22578 = vmatprep.subr.bf16.mxu1 %v22577_v24 }
 0x6f7   :  { %22580 = vmatpush3.bf16.msra.mxu1 %v22577_v24 }
 0x704   :  { %v22219_v48 = vpop.f32.mrb[180].mxu0 }
 0x705   :  { %v22241_v49 = vpop.f32.mrb[180].mxu1  ;;  %v22220_v50 = vpop.f32.mrb[181].mxu0 }
 0x706   :  { %v22221_v51 = vadd.f32 %v22220_v50, %v22219_v48  ;;  %v22242_v52 = vpop.f32.mrb[181].mxu1  ;;  %v22222_v53 = vpop.f32.mrb[182].mxu0 }
 0x707   :  { %v22243_v54 = vadd.f32 %v22242_v52, %v22241_v49  ;;  %v22244_v55 = vpop.f32.mrb[182].mxu1  ;;  %v22223_v57 = vpop.f32.mrb[183].mxu0 }
 0x708   :  { %v17835_v59 = vadd.f32 %v22221_v51, %v17794_v30  ;;  %v22224_v60 = vadd.f32 %v22223_v57, %v22222_v53  ;;  %v22245_v61 = vpop.f32.mrb[183].mxu1  ;;  %v22581_v30 = vpack.c.bf16 %v18323_v25, %v18322_v23 }
 0x709   :  { %v22246_v63 = vadd.f32 %v22245_v61, %v22244_v55 }
 0x70a   :  { %v17876_v0 = vadd.f32 %v22243_v54, %v17835_v59  ;;  %v17838_v1 = vadd.f32 %v22224_v60, %v17797_v31  ;;  %22582 = vmatprep.subr.bf16.mxu1 %v22581_v30 }
 0x70b   :  { %22584 = vmatpush3.bf16.msra.mxu1 %v22581_v30 }
 0x70c   :  { %v17879_v4 = vadd.f32 %v22246_v63, %v17838_v1  ;;  %22586 = vmatprep.subr.bf16.mxu1 %v22585_v42 }
 0x70f   :  { %22588 = vmatpush3.bf16.msra.mxu1 %v22585_v42  ;;  %v20222_v42 = vld [vmem:[#allocation10] ss:$0 sm:$0xff] }
 0x724   :  { %v22263_v26 = vpop.f32.mrb[184].mxu0 }
 0x725   :  { %v22285_v27 = vpop.f32.mrb[184].mxu1  ;;  %v22264_v28 = vpop.f32.mrb[185].mxu0 }
 0x726   :  { %v22286_v29 = vpop.f32.mrb[185].mxu1  ;;  %v22265_v32 = vadd.f32 %v22264_v28, %v22263_v26  ;;  %v22266_v33 = vpop.f32.mrb[186].mxu0 }
 0x727   :  { %v22287_v31 = vadd.f32 %v22286_v29, %v22285_v27  ;;  %v22288_v34 = vpop.f32.mrb[186].mxu1  ;;  %v22267_v37 = vpop.f32.mrb[187].mxu0 }
 0x728   :  { %v22289_v38 = vpop.f32.mrb[187].mxu1  ;;  %v17917_v41 = vadd.f32 %v22265_v32, %v17876_v0  ;;  %v22268_v40 = vadd.f32 %v22267_v37, %v22266_v33  ;;  %v18327_v33 = vld [vmem:[#allocation9 + $0x78] sm:$0xff] }
 0x729   :  { %v22290_v39 = vadd.f32 %v22289_v38, %v22288_v34 }
 0x72a   :  { %v17958_v43 = vadd.f32 %v22287_v31, %v17917_v41  ;;  %v17920_v44 = vadd.f32 %v22268_v40, %v17879_v4  ;;  %v18326_v31 = vld [vmem:[#allocation9 + $0x70] sm:$0xff] }
 0x72b   :  { %v22589_v34 = vpack.c.bf16 %v18327_v33, %v18326_v31 }
 0x72c   :  { %v17961_v45 = vadd.f32 %v22290_v39, %v17920_v44 }
 0x72d   :  { %22590 = vmatprep.subr.bf16.mxu1 %v22589_v34 }
 0x72e   :  { %22592 = vmatpush3.bf16.msra.mxu1 %v22589_v34 }
 0x744   :  { %v22307_v46 = vpop.f32.mrb[188].mxu0 }
 0x745   :  { %v22329_v47 = vpop.f32.mrb[188].mxu1  ;;  %v22308_v48 = vpop.f32.mrb[189].mxu0 }
 0x746   :  { %v22309_v49 = vadd.f32 %v22308_v48, %v22307_v46  ;;  %v22330_v50 = vpop.f32.mrb[189].mxu1  ;;  %v22310_v51 = vpop.f32.mrb[190].mxu0 }
 0x747   :  { %v22331_v52 = vadd.f32 %v22330_v50, %v22329_v47  ;;  %v22332_v53 = vpop.f32.mrb[190].mxu1  ;;  %v22311_v54 = vpop.f32.mrb[191].mxu0 }
 0x748   :  { %v17999_v55 = vadd.f32 %v22309_v49, %v17958_v43  ;;  %v22312_v57 = vadd.f32 %v22311_v54, %v22310_v51  ;;  %v22333_v56 = vpop.f32.mrb[191].mxu1 }
 0x749   :  { %v22334_v58 = vadd.f32 %v22333_v56, %v22332_v53 }
 0x74a   :  { %v18040_v59 = vadd.f32 %v22331_v52, %v17999_v55  ;;  %v18002_v60 = vadd.f32 %v22312_v57, %v17961_v45 }
 0x74c   :  { %v18043_v61 = vadd.f32 %v22334_v58, %v18002_v60 }
 0x764   :  { %v22351_v62 = vpop.f32.mrb[192].mxu0 }
 0x765   :  { %v22373_v63 = vpop.f32.mrb[192].mxu1  ;;  %v22352_v0 = vpop.f32.mrb[193].mxu0 }
 0x766   :  { %v22353_v1 = vadd.f32 %v22352_v0, %v22351_v62  ;;  %v22374_v2 = vpop.f32.mrb[193].mxu1  ;;  %v22354_v3 = vpop.f32.mrb[194].mxu0 }
 0x767   :  { %v22375_v4 = vadd.f32 %v22374_v2, %v22373_v63  ;;  %v22376_v5 = vpop.f32.mrb[194].mxu1  ;;  %v22355_v6 = vpop.f32.mrb[195].mxu0 }
 0x768   :  { %v18081_v8 = vadd.f32 %v22353_v1, %v18040_v59  ;;  %v22356_v9 = vadd.f32 %v22355_v6, %v22354_v3  ;;  %v22377_v7 = vpop.f32.mrb[195].mxu1 }
 0x769   :  { %v22378_v10 = vadd.f32 %v22377_v7, %v22376_v5 }
 0x76a   :  { %v18122_v11 = vadd.f32 %v22375_v4, %v18081_v8  ;;  %v18084_v12 = vadd.f32 %v22356_v9, %v18043_v61 }
 0x76c   :  { %v18125_v13 = vadd.f32 %v22378_v10, %v18084_v12 }
 0x784   :  { %v22395_v14 = vpop.f32.mrb[196].mxu0 }
 0x785   :  { %v22417_v15 = vpop.f32.mrb[196].mxu1  ;;  %v22396_v16 = vpop.f32.mrb[197].mxu0 }
 0x786   :  { %v22418_v17 = vpop.f32.mrb[197].mxu1  ;;  %v22397_v18 = vadd.f32 %v22396_v16, %v22395_v14  ;;  %v22398_v20 = vpop.f32.mrb[198].mxu0 }
 0x787   :  { %v22419_v19 = vadd.f32 %v22418_v17, %v22417_v15  ;;  %v22420_v21 = vpop.f32.mrb[198].mxu1  ;;  %v22399_v22 = vpop.f32.mrb[199].mxu0 }
 0x788   :  { %v22421_v24 = vpop.f32.mrb[199].mxu1  ;;  %v18163_v23 = vadd.f32 %v22397_v18, %v18122_v11  ;;  %v22400_v25 = vadd.f32 %v22399_v22, %v22398_v20 }
 0x789   :  { %v22422_v26 = vadd.f32 %v22421_v24, %v22420_v21 }
 0x78a   :  { %v18204_v27 = vadd.f32 %v22419_v19, %v18163_v23  ;;  %v18166_v28 = vadd.f32 %v22400_v25, %v18125_v13 }
 0x78c   :  { %v18210_v29 = vmax.f32 %v18204_v27, 0.0  ;;  %v18207_v30 = vadd.f32 %v22422_v26, %v18166_v28 }
 0x78e   :  { %v18211_v32 = vmax.f32 %v18207_v30, 0.0  ;;  %22491 = vmatprep.mubr.f32.mxu0 %v18210_v29 }
 0x790   :  { %22492 = vmatmul.mubr.f32.vlgmr.msra.gmra.mrb[200].mxu0 %v18211_v32 }
 0x863   :  { %v22493_v36 = vpop.f32.mrb[200].mxu0 }
 0x864   :  { %v18307_v37 = vadd.f32 %v22493_v36, %v20221_v35  ;;  %v18301_v38 = vpop.f32.mrb[201].mxu0 }
 0x865   :  { %v18302_v41 = vadd.f32 %v20221_v35, %v18301_v38 }
 0x866   :  { %v18311_v39 = vmax.f32 %v18307_v37, 0.0 }
 0x867   :  { %v18310_v40 = vmax.f32 %v18302_v41, 0.0 }
 0x869   :  { %22526 = vmatprep.mubr.f32.mxu1 %v18310_v40 }
 0x86a   :  { %22527 = vmatmul.mubr.f32.vlgmr.msra.gmra.mrb[200].mxu1 %v18311_v39 }
 0x93d   :  { %v22528_v43 = vpop.f32.mrb[200].mxu1 }
 0x93e   :  { %v18407_v44 = vadd.f32 %v22528_v43, %v20222_v42  ;;  %v18401_v45 = vpop.f32.mrb[201].mxu1 }
 0x93f   :  { %v18402_v46 = vadd.f32 %v20222_v42, %v18401_v45 }
 0x940   :  { %18411 = vst [vmem:[%s25330_s7 + $0x8] sm:$0xff] %v18407_v44 }
 0x941   :  { %18410 = vst [vmem:[%s25330_s7] sm:$0xff] %v18402_v46 }
 0x942   :  { %18416 = vsyncpa [#allocation3], 1 }
 0x943   :  { %18417 = vsyncpa [#allocation5], 1 }
 0x944   :  { %18418 = vsyncpa [#allocation8], 1 }
 0x945   :  { %18419 = vsyncpa [#allocation11], 1 }

</bundles_post_ra>
